<compile_context>
chip_gen: v7x
topology: tpu7x:2x2x1
jax: 0.10.0
libtpu: 0.0.40
codegen_flags: <defaults>
</compile_context>

<pallas_src>
import functools

import numpy as np
import jax
import jax.numpy as jnp
from jax.experimental import pallas as pl
from jax.experimental.pallas import tpu as pltpu


# ----------------------------------------------------------------------------
# Fused kernel: the whole autoencoder forward, VMEM resident.
#   refs = [A0, (R, M, bias) x 8 layers, enc_out, dec_out]
#   A0:   (B*H0, W0*C0) f32
#   R_l:  (3, B*H_out, B*H_in) f32     M_l: (3, W_in*C_in, W_out*C_out) f32
#   bias: (1, W_out*C_out) f32
# ----------------------------------------------------------------------------
def _fused_forward_kernel(*refs):
    a0_ref = refs[0]
    enc_ref, dec_ref = refs[-2], refs[-1]
    lrefs = refs[1:-2]
    n_layers = len(lrefs) // 3
    enc_layer = n_layers // 2 - 1          # encoder output after layer e4

    a = a0_ref[...]
    for l in range(n_layers):
        r_ref, m_ref, bias_ref = lrefs[3 * l], lrefs[3 * l + 1], lrefs[3 * l + 2]
        # sum over the 3 vertical taps; each tap = two small dense MXU matmuls.
        acc = jnp.dot(r_ref[0], a, preferred_element_type=jnp.float32)
        acc = jnp.dot(acc, m_ref[0], preferred_element_type=jnp.float32)
        for k in (1, 2):
            t = jnp.dot(r_ref[k], a, preferred_element_type=jnp.float32)
            acc = acc + jnp.dot(t, m_ref[k], preferred_element_type=jnp.float32)
        z = acc + bias_ref[...]            # (1, N) broadcasts over rows
        a = 1.0 / (1.0 + jnp.exp(-z))      # exact sigmoid (EUP exp + VPU divide)
        if l == enc_layer:
            enc_ref[...] = a
    dec_ref[...] = a


# ----------------------------------------------------------------------------
# Host-side constant construction (one-time, numpy): fold stride / padding /
# dilation / output_padding + weights into the R / M / bias matrices.
# ----------------------------------------------------------------------------
def _conv_consts(w, b, H, W, stride, pad, batch):
    """Conv2d, PyTorch weight layout (Cout, Cin, kh, kw)."""
    w = np.asarray(w, np.float32)
    b = np.asarray(b, np.float32)
    Cout, Cin, kh, kw = w.shape
    Ho = (H + 2 * pad - kh) // stride + 1
    Wo = (W + 2 * pad - kw) // stride + 1
    R = np.zeros((kh, batch * Ho, batch * H), np.float32)
    M = np.zeros((kh, W * Cin, Wo * Cout), np.float32)
    for ki in range(kh):
        for bb in range(batch):
            for ho in range(Ho):
                h = stride * ho + ki - pad
                if 0 <= h < H:
                    R[ki, bb * Ho + ho, bb * H + h] = 1.0
        for kj in range(kw):
            for wo in range(Wo):
                wi = stride * wo + kj - pad
                if 0 <= wi < W:
                    M[ki, wi * Cin:(wi + 1) * Cin,
                      wo * Cout:(wo + 1) * Cout] += w[:, :, ki, kj].T
    bias = np.tile(b, Wo).reshape(1, Wo * Cout)
    return R, M, bias, Ho, Wo, Cout


def _convT_consts(w, b, H, W, stride, pad, outpad, batch):
    """ConvTranspose2d, PyTorch weight layout (Cin, Cout, kh, kw)."""
    w = np.asarray(w, np.float32)
    b = np.asarray(b, np.float32)
    Cin, Cout, kh, kw = w.shape
    Ho = (H - 1) * stride - 2 * pad + kh + outpad
    Wo = (W - 1) * stride - 2 * pad + kw + outpad
    R = np.zeros((kh, batch * Ho, batch * H), np.float32)
    M = np.zeros((kh, W * Cin, Wo * Cout), np.float32)
    for ki in range(kh):
        for bb in range(batch):
            for ho in range(Ho):
                num = ho + pad - ki
                if num % stride == 0 and 0 <= num // stride < H:
                    R[ki, bb * Ho + ho, bb * H + num // stride] = 1.0
        for kj in range(kw):
            for wo in range(Wo):
                num = wo + pad - kj
                if num % stride == 0 and 0 <= num // stride < W:
                    wi = num // stride
                    M[ki, wi * Cin:(wi + 1) * Cin,
                      wo * Cout:(wo + 1) * Cout] += w[:, :, ki, kj]
    bias = np.tile(b, Wo).reshape(1, Wo * Cout)
    return R, M, bias, Ho, Wo, Cout


_ENC_CFG = (("e1", 2, 1), ("e2", 2, 1), ("e3", 2, 1), ("e4", 2, 1))
_DEC_CFG = (("d1", 2, 1, 1), ("d2", 2, 1, 0), ("d3", 2, 1, 1), ("d4", 2, 1, 1))


def prepare_constants(params, batch, H=28, W=28):
    """PyTorch-layout params -> flat tuple of (R, M, bias) per layer."""
    consts = []
    h, w = H, W
    for name, s, p in _ENC_CFG:
        R, M, bias, h, w, c = _conv_consts(
            params[name + "_w"], params[name + "_b"], h, w, s, p, batch)
        consts += [jnp.asarray(R), jnp.asarray(M), jnp.asarray(bias)]
    enc_hwc = (h, w, c)
    for name, s, p, op in _DEC_CFG:
        R, M, bias, h, w, c = _convT_consts(
            params[name + "_w"], params[name + "_b"], h, w, s, p, op, batch)
        consts += [jnp.asarray(R), jnp.asarray(M), jnp.asarray(bias)]
    dec_hwc = (h, w, c)
    return tuple(consts), enc_hwc, dec_hwc


# ----------------------------------------------------------------------------
# Forward: single pallas_call for the whole model.
# ----------------------------------------------------------------------------
@functools.partial(jax.jit, static_argnums=(2, 3))
def fused_forward(consts, x_nchw, enc_hwc, dec_hwc):
    B, Cin, H, W = x_nchw.shape
    a0 = x_nchw.transpose(0, 2, 3, 1).reshape(B * H, W * Cin).astype(jnp.float32)
    eh, ew, ec = enc_hwc
    dh, dw, dc = dec_hwc
    enc2d, dec2d = pl.pallas_call(
        _fused_forward_kernel,
        out_shape=(jax.ShapeDtypeStruct((B * eh, ew * ec), jnp.float32),
                   jax.ShapeDtypeStruct((B * dh, dw * dc), jnp.float32)),
        compiler_params=pltpu.CompilerParams(vmem_limit_bytes=32 * 1024 * 1024),
    )(a0, *consts)
    enc = enc2d.reshape(B, eh, ew, ec).transpose(0, 3, 1, 2)   # NCHW
    dec = dec2d.reshape(B, dh, dw, dc).transpose(0, 3, 1, 2)   # NCHW
    return enc, dec


# ----------------------------------------------------------------------------
# Parameters (PyTorch layouts) + plain-XLA f32 reference for correctness check
# ----------------------------------------------------------------------------
def init_params(key):
    def p(key, shape, fan_in):
        scale = 1.0 / jnp.sqrt(jnp.float32(fan_in))
        return jax.random.uniform(key, shape, jnp.float32, -scale, scale)

    ks = jax.random.split(key, 16)
    return {
        # encoder Conv2d weights: (Cout, Cin, 3, 3)
        "e1_w": p(ks[0], (32, 1, 3, 3), 1 * 9),   "e1_b": p(ks[1], (32,), 1 * 9),
        "e2_w": p(ks[2], (32, 32, 3, 3), 32 * 9), "e2_b": p(ks[3], (32,), 32 * 9),
        "e3_w": p(ks[4], (32, 32, 3, 3), 32 * 9), "e3_b": p(ks[5], (32,), 32 * 9),
        "e4_w": p(ks[6], (10, 32, 3, 3), 32 * 9), "e4_b": p(ks[7], (10,), 32 * 9),
        # decoder ConvTranspose2d weights: (Cin, Cout, 3, 3)
        "d1_w": p(ks[8], (10, 32, 3, 3), 10 * 9),  "d1_b": p(ks[9], (32,), 10 * 9),
        "d2_w": p(ks[10], (32, 32, 3, 3), 32 * 9), "d2_b": p(ks[11], (32,), 32 * 9),
        "d3_w": p(ks[12], (32, 32, 3, 3), 32 * 9), "d3_b": p(ks[13], (32,), 32 * 9),
        "d4_w": p(ks[14], (32, 1, 3, 3), 32 * 9),  "d4_b": p(ks[15], (1,), 32 * 9),
    }


def _ref_forward(params, x):
    def conv(h, w, b, s, p):
        y = jax.lax.conv_general_dilated(
            h, w, window_strides=(s, s), padding=[(p, p), (p, p)],
            dimension_numbers=("NCHW", "OIHW", "NCHW"))
        return jax.nn.sigmoid(y + b[None, :, None, None])

    def convT(h, w, b, s, p, op):
        kh, kw = w.shape[2], w.shape[3]
        wconv = jnp.flip(w, axis=(2, 3)).transpose(1, 0, 2, 3)
        y = jax.lax.conv_general_dilated(
            h, wconv, window_strides=(1, 1),
            padding=[(kh - 1 - p, kh - 1 - p + op), (kw - 1 - p, kw - 1 - p + op)],
            lhs_dilation=(s, s),
            dimension_numbers=("NCHW", "OIHW", "NCHW"))
        return jax.nn.sigmoid(y + b[None, :, None, None])

    h = conv(x, params["e1_w"], params["e1_b"], 2, 1)
    h = conv(h, params["e2_w"], params["e2_b"], 2, 1)
    h = conv(h, params["e3_w"], params["e3_b"], 2, 1)
    enc = conv(h, params["e4_w"], params["e4_b"], 2, 1)
    h = convT(enc, params["d1_w"], params["d1_b"], 2, 1, 1)
    h = convT(h, params["d2_w"], params["d2_b"], 2, 1, 0)
    h = convT(h, params["d3_w"], params["d3_b"], 2, 1, 1)
    dec = convT(h, params["d4_w"], params["d4_b"], 2, 1, 1)
    return enc, dec


if __name__ == "__main__":
    key = jax.random.PRNGKey(0)
    pkey, xkey = jax.random.split(key)
    params = init_params(pkey)

    # MNIST-like input: batch=2, 1 channel, 28x28 (enc_output_size = 10*2*2 = 40)
    B = 2
    x = jax.random.uniform(xkey, (B, 1, 28, 28), jnp.float32)

    consts, enc_hwc, dec_hwc = prepare_constants(params, B)
    enc, dec = fused_forward(consts, x, enc_hwc, dec_hwc)
    enc = jax.block_until_ready(enc)
    dec = jax.block_until_ready(dec)

    assert enc.shape == (B, 10, 2, 2), enc.shape
    assert dec.shape == (B, 1, 28, 28), dec.shape
    assert enc.reshape(B, -1).shape[1] == 40  # enc_output_size

    # Correctness vs the plain-XLA f32 reference (f32 path + exact sigmoid).
    enc_ref, dec_ref = _ref_forward(params, x)
    err_enc = float(jnp.max(jnp.abs(enc - enc_ref)))
    err_dec = float(jnp.max(jnp.abs(dec - dec_ref)))
    assert err_enc < 5e-3 and err_dec < 5e-3, (err_enc, err_dec)

    print("KERNEL_OK")
</pallas_src>

<mosaic_0001>
module attributes {stable_mosaic.version = 11 : i64} {
  func.func @_fused_forward_kernel(%arg0: memref<56x28xf32, #tpu.memory_space<vmem>>, %arg1: memref<3x28x56xf32, #tpu.memory_space<vmem>>, %arg2: memref<3x28x448xf32, #tpu.memory_space<vmem>>, %arg3: memref<1x448xf32, #tpu.memory_space<vmem>>, %arg4: memref<3x14x28xf32, #tpu.memory_space<vmem>>, %arg5: memref<3x448x224xf32, #tpu.memory_space<vmem>>, %arg6: memref<1x224xf32, #tpu.memory_space<vmem>>, %arg7: memref<3x8x14xf32, #tpu.memory_space<vmem>>, %arg8: memref<3x224x128xf32, #tpu.memory_space<vmem>>, %arg9: memref<1x128xf32, #tpu.memory_space<vmem>>, %arg10: memref<3x4x8xf32, #tpu.memory_space<vmem>>, %arg11: memref<3x128x20xf32, #tpu.memory_space<vmem>>, %arg12: memref<1x20xf32, #tpu.memory_space<vmem>>, %arg13: memref<3x8x4xf32, #tpu.memory_space<vmem>>, %arg14: memref<3x20x128xf32, #tpu.memory_space<vmem>>, %arg15: memref<1x128xf32, #tpu.memory_space<vmem>>, %arg16: memref<3x14x8xf32, #tpu.memory_space<vmem>>, %arg17: memref<3x128x224xf32, #tpu.memory_space<vmem>>, %arg18: memref<1x224xf32, #tpu.memory_space<vmem>>, %arg19: memref<3x28x14xf32, #tpu.memory_space<vmem>>, %arg20: memref<3x224x448xf32, #tpu.memory_space<vmem>>, %arg21: memref<1x448xf32, #tpu.memory_space<vmem>>, %arg22: memref<3x56x28xf32, #tpu.memory_space<vmem>>, %arg23: memref<3x448x28xf32, #tpu.memory_space<vmem>>, %arg24: memref<1x28xf32, #tpu.memory_space<vmem>>, %arg25: memref<4x20xf32, #tpu.memory_space<vmem>>, %arg26: memref<56x28xf32, #tpu.memory_space<vmem>>) attributes {dimension_semantics = [], scalar_prefetch = 0 : i64, scratch_operands = 0 : i64, tpu.core_type = #tpu.core_type<tc>} {
    %c0 = arith.constant 0 : index
    %c0_0 = arith.constant 0 : index
    %0 = vector.load %arg0[%c0, %c0_0] : memref<56x28xf32, #tpu.memory_space<vmem>>, vector<56x28xf32>
    %c0_1 = arith.constant 0 : index
    %c0_2 = arith.constant 0 : index
    %c0_3 = arith.constant 0 : index
    %1 = vector.load %arg1[%c0_1, %c0_2, %c0_3] : memref<3x28x56xf32, #tpu.memory_space<vmem>>, vector<1x28x56xf32>
    %2 = vector.shape_cast %1 : vector<1x28x56xf32> to vector<28x56xf32>
    %cst = arith.constant dense<0.000000e+00> : vector<28x28xf32>
    %3 = tpu.matmul %2, %0, %cst {dimension_numbers = #tpu.dot_dimension_numbers<[1], [0], [0], [1], [0, 0, 1, 1], [], []>} : vector<28x56xf32>, vector<56x28xf32>, vector<28x28xf32> -> vector<28x28xf32>
    %c0_4 = arith.constant 0 : index
    %c0_5 = arith.constant 0 : index
    %c0_6 = arith.constant 0 : index
    %4 = vector.load %arg2[%c0_4, %c0_5, %c0_6] : memref<3x28x448xf32, #tpu.memory_space<vmem>>, vector<1x28x448xf32>
    %5 = vector.shape_cast %4 : vector<1x28x448xf32> to vector<28x448xf32>
    %cst_7 = arith.constant dense<0.000000e+00> : vector<28x448xf32>
    %6 = tpu.matmul %3, %5, %cst_7 {dimension_numbers = #tpu.dot_dimension_numbers<[1], [0], [0], [1], [0, 0, 1, 1], [], []>} : vector<28x28xf32>, vector<28x448xf32>, vector<28x448xf32> -> vector<28x448xf32>
    %c1 = arith.constant 1 : index
    %c0_8 = arith.constant 0 : index
    %c0_9 = arith.constant 0 : index
    %7 = vector.load %arg1[%c1, %c0_8, %c0_9] : memref<3x28x56xf32, #tpu.memory_space<vmem>>, vector<1x28x56xf32>
    %8 = vector.shape_cast %7 : vector<1x28x56xf32> to vector<28x56xf32>
    %cst_10 = arith.constant dense<0.000000e+00> : vector<28x28xf32>
    %9 = tpu.matmul %8, %0, %cst_10 {dimension_numbers = #tpu.dot_dimension_numbers<[1], [0], [0], [1], [0, 0, 1, 1], [], []>} : vector<28x56xf32>, vector<56x28xf32>, vector<28x28xf32> -> vector<28x28xf32>
    %c1_11 = arith.constant 1 : index
    %c0_12 = arith.constant 0 : index
    %c0_13 = arith.constant 0 : index
    %10 = vector.load %arg2[%c1_11, %c0_12, %c0_13] : memref<3x28x448xf32, #tpu.memory_space<vmem>>, vector<1x28x448xf32>
    %11 = vector.shape_cast %10 : vector<1x28x448xf32> to vector<28x448xf32>
    %cst_14 = arith.constant dense<0.000000e+00> : vector<28x448xf32>
    %12 = tpu.matmul %9, %11, %cst_14 {dimension_numbers = #tpu.dot_dimension_numbers<[1], [0], [0], [1], [0, 0, 1, 1], [], []>} : vector<28x28xf32>, vector<28x448xf32>, vector<28x448xf32> -> vector<28x448xf32>
    %13 = arith.addf %6, %12 : vector<28x448xf32>
    %c2 = arith.constant 2 : index
    %c0_15 = arith.constant 0 : index
    %c0_16 = arith.constant 0 : index
    %14 = vector.load %arg1[%c2, %c0_15, %c0_16] : memref<3x28x56xf32, #tpu.memory_space<vmem>>, vector<1x28x56xf32>
    %15 = vector.shape_cast %14 : vector<1x28x56xf32> to vector<28x56xf32>
    %cst_17 = arith.constant dense<0.000000e+00> : vector<28x28xf32>
    %16 = tpu.matmul %15, %0, %cst_17 {dimension_numbers = #tpu.dot_dimension_numbers<[1], [0], [0], [1], [0, 0, 1, 1], [], []>} : vector<28x56xf32>, vector<56x28xf32>, vector<28x28xf32> -> vector<28x28xf32>
    %c2_18 = arith.constant 2 : index
    %c0_19 = arith.constant 0 : index
    %c0_20 = arith.constant 0 : index
    %17 = vector.load %arg2[%c2_18, %c0_19, %c0_20] : memref<3x28x448xf32, #tpu.memory_space<vmem>>, vector<1x28x448xf32>
    %18 = vector.shape_cast %17 : vector<1x28x448xf32> to vector<28x448xf32>
    %cst_21 = arith.constant dense<0.000000e+00> : vector<28x448xf32>
    %19 = tpu.matmul %16, %18, %cst_21 {dimension_numbers = #tpu.dot_dimension_numbers<[1], [0], [0], [1], [0, 0, 1, 1], [], []>} : vector<28x28xf32>, vector<28x448xf32>, vector<28x448xf32> -> vector<28x448xf32>
    %20 = arith.addf %13, %19 : vector<28x448xf32>
    %c0_22 = arith.constant 0 : index
    %c0_23 = arith.constant 0 : index
    %21 = vector.load %arg3[%c0_22, %c0_23] : memref<1x448xf32, #tpu.memory_space<vmem>>, vector<1x448xf32>
    %22 = vector.broadcast %21 : vector<1x448xf32> to vector<28x448xf32>
    %23 = arith.addf %20, %22 : vector<28x448xf32>
    %cst_24 = arith.constant 0.000000e+00 : f32
    %24 = vector.broadcast %cst_24 : f32 to vector<28x448xf32>
    %25 = arith.subf %24, %23 : vector<28x448xf32>
    %26 = math.exp %25 : vector<28x448xf32>
    %cst_25 = arith.constant 1.000000e+00 : f32
    %27 = vector.broadcast %cst_25 : f32 to vector<28x448xf32>
    %28 = arith.addf %27, %26 : vector<28x448xf32>
    %cst_26 = arith.constant 1.000000e+00 : f32
    %29 = vector.broadcast %cst_26 : f32 to vector<28x448xf32>
    %30 = arith.divf %29, %28 : vector<28x448xf32>
    %c0_27 = arith.constant 0 : index
    %c0_28 = arith.constant 0 : index
    %c0_29 = arith.constant 0 : index
    %31 = vector.load %arg4[%c0_27, %c0_28, %c0_29] : memref<3x14x28xf32, #tpu.memory_space<vmem>>, vector<1x14x28xf32>
    %32 = vector.shape_cast %31 : vector<1x14x28xf32> to vector<14x28xf32>
    %cst_30 = arith.constant dense<0.000000e+00> : vector<14x448xf32>
    %33 = tpu.matmul %32, %30, %cst_30 {dimension_numbers = #tpu.dot_dimension_numbers<[1], [0], [0], [1], [0, 0, 1, 1], [], []>} : vector<14x28xf32>, vector<28x448xf32>, vector<14x448xf32> -> vector<14x448xf32>
    %c0_31 = arith.constant 0 : index
    %c0_32 = arith.constant 0 : index
    %c0_33 = arith.constant 0 : index
    %34 = vector.load %arg5[%c0_31, %c0_32, %c0_33] : memref<3x448x224xf32, #tpu.memory_space<vmem>>, vector<1x448x224xf32>
    %35 = vector.shape_cast %34 : vector<1x448x224xf32> to vector<448x224xf32>
    %cst_34 = arith.constant dense<0.000000e+00> : vector<14x224xf32>
    %36 = tpu.matmul %33, %35, %cst_34 {dimension_numbers = #tpu.dot_dimension_numbers<[1], [0], [0], [1], [0, 0, 1, 1], [], []>} : vector<14x448xf32>, vector<448x224xf32>, vector<14x224xf32> -> vector<14x224xf32>
    %c1_35 = arith.constant 1 : index
    %c0_36 = arith.constant 0 : index
    %c0_37 = arith.constant 0 : index
    %37 = vector.load %arg4[%c1_35, %c0_36, %c0_37] : memref<3x14x28xf32, #tpu.memory_space<vmem>>, vector<1x14x28xf32>
    %38 = vector.shape_cast %37 : vector<1x14x28xf32> to vector<14x28xf32>
    %cst_38 = arith.constant dense<0.000000e+00> : vector<14x448xf32>
    %39 = tpu.matmul %38, %30, %cst_38 {dimension_numbers = #tpu.dot_dimension_numbers<[1], [0], [0], [1], [0, 0, 1, 1], [], []>} : vector<14x28xf32>, vector<28x448xf32>, vector<14x448xf32> -> vector<14x448xf32>
    %c1_39 = arith.constant 1 : index
    %c0_40 = arith.constant 0 : index
    %c0_41 = arith.constant 0 : index
    %40 = vector.load %arg5[%c1_39, %c0_40, %c0_41] : memref<3x448x224xf32, #tpu.memory_space<vmem>>, vector<1x448x224xf32>
    %41 = vector.shape_cast %40 : vector<1x448x224xf32> to vector<448x224xf32>
    %cst_42 = arith.constant dense<0.000000e+00> : vector<14x224xf32>
    %42 = tpu.matmul %39, %41, %cst_42 {dimension_numbers = #tpu.dot_dimension_numbers<[1], [0], [0], [1], [0, 0, 1, 1], [], []>} : vector<14x448xf32>, vector<448x224xf32>, vector<14x224xf32> -> vector<14x224xf32>
    %43 = arith.addf %36, %42 : vector<14x224xf32>
    %c2_43 = arith.constant 2 : index
    %c0_44 = arith.constant 0 : index
    %c0_45 = arith.constant 0 : index
    %44 = vector.load %arg4[%c2_43, %c0_44, %c0_45] : memref<3x14x28xf32, #tpu.memory_space<vmem>>, vector<1x14x28xf32>
    %45 = vector.shape_cast %44 : vector<1x14x28xf32> to vector<14x28xf32>
    %cst_46 = arith.constant dense<0.000000e+00> : vector<14x448xf32>
    %46 = tpu.matmul %45, %30, %cst_46 {dimension_numbers = #tpu.dot_dimension_numbers<[1], [0], [0], [1], [0, 0, 1, 1], [], []>} : vector<14x28xf32>, vector<28x448xf32>, vector<14x448xf32> -> vector<14x448xf32>
    %c2_47 = arith.constant 2 : index
    %c0_48 = arith.constant 0 : index
    %c0_49 = arith.constant 0 : index
    %47 = vector.load %arg5[%c2_47, %c0_48, %c0_49] : memref<3x448x224xf32, #tpu.memory_space<vmem>>, vector<1x448x224xf32>
    %48 = vector.shape_cast %47 : vector<1x448x224xf32> to vector<448x224xf32>
    %cst_50 = arith.constant dense<0.000000e+00> : vector<14x224xf32>
    %49 = tpu.matmul %46, %48, %cst_50 {dimension_numbers = #tpu.dot_dimension_numbers<[1], [0], [0], [1], [0, 0, 1, 1], [], []>} : vector<14x448xf32>, vector<448x224xf32>, vector<14x224xf32> -> vector<14x224xf32>
    %50 = arith.addf %43, %49 : vector<14x224xf32>
    %c0_51 = arith.constant 0 : index
    %c0_52 = arith.constant 0 : index
    %51 = vector.load %arg6[%c0_51, %c0_52] : memref<1x224xf32, #tpu.memory_space<vmem>>, vector<1x224xf32>
    %52 = vector.broadcast %51 : vector<1x224xf32> to vector<14x224xf32>
    %53 = arith.addf %50, %52 : vector<14x224xf32>
    %cst_53 = arith.constant 0.000000e+00 : f32
    %54 = vector.broadcast %cst_53 : f32 to vector<14x224xf32>
    %55 = arith.subf %54, %53 : vector<14x224xf32>
    %56 = math.exp %55 : vector<14x224xf32>
    %cst_54 = arith.constant 1.000000e+00 : f32
    %57 = vector.broadcast %cst_54 : f32 to vector<14x224xf32>
    %58 = arith.addf %57, %56 : vector<14x224xf32>
    %cst_55 = arith.constant 1.000000e+00 : f32
    %59 = vector.broadcast %cst_55 : f32 to vector<14x224xf32>
    %60 = arith.divf %59, %58 : vector<14x224xf32>
    %c0_56 = arith.constant 0 : index
    %c0_57 = arith.constant 0 : index
    %c0_58 = arith.constant 0 : index
    %61 = vector.load %arg7[%c0_56, %c0_57, %c0_58] : memref<3x8x14xf32, #tpu.memory_space<vmem>>, vector<1x8x14xf32>
    %62 = vector.shape_cast %61 : vector<1x8x14xf32> to vector<8x14xf32>
    %cst_59 = arith.constant dense<0.000000e+00> : vector<8x224xf32>
    %63 = tpu.matmul %62, %60, %cst_59 {dimension_numbers = #tpu.dot_dimension_numbers<[1], [0], [0], [1], [0, 0, 1, 1], [], []>} : vector<8x14xf32>, vector<14x224xf32>, vector<8x224xf32> -> vector<8x224xf32>
    %c0_60 = arith.constant 0 : index
    %c0_61 = arith.constant 0 : index
    %c0_62 = arith.constant 0 : index
    %64 = vector.load %arg8[%c0_60, %c0_61, %c0_62] : memref<3x224x128xf32, #tpu.memory_space<vmem>>, vector<1x224x128xf32>
    %65 = vector.shape_cast %64 : vector<1x224x128xf32> to vector<224x128xf32>
    %cst_63 = arith.constant dense<0.000000e+00> : vector<8x128xf32>
    %66 = tpu.matmul %63, %65, %cst_63 {dimension_numbers = #tpu.dot_dimension_numbers<[1], [0], [0], [1], [0, 0, 1, 1], [], []>} : vector<8x224xf32>, vector<224x128xf32>, vector<8x128xf32> -> vector<8x128xf32>
    %c1_64 = arith.constant 1 : index
    %c0_65 = arith.constant 0 : index
    %c0_66 = arith.constant 0 : index
    %67 = vector.load %arg7[%c1_64, %c0_65, %c0_66] : memref<3x8x14xf32, #tpu.memory_space<vmem>>, vector<1x8x14xf32>
    %68 = vector.shape_cast %67 : vector<1x8x14xf32> to vector<8x14xf32>
    %cst_67 = arith.constant dense<0.000000e+00> : vector<8x224xf32>
    %69 = tpu.matmul %68, %60, %cst_67 {dimension_numbers = #tpu.dot_dimension_numbers<[1], [0], [0], [1], [0, 0, 1, 1], [], []>} : vector<8x14xf32>, vector<14x224xf32>, vector<8x224xf32> -> vector<8x224xf32>
    %c1_68 = arith.constant 1 : index
    %c0_69 = arith.constant 0 : index
    %c0_70 = arith.constant 0 : index
    %70 = vector.load %arg8[%c1_68, %c0_69, %c0_70] : memref<3x224x128xf32, #tpu.memory_space<vmem>>, vector<1x224x128xf32>
    %71 = vector.shape_cast %70 : vector<1x224x128xf32> to vector<224x128xf32>
    %cst_71 = arith.constant dense<0.000000e+00> : vector<8x128xf32>
    %72 = tpu.matmul %69, %71, %cst_71 {dimension_numbers = #tpu.dot_dimension_numbers<[1], [0], [0], [1], [0, 0, 1, 1], [], []>} : vector<8x224xf32>, vector<224x128xf32>, vector<8x128xf32> -> vector<8x128xf32>
    %73 = arith.addf %66, %72 : vector<8x128xf32>
    %c2_72 = arith.constant 2 : index
    %c0_73 = arith.constant 0 : index
    %c0_74 = arith.constant 0 : index
    %74 = vector.load %arg7[%c2_72, %c0_73, %c0_74] : memref<3x8x14xf32, #tpu.memory_space<vmem>>, vector<1x8x14xf32>
    %75 = vector.shape_cast %74 : vector<1x8x14xf32> to vector<8x14xf32>
    %cst_75 = arith.constant dense<0.000000e+00> : vector<8x224xf32>
    %76 = tpu.matmul %75, %60, %cst_75 {dimension_numbers = #tpu.dot_dimension_numbers<[1], [0], [0], [1], [0, 0, 1, 1], [], []>} : vector<8x14xf32>, vector<14x224xf32>, vector<8x224xf32> -> vector<8x224xf32>
    %c2_76 = arith.constant 2 : index
    %c0_77 = arith.constant 0 : index
    %c0_78 = arith.constant 0 : index
    %77 = vector.load %arg8[%c2_76, %c0_77, %c0_78] : memref<3x224x128xf32, #tpu.memory_space<vmem>>, vector<1x224x128xf32>
    %78 = vector.shape_cast %77 : vector<1x224x128xf32> to vector<224x128xf32>
    %cst_79 = arith.constant dense<0.000000e+00> : vector<8x128xf32>
    %79 = tpu.matmul %76, %78, %cst_79 {dimension_numbers = #tpu.dot_dimension_numbers<[1], [0], [0], [1], [0, 0, 1, 1], [], []>} : vector<8x224xf32>, vector<224x128xf32>, vector<8x128xf32> -> vector<8x128xf32>
    %80 = arith.addf %73, %79 : vector<8x128xf32>
    %c0_80 = arith.constant 0 : index
    %c0_81 = arith.constant 0 : index
    %81 = vector.load %arg9[%c0_80, %c0_81] : memref<1x128xf32, #tpu.memory_space<vmem>>, vector<1x128xf32>
    %82 = vector.broadcast %81 : vector<1x128xf32> to vector<8x128xf32>
    %83 = arith.addf %80, %82 : vector<8x128xf32>
    %cst_82 = arith.constant 0.000000e+00 : f32
    %84 = vector.broadcast %cst_82 : f32 to vector<8x128xf32>
    %85 = arith.subf %84, %83 : vector<8x128xf32>
    %86 = math.exp %85 : vector<8x128xf32>
    %cst_83 = arith.constant 1.000000e+00 : f32
    %87 = vector.broadcast %cst_83 : f32 to vector<8x128xf32>
    %88 = arith.addf %87, %86 : vector<8x128xf32>
    %cst_84 = arith.constant 1.000000e+00 : f32
    %89 = vector.broadcast %cst_84 : f32 to vector<8x128xf32>
    %90 = arith.divf %89, %88 : vector<8x128xf32>
    %c0_85 = arith.constant 0 : index
    %c0_86 = arith.constant 0 : index
    %c0_87 = arith.constant 0 : index
    %91 = vector.load %arg10[%c0_85, %c0_86, %c0_87] : memref<3x4x8xf32, #tpu.memory_space<vmem>>, vector<1x4x8xf32>
    %92 = vector.shape_cast %91 : vector<1x4x8xf32> to vector<4x8xf32>
    %cst_88 = arith.constant dense<0.000000e+00> : vector<4x128xf32>
    %93 = tpu.matmul %92, %90, %cst_88 {dimension_numbers = #tpu.dot_dimension_numbers<[1], [0], [0], [1], [0, 0, 1, 1], [], []>} : vector<4x8xf32>, vector<8x128xf32>, vector<4x128xf32> -> vector<4x128xf32>
    %c0_89 = arith.constant 0 : index
    %c0_90 = arith.constant 0 : index
    %c0_91 = arith.constant 0 : index
    %94 = vector.load %arg11[%c0_89, %c0_90, %c0_91] : memref<3x128x20xf32, #tpu.memory_space<vmem>>, vector<1x128x20xf32>
    %95 = vector.shape_cast %94 : vector<1x128x20xf32> to vector<128x20xf32>
    %cst_92 = arith.constant dense<0.000000e+00> : vector<4x20xf32>
    %96 = tpu.matmul %93, %95, %cst_92 {dimension_numbers = #tpu.dot_dimension_numbers<[1], [0], [0], [1], [0, 0, 1, 1], [], []>} : vector<4x128xf32>, vector<128x20xf32>, vector<4x20xf32> -> vector<4x20xf32>
    %c1_93 = arith.constant 1 : index
    %c0_94 = arith.constant 0 : index
    %c0_95 = arith.constant 0 : index
    %97 = vector.load %arg10[%c1_93, %c0_94, %c0_95] : memref<3x4x8xf32, #tpu.memory_space<vmem>>, vector<1x4x8xf32>
    %98 = vector.shape_cast %97 : vector<1x4x8xf32> to vector<4x8xf32>
    %cst_96 = arith.constant dense<0.000000e+00> : vector<4x128xf32>
    %99 = tpu.matmul %98, %90, %cst_96 {dimension_numbers = #tpu.dot_dimension_numbers<[1], [0], [0], [1], [0, 0, 1, 1], [], []>} : vector<4x8xf32>, vector<8x128xf32>, vector<4x128xf32> -> vector<4x128xf32>
    %c1_97 = arith.constant 1 : index
    %c0_98 = arith.constant 0 : index
    %c0_99 = arith.constant 0 : index
    %100 = vector.load %arg11[%c1_97, %c0_98, %c0_99] : memref<3x128x20xf32, #tpu.memory_space<vmem>>, vector<1x128x20xf32>
    %101 = vector.shape_cast %100 : vector<1x128x20xf32> to vector<128x20xf32>
    %cst_100 = arith.constant dense<0.000000e+00> : vector<4x20xf32>
    %102 = tpu.matmul %99, %101, %cst_100 {dimension_numbers = #tpu.dot_dimension_numbers<[1], [0], [0], [1], [0, 0, 1, 1], [], []>} : vector<4x128xf32>, vector<128x20xf32>, vector<4x20xf32> -> vector<4x20xf32>
    %103 = arith.addf %96, %102 : vector<4x20xf32>
    %c2_101 = arith.constant 2 : index
    %c0_102 = arith.constant 0 : index
    %c0_103 = arith.constant 0 : index
    %104 = vector.load %arg10[%c2_101, %c0_102, %c0_103] : memref<3x4x8xf32, #tpu.memory_space<vmem>>, vector<1x4x8xf32>
    %105 = vector.shape_cast %104 : vector<1x4x8xf32> to vector<4x8xf32>
    %cst_104 = arith.constant dense<0.000000e+00> : vector<4x128xf32>
    %106 = tpu.matmul %105, %90, %cst_104 {dimension_numbers = #tpu.dot_dimension_numbers<[1], [0], [0], [1], [0, 0, 1, 1], [], []>} : vector<4x8xf32>, vector<8x128xf32>, vector<4x128xf32> -> vector<4x128xf32>
    %c2_105 = arith.constant 2 : index
    %c0_106 = arith.constant 0 : index
    %c0_107 = arith.constant 0 : index
    %107 = vector.load %arg11[%c2_105, %c0_106, %c0_107] : memref<3x128x20xf32, #tpu.memory_space<vmem>>, vector<1x128x20xf32>
    %108 = vector.shape_cast %107 : vector<1x128x20xf32> to vector<128x20xf32>
    %cst_108 = arith.constant dense<0.000000e+00> : vector<4x20xf32>
    %109 = tpu.matmul %106, %108, %cst_108 {dimension_numbers = #tpu.dot_dimension_numbers<[1], [0], [0], [1], [0, 0, 1, 1], [], []>} : vector<4x128xf32>, vector<128x20xf32>, vector<4x20xf32> -> vector<4x20xf32>
    %110 = arith.addf %103, %109 : vector<4x20xf32>
    %c0_109 = arith.constant 0 : index
    %c0_110 = arith.constant 0 : index
    %111 = vector.load %arg12[%c0_109, %c0_110] : memref<1x20xf32, #tpu.memory_space<vmem>>, vector<1x20xf32>
    %112 = vector.broadcast %111 : vector<1x20xf32> to vector<4x20xf32>
    %113 = arith.addf %110, %112 : vector<4x20xf32>
    %cst_111 = arith.constant 0.000000e+00 : f32
    %114 = vector.broadcast %cst_111 : f32 to vector<4x20xf32>
    %115 = arith.subf %114, %113 : vector<4x20xf32>
    %116 = math.exp %115 : vector<4x20xf32>
    %cst_112 = arith.constant 1.000000e+00 : f32
    %117 = vector.broadcast %cst_112 : f32 to vector<4x20xf32>
    %118 = arith.addf %117, %116 : vector<4x20xf32>
    %cst_113 = arith.constant 1.000000e+00 : f32
    %119 = vector.broadcast %cst_113 : f32 to vector<4x20xf32>
    %120 = arith.divf %119, %118 : vector<4x20xf32>
    %c0_114 = arith.constant 0 : index
    %c0_115 = arith.constant 0 : index
    %121 = vector.load %arg25[%c0_114, %c0_115] : memref<4x20xf32, #tpu.memory_space<vmem>>, vector<4x20xf32>
    tpu.vector_store %arg25[%c0_114, %c0_115], %120 {strides = array<i32>} : memref<4x20xf32, #tpu.memory_space<vmem>>, vector<4x20xf32>,
    %c0_116 = arith.constant 0 : index
    %c0_117 = arith.constant 0 : index
    %c0_118 = arith.constant 0 : index
    %122 = vector.load %arg13[%c0_116, %c0_117, %c0_118] : memref<3x8x4xf32, #tpu.memory_space<vmem>>, vector<1x8x4xf32>
    %123 = vector.shape_cast %122 : vector<1x8x4xf32> to vector<8x4xf32>
    %cst_119 = arith.constant dense<0.000000e+00> : vector<8x20xf32>
    %124 = tpu.matmul %123, %120, %cst_119 {dimension_numbers = #tpu.dot_dimension_numbers<[1], [0], [0], [1], [0, 0, 1, 1], [], []>} : vector<8x4xf32>, vector<4x20xf32>, vector<8x20xf32> -> vector<8x20xf32>
    %c0_120 = arith.constant 0 : index
    %c0_121 = arith.constant 0 : index
    %c0_122 = arith.constant 0 : index
    %125 = vector.load %arg14[%c0_120, %c0_121, %c0_122] : memref<3x20x128xf32, #tpu.memory_space<vmem>>, vector<1x20x128xf32>
    %126 = vector.shape_cast %125 : vector<1x20x128xf32> to vector<20x128xf32>
    %cst_123 = arith.constant dense<0.000000e+00> : vector<8x128xf32>
    %127 = tpu.matmul %124, %126, %cst_123 {dimension_numbers = #tpu.dot_dimension_numbers<[1], [0], [0], [1], [0, 0, 1, 1], [], []>} : vector<8x20xf32>, vector<20x128xf32>, vector<8x128xf32> -> vector<8x128xf32>
    %c1_124 = arith.constant 1 : index
    %c0_125 = arith.constant 0 : index
    %c0_126 = arith.constant 0 : index
    %128 = vector.load %arg13[%c1_124, %c0_125, %c0_126] : memref<3x8x4xf32, #tpu.memory_space<vmem>>, vector<1x8x4xf32>
    %129 = vector.shape_cast %128 : vector<1x8x4xf32> to vector<8x4xf32>
    %cst_127 = arith.constant dense<0.000000e+00> : vector<8x20xf32>
    %130 = tpu.matmul %129, %120, %cst_127 {dimension_numbers = #tpu.dot_dimension_numbers<[1], [0], [0], [1], [0, 0, 1, 1], [], []>} : vector<8x4xf32>, vector<4x20xf32>, vector<8x20xf32> -> vector<8x20xf32>
    %c1_128 = arith.constant 1 : index
    %c0_129 = arith.constant 0 : index
    %c0_130 = arith.constant 0 : index
    %131 = vector.load %arg14[%c1_128, %c0_129, %c0_130] : memref<3x20x128xf32, #tpu.memory_space<vmem>>, vector<1x20x128xf32>
    %132 = vector.shape_cast %131 : vector<1x20x128xf32> to vector<20x128xf32>
    %cst_131 = arith.constant dense<0.000000e+00> : vector<8x128xf32>
    %133 = tpu.matmul %130, %132, %cst_131 {dimension_numbers = #tpu.dot_dimension_numbers<[1], [0], [0], [1], [0, 0, 1, 1], [], []>} : vector<8x20xf32>, vector<20x128xf32>, vector<8x128xf32> -> vector<8x128xf32>
    %134 = arith.addf %127, %133 : vector<8x128xf32>
    %c2_132 = arith.constant 2 : index
    %c0_133 = arith.constant 0 : index
    %c0_134 = arith.constant 0 : index
    %135 = vector.load %arg13[%c2_132, %c0_133, %c0_134] : memref<3x8x4xf32, #tpu.memory_space<vmem>>, vector<1x8x4xf32>
    %136 = vector.shape_cast %135 : vector<1x8x4xf32> to vector<8x4xf32>
    %cst_135 = arith.constant dense<0.000000e+00> : vector<8x20xf32>
    %137 = tpu.matmul %136, %120, %cst_135 {dimension_numbers = #tpu.dot_dimension_numbers<[1], [0], [0], [1], [0, 0, 1, 1], [], []>} : vector<8x4xf32>, vector<4x20xf32>, vector<8x20xf32> -> vector<8x20xf32>
    %c2_136 = arith.constant 2 : index
    %c0_137 = arith.constant 0 : index
    %c0_138 = arith.constant 0 : index
    %138 = vector.load %arg14[%c2_136, %c0_137, %c0_138] : memref<3x20x128xf32, #tpu.memory_space<vmem>>, vector<1x20x128xf32>
    %139 = vector.shape_cast %138 : vector<1x20x128xf32> to vector<20x128xf32>
    %cst_139 = arith.constant dense<0.000000e+00> : vector<8x128xf32>
    %140 = tpu.matmul %137, %139, %cst_139 {dimension_numbers = #tpu.dot_dimension_numbers<[1], [0], [0], [1], [0, 0, 1, 1], [], []>} : vector<8x20xf32>, vector<20x128xf32>, vector<8x128xf32> -> vector<8x128xf32>
    %141 = arith.addf %134, %140 : vector<8x128xf32>
    %c0_140 = arith.constant 0 : index
    %c0_141 = arith.constant 0 : index
    %142 = vector.load %arg15[%c0_140, %c0_141] : memref<1x128xf32, #tpu.memory_space<vmem>>, vector<1x128xf32>
    %143 = vector.broadcast %142 : vector<1x128xf32> to vector<8x128xf32>
    %144 = arith.addf %141, %143 : vector<8x128xf32>
    %cst_142 = arith.constant 0.000000e+00 : f32
    %145 = vector.broadcast %cst_142 : f32 to vector<8x128xf32>
    %146 = arith.subf %145, %144 : vector<8x128xf32>
    %147 = math.exp %146 : vector<8x128xf32>
    %cst_143 = arith.constant 1.000000e+00 : f32
    %148 = vector.broadcast %cst_143 : f32 to vector<8x128xf32>
    %149 = arith.addf %148, %147 : vector<8x128xf32>
    %cst_144 = arith.constant 1.000000e+00 : f32
    %150 = vector.broadcast %cst_144 : f32 to vector<8x128xf32>
    %151 = arith.divf %150, %149 : vector<8x128xf32>
    %c0_145 = arith.constant 0 : index
    %c0_146 = arith.constant 0 : index
    %c0_147 = arith.constant 0 : index
    %152 = vector.load %arg16[%c0_145, %c0_146, %c0_147] : memref<3x14x8xf32, #tpu.memory_space<vmem>>, vector<1x14x8xf32>
    %153 = vector.shape_cast %152 : vector<1x14x8xf32> to vector<14x8xf32>
    %cst_148 = arith.constant dense<0.000000e+00> : vector<14x128xf32>
    %154 = tpu.matmul %153, %151, %cst_148 {dimension_numbers = #tpu.dot_dimension_numbers<[1], [0], [0], [1], [0, 0, 1, 1], [], []>} : vector<14x8xf32>, vector<8x128xf32>, vector<14x128xf32> -> vector<14x128xf32>
    %c0_149 = arith.constant 0 : index
    %c0_150 = arith.constant 0 : index
    %c0_151 = arith.constant 0 : index
    %155 = vector.load %arg17[%c0_149, %c0_150, %c0_151] : memref<3x128x224xf32, #tpu.memory_space<vmem>>, vector<1x128x224xf32>
    %156 = vector.shape_cast %155 : vector<1x128x224xf32> to vector<128x224xf32>
    %cst_152 = arith.constant dense<0.000000e+00> : vector<14x224xf32>
    %157 = tpu.matmul %154, %156, %cst_152 {dimension_numbers = #tpu.dot_dimension_numbers<[1], [0], [0], [1], [0, 0, 1, 1], [], []>} : vector<14x128xf32>, vector<128x224xf32>, vector<14x224xf32> -> vector<14x224xf32>
    %c1_153 = arith.constant 1 : index
    %c0_154 = arith.constant 0 : index
    %c0_155 = arith.constant 0 : index
    %158 = vector.load %arg16[%c1_153, %c0_154, %c0_155] : memref<3x14x8xf32, #tpu.memory_space<vmem>>, vector<1x14x8xf32>
    %159 = vector.shape_cast %158 : vector<1x14x8xf32> to vector<14x8xf32>
    %cst_156 = arith.constant dense<0.000000e+00> : vector<14x128xf32>
    %160 = tpu.matmul %159, %151, %cst_156 {dimension_numbers = #tpu.dot_dimension_numbers<[1], [0], [0], [1], [0, 0, 1, 1], [], []>} : vector<14x8xf32>, vector<8x128xf32>, vector<14x128xf32> -> vector<14x128xf32>
    %c1_157 = arith.constant 1 : index
    %c0_158 = arith.constant 0 : index
    %c0_159 = arith.constant 0 : index
    %161 = vector.load %arg17[%c1_157, %c0_158, %c0_159] : memref<3x128x224xf32, #tpu.memory_space<vmem>>, vector<1x128x224xf32>
    %162 = vector.shape_cast %161 : vector<1x128x224xf32> to vector<128x224xf32>
    %cst_160 = arith.constant dense<0.000000e+00> : vector<14x224xf32>
    %163 = tpu.matmul %160, %162, %cst_160 {dimension_numbers = #tpu.dot_dimension_numbers<[1], [0], [0], [1], [0, 0, 1, 1], [], []>} : vector<14x128xf32>, vector<128x224xf32>, vector<14x224xf32> -> vector<14x224xf32>
    %164 = arith.addf %157, %163 : vector<14x224xf32>
    %c2_161 = arith.constant 2 : index
    %c0_162 = arith.constant 0 : index
    %c0_163 = arith.constant 0 : index
    %165 = vector.load %arg16[%c2_161, %c0_162, %c0_163] : memref<3x14x8xf32, #tpu.memory_space<vmem>>, vector<1x14x8xf32>
    %166 = vector.shape_cast %165 : vector<1x14x8xf32> to vector<14x8xf32>
    %cst_164 = arith.constant dense<0.000000e+00> : vector<14x128xf32>
    %167 = tpu.matmul %166, %151, %cst_164 {dimension_numbers = #tpu.dot_dimension_numbers<[1], [0], [0], [1], [0, 0, 1, 1], [], []>} : vector<14x8xf32>, vector<8x128xf32>, vector<14x128xf32> -> vector<14x128xf32>
    %c2_165 = arith.constant 2 : index
    %c0_166 = arith.constant 0 : index
    %c0_167 = arith.constant 0 : index
    %168 = vector.load %arg17[%c2_165, %c0_166, %c0_167] : memref<3x128x224xf32, #tpu.memory_space<vmem>>, vector<1x128x224xf32>
    %169 = vector.shape_cast %168 : vector<1x128x224xf32> to vector<128x224xf32>
    %cst_168 = arith.constant dense<0.000000e+00> : vector<14x224xf32>
    %170 = tpu.matmul %167, %169, %cst_168 {dimension_numbers = #tpu.dot_dimension_numbers<[1], [0], [0], [1], [0, 0, 1, 1], [], []>} : vector<14x128xf32>, vector<128x224xf32>, vector<14x224xf32> -> vector<14x224xf32>
    %171 = arith.addf %164, %170 : vector<14x224xf32>
    %c0_169 = arith.constant 0 : index
    %c0_170 = arith.constant 0 : index
    %172 = vector.load %arg18[%c0_169, %c0_170] : memref<1x224xf32, #tpu.memory_space<vmem>>, vector<1x224xf32>
    %173 = vector.broadcast %172 : vector<1x224xf32> to vector<14x224xf32>
    %174 = arith.addf %171, %173 : vector<14x224xf32>
    %cst_171 = arith.constant 0.000000e+00 : f32
    %175 = vector.broadcast %cst_171 : f32 to vector<14x224xf32>
    %176 = arith.subf %175, %174 : vector<14x224xf32>
    %177 = math.exp %176 : vector<14x224xf32>
    %cst_172 = arith.constant 1.000000e+00 : f32
    %178 = vector.broadcast %cst_172 : f32 to vector<14x224xf32>
    %179 = arith.addf %178, %177 : vector<14x224xf32>
    %cst_173 = arith.constant 1.000000e+00 : f32
    %180 = vector.broadcast %cst_173 : f32 to vector<14x224xf32>
    %181 = arith.divf %180, %179 : vector<14x224xf32>
    %c0_174 = arith.constant 0 : index
    %c0_175 = arith.constant 0 : index
    %c0_176 = arith.constant 0 : index
    %182 = vector.load %arg19[%c0_174, %c0_175, %c0_176] : memref<3x28x14xf32, #tpu.memory_space<vmem>>, vector<1x28x14xf32>
    %183 = vector.shape_cast %182 : vector<1x28x14xf32> to vector<28x14xf32>
    %cst_177 = arith.constant dense<0.000000e+00> : vector<28x224xf32>
    %184 = tpu.matmul %183, %181, %cst_177 {dimension_numbers = #tpu.dot_dimension_numbers<[1], [0], [0], [1], [0, 0, 1, 1], [], []>} : vector<28x14xf32>, vector<14x224xf32>, vector<28x224xf32> -> vector<28x224xf32>
    %c0_178 = arith.constant 0 : index
    %c0_179 = arith.constant 0 : index
    %c0_180 = arith.constant 0 : index
    %185 = vector.load %arg20[%c0_178, %c0_179, %c0_180] : memref<3x224x448xf32, #tpu.memory_space<vmem>>, vector<1x224x448xf32>
    %186 = vector.shape_cast %185 : vector<1x224x448xf32> to vector<224x448xf32>
    %cst_181 = arith.constant dense<0.000000e+00> : vector<28x448xf32>
    %187 = tpu.matmul %184, %186, %cst_181 {dimension_numbers = #tpu.dot_dimension_numbers<[1], [0], [0], [1], [0, 0, 1, 1], [], []>} : vector<28x224xf32>, vector<224x448xf32>, vector<28x448xf32> -> vector<28x448xf32>
    %c1_182 = arith.constant 1 : index
    %c0_183 = arith.constant 0 : index
    %c0_184 = arith.constant 0 : index
    %188 = vector.load %arg19[%c1_182, %c0_183, %c0_184] : memref<3x28x14xf32, #tpu.memory_space<vmem>>, vector<1x28x14xf32>
    %189 = vector.shape_cast %188 : vector<1x28x14xf32> to vector<28x14xf32>
    %cst_185 = arith.constant dense<0.000000e+00> : vector<28x224xf32>
    %190 = tpu.matmul %189, %181, %cst_185 {dimension_numbers = #tpu.dot_dimension_numbers<[1], [0], [0], [1], [0, 0, 1, 1], [], []>} : vector<28x14xf32>, vector<14x224xf32>, vector<28x224xf32> -> vector<28x224xf32>
    %c1_186 = arith.constant 1 : index
    %c0_187 = arith.constant 0 : index
    %c0_188 = arith.constant 0 : index
    %191 = vector.load %arg20[%c1_186, %c0_187, %c0_188] : memref<3x224x448xf32, #tpu.memory_space<vmem>>, vector<1x224x448xf32>
    %192 = vector.shape_cast %191 : vector<1x224x448xf32> to vector<224x448xf32>
    %cst_189 = arith.constant dense<0.000000e+00> : vector<28x448xf32>
    %193 = tpu.matmul %190, %192, %cst_189 {dimension_numbers = #tpu.dot_dimension_numbers<[1], [0], [0], [1], [0, 0, 1, 1], [], []>} : vector<28x224xf32>, vector<224x448xf32>, vector<28x448xf32> -> vector<28x448xf32>
    %194 = arith.addf %187, %193 : vector<28x448xf32>
    %c2_190 = arith.constant 2 : index
    %c0_191 = arith.constant 0 : index
    %c0_192 = arith.constant 0 : index
    %195 = vector.load %arg19[%c2_190, %c0_191, %c0_192] : memref<3x28x14xf32, #tpu.memory_space<vmem>>, vector<1x28x14xf32>
    %196 = vector.shape_cast %195 : vector<1x28x14xf32> to vector<28x14xf32>
    %cst_193 = arith.constant dense<0.000000e+00> : vector<28x224xf32>
    %197 = tpu.matmul %196, %181, %cst_193 {dimension_numbers = #tpu.dot_dimension_numbers<[1], [0], [0], [1], [0, 0, 1, 1], [], []>} : vector<28x14xf32>, vector<14x224xf32>, vector<28x224xf32> -> vector<28x224xf32>
    %c2_194 = arith.constant 2 : index
    %c0_195 = arith.constant 0 : index
    %c0_196 = arith.constant 0 : index
    %198 = vector.load %arg20[%c2_194, %c0_195, %c0_196] : memref<3x224x448xf32, #tpu.memory_space<vmem>>, vector<1x224x448xf32>
    %199 = vector.shape_cast %198 : vector<1x224x448xf32> to vector<224x448xf32>
    %cst_197 = arith.constant dense<0.000000e+00> : vector<28x448xf32>
    %200 = tpu.matmul %197, %199, %cst_197 {dimension_numbers = #tpu.dot_dimension_numbers<[1], [0], [0], [1], [0, 0, 1, 1], [], []>} : vector<28x224xf32>, vector<224x448xf32>, vector<28x448xf32> -> vector<28x448xf32>
    %201 = arith.addf %194, %200 : vector<28x448xf32>
    %c0_198 = arith.constant 0 : index
    %c0_199 = arith.constant 0 : index
    %202 = vector.load %arg21[%c0_198, %c0_199] : memref<1x448xf32, #tpu.memory_space<vmem>>, vector<1x448xf32>
    %203 = vector.broadcast %202 : vector<1x448xf32> to vector<28x448xf32>
    %204 = arith.addf %201, %203 : vector<28x448xf32>
    %cst_200 = arith.constant 0.000000e+00 : f32
    %205 = vector.broadcast %cst_200 : f32 to vector<28x448xf32>
    %206 = arith.subf %205, %204 : vector<28x448xf32>
    %207 = math.exp %206 : vector<28x448xf32>
    %cst_201 = arith.constant 1.000000e+00 : f32
    %208 = vector.broadcast %cst_201 : f32 to vector<28x448xf32>
    %209 = arith.addf %208, %207 : vector<28x448xf32>
    %cst_202 = arith.constant 1.000000e+00 : f32
    %210 = vector.broadcast %cst_202 : f32 to vector<28x448xf32>
    %211 = arith.divf %210, %209 : vector<28x448xf32>
    %c0_203 = arith.constant 0 : index
    %c0_204 = arith.constant 0 : index
    %c0_205 = arith.constant 0 : index
    %212 = vector.load %arg22[%c0_203, %c0_204, %c0_205] : memref<3x56x28xf32, #tpu.memory_space<vmem>>, vector<1x56x28xf32>
    %213 = vector.shape_cast %212 : vector<1x56x28xf32> to vector<56x28xf32>
    %cst_206 = arith.constant dense<0.000000e+00> : vector<56x448xf32>
    %214 = tpu.matmul %213, %211, %cst_206 {dimension_numbers = #tpu.dot_dimension_numbers<[1], [0], [0], [1], [0, 0, 1, 1], [], []>} : vector<56x28xf32>, vector<28x448xf32>, vector<56x448xf32> -> vector<56x448xf32>
    %c0_207 = arith.constant 0 : index
    %c0_208 = arith.constant 0 : index
    %c0_209 = arith.constant 0 : index
    %215 = vector.load %arg23[%c0_207, %c0_208, %c0_209] : memref<3x448x28xf32, #tpu.memory_space<vmem>>, vector<1x448x28xf32>
    %216 = vector.shape_cast %215 : vector<1x448x28xf32> to vector<448x28xf32>
    %cst_210 = arith.constant dense<0.000000e+00> : vector<56x28xf32>
    %217 = tpu.matmul %214, %216, %cst_210 {dimension_numbers = #tpu.dot_dimension_numbers<[1], [0], [0], [1], [0, 0, 1, 1], [], []>} : vector<56x448xf32>, vector<448x28xf32>, vector<56x28xf32> -> vector<56x28xf32>
    %c1_211 = arith.constant 1 : index
    %c0_212 = arith.constant 0 : index
    %c0_213 = arith.constant 0 : index
    %218 = vector.load %arg22[%c1_211, %c0_212, %c0_213] : memref<3x56x28xf32, #tpu.memory_space<vmem>>, vector<1x56x28xf32>
    %219 = vector.shape_cast %218 : vector<1x56x28xf32> to vector<56x28xf32>
    %cst_214 = arith.constant dense<0.000000e+00> : vector<56x448xf32>
    %220 = tpu.matmul %219, %211, %cst_214 {dimension_numbers = #tpu.dot_dimension_numbers<[1], [0], [0], [1], [0, 0, 1, 1], [], []>} : vector<56x28xf32>, vector<28x448xf32>, vector<56x448xf32> -> vector<56x448xf32>
    %c1_215 = arith.constant 1 : index
    %c0_216 = arith.constant 0 : index
    %c0_217 = arith.constant 0 : index
    %221 = vector.load %arg23[%c1_215, %c0_216, %c0_217] : memref<3x448x28xf32, #tpu.memory_space<vmem>>, vector<1x448x28xf32>
    %222 = vector.shape_cast %221 : vector<1x448x28xf32> to vector<448x28xf32>
    %cst_218 = arith.constant dense<0.000000e+00> : vector<56x28xf32>
    %223 = tpu.matmul %220, %222, %cst_218 {dimension_numbers = #tpu.dot_dimension_numbers<[1], [0], [0], [1], [0, 0, 1, 1], [], []>} : vector<56x448xf32>, vector<448x28xf32>, vector<56x28xf32> -> vector<56x28xf32>
    %224 = arith.addf %217, %223 : vector<56x28xf32>
    %c2_219 = arith.constant 2 : index
    %c0_220 = arith.constant 0 : index
    %c0_221 = arith.constant 0 : index
    %225 = vector.load %arg22[%c2_219, %c0_220, %c0_221] : memref<3x56x28xf32, #tpu.memory_space<vmem>>, vector<1x56x28xf32>
    %226 = vector.shape_cast %225 : vector<1x56x28xf32> to vector<56x28xf32>
    %cst_222 = arith.constant dense<0.000000e+00> : vector<56x448xf32>
    %227 = tpu.matmul %226, %211, %cst_222 {dimension_numbers = #tpu.dot_dimension_numbers<[1], [0], [0], [1], [0, 0, 1, 1], [], []>} : vector<56x28xf32>, vector<28x448xf32>, vector<56x448xf32> -> vector<56x448xf32>
    %c2_223 = arith.constant 2 : index
    %c0_224 = arith.constant 0 : index
    %c0_225 = arith.constant 0 : index
    %228 = vector.load %arg23[%c2_223, %c0_224, %c0_225] : memref<3x448x28xf32, #tpu.memory_space<vmem>>, vector<1x448x28xf32>
    %229 = vector.shape_cast %228 : vector<1x448x28xf32> to vector<448x28xf32>
    %cst_226 = arith.constant dense<0.000000e+00> : vector<56x28xf32>
    %230 = tpu.matmul %227, %229, %cst_226 {dimension_numbers = #tpu.dot_dimension_numbers<[1], [0], [0], [1], [0, 0, 1, 1], [], []>} : vector<56x448xf32>, vector<448x28xf32>, vector<56x28xf32> -> vector<56x28xf32>
    %231 = arith.addf %224, %230 : vector<56x28xf32>
    %c0_227 = arith.constant 0 : index
    %c0_228 = arith.constant 0 : index
    %232 = vector.load %arg24[%c0_227, %c0_228] : memref<1x28xf32, #tpu.memory_space<vmem>>, vector<1x28xf32>
    %233 = vector.broadcast %232 : vector<1x28xf32> to vector<56x28xf32>
    %234 = arith.addf %231, %233 : vector<56x28xf32>
    %cst_229 = arith.constant 0.000000e+00 : f32
    %235 = vector.broadcast %cst_229 : f32 to vector<56x28xf32>
    %236 = arith.subf %235, %234 : vector<56x28xf32>
    %237 = math.exp %236 : vector<56x28xf32>
    %cst_230 = arith.constant 1.000000e+00 : f32
    %238 = vector.broadcast %cst_230 : f32 to vector<56x28xf32>
    %239 = arith.addf %238, %237 : vector<56x28xf32>
    %cst_231 = arith.constant 1.000000e+00 : f32
    %240 = vector.broadcast %cst_231 : f32 to vector<56x28xf32>
    %241 = arith.divf %240, %239 : vector<56x28xf32>
    %c0_232 = arith.constant 0 : index
    %c0_233 = arith.constant 0 : index
    %242 = vector.load %arg26[%c0_232, %c0_233] : memref<56x28xf32, #tpu.memory_space<vmem>>, vector<56x28xf32>
    tpu.vector_store %arg26[%c0_232, %c0_233], %241 {strides = array<i32>} : memref<56x28xf32, #tpu.memory_space<vmem>>, vector<56x28xf32>,
    return
  }
}

</mosaic_0001>

<bundles_post_ra>
// kernel: fused_forward.1
= control target key start
LH: loop header
LB: loop body
LE: loop exit
PB: predicated region body
PF: predicated region fallthrough
CT: control target
= control target key end

     0   :  { %s15149_s0 = inlined_call_operand.hbm [shape: f32[56,28], index: 0, kind: input, shape index: {}]   ;;  %s15150_s1 = inlined_call_operand.vmem [shape: f32[3,28,56], index: 1, kind: input, shape index: {}]   ;;  %s15151_s2 = inlined_call_operand.vmem [shape: f32[3,28,448], index: 2, kind: input, shape index: {}]   ;;  %s15152_s3 = inlined_call_operand.hbm [shape: f32[1,448], index: 3, kind: input, shape index: {}]   ;;  %s15153_s4 = inlined_call_operand.hbm [shape: f32[3,14,28], index: 4, kind: input, shape index: {}]   ;;  %s15154_s5 = inlined_call_operand.vmem [shape: f32[3,448,224], index: 5, kind: input, shape index: {}]   ;;  %s15155_s6 = inlined_call_operand.vmem [shape: f32[1,224], index: 6, kind: input, shape index: {}]   ;;  %s15156_s7 = inlined_call_operand.hbm [shape: f32[3,8,14], index: 7, kind: input, shape index: {}]   ;;  %s15157_s8 = inlined_call_operand.vmem [shape: f32[3,224,128], index: 8, kind: input, shape index: {}]   ;;  %s15158_s9 = inlined_call_operand.vmem [shape: f32[1,128], index: 9, kind: input, shape index: {}]   ;;  %s15159_s10 = inlined_call_operand.hbm [shape: f32[3,4,8], index: 10, kind: input, shape index: {}]   ;;  %s15160_s11 = inlined_call_operand.vmem [shape: f32[3,128,20], index: 11, kind: input, shape index: {}]   ;;  %s15161_s12 = inlined_call_operand.hbm [shape: f32[1,20], index: 12, kind: input, shape index: {}]   ;;  %s15162_s13 = inlined_call_operand.vmem [shape: f32[3,8,4], index: 13, kind: input, shape index: {}]   ;;  %s15163_s14 = inlined_call_operand.hbm [shape: f32[3,20,128], index: 14, kind: input, shape index: {}]   ;;  %s15164_s15 = inlined_call_operand.hbm [shape: f32[1,128], index: 15, kind: input, shape index: {}]   ;;  %s15165_s16 = inlined_call_operand.vmem [shape: f32[3,14,8], index: 16, kind: input, shape index: {}]   ;;  %s15166_s17 = inlined_call_operand.vmem [shape: f32[3,128,224], index: 17, kind: input, shape index: {}]   ;;  %s15167_s18 = inlined_call_operand.hbm [shape: f32[1,224], index: 18, kind: input, shape index: {}]   ;;  %s15168_s19 = inlined_call_operand.vmem [shape: f32[3,28,14], index: 19, kind: input, shape index: {}]   ;;  %s15169_s20 = inlined_call_operand.hbm [shape: f32[3,224,448], index: 20, kind: input, shape index: {}]   ;;  %s15170_s21 = inlined_call_operand.hbm [shape: f32[1,448], index: 21, kind: input, shape index: {}]   ;;  %s15171_s22 = inlined_call_operand.vmem [shape: f32[3,56,28], index: 22, kind: input, shape index: {}]   ;;  %s15172_s23 = inlined_call_operand.vmem [shape: f32[3,448,28], index: 23, kind: input, shape index: {}]   ;;  %s15173_s24 = inlined_call_operand.vmem [shape: f32[1,28], index: 24, kind: input, shape index: {}]   ;;  %s15174_s25 = inlined_call_operand.vmem [shape: f32[4,20], index: 25, kind: output, shape index: {0}]   ;;  %s15175_s26 = inlined_call_operand.hbm [shape: f32[56,28], index: 26, kind: output, shape index: {1}]  }
   0x1   :  { %15190 = sst [smem:[#allocation28_spill]] %s15149_s0 }
   0x2   :  { %15191 = sst [smem:[#allocation29_spill]] %s15150_s1 }
   0x3   :  { %15192 = sst [smem:[#allocation30_spill]] %s15151_s2 }
   0x4   :  { %15193 = sst [smem:[#allocation31_spill]] %s15152_s3 }
   0x5   :  { %15194 = sst [smem:[#allocation32_spill]] %s15153_s4 }
   0x6   :  { %15195 = sst [smem:[#allocation33_spill]] %s15154_s5 }
   0x7   :  { %15196 = sst [smem:[#allocation34_spill]] %s15155_s6 }
   0x8   :  { %15197 = sst [smem:[#allocation35_spill]] %s15156_s7 }
   0x9   :  { %15198 = sst [smem:[#allocation36_spill]] %s15157_s8 }
   0xa   :  { %15199 = sst [smem:[#allocation37_spill]] %s15158_s9 }
   0xb   :  { %15200 = sst [smem:[#allocation38_spill]] %s15159_s10 }
   0xc   :  { %15201 = sst [smem:[#allocation39_spill]] %s15175_s26 }
   0xd   :  { %32 = vsyncpa [#allocation3], 0 }
   0xe   :  { %33 = vsyncpa [#allocation6], 0 }
   0xf   :  { %34 = vsyncpa [#allocation9], 0 }
  0x10   :  { %35 = vsyncpa [#allocation12], 0 }
  0x11   :  { %36 = vsyncpa [#allocation15], 0 }
  0x12   :  { %37 = vsyncpa [#allocation18], 0 }
  0x13   :  { %38 = vsyncpa [#allocation4], 0  ;;  %s11245_s27 = smov [#allocation5]   ;;  %s15202_s8 = sld [smem:[#allocation31_spill]] }
  0x14   :  { %s61_s3 = sshll.u32 %s11245_s27, 4  ;;  %s62_s3 = int_to_ptr.vmem [resolvable:$true] %s61_s3 }
  0x19   :  { %s10967_s4 = scalar_lea.hbm %s15202_s8, 64 }
  0x1a   :  { %p10968_p0 = scmp.ne.s32.totalorder %s15202_s8, %s10967_s4  ;;  %p10971_p1 = scmp.lt.u32.totalorder %s10967_s4, %s15202_s8 }
  0x1c   :  { %p10973_p2 = pnand %p10971_p1, %p10968_p0 }
  0x1e   :  { %10976 = shalt.err (!%p10973_p2)
}
  0x1f   :  { %s10977_s2 = scalar_lea.vmem %s62_s3, 64  ;;  %p10982_p4 = scmp.lt.s32.totalorder %s62_s3, %s62_s3 }
  0x20   :  { %p10978_p3 = scmp.ne.s32.totalorder %s62_s3, %s10977_s2  ;;  %p10983_p5 = scmp.lt.s32.totalorder %s10977_s2, %s10977_s2 }
  0x22   :  { %p10984_p6 = por %p10983_p5, %p10982_p4 }
  0x24   :  { %p10985_p7 = pnand %p10984_p6, %p10978_p3 }
  0x26   :  { %10988 = shalt.err (!%p10985_p7)
}
  0x27   :  { %64 = dma.hbm_to_vmem [thread:$0]  %s15202_s8, 64, %s62_s3, [#allocation6]  }
  0x28   :  { %s11246_s6 = smov [#allocation8]   ;;  %s11247_s27 = smov [#allocation11]  }
  0x29   :  { %s86_s1 = sshll.u32 %s11246_s6, 4  ;;  %s117_s7 = sshll.u32 %s11247_s27, 4  ;;  %s87_s1 = int_to_ptr.vmem [resolvable:$true] %s86_s1  ;;  %s118_s7 = int_to_ptr.vmem [resolvable:$true] %s117_s7 }
  0x2a   :  { %s15203_s29 = sld [smem:[#allocation35_spill]] }
  0x30   :  { %s10989_s0 = scalar_lea.hbm %s15203_s29, 384 }
  0x31   :  { %p10990_p8 = scmp.ne.s32.totalorder %s15203_s29, %s10989_s0  ;;  %p10993_p9 = scmp.lt.u32.totalorder %s10989_s0, %s15203_s29 }
  0x33   :  { %p10995_p10 = pnand %p10993_p9, %p10990_p8 }
  0x35   :  { %10998 = shalt.err (!%p10995_p10)
}
  0x36   :  { %s10999_s3 = scalar_lea.vmem %s87_s1, 384  ;;  %p11004_p12 = scmp.lt.s32.totalorder %s87_s1, %s87_s1 }
  0x37   :  { %p11000_p11 = scmp.ne.s32.totalorder %s87_s1, %s10999_s3  ;;  %p11005_p13 = scmp.lt.s32.totalorder %s10999_s3, %s10999_s3 }
  0x39   :  { %p11006_p0 = por %p11005_p13, %p11004_p12 }
  0x3b   :  { %p11007_p1 = pnand %p11006_p0, %p11000_p11 }
  0x3d   :  { %11010 = shalt.err (!%p11007_p1)
}
  0x3e   :  { %s15186_s8 = smov 128   ;;  %s11249_s5 = smov 8  }
  0x3f   :  { %92 = dma.hbm_to_vmem [thread:$0]  %s15203_s29, 384, %s87_s1, [#allocation9], %s15186_s8, %s15186_s8, %s11249_s5  }
  0x40   :  { %s11011_s28 = scalar_lea.hbm %s15161_s12, 16 }
  0x41   :  { %p11012_p2 = scmp.ne.s32.totalorder %s15161_s12, %s11011_s28  ;;  %p11015_p3 = scmp.lt.u32.totalorder %s11011_s28, %s15161_s12 }
  0x43   :  { %p11017_p4 = pnand %p11015_p3, %p11012_p2 }
  0x45   :  { %11020 = shalt.err (!%p11017_p4)
}
  0x46   :  { %s11021_s2 = scalar_lea.vmem %s118_s7, 16  ;;  %s11025_s3 = scalar_lea.vmem %s118_s7, 32 }
  0x47   :  { %p11022_p5 = scmp.ne.s32.totalorder %s118_s7, %s11021_s2  ;;  %p11026_p6 = scmp.lt.s32.totalorder %s118_s7, %s118_s7 }
  0x48   :  { %p11027_p7 = scmp.lt.s32.totalorder %s11025_s3, %s11021_s2 }
  0x4a   :  { %p11028_p8 = por %p11027_p7, %p11026_p6 }
  0x4c   :  { %p11029_p9 = pnand %p11028_p8, %p11022_p5 }
  0x4e   :  { %11032 = shalt.err (!%p11029_p9)
}
  0x4f   :  { %120 = dma.hbm_to_vmem [thread:$0]  %s15161_s12, 16, %s118_s7, [#allocation12]  }
  0x50   :  { %s11250_s10 = smov [#allocation14]   ;;  %s11251_s26 = smov [#allocation17]  }
  0x51   :  { %s141_s6 = sshll.u32 %s11250_s10, 4  ;;  %s166_s27 = sshll.u32 %s11251_s26, 4  ;;  %s142_s6 = int_to_ptr.vmem [resolvable:$true] %s141_s6  ;;  %s167_s27 = int_to_ptr.vmem [resolvable:$true] %s166_s27 }
  0x52   :  { %s11033_s0 = scalar_lea.hbm %s15164_s15, 16 }
  0x53   :  { %p11034_p10 = scmp.ne.s32.totalorder %s15164_s15, %s11033_s0  ;;  %p11037_p11 = scmp.lt.u32.totalorder %s11033_s0, %s15164_s15 }
  0x55   :  { %p11039_p12 = pnand %p11037_p11, %p11034_p10 }
  0x57   :  { %11042 = shalt.err (!%p11039_p12)
}
  0x58   :  { %s11043_s12 = scalar_lea.vmem %s142_s6, 16  ;;  %s11047_s7 = scalar_lea.vmem %s142_s6, 32 }
  0x59   :  { %p11044_p13 = scmp.ne.s32.totalorder %s142_s6, %s11043_s12  ;;  %p11048_p0 = scmp.lt.s32.totalorder %s142_s6, %s142_s6 }
  0x5a   :  { %p11049_p1 = scmp.lt.s32.totalorder %s11047_s7, %s11043_s12 }
  0x5c   :  { %p11050_p2 = por %p11049_p1, %p11048_p0 }
  0x5e   :  { %p11051_p3 = pnand %p11050_p2, %p11044_p13 }
  0x60   :  { %11054 = shalt.err (!%p11051_p3)
}
  0x61   :  { %144 = dma.hbm_to_vmem [thread:$0]  %s15164_s15, 16, %s142_s6, [#allocation15]  }
  0x62   :  { %s11055_s28 = scalar_lea.hbm %s15169_s20, 43008 }
  0x63   :  { %p11056_p4 = scmp.ne.s32.totalorder %s15169_s20, %s11055_s28  ;;  %p11059_p5 = scmp.lt.u32.totalorder %s11055_s28, %s15169_s20 }
  0x65   :  { %p11061_p6 = pnand %p11059_p5, %p11056_p4 }
  0x67   :  { %11064 = shalt.err (!%p11061_p6)
}
  0x68   :  { %s11065_s2 = scalar_lea.vmem %s167_s27, 43008  ;;  %p11070_p8 = scmp.lt.s32.totalorder %s167_s27, %s167_s27 }
  0x69   :  { %p11066_p7 = scmp.ne.s32.totalorder %s167_s27, %s11065_s2  ;;  %p11071_p9 = scmp.lt.s32.totalorder %s11065_s2, %s11065_s2 }
  0x6b   :  { %p11072_p10 = por %p11071_p9, %p11070_p8 }
  0x6d   :  { %p11073_p11 = pnand %p11072_p10, %p11066_p7 }
  0x6f   :  { %11076 = shalt.err (!%p11073_p11)
}
  0x70   :  { %s11252_s15 = smov 512   ;;  %s11253_s6 = smov 32  }
  0x71   :  { %172 = dma.hbm_to_vmem [thread:$0]  %s15169_s20, 43008, %s167_s27, [#allocation18], %s11252_s15, %s11252_s15, %s11253_s6  }
  0x72   :  { %s11254_s7 = smov [#allocation2]   ;;  %s11255_s29 = smov [#allocation7]  }
  0x73   :  { %s44_s1 = sshll.u32 %s11254_s7, 4  ;;  %s70_s10 = sshll.u32 %s11255_s29, 4  ;;  %s45_s1 = int_to_ptr.vmem [resolvable:$true] %s44_s1  ;;  %s71_s10 = int_to_ptr.vmem [resolvable:$true] %s70_s10 }
  0x74   :  { %s15204_s4 = sld [smem:[#allocation28_spill]] }
  0x7a   :  { %s11077_s0 = scalar_lea.hbm %s15204_s4, 896 }
  0x7b   :  { %p11078_p12 = scmp.ne.s32.totalorder %s15204_s4, %s11077_s0  ;;  %p11081_p13 = scmp.lt.u32.totalorder %s11077_s0, %s15204_s4 }
  0x7d   :  { %p11083_p0 = pnand %p11081_p13, %p11078_p12 }
  0x7f   :  { %11086 = shalt.err (!%p11083_p0)
}
  0x80   :  { %s11087_s20 = scalar_lea.vmem %s45_s1, 896  ;;  %p11092_p2 = scmp.lt.s32.totalorder %s45_s1, %s45_s1 }
  0x81   :  { %p11088_p1 = scmp.ne.s32.totalorder %s45_s1, %s11087_s20  ;;  %p11093_p3 = scmp.lt.s32.totalorder %s11087_s20, %s11087_s20 }
  0x83   :  { %p11094_p4 = por %p11093_p3, %p11092_p2 }
  0x85   :  { %p11095_p5 = pnand %p11094_p4, %p11088_p1 }
  0x87   :  { %11098 = shalt.err (!%p11095_p5)
}
  0x88   :  { %s15205_s27 = smov 128   ;;  %s15206_s12 = sld [smem:[#allocation32_spill]] }
  0x89   :  { %50 = dma.hbm_to_vmem [thread:$0]  %s15204_s4, 896, %s45_s1, [#allocation3], %s15205_s27, %s15205_s27, %s11249_s5  }
  0x8e   :  { %s11099_s7 = scalar_lea.hbm %s15206_s12, 768 }
  0x8f   :  { %p11100_p6 = scmp.ne.s32.totalorder %s15206_s12, %s11099_s7  ;;  %p11103_p7 = scmp.lt.u32.totalorder %s11099_s7, %s15206_s12 }
  0x91   :  { %p11105_p8 = pnand %p11103_p7, %p11100_p6 }
  0x93   :  { %11108 = shalt.err (!%p11105_p8)
}
  0x94   :  { %s11109_s9 = scalar_lea.vmem %s71_s10, 768  ;;  %p11114_p10 = scmp.lt.s32.totalorder %s71_s10, %s71_s10 }
  0x95   :  { %p11110_p9 = scmp.ne.s32.totalorder %s71_s10, %s11109_s9  ;;  %p11115_p11 = scmp.lt.s32.totalorder %s11109_s9, %s11109_s9 }
  0x97   :  { %p11116_p12 = por %p11115_p11, %p11114_p10 }
  0x99   :  { %p11117_p13 = pnand %p11116_p12, %p11110_p9 }
  0x9b   :  { %11120 = shalt.err (!%p11117_p13)
}
  0x9c   :  { %76 = dma.hbm_to_vmem [thread:$0]  %s15206_s12, 768, %s71_s10, [#allocation6], %s15205_s27, %s15205_s27, %s11249_s5  }
  0x9d   :  { %s11256_s30 = smov [#allocation10]   ;;  %s15207_s6 = sld [smem:[#allocation38_spill]] }
  0x9e   :  { %s102_s2 = sshll.u32 %s11256_s30, 4  ;;  %s103_s2 = int_to_ptr.vmem [resolvable:$true] %s102_s2 }
  0xa3   :  { %s11121_s3 = scalar_lea.hbm %s15207_s6, 192 }
  0xa4   :  { %p11122_p0 = scmp.ne.s32.totalorder %s15207_s6, %s11121_s3  ;;  %p11125_p1 = scmp.lt.u32.totalorder %s11121_s3, %s15207_s6 }
  0xa6   :  { %p11127_p2 = pnand %p11125_p1, %p11122_p0 }
  0xa8   :  { %11130 = shalt.err (!%p11127_p2)
}
  0xa9   :  { %s11131_s28 = scalar_lea.vmem %s103_s2, 192  ;;  %p11136_p4 = scmp.lt.s32.totalorder %s103_s2, %s103_s2 }
  0xaa   :  { %p11132_p3 = scmp.ne.s32.totalorder %s103_s2, %s11131_s28  ;;  %p11137_p5 = scmp.lt.s32.totalorder %s11131_s28, %s11131_s28 }
  0xac   :  { %p11138_p6 = por %p11137_p5, %p11136_p4 }
  0xae   :  { %p11139_p7 = pnand %p11138_p6, %p11132_p3 }
  0xb0   :  { %11142 = shalt.err (!%p11139_p7)
}
  0xb1   :  { %s11257_s10 = smov 64   ;;  %s11258_s12 = smov 4  }
  0xb2   :  { %108 = dma.hbm_to_vmem [thread:$0]  %s15207_s6, 192, %s103_s2, [#allocation9], %s11257_s10, %s11257_s10, %s11258_s12  }
  0xb3   :  { %s11259_s1 = smov [#allocation13]   ;;  %s11260_s30 = smov [#allocation16]  }
  0xb4   :  { %s128_s4 = sshll.u32 %s11259_s1, 4  ;;  %s155_s20 = sshll.u32 %s11260_s30, 4  ;;  %s129_s4 = int_to_ptr.vmem [resolvable:$true] %s128_s4  ;;  %s156_s20 = int_to_ptr.vmem [resolvable:$true] %s155_s20 }
  0xb5   :  { %s11143_s8 = scalar_lea.hbm %s15163_s14, 1152 }
  0xb6   :  { %p11144_p8 = scmp.ne.s32.totalorder %s15163_s14, %s11143_s8  ;;  %p11147_p9 = scmp.lt.u32.totalorder %s11143_s8, %s15163_s14 }
  0xb8   :  { %p11149_p10 = pnand %p11147_p9, %p11144_p8 }
  0xba   :  { %11152 = shalt.err (!%p11149_p10)
}
  0xbb   :  { %s11153_s2 = scalar_lea.vmem %s129_s4, 1152  ;;  %p11158_p12 = scmp.lt.s32.totalorder %s129_s4, %s129_s4 }
  0xbc   :  { %p11154_p11 = scmp.ne.s32.totalorder %s129_s4, %s11153_s2  ;;  %p11159_p13 = scmp.lt.s32.totalorder %s11153_s2, %s11153_s2 }
  0xbe   :  { %p11160_p0 = por %p11159_p13, %p11158_p12 }
  0xc0   :  { %p11161_p1 = pnand %p11160_p0, %p11154_p11 }
  0xc2   :  { %11164 = shalt.err (!%p11161_p1)
}
  0xc3   :  { %134 = dma.hbm_to_vmem [thread:$0]  %s15163_s14, 1152, %s129_s4, [#allocation12], %s15205_s27, %s15205_s27, %s11249_s5  }
  0xc4   :  { %s11165_s9 = scalar_lea.hbm %s15167_s18, 32 }
  0xc5   :  { %p11166_p2 = scmp.ne.s32.totalorder %s15167_s18, %s11165_s9  ;;  %p11169_p3 = scmp.lt.u32.totalorder %s11165_s9, %s15167_s18 }
  0xc7   :  { %p11171_p4 = pnand %p11169_p3, %p11166_p2 }
  0xc9   :  { %11174 = shalt.err (!%p11171_p4)
}
  0xca   :  { %s11175_s8 = scalar_lea.vmem %s156_s20, 32  ;;  %p11180_p6 = scmp.lt.s32.totalorder %s156_s20, %s156_s20 }
  0xcb   :  { %p11176_p5 = scmp.ne.s32.totalorder %s156_s20, %s11175_s8  ;;  %p11181_p7 = scmp.lt.s32.totalorder %s11175_s8, %s11175_s8 }
  0xcd   :  { %p11182_p8 = por %p11181_p7, %p11180_p6 }
  0xcf   :  { %p11183_p9 = pnand %p11182_p8, %p11176_p5 }
  0xd1   :  { %11186 = shalt.err (!%p11183_p9)
}
  0xd2   :  { %158 = dma.hbm_to_vmem [thread:$0]  %s15167_s18, 32, %s156_s20, [#allocation15]  }
  0xd3   :  { %s11261_s7 = smov [#allocation19]   ;;  %s11187_s2 = scalar_lea.hbm %s15170_s21, 64 }
  0xd4   :  { %s179_s29 = sshll.u32 %s11261_s7, 4  ;;  %p11188_p10 = scmp.ne.s32.totalorder %s15170_s21, %s11187_s2  ;;  %s180_s29 = int_to_ptr.vmem [resolvable:$true] %s179_s29 }
  0xd5   :  { %p11191_p11 = scmp.lt.u32.totalorder %s11187_s2, %s15170_s21 }
  0xd7   :  { %p11193_p12 = pnand %p11191_p11, %p11188_p10 }
  0xd9   :  { %11196 = shalt.err (!%p11193_p12)
}
  0xda   :  { %s11197_s9 = scalar_lea.vmem %s180_s29, 64  ;;  %p11202_p0 = scmp.lt.s32.totalorder %s180_s29, %s180_s29 }
  0xdb   :  { %p11198_p13 = scmp.ne.s32.totalorder %s180_s29, %s11197_s9  ;;  %p11203_p1 = scmp.lt.s32.totalorder %s11197_s9, %s11197_s9 }
  0xdd   :  { %p11204_p2 = por %p11203_p1, %p11202_p0 }
  0xdf   :  { %p11205_p3 = pnand %p11204_p2, %p11198_p13 }
  0xe1   :  { %11208 = shalt.err (!%p11205_p3)
}
  0xe2   :  { %182 = dma.hbm_to_vmem [thread:$0]  %s15170_s21, 64, %s180_s29, [#allocation18]  }
  0xe3   :  { %11231 = dma.done.wait [#allocation3], 896  }
  0xe4   :  { %11232 = vsyncadd [#allocation3], 4294966400 }
  0xe5   :  { %11233 = dma.done.wait [#allocation6], 832  }
  0xe6   :  { %11234 = vsyncadd [#allocation6], 4294966464 }
  0xe7   :  { %11235 = dma.done.wait [#allocation9], 576  }
  0xe8   :  { %11236 = vsyncadd [#allocation9], 4294966720 }
  0xe9   :  { %11237 = dma.done.wait [#allocation12], 1168  }
  0xea   :  { %11238 = vsyncadd [#allocation12], 4294966128 }
  0xeb   :  { %11239 = dma.done.wait [#allocation15], 48  }
  0xec   :  { %11240 = vsyncadd [#allocation15], 4294967248 }
  0xed   :  { %11241 = dma.done.wait [#allocation18], 43072  }
  0xee   :  { %11242 = vsyncadd [#allocation18], 4294924224  ;;  %v222_v0 = vld [vmem:[#allocation2] sm:$0xff]  ;;  %v223_v1 = vld [vmem:[#allocation2 + $0x8] sm:$0xff]  ;;  %vm233_vm0 = vcmask 457728   ;;  %s15208_s30 = sld [smem:[#allocation29_spill]] }
  0xef   :  { %v224_v2 = vld [vmem:[#allocation2 + $0x10] sm:$0xff]  ;;  %v11546_v3 = vpack.c.bf16 %v223_v1, %v222_v0  ;;  %v225_v4 = vld [vmem:[#allocation2 + $0x18] sm:$0xff]  ;;  %v226_v6 = vld [vmem:[#allocation2 + $0x20] sm:$0xff]  ;;  %s15209_s20 = sld [smem:[#allocation30_spill]]  ;;  %vm479_vm1 = vcmask 1043456   ;;  %vm11262_vm2 = vmmov 1  }
  0xf0   :  { %v11548_v5 = vpack.c.bf16 %v225_v4, %v224_v2  ;;  %v227_v7 = vld [vmem:[#allocation2 + $0x28] sm:$0xff]  ;;  %v11561_v10 = vld [vmem:[#allocation2 + $0x30] sm:$0xff]  ;;  %vm11634_vm3 = vmpackc.low %vm479_vm1, %vm11262_vm2  ;;  %v15188_v43 = vmov 0.0   ;;  %vm466_vm4 = vcmask 228352   ;;  %s15212_s6 = sld [smem:[#allocation33_spill]]  ;;  %vm1905_vm5 = vcmask 523264  }
  0xf1   :  { %9223 = vmatprep.subr.bf16.mxu0 %v11546_v3  ;;  %v11557_v9 = vpack.c.bf16 %v227_v7, %v226_v6  ;;  %645 = vmatprep.mubr.f32.mxu1 %v15188_v43  ;;  %s15213_s15 = sld [smem:[#allocation34_spill]]  ;;  %vm2711_vm6 = vcmask 1045504   ;;  %vm2707_vm8 = vcmask 113664   ;;  %s15216_s8 = sld [smem:[#allocation36_spill]]  ;;  %vm2922_vm9 = vcmask 785408  }
  0xf2   :  { %9225 = vmatpush3.bf16.msra.mxu0 %v11546_v3  ;;  %vm13061_vm7 = vmpackc.low %vm2711_vm6, %vm11262_vm2  ;;  %vm11265_vm10 = vmmov 0   ;;  %s15217_s1 = sld [smem:[#allocation37_spill]]  ;;  %vm3263_vm11 = vcmask 64512   ;;  %vm3762_vm12 = vcmask 158720   ;;  %vm3765_vm13 = vcmask 31744  }
  0xf3   :  { %9227 = vmatprep.subr.bf16.mxu0 %v11548_v5  ;;  %vm3924_vm14 = vcmask 162816   ;;  %v15218_v33 = vmov 0.0  }
  0xf4   :  { %v229_v8 = vld [vmem:[%s15208_s30] sm:$0xff]  ;;  %v230_v11 = vld [vmem:[%s15208_s30 + $0x8] sm:$0xff]  ;;  %v231_v12 = vld [vmem:[%s15208_s30 + $0x10] sm:$0xff] }
  0xf5   :  { %8999 = vmatprep.mubr.msk.f32.mxu0 %vm233_vm0, %v229_v8  ;;  %v232_v13 = vld [vmem:[%s15208_s30 + $0x18] sm:$0xf]  ;;  %v7925_v14 = vld [vmem:[%s15208_s30 + $0x20] sm:$0xff]  ;;  %v7926_v15 = vld [vmem:[%s15208_s30 + $0x28] sm:$0xff] }
  0xf6   :  { %9229 = vmatpush3.bf16.msra.mxu0 %v11548_v5  ;;  %v7927_v16 = vld [vmem:[%s15208_s30 + $0x30] sm:$0xff]  ;;  %v7928_v17 = vld [vmem:[%s15208_s30 + $0x38] sm:$0xf]  ;;  %v7934_v18 = vld [vmem:[%s15209_s20 + $0x88] sm:$0xff] }
  0xf7   :  { %9231 = vmatprep.subr.bf16.mxu0 %v11557_v9  ;;  %v7938_v19 = vld [vmem:[%s15209_s20 + $0xa8] sm:$0xff]  ;;  %v7936_v20 = vld [vmem:[%s15209_s20 + $0x98] sm:$0xff]  ;;  %v7933_v24 = vld [vmem:[%s15209_s20 + $0x80] sm:$0xff] }
  0xf8   :  { %v9246_v21 = vpack.c.bf16 %v7938_v19, %v7934_v18  ;;  %v7940_v22 = vld [vmem:[%s15209_s20 + $0xb8] sm:$0xff]  ;;  %v7937_v25 = vld [vmem:[%s15209_s20 + $0xa0] sm:$0xff]  ;;  %v7935_v26 = vld [vmem:[%s15209_s20 + $0x90] sm:$0xff] }
  0xf9   :  { %v9256_v23 = vpack.c.bf16 %v7940_v22, %v7936_v20  ;;  %v9248_v27 = vpack.c.bf16 %v7937_v25, %v7933_v24  ;;  %v7939_v28 = vld [vmem:[%s15209_s20 + $0xb0] sm:$0xff]  ;;  %v7942_v29 = vld [vmem:[%s15209_s20 + $0xc8] sm:$0xff]  ;;  %v7944_v34 = vld [vmem:[%s15209_s20 + $0xd8] sm:$0xff] }
  0xfa   :  { %9233 = vmatpush3.bf16.msra.mxu0 %v11557_v9  ;;  %v7946_v30 = vld [vmem:[%s15209_s20 + $0xe8] sm:$0xf]  ;;  %v9258_v31 = vpack.c.bf16 %v7939_v28, %v7935_v26  ;;  %v7948_v35 = vld [vmem:[%s15209_s20 + $0xf8] sm:$0xf]  ;;  %v7941_v37 = vld [vmem:[%s15209_s20 + $0xc0] sm:$0xff] }
  0xfb   :  { %8997 = vmatprep.subr.mxu0 %v11561_v10  ;;  %9257 = vmatprep.subr.bf16.mxu1 %v9256_v23  ;;  %v9250_v32 = vpack.c.bf16 %v7946_v30, %v7942_v29  ;;  %v9260_v36 = vpack.c.bf16 %v7948_v35, %v7944_v34  ;;  %v7945_v38 = vld [vmem:[%s15209_s20 + $0xe0] sm:$0xf]  ;;  %v7943_v39 = vld [vmem:[%s15209_s20 + $0xd0] sm:$0xff]  ;;  %v332_v44 = vld [vmem:[%s15209_s20 + $0x8] sm:$0xff] }
  0xfc   :  { %9259 = vmatpush1.bf16.msra.mxu1 %v9258_v31  ;;  %v9253_v40 = vpack.c.bf16 %v7945_v38, %v7941_v37  ;;  %v7947_v41 = vld [vmem:[%s15209_s20 + $0xf0] sm:$0xf]  ;;  %v336_v45 = vld [vmem:[%s15209_s20 + $0x28] sm:$0xff]  ;;  %v334_v46 = vld [vmem:[%s15209_s20 + $0x18] sm:$0xff] }
  0xfd   :  { %9262 = vmatprep.subr.msk.bf16.mxu1 %vm11634_vm3, %v9260_v36  ;;  %v9263_v42 = vpack.c.bf16 %v7947_v41, %v7943_v39  ;;  %v9266_v47 = vpack.c.bf16 %v336_v45, %v332_v44  ;;  %v338_v48 = vld [vmem:[%s15209_s20 + $0x38] sm:$0xff]  ;;  %v331_v54 = vld [vmem:[%s15209_s20] sm:$0xff]  ;;  %v333_v56 = vld [vmem:[%s15209_s20 + $0x10] sm:$0xff] }
  0xfe   :  { %8998 = vmatpush3.msra.mxu0 %v11561_v10  ;;  %v9276_v49 = vpack.c.bf16 %v338_v48, %v334_v46  ;;  %v335_v55 = vld [vmem:[%s15209_s20 + $0x20] sm:$0xff]  ;;  %v337_v57 = vld [vmem:[%s15209_s20 + $0x30] sm:$0xff]  ;;  %v340_v58 = vld [vmem:[%s15209_s20 + $0x48] sm:$0xff]  ;;  %v1211_v46 = vlaneseq }
  0xff   :  { %9000 = vmatmul.mubr.msk.f32.vlgmr.msra.gmra.mrb[0].mxu0 %vm233_vm0, %v230_v11  ;;  %9235 = vmatprep.subr.bf16.mxu0 %v11546_v3  ;;  %v344_v59 = vld [vmem:[%s15209_s20 + $0x68] sm:$0xf]  ;;  %v342_v60 = vld [vmem:[%s15209_s20 + $0x58] sm:$0xff]  ;;  %v9268_v63 = vpack.c.bf16 %v335_v55, %v331_v54  ;;  %v9278_v0 = vpack.c.bf16 %v337_v57, %v333_v56  ;;  %v339_v1 = vld [vmem:[%s15209_s20 + $0x40] sm:$0xff] }
 0x100   :  { %9237 = vmatpush3.bf16.msra.mxu0 %v11546_v3  ;;  %9002 = vmatprep.mubr.msk.f32.mxu0 %vm233_vm0, %v231_v12  ;;  %v346_v61 = vld [vmem:[%s15209_s20 + $0x78] sm:$0xf]  ;;  %v9270_v4 = vpack.c.bf16 %v344_v59, %v340_v58  ;;  %v343_v7 = vld [vmem:[%s15209_s20 + $0x60] sm:$0xf]  ;;  %v341_v8 = vld [vmem:[%s15209_s20 + $0x50] sm:$0xff] }
 0x101   :  { %9239 = vmatprep.subr.bf16.mxu0 %v11548_v5  ;;  %9265 = vmatpush1.bf16.msk.msra.mxu1 %vm11634_vm3, %v9263_v42  ;;  %v9280_v6 = vpack.c.bf16 %v346_v61, %v342_v60  ;;  %v345_v11 = vld [vmem:[%s15209_s20 + $0x70] sm:$0xf]  ;;  %v7984_v12 = vld [vmem:[%s15209_s20 + $0x118] sm:$0xff]  ;;  %v7986_v28 = vld [vmem:[%s15209_s20 + $0x128] sm:$0xff] }
 0x102   :  { %9277 = vmatprep.subr.bf16.mxu1 %v9276_v49  ;;  %v7983_v19 = vld [vmem:[%s15209_s20 + $0x110] sm:$0xff]  ;;  %v7996_v22 = vld [vmem:[%s15209_s20 + $0x178] sm:$0xf]  ;;  %v7981_v29 = vld [vmem:[%s15209_s20 + $0x100] sm:$0xff] }
 0x103   :  { %9003 = vmatmul.mubr.msk.f32.gmra.mrb[2].mxu0 %vm233_vm0, %v232_v13  ;;  %v7988_v13 = vld [vmem:[%s15209_s20 + $0x138] sm:$0xff]  ;;  %v7987_v20 = vld [vmem:[%s15209_s20 + $0x130] sm:$0xff]  ;;  %v7985_v30 = vld [vmem:[%s15209_s20 + $0x120] sm:$0xff] }
 0x104   :  { %9241 = vmatpush3.bf16.msra.mxu0 %v11548_v5  ;;  %9019 = vmatprep.mubr.msk.f32.mxu0 %vm233_vm0, %v7925_v14  ;;  %v9308_v18 = vpack.c.bf16 %v7988_v13, %v7984_v12  ;;  %v9310_v23 = vpack.c.bf16 %v7987_v20, %v7983_v19  ;;  %v7991_v25 = vld [vmem:[%s15209_s20 + $0x150] sm:$0xff]  ;;  %v7974_v34 = vld [vmem:[%s15208_s30 + $0x48] sm:$0xff]  ;;  %v9300_v35 = vpack.c.bf16 %v7985_v30, %v7981_v29  ;;  %v7989_v38 = vld [vmem:[%s15209_s20 + $0x140] sm:$0xff] }
 0x105   :  { %9243 = vmatprep.subr.bf16.mxu0 %v11557_v9  ;;  %v7995_v26 = vld [vmem:[%s15209_s20 + $0x170] sm:$0xf]  ;;  %v7993_v39 = vld [vmem:[%s15209_s20 + $0x160] sm:$0xf] }
 0x106   :  { %v7975_v36 = vld [vmem:[%s15208_s30 + $0x50] sm:$0xff] }
 0x108   :  { %9245 = vmatpush3.bf16.msra.mxu0 %v11557_v9 }
 0x109   :  { %9017 = vmatprep.subr.mxu0 %v11561_v10 }
 0x10c   :  { %9018 = vmatpush3.msra.mxu0 %v11561_v10 }
 0x10d   :  { %9020 = vmatmul.mubr.msk.f32.vlgmr.msra.gmra.mrb[4].mxu0 %vm233_vm0, %v7926_v15  ;;  %9247 = vmatprep.subr.bf16.mxu0 %v9246_v21  ;;  %v9273_v15 = vpack.c.bf16 %v343_v7, %v339_v1  ;;  %v7992_v21 = vld [vmem:[%s15209_s20 + $0x158] sm:$0xff] }
 0x10e   :  { %9022 = vmatprep.mubr.msk.f32.mxu0 %vm233_vm0, %v7927_v16  ;;  %9249 = vmatpush1.bf16.msra.mxu0 %v9248_v27  ;;  %v9283_v16 = vpack.c.bf16 %v345_v11, %v341_v8  ;;  %v9312_v24 = vpack.c.bf16 %v7996_v22, %v7992_v21  ;;  %v9315_v27 = vpack.c.bf16 %v7995_v26, %v7991_v25 }
 0x10f   :  { %9252 = vmatprep.subr.msk.bf16.mxu0 %vm11634_vm3, %v9250_v32  ;;  %v7990_v32 = vld [vmem:[%s15209_s20 + $0x148] sm:$0xff] }
 0x111   :  { %9023 = vmatmul.mubr.msk.f32.gmra.mrb[6].mxu0 %vm233_vm0, %v7928_v17 }
 0x112   :  { %9255 = vmatpush1.bf16.msk.msra.mxu0 %vm11634_vm3, %v9253_v40  ;;  %556 = vmatprep.mubr.f32.mxu0 %v15188_v43  ;;  %v9305_v40 = vpack.c.bf16 %v7993_v39, %v7989_v38 }
 0x113   :  { %9267 = vmatprep.subr.bf16.mxu0 %v9266_v47  ;;  %v11862_v47 = vshrl.u32 %v1211_v46, 7 }
 0x115   :  { %v11865_v48 = vsub.s32 0, %v11862_v47  ;;  %v1221_v49 = vsub.s32 2, %v11862_v47 }
 0x1d2   :  { %v11678_v50 = vpop.f32.mrb[0].mxu0 }
 0x1d3   :  { %v312_v51 = vpop.f32.mrb[1].mxu0 }
 0x1d6   :  { %v11680_v52 = vpop.f32.mrb[2].mxu0 }
 0x1d7   :  { %v11682_v53 = vpop.f32.mrb[3].mxu0 }
 0x1e0   :  { %v9021_v62 = vpop.f32.mrb[4].mxu0 }
 0x1e1   :  { %v430_v2 = vpop.f32.mrb[5].mxu0 }
 0x1e2   :  { %7951 = vmatmul.mubr.msk.f32.vlgmr.msra.gmra.mrb[8].mxu0 %vm466_vm4, %v430_v2  ;;  %7957 = vmatmul.mubr.msk.f32.vlgmr.msra.gmra.mrb[0].mxu1 %vm466_vm4, %v430_v2 }
 0x1e3   :  { %562 = vmatprep.mubr.f32.mxu0 %v15188_v43  ;;  %651 = vmatprep.mubr.f32.mxu1 %v15188_v43 }
 0x1e4   :  { %v9024_v14 = vpop.f32.mrb[6].mxu0  ;;  %9269 = vmatpush1.bf16.msra.mxu0 %v9268_v63  ;;  %9279 = vmatpush1.bf16.msra.mxu1 %v9278_v0 }
 0x1e5   :  { %v440_v17 = vpop.f32.mrb[7].mxu0  ;;  %9272 = vmatprep.subr.msk.bf16.mxu0 %vm11634_vm3, %v9270_v4  ;;  %9282 = vmatprep.subr.msk.bf16.mxu1 %vm11634_vm3, %v9280_v6 }
 0x1e6   :  { %7952 = vmatmul.mubr.msk.f32.gmra.mrb[10].mxu0 %vm466_vm4, %v9021_v62  ;;  %7958 = vmatmul.mubr.msk.f32.gmra.mrb[2].mxu1 %vm466_vm4, %v9021_v62 }
 0x1e7   :  { %568 = vmatprep.mubr.f32.mxu0 %v15188_v43  ;;  %657 = vmatprep.mubr.f32.mxu1 %v15188_v43 }
 0x1e8   :  { %9275 = vmatpush1.bf16.msk.msra.mxu0 %vm11634_vm3, %v9273_v15  ;;  %9285 = vmatpush1.bf16.msk.msra.mxu1 %vm11634_vm3, %v9283_v16 }
 0x1e9   :  { %9287 = vmatprep.subr.bf16.mxu0 %v11546_v3  ;;  %9309 = vmatprep.subr.bf16.mxu1 %v9308_v18 }
 0x1ea   :  { %7953 = vmatmul.mubr.msk.f32.gmra.mrb[12].mxu0 %vm466_vm4, %v440_v17  ;;  %7959 = vmatmul.mubr.msk.f32.gmra.mrb[4].mxu1 %vm466_vm4, %v440_v17 }
 0x1eb   :  { %574 = vmatprep.mubr.f32.mxu0 %v15188_v43  ;;  %663 = vmatprep.mubr.f32.mxu1 %v15188_v43 }
 0x1ee   :  { %7954 = vmatmul.mubr.msk.f32.gmra.mrb[14].mxu0 %vm466_vm4, %v9024_v14  ;;  %7960 = vmatmul.mubr.msk.f32.gmra.mrb[6].mxu1 %vm466_vm4, %v9024_v14 }
 0x1ef   :  { %758 = vmatprep.mubr.f32.mxu0 %v15188_v43  ;;  %847 = vmatprep.mubr.f32.mxu1 %v15188_v43 }
 0x1f2   :  { %7963 = vmatmul.mubr.msk.f32.vlgmr.msra.gmra.mrb[8].mxu0 %vm466_vm4, %v312_v51  ;;  %7969 = vmatmul.mubr.msk.f32.vlgmr.msra.gmra.mrb[0].mxu1 %vm466_vm4, %v312_v51  ;;  %v11869_v51 = vsub.s32 1, %v11862_v47 }
 0x1f3   :  { %764 = vmatprep.mubr.f32.mxu0 %v15188_v43  ;;  %853 = vmatprep.mubr.f32.mxu1 %v15188_v43 }
 0x1f4   :  { %9289 = vmatpush3.bf16.msra.mxu0 %v11546_v3  ;;  %9311 = vmatpush1.bf16.msra.mxu1 %v9310_v23  ;;  %v7982_v3 = vld [vmem:[%s15209_s20 + $0x108] sm:$0xff] }
 0x1f5   :  { %9291 = vmatprep.subr.bf16.mxu0 %v11548_v5  ;;  %9314 = vmatprep.subr.msk.bf16.mxu1 %vm11634_vm3, %v9312_v24  ;;  %v9298_v31 = vpack.c.bf16 %v7986_v28, %v7982_v3 }
 0x1f6   :  { %7964 = vmatmul.mubr.msk.f32.gmra.mrb[10].mxu0 %vm466_vm4, %v11678_v50  ;;  %7970 = vmatmul.mubr.msk.f32.gmra.mrb[2].mxu1 %vm466_vm4, %v11678_v50  ;;  %v1209_v50 = vld [vmem:[#allocation5] sm:$0xf] }
 0x1f7   :  { %770 = vmatprep.mubr.f32.mxu0 %v15188_v43  ;;  %859 = vmatprep.mubr.f32.mxu1 %v15188_v43  ;;  %v11877_v54 = vrot.slane %v1209_v50, %v1221_v49  ;;  %v11880_v55 = vrot.slane %v1209_v50, %v11869_v51 }
 0x1f8   :  { %9293 = vmatpush3.bf16.msra.mxu0 %v11548_v5  ;;  %9317 = vmatpush1.bf16.msk.msra.mxu1 %vm11634_vm3, %v9315_v27  ;;  %v7973_v5 = vld [vmem:[%s15208_s30 + $0x40] sm:$0xff] }
 0x1f9   :  { %9295 = vmatprep.subr.bf16.mxu0 %v11557_v9 }
 0x1fa   :  { %7965 = vmatmul.mubr.msk.f32.gmra.mrb[12].mxu0 %vm466_vm4, %v11682_v53  ;;  %7971 = vmatmul.mubr.msk.f32.gmra.mrb[4].mxu1 %vm466_vm4, %v11682_v53  ;;  %v11873_v53 = vrot.slane %v1209_v50, %v11865_v48 }
 0x1fb   :  { %776 = vmatprep.mubr.f32.mxu0 %v15188_v43  ;;  %865 = vmatprep.mubr.f32.mxu1 %v15188_v43 }
 0x1fc   :  { %9297 = vmatpush3.bf16.msra.mxu0 %v11557_v9  ;;  %v7994_v9 = vld [vmem:[%s15209_s20 + $0x168] sm:$0xf] }
 0x1fd   :  { %9037 = vmatprep.subr.mxu0 %v11561_v10  ;;  %v9302_v37 = vpack.c.bf16 %v7994_v9, %v7990_v32 }
 0x1fe   :  { %7966 = vmatmul.mubr.msk.f32.gmra.mrb[14].mxu0 %vm466_vm4, %v11680_v52  ;;  %7972 = vmatmul.mubr.msk.f32.gmra.mrb[6].mxu1 %vm466_vm4, %v11680_v52  ;;  %v1225_v52 = vsub.s32 3, %v11862_v47 }
 0x1ff   :  { %9039 = vmatprep.mubr.msk.f32.mxu0 %vm233_vm0, %v7973_v5  ;;  %1168 = vmatprep.mubr.f32.mxu1 %v15188_v43 }
 0x200   :  { %9038 = vmatpush3.msra.mxu0 %v11561_v10  ;;  %v7976_v10 = vld [vmem:[%s15208_s30 + $0x58] sm:$0xf]  ;;  %v11884_v56 = vrot.slane %v1209_v50, %v1225_v52 }
 0x201   :  { %9299 = vmatprep.subr.bf16.mxu0 %v9298_v31 }
 0x202   :  { %9040 = vmatmul.mubr.msk.f32.vlgmr.msra.gmra.mrb[16].mxu0 %vm233_vm0, %v7974_v34 }
 0x203   :  { %9042 = vmatprep.mubr.msk.f32.mxu0 %vm233_vm0, %v7975_v36  ;;  %9301 = vmatpush1.bf16.msra.mxu0 %v9300_v35 }
 0x204   :  { %9304 = vmatprep.subr.msk.bf16.mxu0 %vm11634_vm3, %v9302_v37 }
 0x206   :  { %9043 = vmatmul.mubr.msk.f32.gmra.mrb[18].mxu0 %vm233_vm0, %v7976_v10 }
 0x207   :  { %9307 = vmatpush1.bf16.msk.msra.mxu0 %vm11634_vm3, %v9305_v40  ;;  %1079 = vmatprep.mubr.f32.mxu0 %v15188_v43 }
 0x2d5   :  { %v9041_v41 = vpop.f32.mrb[16].mxu0 }
 0x2d6   :  { %v955_v42 = vpop.f32.mrb[17].mxu0 }
 0x2d7   :  { %7999 = vmatmul.mubr.msk.f32.vlgmr.msra.gmra.mrb[8].mxu0 %vm466_vm4, %v955_v42  ;;  %8005 = vmatmul.mubr.msk.f32.vlgmr.msra.gmra.mrb[0].mxu1 %vm466_vm4, %v955_v42 }
 0x2d8   :  { %1085 = vmatprep.mubr.f32.mxu0 %v15188_v43  ;;  %1174 = vmatprep.mubr.f32.mxu1 %v15188_v43 }
 0x2d9   :  { %v9044_v44 = vpop.f32.mrb[18].mxu0 }
 0x2da   :  { %v965_v45 = vpop.f32.mrb[19].mxu0 }
 0x2db   :  { %8000 = vmatmul.mubr.msk.f32.gmra.mrb[10].mxu0 %vm466_vm4, %v9041_v41  ;;  %8006 = vmatmul.mubr.msk.f32.gmra.mrb[2].mxu1 %vm466_vm4, %v9041_v41 }
 0x2dc   :  { %1091 = vmatprep.mubr.f32.mxu0 %v15188_v43  ;;  %1180 = vmatprep.mubr.f32.mxu1 %v15188_v43 }
 0x2df   :  { %8001 = vmatmul.mubr.msk.f32.gmra.mrb[12].mxu0 %vm466_vm4, %v965_v45  ;;  %8007 = vmatmul.mubr.msk.f32.gmra.mrb[4].mxu1 %vm466_vm4, %v965_v45 }
 0x2e0   :  { %1097 = vmatprep.mubr.f32.mxu0 %v15188_v43  ;;  %1186 = vmatprep.mubr.f32.mxu1 %v15188_v43 }
 0x2e3   :  { %8002 = vmatmul.mubr.msk.f32.gmra.mrb[14].mxu0 %vm466_vm4, %v9044_v44  ;;  %8008 = vmatmul.mubr.msk.f32.gmra.mrb[6].mxu1 %vm466_vm4, %v9044_v44 }
 0x2e4   :  { %1427 = vmatprep.mubr.f32.mxu1 %v15188_v43  ;;  %1504 = vmatprep.mubr.f32.mxu0 %v15188_v43 }
 0x3aa   :  { %v1081_v57 = vpop.f32.mrb[8].mxu0  ;;  %v1170_v58 = vpop.f32.mrb[0].mxu1 }
 0x3ab   :  { %v1231_v59 = vadd.f32 %v11873_v53, %v1081_v57  ;;  %v1233_v60 = vadd.f32 %v11877_v54, %v1170_v58  ;;  %v1083_v61 = vpop.f32.mrb[9].mxu0  ;;  %v1172_v62 = vpop.f32.mrb[1].mxu1 }
 0x3ac   :  { %v1232_v63 = vadd.f32 %v11880_v55, %v1083_v61  ;;  %v1234_v0 = vadd.f32 %v11884_v56, %v1172_v62 }
 0x3ad   :  { %v1247_v1 = vsub.f32 0.0, %v1231_v59  ;;  %v1249_v2 = vsub.f32 0.0, %v1233_v60 }
 0x3ae   :  { %v1248_v4 = vsub.f32 0.0, %v1232_v63  ;;  %v1250_v6 = vsub.f32 0.0, %v1234_v0  ;;  %v1087_v7 = vpop.f32.mrb[10].mxu0  ;;  %v1176_v8 = vpop.f32.mrb[2].mxu1 }
 0x3af   :  { %v1263_v11 = vmul.f32 1.442695, %v1247_v1  ;;  %v1267_v12 = vmul.f32 1.442695, %v1249_v2  ;;  %v1235_v13 = vadd.f32 %v11873_v53, %v1087_v7  ;;  %v1237_v14 = vadd.f32 %v11877_v54, %v1176_v8  ;;  %v1089_v15 = vpop.f32.mrb[11].mxu0  ;;  %v1178_v16 = vpop.f32.mrb[3].mxu1 }
 0x3b0   :  { %v1265_v17 = vmul.f32 1.442695, %v1248_v4  ;;  %v1269_v18 = vmul.f32 1.442695, %v1250_v6  ;;  %v1236_v19 = vadd.f32 %v11880_v55, %v1089_v15  ;;  %v1238_v20 = vadd.f32 %v11884_v56, %v1178_v16 }
 0x3b1   :  { %10767 = vpow2.f32 %v1263_v11  ;;  %v1251_v21 = vsub.f32 0.0, %v1235_v13  ;;  %v1253_v22 = vsub.f32 0.0, %v1237_v14 }
 0x3b2   :  { %10769 = vpow2.f32 %v1267_v12  ;;  %v1252_v23 = vsub.f32 0.0, %v1236_v19  ;;  %v1254_v24 = vsub.f32 0.0, %v1238_v20  ;;  %v1093_v25 = vpop.f32.mrb[12].mxu0  ;;  %v1182_v26 = vpop.f32.mrb[4].mxu1 }
 0x3b3   :  { %10771 = vpow2.f32 %v1265_v17  ;;  %v1271_v27 = vmul.f32 1.442695, %v1251_v21  ;;  %v1275_v3 = vmul.f32 1.442695, %v1253_v22  ;;  %v1239_v28 = vadd.f32 %v11873_v53, %v1093_v25  ;;  %v1095_v5 = vpop.f32.mrb[13].mxu0  ;;  %v1184_v29 = vpop.f32.mrb[5].mxu1 }
 0x3b4   :  { %10773 = vpow2.f32 %v1269_v18  ;;  %v1273_v30 = vmul.f32 1.442695, %v1252_v23  ;;  %v1277_v31 = vmul.f32 1.442695, %v1254_v24  ;;  %v1241_v32 = vadd.f32 %v11877_v54, %v1182_v26 }
 0x3b5   :  { %10775 = vpow2.f32 %v1271_v27  ;;  %v1255_v9 = vsub.f32 0.0, %v1239_v28  ;;  %v1240_v34 = vadd.f32 %v11880_v55, %v1095_v5  ;;  %v1242_v35 = vadd.f32 %v11884_v56, %v1184_v29 }
 0x3b6   :  { %10777 = vpow2.f32 %v1275_v3  ;;  %v1257_v36 = vsub.f32 0.0, %v1241_v32  ;;  %v1099_v37 = vpop.f32.mrb[14].mxu0  ;;  %v1188_v38 = vpop.f32.mrb[6].mxu1 }
 0x3b7   :  { %10779 = vpow2.f32 %v1273_v30  ;;  %v1279_v39 = vmul.f32 1.442695, %v1255_v9  ;;  %v1256_v10 = vsub.f32 0.0, %v1240_v34  ;;  %v1258_v40 = vsub.f32 0.0, %v1242_v35  ;;  %v1101_v41 = vpop.f32.mrb[15].mxu0  ;;  %v1190_v42 = vpop.f32.mrb[7].mxu1 }
 0x3b8   :  { %10781 = vpow2.f32 %v1277_v31  ;;  %v1283_v44 = vmul.f32 1.442695, %v1257_v36  ;;  %v1243_v63 = vadd.f32 %v11873_v53, %v1099_v37  ;;  %v1245_v2 = vadd.f32 %v11877_v54, %v1188_v38 }
 0x3b9   :  { %v1281_v45 = vmul.f32 1.442695, %v1256_v10  ;;  %v1285_v46 = vmul.f32 1.442695, %v1258_v40  ;;  %10783 = vpow2.f32 %v1279_v39  ;;  %v1244_v7 = vadd.f32 %v11880_v55, %v1101_v41 }
 0x3ba   :  { %10785 = vpow2.f32 %v1283_v44  ;;  %v1246_v12 = vadd.f32 %v11884_v56, %v1190_v42  ;;  %v1259_v15 = vsub.f32 0.0, %v1243_v63  ;;  %v1261_v16 = vsub.f32 0.0, %v1245_v2 }
 0x3bb   :  { %v10768_v50 = vpop.eup %10767  ;;  %10787 = vpow2.f32 %v1281_v45  ;;  %v1260_v54 = vsub.f32 0.0, %v1244_v7  ;;  %v8026_v7 = vld [vmem:[%s15212_s6 + $0x388] sm:$0xff] }
 0x3bc   :  { %v10770_v57 = vpop.eup %10769  ;;  %v1295_v58 = vadd.f32 1.0, %v10768_v50  ;;  %10789 = vpow2.f32 %v1285_v46  ;;  %v1262_v19 = vsub.f32 0.0, %v1246_v12  ;;  %v1287_v55 = vmul.f32 1.442695, %v1259_v15  ;;  %v8025_v12 = vld [vmem:[%s15212_s6 + $0x380] sm:$0xff]  ;;  %v8030_v15 = vld [vmem:[%s15212_s6 + $0x3a8] sm:$0xff] }
 0x3bd   :  { %v10772_v59 = vpop.eup %10771  ;;  %v1297_v60 = vadd.f32 1.0, %v10770_v57  ;;  %v1291_v22 = vmul.f32 1.442695, %v1261_v16  ;;  %v1289_v24 = vmul.f32 1.442695, %v1260_v54  ;;  %v8029_v54 = vld [vmem:[%s15212_s6 + $0x3a0] sm:$0xff] }
 0x3be   :  { %v10774_v61 = vpop.eup %10773  ;;  %10791 = vrcp.f32 %v1295_v58  ;;  %v1296_v62 = vadd.f32 1.0, %v10772_v59  ;;  %v1293_v25 = vmul.f32 1.442695, %v1262_v19  ;;  %v8034_v19 = vld [vmem:[%s15212_s6 + $0x3c8] sm:$0xff] }
 0x3bf   :  { %v10776_v0 = vpop.eup %10775  ;;  %10793 = vrcp.f32 %v1297_v60  ;;  %v1298_v1 = vadd.f32 1.0, %v10774_v61 }
 0x3c0   :  { %v10778_v4 = vpop.eup %10777  ;;  %10795 = vrcp.f32 %v1296_v62  ;;  %v1299_v6 = vadd.f32 1.0, %v10776_v0 }
 0x3c1   :  { %v10780_v8 = vpop.eup %10779  ;;  %10797 = vrcp.f32 %v1298_v1  ;;  %v1301_v11 = vadd.f32 1.0, %v10778_v4  ;;  %v1343_v4 = vld [vmem:[#allocation7] sm:$0xff] }
 0x3c2   :  { %v10782_v13 = vpop.eup %10781  ;;  %10799 = vrcp.f32 %v1299_v6  ;;  %v1300_v14 = vadd.f32 1.0, %v10780_v8  ;;  %v1344_v6 = vld [vmem:[#allocation7 + $0x8] sm:$0x3f]  ;;  %v8028_v8 = vld [vmem:[%s15212_s6 + $0x398] sm:$0xff] }
 0x3c3   :  { %10801 = vrcp.f32 %v1301_v11  ;;  %v1302_v53 = vadd.f32 1.0, %v10782_v13  ;;  %v10784_v17 = vpop.eup %10783  ;;  %v9358_v11 = vpack.c.bf16 %v8028_v8, %v8026_v7  ;;  %v8027_v13 = vld [vmem:[%s15212_s6 + $0x390] sm:$0xff]  ;;  %v8064_v7 = vld [vmem:[%s15212_s6 + $0x4b8] sm:$0xff] }
 0x3c4   :  { %10803 = vrcp.f32 %v1300_v14  ;;  %v10786_v18 = vpop.eup %10785  ;;  %v1303_v32 = vadd.f32 1.0, %v10784_v17  ;;  %v1630_v14 = vld [vmem:[#allocation7 + $0x10] sm:$0xff]  ;;  %v9360_v16 = vpack.c.bf16 %v8027_v13, %v8025_v12  ;;  %v8061_v12 = vld [vmem:[%s15212_s6 + $0x4a0] sm:$0xff] }
 0x3c5   :  { %10805 = vrcp.f32 %v1302_v53  ;;  %v10788_v20 = vpop.eup %10787  ;;  %v1305_v34 = vadd.f32 1.0, %v10786_v18  ;;  %v8032_v53 = vld [vmem:[%s15212_s6 + $0x3b8] sm:$0xff]  ;;  %v8031_v18 = vld [vmem:[%s15212_s6 + $0x3b0] sm:$0xff] }
 0x3c6   :  { %v10790_v21 = vpop.eup %10789  ;;  %10807 = vpow2.f32 %v1287_v55  ;;  %v1304_v36 = vadd.f32 1.0, %v10788_v20  ;;  %v9362_v17 = vpack.c.bf16 %v8032_v53, %v8030_v15  ;;  %v8036_v20 = vld [vmem:[%s15212_s6 + $0x3d8] sm:$0xff]  ;;  %v8063_v13 = vld [vmem:[%s15212_s6 + $0x4b0] sm:$0xff] }
 0x3c7   :  { %10809 = vpow2.f32 %v1291_v22  ;;  %v1306_v37 = vadd.f32 1.0, %v10790_v21  ;;  %v1631_v55 = vld [vmem:[#allocation7 + $0x18] sm:$0x3f]  ;;  %v9364_v21 = vpack.c.bf16 %v8031_v18, %v8029_v54  ;;  %v9366_v22 = vpack.c.bf16 %v8036_v20, %v8034_v19  ;;  %v8070_v18 = vld [vmem:[%s15212_s6 + $0x4e8] sm:$0xff] }
 0x3c8   :  { %v10792_v23 = vpop.eup %10791  ;;  %10811 = vpow2.f32 %v1289_v24  ;;  %v8035_v24 = vld [vmem:[%s15212_s6 + $0x3d0] sm:$0xff]  ;;  %v8068_v15 = vld [vmem:[%s15212_s6 + $0x4d8] sm:$0xff]  ;;  %v9396_v53 = vpack.c.bf16 %v8063_v13, %v8061_v12 }
 0x3c9   :  { %v10794_v56 = vpop.eup %10793  ;;  %10813 = vpow2.f32 %v1293_v25  ;;  %v8040_v25 = vld [vmem:[%s15212_s6 + $0x3f8] sm:$0xff]  ;;  %v8067_v54 = vld [vmem:[%s15212_s6 + $0x4d0] sm:$0xff] }
 0x3ca   :  { %v10796_v26 = vpop.eup %10795  ;;  %10815 = vrcp.f32 %v1303_v32  ;;  %v8072_v19 = vld [vmem:[%s15212_s6 + $0x4f8] sm:$0xff] }
 0x3cb   :  { %v10798_v27 = vpop.eup %10797  ;;  %10817 = vrcp.f32 %v1305_v34  ;;  %v8041_v34 = vld [vmem:[%s15212_s6 + $0x400] sm:$0xff] }
 0x3cc   :  { %v10800_v3 = vpop.eup %10799  ;;  %10819 = vrcp.f32 %v1304_v36  ;;  %v8048_v36 = vld [vmem:[%s15212_s6 + $0x438] sm:$0xff] }
 0x3cd   :  { %v10802_v28 = vpop.eup %10801  ;;  %v11902_v5 = vpack.c.bf16 %v10800_v3, %v10792_v23  ;;  %10821 = vrcp.f32 %v1306_v37  ;;  %v8033_v23 = vld [vmem:[%s15212_s6 + $0x3c0] sm:$0xff] }
 0x3ce   :  { %v10804_v29 = vpop.eup %10803  ;;  %v11904_v30 = vpack.c.bf16 %v10802_v28, %v10794_v56  ;;  %v8038_v56 = vld [vmem:[%s15212_s6 + $0x3e8] sm:$0xff]  ;;  %v8037_v28 = vld [vmem:[%s15212_s6 + $0x3e0] sm:$0xff] }
 0x3cf   :  { %v10806_v31 = vpop.eup %10805  ;;  %v11906_v9 = vpack.c.bf16 %v10804_v29, %v10796_v26  ;;  %v12005_v26 = vld [vmem:[#allocation7 + $0x20] sm:$0xff]  ;;  %v9370_v3 = vpack.c.bf16 %v8040_v25, %v8038_v56  ;;  %v8042_v29 = vld [vmem:[%s15212_s6 + $0x408] sm:$0xff] }
 0x3d0   :  { %v11908_v35 = vpack.c.bf16 %v10806_v31, %v10798_v27  ;;  %v10808_v38 = vpop.eup %10807  ;;  %v9368_v27 = vpack.c.bf16 %v8035_v24, %v8033_v23  ;;  %v8044_v31 = vld [vmem:[%s15212_s6 + $0x418] sm:$0xff]  ;;  %v8074_v23 = vld [vmem:[%s15212_s6 + $0x508] sm:$0xff] }
 0x3d1   :  { %9319 = vmatprep.subr.bf16.mxu1 %v11906_v9  ;;  %v10810_v39 = vpop.eup %10809  ;;  %v1307_v10 = vadd.f32 1.0, %v10808_v38  ;;  %v8076_v24 = vld [vmem:[%s15212_s6 + $0x518] sm:$0xff] }
 0x3d2   :  { %9329 = vmatprep.subr.bf16.mxu0 %v11908_v35  ;;  %9321 = vmatpush1.bf16.msra.mxu1 %v11902_v5  ;;  %v10812_v40 = vpop.eup %10811  ;;  %v1309_v41 = vadd.f32 1.0, %v10810_v39  ;;  %v8045_v39 = vld [vmem:[%s15212_s6 + $0x420] sm:$0xff]  ;;  %v9406_v25 = vpack.c.bf16 %v8076_v24, %v8074_v23  ;;  %v8102_v24 = vld [vmem:[%s15212_s6 + $0x5e8] sm:$0xff] }
 0x3d3   :  { %9331 = vmatpush1.bf16.msra.mxu0 %v11904_v30  ;;  %v10814_v42 = vpop.eup %10813  ;;  %10823 = vrcp.f32 %v1307_v10  ;;  %v1308_v44 = vadd.f32 1.0, %v10812_v40  ;;  %v8047_v10 = vld [vmem:[%s15212_s6 + $0x430] sm:$0xff]  ;;  %v8050_v40 = vld [vmem:[%s15212_s6 + $0x448] sm:$0xff] }
 0x3d4   :  { %10825 = vrcp.f32 %v1309_v41  ;;  %v1310_v45 = vadd.f32 1.0, %v10814_v42  ;;  %v10816_v46 = vpop.eup %10815  ;;  %v8052_v41 = vld [vmem:[%s15212_s6 + $0x458] sm:$0xff]  ;;  %v9380_v42 = vpack.c.bf16 %v8047_v10, %v8045_v39  ;;  %v8086_v10 = vld [vmem:[%s15212_s6 + $0x568] sm:$0xff] }
 0x3d5   :  { %10827 = vrcp.f32 %v1308_v44  ;;  %v10818_v50 = vpop.eup %10817  ;;  %v9382_v44 = vpack.c.bf16 %v8052_v41, %v8050_v40  ;;  %v8088_v40 = vld [vmem:[%s15212_s6 + $0x578] sm:$0xff] }
 0x3d6   :  { %10829 = vrcp.f32 %v1310_v45  ;;  %v10820_v57 = vpop.eup %10819  ;;  %v8049_v45 = vld [vmem:[%s15212_s6 + $0x440] sm:$0xff]  ;;  %v9418_v41 = vpack.c.bf16 %v8088_v40, %v8086_v10  ;;  %v8111_v10 = vld [vmem:[%s15212_s6 + $0x630] sm:$0xff]  ;;  %v8114_v40 = vld [vmem:[%s15212_s6 + $0x648] sm:$0xff] }
 0x3d7   :  { %v10822_v58 = vpop.eup %10821 }
 0x3dd   :  { %v10824_v59 = vpop.eup %10823 }
 0x3de   :  { %v10826_v60 = vpop.eup %10825  ;;  %v9325_v61 = vpack.c.bf16 %v10824_v59, %v10816_v46  ;;  %v8051_v46 = vld [vmem:[%s15212_s6 + $0x450] sm:$0xff] }
 0x3df   :  { %v10828_v62 = vpop.eup %10827  ;;  %v11914_v63 = vpack.c.bf16 %v10826_v60, %v10818_v50  ;;  %v8054_v50 = vld [vmem:[%s15212_s6 + $0x468] sm:$0xff]  ;;  %v8053_v60 = vld [vmem:[%s15212_s6 + $0x460] sm:$0xff] }
 0x3e0   :  { %v10830_v0 = vpop.eup %10829  ;;  %v9322_v1 = vpack.c.bf16 %v10828_v62, %v10820_v57  ;;  %v8056_v57 = vld [vmem:[%s15212_s6 + $0x478] sm:$0xff]  ;;  %v8058_v62 = vld [vmem:[%s15212_s6 + $0x488] sm:$0xff] }
 0x3e1   :  { %v11916_v2 = vpack.c.bf16 %v10830_v0, %v10822_v58  ;;  %v9384_v58 = vpack.c.bf16 %v8051_v46, %v8049_v45  ;;  %v9386_v59 = vpack.c.bf16 %v8056_v57, %v8054_v50  ;;  %v8090_v46 = vld [vmem:[%s15212_s6 + $0x588] sm:$0xff]  ;;  %v8092_v50 = vld [vmem:[%s15212_s6 + $0x598] sm:$0xff] }
 0x3e2   :  { %9324 = vmatprep.subr.msk.bf16.mxu1 %vm11634_vm3, %v9322_v1  ;;  %v9422_v57 = vpack.c.bf16 %v8092_v50, %v8090_v46  ;;  %v8115_v46 = vld [vmem:[%s15212_s6 + $0x650] sm:$0xff]  ;;  %v8118_v50 = vld [vmem:[%s15212_s6 + $0x668] sm:$0xff] }
 0x3e3   :  { %9334 = vmatprep.subr.msk.bf16.mxu0 %vm11634_vm3, %v11916_v2  ;;  %9327 = vmatpush1.bf16.msk.msra.mxu1 %vm11634_vm3, %v9325_v61 }
 0x3e4   :  { %9337 = vmatpush1.bf16.msk.msra.mxu0 %vm11634_vm3, %v11914_v63  ;;  %9339 = vmatprep.subr.bf16.mxu1 %v11906_v9 }
 0x3e5   :  { %9349 = vmatprep.subr.bf16.mxu0 %v11908_v35 }
 0x3e6   :  { %8011 = vmatmul.mubr.msk.f32.vlgmr.msra.gmra.mrb[8].mxu1 %vm466_vm4, %v1343_v4 }
 0x3e7   :  { %8015 = vmatmul.mubr.msk.f32.vlgmr.msra.gmra.mrb[20].mxu0 %vm466_vm4, %v1343_v4  ;;  %9341 = vmatpush1.bf16.msra.mxu1 %v11902_v5  ;;  %v8059_v4 = vld [vmem:[%s15212_s6 + $0x490] sm:$0xff] }
 0x3e8   :  { %9351 = vmatpush1.bf16.msra.mxu0 %v11904_v30  ;;  %9344 = vmatprep.subr.msk.bf16.mxu1 %vm11634_vm3, %v9322_v1 }
 0x3e9   :  { %9354 = vmatprep.subr.msk.bf16.mxu0 %vm11634_vm3, %v11916_v2  ;;  %1433 = vmatprep.mubr.f32.mxu1 %v15188_v43 }
 0x3ea   :  { %8012 = vmatmul.mubr.msk.f32.gmra.mrb[10].mxu1 %vm466_vm4, %v1344_v6  ;;  %1510 = vmatprep.mubr.f32.mxu0 %v15188_v43 }
 0x3eb   :  { %8016 = vmatmul.mubr.msk.f32.gmra.mrb[22].mxu0 %vm466_vm4, %v1344_v6  ;;  %9347 = vmatpush1.bf16.msk.msra.mxu1 %vm11634_vm3, %v9325_v61  ;;  %v8062_v6 = vld [vmem:[%s15212_s6 + $0x4a8] sm:$0xff] }
 0x3ec   :  { %9357 = vmatpush1.bf16.msk.msra.mxu0 %vm11634_vm3, %v11914_v63  ;;  %1702 = vmatprep.mubr.f32.mxu1 %v15188_v43 }
 0x3ed   :  { %9583 = vmatprep.subr.bf16.mxu0 %v11906_v9  ;;  %1779 = vmatprep.mubr.f32.mxu0 %v15188_v43  ;;  %v9374_v9 = vpack.c.bf16 %v8044_v31, %v8042_v29 }
 0x3ee   :  { %8019 = vmatmul.mubr.msk.f32.vlgmr.msra.gmra.mrb[12].mxu1 %vm466_vm4, %v1630_v14  ;;  %9359 = vmatprep.subr.bf16.mxu1 %v9358_v11  ;;  %v9394_v11 = vpack.c.bf16 %v8064_v7, %v8062_v6  ;;  %v8096_v6 = vld [vmem:[%s15212_s6 + $0x5b8] sm:$0xff] }
 0x3ef   :  { %8023 = vmatmul.mubr.msk.f32.vlgmr.msra.gmra.mrb[24].mxu0 %vm466_vm4, %v1630_v14  ;;  %1708 = vmatprep.mubr.f32.mxu1 %v15188_v43  ;;  %v8066_v14 = vld [vmem:[%s15212_s6 + $0x4c8] sm:$0xff] }
 0x3f0   :  { %9585 = vmatpush1.bf16.msra.mxu0 %v11902_v5  ;;  %1785 = vmatprep.mubr.f32.mxu0 %v15188_v43  ;;  %v8039_v5 = vld [vmem:[%s15212_s6 + $0x3f0] sm:$0xff] }
 0x3f1   :  { %9588 = vmatprep.subr.msk.bf16.mxu0 %vm11634_vm3, %v9322_v1  ;;  %9361 = vmatpush1.bf16.msra.mxu1 %v9360_v16  ;;  %v9372_v32 = vpack.c.bf16 %v8039_v5, %v8037_v28  ;;  %v9398_v16 = vpack.c.bf16 %v8068_v15, %v8066_v14  ;;  %v8078_v28 = vld [vmem:[%s15212_s6 + $0x528] sm:$0xff]  ;;  %v8080_v5 = vld [vmem:[%s15212_s6 + $0x538] sm:$0xff]  ;;  %v8093_v14 = vld [vmem:[%s15212_s6 + $0x5a0] sm:$0xff] }
 0x3f2   :  { %8020 = vmatmul.mubr.msk.f32.gmra.mrb[14].mxu1 %vm466_vm4, %v1631_v55  ;;  %9363 = vmatprep.subr.bf16.mxu1 %v9362_v17  ;;  %v8065_v17 = vld [vmem:[%s15212_s6 + $0x4c0] sm:$0xff]  ;;  %v9410_v31 = vpack.c.bf16 %v8080_v5, %v8078_v28  ;;  %v8095_v15 = vld [vmem:[%s15212_s6 + $0x5b0] sm:$0xff] }
 0x3f3   :  { %8024 = vmatmul.mubr.msk.f32.gmra.mrb[26].mxu0 %vm466_vm4, %v1631_v55  ;;  %v9400_v20 = vpack.c.bf16 %v8067_v54, %v8065_v17  ;;  %v9402_v55 = vpack.c.bf16 %v8072_v19, %v8070_v18  ;;  %v8100_v17 = vld [vmem:[%s15212_s6 + $0x5d8] sm:$0xff]  ;;  %v9428_v18 = vpack.c.bf16 %v8095_v15, %v8093_v14  ;;  %v8101_v28 = vld [vmem:[%s15212_s6 + $0x5e0] sm:$0xff]  ;;  %v8103_v5 = vld [vmem:[%s15212_s6 + $0x5f0] sm:$0xff] }
 0x3f4   :  { %9591 = vmatpush1.bf16.msk.msra.mxu0 %vm11634_vm3, %v9325_v61  ;;  %2299 = vmatprep.mubr.f32.mxu0 %v15188_v43  ;;  %v8055_v61 = vld [vmem:[%s15212_s6 + $0x470] sm:$0xff]  ;;  %v8126_v15 = vld [vmem:[%s15212_s6 + $0x6a8] sm:$0xff] }
 0x3f5   :  { %9593 = vmatprep.subr.bf16.mxu0 %v11908_v35  ;;  %9365 = vmatpush1.bf16.msra.mxu1 %v9364_v21  ;;  %v8043_v35 = vld [vmem:[%s15212_s6 + $0x410] sm:$0xff]  ;;  %v9388_v0 = vpack.c.bf16 %v8055_v61, %v8053_v60  ;;  %v8069_v21 = vld [vmem:[%s15212_s6 + $0x4e0] sm:$0xff] }
 0x3f6   :  { %9367 = vmatprep.subr.bf16.mxu1 %v9366_v22  ;;  %v9376_v37 = vpack.c.bf16 %v8043_v35, %v8041_v34  ;;  %v8071_v22 = vld [vmem:[%s15212_s6 + $0x4f0] sm:$0xff]  ;;  %v8082_v35 = vld [vmem:[%s15212_s6 + $0x548] sm:$0xff] }
 0x3f7   :  { %8143 = vmatmul.mubr.msk.f32.vlgmr.msra.gmra.mrb[28].mxu0 %vm466_vm4, %v12005_v26  ;;  %v9404_v56 = vpack.c.bf16 %v8071_v22, %v8069_v21  ;;  %v8099_v21 = vld [vmem:[%s15212_s6 + $0x5d0] sm:$0xff] }
 0x3f8   :  { %9595 = vmatpush1.bf16.msra.mxu0 %v11904_v30  ;;  %2305 = vmatprep.mubr.f32.mxu0 %v15188_v43  ;;  %v8046_v30 = vld [vmem:[%s15212_s6 + $0x428] sm:$0xff]  ;;  %v8123_v14 = vld [vmem:[%s15212_s6 + $0x690] sm:$0xff] }
 0x3f9   :  { %9598 = vmatprep.subr.msk.bf16.mxu0 %vm11634_vm3, %v11916_v2  ;;  %9369 = vmatpush1.bf16.msra.mxu1 %v9368_v27  ;;  %v9378_v38 = vpack.c.bf16 %v8048_v36, %v8046_v30  ;;  %v8057_v2 = vld [vmem:[%s15212_s6 + $0x480] sm:$0xff]  ;;  %v8084_v30 = vld [vmem:[%s15212_s6 + $0x558] sm:$0xff] }
 0x3fa   :  { %9371 = vmatprep.subr.bf16.mxu1 %v9370_v3  ;;  %v9392_v8 = vpack.c.bf16 %v8059_v4, %v8057_v2  ;;  %v8073_v27 = vld [vmem:[%s15212_s6 + $0x500] sm:$0xff]  ;;  %v8075_v3 = vld [vmem:[%s15212_s6 + $0x510] sm:$0xff]  ;;  %v9414_v36 = vpack.c.bf16 %v8084_v30, %v8082_v35  ;;  %v8094_v4 = vld [vmem:[%s15212_s6 + $0x5a8] sm:$0xff] }
 0x3fb   :  { %v9408_v29 = vpack.c.bf16 %v8075_v3, %v8073_v27  ;;  %v9426_v13 = vpack.c.bf16 %v8096_v6, %v8094_v4  ;;  %v8107_v35 = vld [vmem:[%s15212_s6 + $0x610] sm:$0xff]  ;;  %v8110_v30 = vld [vmem:[%s15212_s6 + $0x628] sm:$0xff] }
 0x3fc   :  { %9601 = vmatpush1.bf16.msk.msra.mxu0 %vm11634_vm3, %v11914_v63  ;;  %v8060_v63 = vld [vmem:[%s15212_s6 + $0x498] sm:$0xff]  ;;  %v8119_v4 = vld [vmem:[%s15212_s6 + $0x670] sm:$0xff]  ;;  %v8122_v6 = vld [vmem:[%s15212_s6 + $0x688] sm:$0xff] }
 0x3fd   :  { %9373 = vmatpush1.bf16.msra.mxu1 %v9372_v32  ;;  %v9390_v1 = vpack.c.bf16 %v8060_v63, %v8058_v62  ;;  %v8077_v32 = vld [vmem:[%s15212_s6 + $0x520] sm:$0xff] }
 0x3fe   :  { %9375 = vmatprep.subr.bf16.mxu1 %v9374_v9  ;;  %v8079_v9 = vld [vmem:[%s15212_s6 + $0x530] sm:$0xff] }
 0x3ff   :  { %v9412_v34 = vpack.c.bf16 %v8079_v9, %v8077_v32  ;;  %v9436_v32 = vpack.c.bf16 %v8103_v5, %v8101_v28 }
 0x401   :  { %9377 = vmatpush1.bf16.msra.mxu1 %v9376_v37  ;;  %v8081_v37 = vld [vmem:[%s15212_s6 + $0x540] sm:$0xff] }
 0x402   :  { %9379 = vmatprep.subr.bf16.mxu1 %v9378_v38  ;;  %v8083_v38 = vld [vmem:[%s15212_s6 + $0x550] sm:$0xff] }
 0x403   :  { %v9416_v39 = vpack.c.bf16 %v8083_v38, %v8081_v37 }
 0x405   :  { %9381 = vmatpush1.bf16.msra.mxu1 %v9380_v42  ;;  %v8085_v42 = vld [vmem:[%s15212_s6 + $0x560] sm:$0xff] }
 0x406   :  { %9383 = vmatprep.subr.bf16.mxu1 %v9382_v44  ;;  %v8087_v44 = vld [vmem:[%s15212_s6 + $0x570] sm:$0xff] }
 0x407   :  { %v9420_v45 = vpack.c.bf16 %v8087_v44, %v8085_v42 }
 0x409   :  { %9385 = vmatpush1.bf16.msra.mxu1 %v9384_v58  ;;  %v2228_v58 = vld [vmem:[#allocation7 + $0x28] sm:$0x3f] }
 0x40a   :  { %9387 = vmatprep.subr.bf16.mxu1 %v9386_v59  ;;  %8144 = vmatmul.mubr.msk.f32.gmra.mrb[30].mxu0 %vm466_vm4, %v2228_v58 }
 0x40b   :  { %2376 = vmatprep.mubr.f32.mxu0 %v15188_v43 }
 0x40d   :  { %9389 = vmatpush1.bf16.msra.mxu1 %v9388_v0 }
 0x40e   :  { %9391 = vmatprep.subr.bf16.mxu1 %v9390_v1  ;;  %8147 = vmatmul.mubr.msk.f32.vlgmr.msra.gmra.mrb[32].mxu0 %vm466_vm4, %v12005_v26  ;;  %v8089_v26 = vld [vmem:[%s15212_s6 + $0x580] sm:$0xff]  ;;  %v8091_v1 = vld [vmem:[%s15212_s6 + $0x590] sm:$0xff] }
 0x40f   :  { %2382 = vmatprep.mubr.f32.mxu0 %v15188_v43 }
 0x411   :  { %9393 = vmatpush1.bf16.msra.mxu1 %v9392_v8 }
 0x412   :  { %9395 = vmatprep.subr.bf16.mxu1 %v9394_v11  ;;  %8148 = vmatmul.mubr.msk.f32.gmra.mrb[34].mxu0 %vm466_vm4, %v2228_v58  ;;  %v9424_v11 = vpack.c.bf16 %v8091_v1, %v8089_v26  ;;  %v8117_v1 = vld [vmem:[%s15212_s6 + $0x660] sm:$0xff] }
 0x413   :  { %2782 = vmatprep.mubr.f32.mxu0 %v15188_v43 }
 0x415   :  { %9397 = vmatpush1.bf16.msra.mxu1 %v9396_v53 }
 0x416   :  { %9399 = vmatprep.subr.bf16.mxu1 %v9398_v16  ;;  %v8098_v16 = vld [vmem:[%s15212_s6 + $0x5c8] sm:$0xff] }
 0x419   :  { %9401 = vmatpush1.bf16.msra.mxu1 %v9400_v20  ;;  %v9430_v20 = vpack.c.bf16 %v8100_v17, %v8098_v16  ;;  %v8128_v16 = vld [vmem:[%s15212_s6 + $0x6b8] sm:$0xff] }
 0x41a   :  { %9403 = vmatprep.subr.bf16.mxu1 %v9402_v55  ;;  %v8097_v55 = vld [vmem:[%s15212_s6 + $0x5c0] sm:$0xff] }
 0x41b   :  { %v9432_v27 = vpack.c.bf16 %v8099_v21, %v8097_v55  ;;  %v8132_v55 = vld [vmem:[%s15212_s6 + $0x6d8] sm:$0xff] }
 0x41d   :  { %9405 = vmatpush1.bf16.msra.mxu1 %v9404_v56  ;;  %v8104_v56 = vld [vmem:[%s15212_s6 + $0x5f8] sm:$0xff] }
 0x41e   :  { %9407 = vmatprep.subr.bf16.mxu1 %v9406_v25  ;;  %v9434_v3 = vpack.c.bf16 %v8104_v56, %v8102_v24  ;;  %v8129_v24 = vld [vmem:[%s15212_s6 + $0x6c0] sm:$0xff]  ;;  %v8131_v56 = vld [vmem:[%s15212_s6 + $0x6d0] sm:$0xff] }
 0x41f   :  { %v9464_v28 = vpack.c.bf16 %v8131_v56, %v8129_v24  ;;  %v1546_v24 = vld [vmem:[%s15212_s6 + $0xe8] sm:$0xff]  ;;  %v1548_v56 = vld [vmem:[%s15212_s6 + $0xf8] sm:$0xff] }
 0x421   :  { %9409 = vmatpush1.bf16.msra.mxu1 %v9408_v29  ;;  %v8106_v29 = vld [vmem:[%s15212_s6 + $0x608] sm:$0xff] }
 0x422   :  { %9411 = vmatprep.subr.bf16.mxu1 %v9410_v31  ;;  %v8108_v31 = vld [vmem:[%s15212_s6 + $0x618] sm:$0xff] }
 0x423   :  { %v9438_v9 = vpack.c.bf16 %v8108_v31, %v8106_v29  ;;  %v8133_v29 = vld [vmem:[%s15212_s6 + $0x6e0] sm:$0xff]  ;;  %v8135_v31 = vld [vmem:[%s15212_s6 + $0x6f0] sm:$0xff] }
 0x425   :  { %9413 = vmatpush1.bf16.msra.mxu1 %v9412_v34  ;;  %v8105_v34 = vld [vmem:[%s15212_s6 + $0x600] sm:$0xff] }
 0x426   :  { %9415 = vmatprep.subr.bf16.mxu1 %v9414_v36  ;;  %v8112_v36 = vld [vmem:[%s15212_s6 + $0x638] sm:$0xff]  ;;  %v9440_v37 = vpack.c.bf16 %v8107_v35, %v8105_v34  ;;  %v9468_v34 = vpack.c.bf16 %v8135_v31, %v8133_v29  ;;  %v1550_v29 = vld [vmem:[%s15212_s6 + $0x108] sm:$0xff] }
 0x427   :  { %v9442_v38 = vpack.c.bf16 %v8112_v36, %v8110_v30  ;;  %v1517_v30 = vld [vmem:[%s15212_s6] sm:$0xff]  ;;  %v1519_v36 = vld [vmem:[%s15212_s6 + $0x10] sm:$0xff]  ;;  %v1552_v31 = vld [vmem:[%s15212_s6 + $0x118] sm:$0xff] }
 0x429   :  { %9417 = vmatpush1.bf16.msra.mxu1 %v9416_v39  ;;  %v8109_v39 = vld [vmem:[%s15212_s6 + $0x620] sm:$0xff] }
 0x42a   :  { %9419 = vmatprep.subr.bf16.mxu1 %v9418_v41  ;;  %v8116_v41 = vld [vmem:[%s15212_s6 + $0x658] sm:$0xff]  ;;  %v9444_v42 = vpack.c.bf16 %v8111_v10, %v8109_v39  ;;  %v9472_v39 = vpack.c.bf16 %v1519_v36, %v1517_v30  ;;  %v1554_v30 = vld [vmem:[%s15212_s6 + $0x128] sm:$0xff] }
 0x42b   :  { %v9446_v44 = vpack.c.bf16 %v8116_v41, %v8114_v40  ;;  %v1521_v40 = vld [vmem:[%s15212_s6 + $0x20] sm:$0xff]  ;;  %v1523_v41 = vld [vmem:[%s15212_s6 + $0x30] sm:$0xff]  ;;  %v1556_v36 = vld [vmem:[%s15212_s6 + $0x138] sm:$0xff] }
 0x42d   :  { %9421 = vmatpush1.bf16.msra.mxu1 %v9420_v45  ;;  %v8113_v45 = vld [vmem:[%s15212_s6 + $0x640] sm:$0xff] }
 0x42e   :  { %9423 = vmatprep.subr.bf16.mxu1 %v9422_v57  ;;  %v8120_v57 = vld [vmem:[%s15212_s6 + $0x678] sm:$0xff]  ;;  %v9448_v58 = vpack.c.bf16 %v8115_v46, %v8113_v45  ;;  %v9476_v45 = vpack.c.bf16 %v1523_v41, %v1521_v40  ;;  %v1558_v40 = vld [vmem:[%s15212_s6 + $0x148] sm:$0xff] }
 0x42f   :  { %v9450_v26 = vpack.c.bf16 %v8120_v57, %v8118_v50  ;;  %v1525_v50 = vld [vmem:[%s15212_s6 + $0x40] sm:$0xff]  ;;  %v1527_v57 = vld [vmem:[%s15212_s6 + $0x50] sm:$0xff]  ;;  %v1560_v41 = vld [vmem:[%s15212_s6 + $0x158] sm:$0xff] }
 0x4b9   :  { %v12181_v59 = vpop.f32.mrb[8].mxu1 }
 0x4ba   :  { %v12183_v60 = vpop.f32.mrb[9].mxu1  ;;  %v12185_v61 = vpop.f32.mrb[20].mxu0 }
 0x4bb   :  { %v12187_v62 = vpop.f32.mrb[21].mxu0 }
 0x4bd   :  { %v12189_v63 = vpop.f32.mrb[10].mxu1 }
 0x4be   :  { %v12191_v0 = vpop.f32.mrb[11].mxu1  ;;  %v12199_v2 = vpop.f32.mrb[22].mxu0 }
 0x4bf   :  { %v12207_v7 = vpop.f32.mrb[23].mxu0 }
 0x4c1   :  { %v1704_v8 = vpop.f32.mrb[12].mxu1 }
 0x4c2   :  { %v1706_v12 = vpop.f32.mrb[13].mxu1  ;;  %v12215_v53 = vpop.f32.mrb[24].mxu0 }
 0x4c3   :  { %1976 = vmatprep.mubr.f32.mxu1 %v1706_v12  ;;  %v1783_v54 = vpop.f32.mrb[25].mxu0 }
 0x4c4   :  { %1977 = vmatmul.mubr.f32.vlgmr.msra.gmra.mrb[16].mxu1 %v1704_v8  ;;  %v8124_v8 = vld [vmem:[%s15212_s6 + $0x698] sm:$0xff] }
 0x4c5   :  { %9425 = vmatpush1.bf16.msra.mxu1 %v9424_v11  ;;  %v1710_v19 = vpop.f32.mrb[14].mxu1  ;;  %v9452_v11 = vpack.c.bf16 %v8119_v4, %v8117_v1  ;;  %v9454_v12 = vpack.c.bf16 %v8124_v8, %v8122_v6  ;;  %v1529_v1 = vld [vmem:[%s15212_s6 + $0x60] sm:$0xff]  ;;  %v1531_v4 = vld [vmem:[%s15212_s6 + $0x70] sm:$0xff]  ;;  %v1534_v6 = vld [vmem:[%s15212_s6 + $0x88] sm:$0xff] }
 0x4c6   :  { %9427 = vmatprep.subr.bf16.mxu1 %v9426_v13  ;;  %v1712_v22 = vpop.f32.mrb[15].mxu1  ;;  %v12229_v23 = vpop.f32.mrb[26].mxu0  ;;  %v8121_v13 = vld [vmem:[%s15212_s6 + $0x680] sm:$0xff] }
 0x4c7   :  { %1982 = vmatprep.mubr.f32.mxu1 %v1712_v22  ;;  %v12237_v25 = vpop.f32.mrb[27].mxu0  ;;  %v9456_v17 = vpack.c.bf16 %v8123_v14, %v8121_v13  ;;  %v1538_v13 = vld [vmem:[%s15212_s6 + $0xa8] sm:$0xff]  ;;  %v1540_v14 = vld [vmem:[%s15212_s6 + $0xb8] sm:$0xff] }
 0x4c8   :  { %1983 = vmatmul.mubr.f32.gmra.mrb[18].mxu1 %v1710_v19  ;;  %v8127_v19 = vld [vmem:[%s15212_s6 + $0x6b0] sm:$0xff] }
 0x4c9   :  { %9429 = vmatpush1.bf16.msra.mxu1 %v9428_v18  ;;  %8137 = vmatprep.mubr.msk.f32.mxu1 %vm1905_vm5, %v1783_v54  ;;  %v9458_v54 = vpack.c.bf16 %v8128_v16, %v8126_v15  ;;  %v8125_v18 = vld [vmem:[%s15212_s6 + $0x6a0] sm:$0xff]  ;;  %v9490_v16 = vpack.c.bf16 %v1540_v14, %v1538_v13  ;;  %v1572_v13 = vld [vmem:[%s15212_s6 + $0x1b8] sm:$0xff] }
 0x4ca   :  { %9431 = vmatprep.subr.bf16.mxu1 %v9430_v20  ;;  %v8130_v20 = vld [vmem:[%s15212_s6 + $0x6c8] sm:$0xff]  ;;  %v9460_v21 = vpack.c.bf16 %v8127_v19, %v8125_v18  ;;  %v1544_v19 = vld [vmem:[%s15212_s6 + $0xd8] sm:$0xff] }
 0x4cb   :  { %v9462_v22 = vpack.c.bf16 %v8132_v55, %v8130_v20  ;;  %v1542_v18 = vld [vmem:[%s15212_s6 + $0xc8] sm:$0xff] }
 0x4cc   :  { %v9494_v55 = vpack.c.bf16 %v1544_v19, %v1542_v18  ;;  %v1574_v18 = vld [vmem:[%s15212_s6 + $0x1c8] sm:$0xff]  ;;  %v1576_v19 = vld [vmem:[%s15212_s6 + $0x1d8] sm:$0xff] }
 0x4cd   :  { %9433 = vmatpush1.bf16.msra.mxu1 %v9432_v27  ;;  %v8134_v27 = vld [vmem:[%s15212_s6 + $0x6e8] sm:$0xff] }
 0x4ce   :  { %9435 = vmatprep.subr.bf16.mxu1 %v9434_v3  ;;  %v8136_v3 = vld [vmem:[%s15212_s6 + $0x6f8] sm:$0xff] }
 0x4cf   :  { %v9466_v5 = vpack.c.bf16 %v8136_v3, %v8134_v27  ;;  %v9498_v3 = vpack.c.bf16 %v1548_v56, %v1546_v24  ;;  %v1578_v24 = vld [vmem:[%s15212_s6 + $0x1e8] sm:$0xff]  ;;  %v1580_v56 = vld [vmem:[%s15212_s6 + $0x1f8] sm:$0xff] }
 0x4d1   :  { %9437 = vmatpush1.bf16.msra.mxu1 %v9436_v32  ;;  %v1518_v32 = vld [vmem:[%s15212_s6 + $0x8] sm:$0xff] }
 0x4d2   :  { %9439 = vmatprep.subr.bf16.mxu1 %v9438_v9  ;;  %v1520_v9 = vld [vmem:[%s15212_s6 + $0x18] sm:$0xff] }
 0x4d3   :  { %v9470_v35 = vpack.c.bf16 %v1520_v9, %v1518_v32  ;;  %v9502_v9 = vpack.c.bf16 %v1552_v31, %v1550_v29  ;;  %v1582_v29 = vld [vmem:[%s15212_s6 + $0x208] sm:$0xff]  ;;  %v1584_v31 = vld [vmem:[%s15212_s6 + $0x218] sm:$0xff] }
 0x4d5   :  { %9441 = vmatpush1.bf16.msra.mxu1 %v9440_v37  ;;  %v1522_v37 = vld [vmem:[%s15212_s6 + $0x28] sm:$0xff] }
 0x4d6   :  { %9443 = vmatprep.subr.bf16.mxu1 %v9442_v38  ;;  %v1524_v38 = vld [vmem:[%s15212_s6 + $0x38] sm:$0xff] }
 0x4d7   :  { %v9474_v10 = vpack.c.bf16 %v1524_v38, %v1522_v37  ;;  %v9506_v38 = vpack.c.bf16 %v1556_v36, %v1554_v30  ;;  %v1586_v30 = vld [vmem:[%s15212_s6 + $0x228] sm:$0xff]  ;;  %v1588_v36 = vld [vmem:[%s15212_s6 + $0x238] sm:$0xff] }
 0x4d9   :  { %9445 = vmatpush1.bf16.msra.mxu1 %v9444_v42  ;;  %v1526_v42 = vld [vmem:[%s15212_s6 + $0x48] sm:$0xff] }
 0x4da   :  { %9447 = vmatprep.subr.bf16.mxu1 %v9446_v44  ;;  %v1528_v44 = vld [vmem:[%s15212_s6 + $0x58] sm:$0xff] }
 0x4db   :  { %v9478_v46 = vpack.c.bf16 %v1528_v44, %v1526_v42  ;;  %v9510_v44 = vpack.c.bf16 %v1560_v41, %v1558_v40  ;;  %v1590_v40 = vld [vmem:[%s15212_s6 + $0x248] sm:$0xff]  ;;  %v1592_v41 = vld [vmem:[%s15212_s6 + $0x258] sm:$0xff] }
 0x4dd   :  { %9449 = vmatpush1.bf16.msra.mxu1 %v9448_v58  ;;  %v1530_v58 = vld [vmem:[%s15212_s6 + $0x68] sm:$0xff] }
 0x4de   :  { %9451 = vmatprep.subr.bf16.mxu1 %v9450_v26 }
 0x4e1   :  { %9453 = vmatpush1.bf16.msra.mxu1 %v9452_v11  ;;  %v1533_v11 = vld [vmem:[%s15212_s6 + $0x80] sm:$0xff] }
 0x4e2   :  { %9455 = vmatprep.subr.bf16.mxu1 %v9454_v12  ;;  %v1535_v12 = vld [vmem:[%s15212_s6 + $0x90] sm:$0xff] }
 0x4e3   :  { %v9488_v15 = vpack.c.bf16 %v1535_v12, %v1533_v11  ;;  %v12503_v11 = vpop.f32.mrb[28].mxu0  ;;  %v1570_v12 = vld [vmem:[%s15212_s6 + $0x1a8] sm:$0xff] }
 0x4e5   :  { %9457 = vmatpush1.bf16.msra.mxu1 %v9456_v17  ;;  %v1537_v17 = vld [vmem:[%s15212_s6 + $0xa0] sm:$0xff] }
 0x4e6   :  { %9459 = vmatprep.subr.bf16.mxu1 %v9458_v54  ;;  %v1539_v54 = vld [vmem:[%s15212_s6 + $0xb0] sm:$0xff] }
 0x4e7   :  { %v9492_v20 = vpack.c.bf16 %v1539_v54, %v1537_v17  ;;  %v1569_v17 = vld [vmem:[%s15212_s6 + $0x1a0] sm:$0xff]  ;;  %v1571_v54 = vld [vmem:[%s15212_s6 + $0x1b0] sm:$0xff] }
 0x4e9   :  { %9461 = vmatpush1.bf16.msra.mxu1 %v9460_v21  ;;  %v1541_v21 = vld [vmem:[%s15212_s6 + $0xc0] sm:$0xff] }
 0x4ea   :  { %9463 = vmatprep.subr.bf16.mxu1 %v9462_v22  ;;  %v1543_v22 = vld [vmem:[%s15212_s6 + $0xd0] sm:$0xff] }
 0x4eb   :  { %v9496_v27 = vpack.c.bf16 %v1543_v22, %v1541_v21  ;;  %v1573_v21 = vld [vmem:[%s15212_s6 + $0x1c0] sm:$0xff]  ;;  %v1575_v22 = vld [vmem:[%s15212_s6 + $0x1d0] sm:$0xff] }
 0x4ed   :  { %9465 = vmatpush1.bf16.msra.mxu1 %v9464_v28  ;;  %v1545_v28 = vld [vmem:[%s15212_s6 + $0xe0] sm:$0xff] }
 0x4ee   :  { %9467 = vmatprep.subr.bf16.mxu1 %v9466_v5  ;;  %v1547_v5 = vld [vmem:[%s15212_s6 + $0xf0] sm:$0xff] }
 0x4ef   :  { %v9500_v32 = vpack.c.bf16 %v1547_v5, %v1545_v28  ;;  %v1577_v28 = vld [vmem:[%s15212_s6 + $0x1e0] sm:$0xff]  ;;  %v1579_v5 = vld [vmem:[%s15212_s6 + $0x1f0] sm:$0xff] }
 0x4f1   :  { %9469 = vmatpush1.bf16.msra.mxu1 %v9468_v34  ;;  %v1549_v34 = vld [vmem:[%s15212_s6 + $0x100] sm:$0xff] }
 0x4f2   :  { %9471 = vmatprep.subr.bf16.mxu1 %v9470_v35  ;;  %v1551_v35 = vld [vmem:[%s15212_s6 + $0x110] sm:$0xff] }
 0x4f3   :  { %v9504_v37 = vpack.c.bf16 %v1551_v35, %v1549_v34  ;;  %v1581_v34 = vld [vmem:[%s15212_s6 + $0x200] sm:$0xff]  ;;  %v1583_v35 = vld [vmem:[%s15212_s6 + $0x210] sm:$0xff] }
 0x4f4   :  { %2054 = vmatmul.mubr.f32.vlgmr.msra.gmra.mrb[16].mxu1 %v12215_v53  ;;  %v1532_v53 = vld [vmem:[%s15212_s6 + $0x78] sm:$0xff] }
 0x4f5   :  { %9473 = vmatpush1.bf16.msra.mxu1 %v9472_v39  ;;  %8138 = vmatprep.mubr.msk.f32.mxu1 %vm1905_vm5, %v12237_v25  ;;  %v9480_v25 = vpack.c.bf16 %v1527_v57, %v1525_v50  ;;  %v9482_v26 = vpack.c.bf16 %v1532_v53, %v1530_v58  ;;  %v1553_v39 = vld [vmem:[%s15212_s6 + $0x120] sm:$0xff]  ;;  %v1562_v50 = vld [vmem:[%s15212_s6 + $0x168] sm:$0xff]  ;;  %v1564_v57 = vld [vmem:[%s15212_s6 + $0x178] sm:$0xff] }
 0x4f6   :  { %9475 = vmatprep.subr.bf16.mxu1 %v9474_v10  ;;  %v1555_v10 = vld [vmem:[%s15212_s6 + $0x130] sm:$0xff]  ;;  %v9514_v53 = vpack.c.bf16 %v1564_v57, %v1562_v50  ;;  %v1594_v50 = vld [vmem:[%s15212_s6 + $0x268] sm:$0xff] }
 0x4f7   :  { %v9508_v42 = vpack.c.bf16 %v1555_v10, %v1553_v39  ;;  %v1585_v39 = vld [vmem:[%s15212_s6 + $0x220] sm:$0xff]  ;;  %v1587_v10 = vld [vmem:[%s15212_s6 + $0x230] sm:$0xff] }
 0x4f8   :  { %2060 = vmatmul.mubr.f32.gmra.mrb[18].mxu1 %v12229_v23  ;;  %v1536_v23 = vld [vmem:[%s15212_s6 + $0x98] sm:$0xff] }
 0x4f9   :  { %9477 = vmatpush1.bf16.msra.mxu1 %v9476_v45  ;;  %2136 = vmatprep.mubr.f32.mxu1 %v12183_v60  ;;  %v9484_v60 = vpack.c.bf16 %v1531_v4, %v1529_v1  ;;  %v9486_v8 = vpack.c.bf16 %v1536_v23, %v1534_v6  ;;  %v1557_v45 = vld [vmem:[%s15212_s6 + $0x140] sm:$0xff]  ;;  %v1566_v1 = vld [vmem:[%s15212_s6 + $0x188] sm:$0xff]  ;;  %v1568_v4 = vld [vmem:[%s15212_s6 + $0x198] sm:$0xff] }
 0x4fa   :  { %9479 = vmatprep.subr.bf16.mxu1 %v9478_v46  ;;  %v1559_v46 = vld [vmem:[%s15212_s6 + $0x150] sm:$0xff]  ;;  %v9518_v23 = vpack.c.bf16 %v1568_v4, %v1566_v1  ;;  %v1597_v1 = vld [vmem:[%s15212_s6 + $0x280] sm:$0xff] }
 0x4fb   :  { %v9512_v58 = vpack.c.bf16 %v1559_v46, %v1557_v45  ;;  %v1589_v45 = vld [vmem:[%s15212_s6 + $0x240] sm:$0xff]  ;;  %v1591_v46 = vld [vmem:[%s15212_s6 + $0x250] sm:$0xff] }
 0x4fc   :  { %v1599_v4 = vld [vmem:[%s15212_s6 + $0x290] sm:$0xff] }
 0x4fd   :  { %9481 = vmatpush1.bf16.msra.mxu1 %v9480_v25  ;;  %v1561_v25 = vld [vmem:[%s15212_s6 + $0x160] sm:$0xff] }
 0x4fe   :  { %9483 = vmatprep.subr.bf16.mxu1 %v9482_v26  ;;  %v1563_v26 = vld [vmem:[%s15212_s6 + $0x170] sm:$0xff] }
 0x4ff   :  { %v9516_v6 = vpack.c.bf16 %v1563_v26, %v1561_v25  ;;  %v1598_v25 = vld [vmem:[%s15212_s6 + $0x288] sm:$0xff] }
 0x501   :  { %9485 = vmatpush1.bf16.msra.mxu1 %v9484_v60  ;;  %v1565_v60 = vld [vmem:[%s15212_s6 + $0x180] sm:$0xff] }
 0x502   :  { %9487 = vmatprep.subr.bf16.mxu1 %v9486_v8  ;;  %v1567_v8 = vld [vmem:[%s15212_s6 + $0x190] sm:$0xff] }
 0x503   :  { %v9520_v14 = vpack.c.bf16 %v1567_v8, %v1565_v60  ;;  %v9552_v60 = vpack.c.bf16 %v1599_v4, %v1597_v1 }
 0x505   :  { %9489 = vmatpush1.bf16.msra.mxu1 %v9488_v15  ;;  %v12511_v15 = vpop.f32.mrb[29].mxu0 }
 0x506   :  { %9491 = vmatprep.subr.bf16.mxu1 %v9490_v16  ;;  %v9522_v16 = vpack.c.bf16 %v1572_v13, %v1570_v12  ;;  %v1601_v12 = vld [vmem:[%s15212_s6 + $0x2a0] sm:$0xff]  ;;  %v1603_v13 = vld [vmem:[%s15212_s6 + $0x2b0] sm:$0xff] }
 0x509   :  { %9493 = vmatpush1.bf16.msra.mxu1 %v9492_v20  ;;  %v9524_v20 = vpack.c.bf16 %v1571_v54, %v1569_v17  ;;  %v9556_v17 = vpack.c.bf16 %v1603_v13, %v1601_v12 }
 0x50a   :  { %9495 = vmatprep.subr.bf16.mxu1 %v9494_v55  ;;  %v9526_v55 = vpack.c.bf16 %v1576_v19, %v1574_v18  ;;  %v1605_v18 = vld [vmem:[%s15212_s6 + $0x2c0] sm:$0xff]  ;;  %v1607_v19 = vld [vmem:[%s15212_s6 + $0x2d0] sm:$0xff] }
 0x50d   :  { %9497 = vmatpush1.bf16.msra.mxu1 %v9496_v27  ;;  %v9528_v27 = vpack.c.bf16 %v1575_v22, %v1573_v21  ;;  %v9560_v21 = vpack.c.bf16 %v1607_v19, %v1605_v18 }
 0x50e   :  { %9499 = vmatprep.subr.bf16.mxu1 %v9498_v3  ;;  %v9530_v3 = vpack.c.bf16 %v1580_v56, %v1578_v24  ;;  %v1609_v24 = vld [vmem:[%s15212_s6 + $0x2e0] sm:$0xff]  ;;  %v1611_v56 = vld [vmem:[%s15212_s6 + $0x2f0] sm:$0xff] }
 0x511   :  { %9501 = vmatpush1.bf16.msra.mxu1 %v9500_v32  ;;  %v9532_v32 = vpack.c.bf16 %v1579_v5, %v1577_v28  ;;  %v12650_v28 = vpop.f32.mrb[30].mxu0 }
 0x512   :  { %9503 = vmatprep.subr.bf16.mxu1 %v9502_v9  ;;  %v9534_v9 = vpack.c.bf16 %v1584_v31, %v1582_v29  ;;  %v12652_v5 = vpop.f32.mrb[31].mxu0  ;;  %v9564_v29 = vpack.c.bf16 %v1611_v56, %v1609_v24  ;;  %v8161_v24 = vld [vmem:[%s15212_s6 + $0x760] sm:$0xff]  ;;  %v8163_v56 = vld [vmem:[%s15212_s6 + $0x770] sm:$0xff] }
 0x515   :  { %9505 = vmatpush1.bf16.msra.mxu1 %v9504_v37  ;;  %v9536_v37 = vpack.c.bf16 %v1583_v35, %v1581_v34  ;;  %v1618_v34 = vld [vmem:[%s15212_s6 + $0x328] sm:$0xff]  ;;  %v1620_v35 = vld [vmem:[%s15212_s6 + $0x338] sm:$0xff] }
 0x516   :  { %9507 = vmatprep.subr.bf16.mxu1 %v9506_v38  ;;  %v9538_v38 = vpack.c.bf16 %v1588_v36, %v1586_v30  ;;  %v12666_v30 = vpop.f32.mrb[32].mxu0 }
 0x517   :  { %v12668_v36 = vpop.f32.mrb[33].mxu0 }
 0x519   :  { %9509 = vmatpush1.bf16.msra.mxu1 %v9508_v42  ;;  %v9540_v42 = vpack.c.bf16 %v1587_v10, %v1585_v39  ;;  %v1617_v39 = vld [vmem:[%s15212_s6 + $0x320] sm:$0xff]  ;;  %v1619_v10 = vld [vmem:[%s15212_s6 + $0x330] sm:$0xff] }
 0x51a   :  { %9511 = vmatprep.subr.bf16.mxu1 %v9510_v44  ;;  %v9542_v44 = vpack.c.bf16 %v1592_v41, %v1590_v40  ;;  %v1622_v40 = vld [vmem:[%s15212_s6 + $0x348] sm:$0xff]  ;;  %v1624_v41 = vld [vmem:[%s15212_s6 + $0x358] sm:$0xff] }
 0x51d   :  { %9513 = vmatpush1.bf16.msra.mxu1 %v9512_v58  ;;  %v1593_v58 = vld [vmem:[%s15212_s6 + $0x260] sm:$0xff] }
 0x51e   :  { %9515 = vmatprep.subr.bf16.mxu1 %v9514_v53  ;;  %v1595_v53 = vld [vmem:[%s15212_s6 + $0x270] sm:$0xff] }
 0x521   :  { %9517 = vmatpush1.bf16.msra.mxu1 %v9516_v6  ;;  %v1602_v6 = vld [vmem:[%s15212_s6 + $0x2a8] sm:$0xff] }
 0x522   :  { %9519 = vmatprep.subr.bf16.mxu1 %v9518_v23  ;;  %v1604_v23 = vld [vmem:[%s15212_s6 + $0x2b8] sm:$0xff] }
 0x523   :  { %v9554_v8 = vpack.c.bf16 %v1604_v23, %v1602_v6  ;;  %v8149_v6 = vld [vmem:[%s15212_s6 + $0x700] sm:$0xff]  ;;  %v8151_v23 = vld [vmem:[%s15212_s6 + $0x710] sm:$0xff] }
 0x524   :  { %v9604_v12 = vpack.c.bf16 %v8151_v23, %v8149_v6  ;;  %v8186_v6 = vld [vmem:[%s15212_s6 + $0x828] sm:$0xff]  ;;  %v8188_v23 = vld [vmem:[%s15212_s6 + $0x838] sm:$0xff] }
 0x525   :  { %9521 = vmatpush1.bf16.msra.mxu1 %v9520_v14  ;;  %v1606_v14 = vld [vmem:[%s15212_s6 + $0x2c8] sm:$0xff] }
 0x526   :  { %9523 = vmatprep.subr.bf16.mxu1 %v9522_v16  ;;  %v1608_v16 = vld [vmem:[%s15212_s6 + $0x2d8] sm:$0xff] }
 0x527   :  { %v9558_v54 = vpack.c.bf16 %v1608_v16, %v1606_v14  ;;  %v8153_v14 = vld [vmem:[%s15212_s6 + $0x720] sm:$0xff]  ;;  %v8155_v16 = vld [vmem:[%s15212_s6 + $0x730] sm:$0xff] }
 0x528   :  { %v9608_v18 = vpack.c.bf16 %v8155_v16, %v8153_v14  ;;  %v8190_v14 = vld [vmem:[%s15212_s6 + $0x848] sm:$0xff]  ;;  %v8192_v16 = vld [vmem:[%s15212_s6 + $0x858] sm:$0xff] }
 0x529   :  { %9525 = vmatpush1.bf16.msra.mxu1 %v9524_v20  ;;  %v1610_v20 = vld [vmem:[%s15212_s6 + $0x2e8] sm:$0xff] }
 0x52a   :  { %9527 = vmatprep.subr.bf16.mxu1 %v9526_v55  ;;  %v1612_v55 = vld [vmem:[%s15212_s6 + $0x2f8] sm:$0xff] }
 0x52b   :  { %v9562_v22 = vpack.c.bf16 %v1612_v55, %v1610_v20  ;;  %v8157_v20 = vld [vmem:[%s15212_s6 + $0x740] sm:$0xff]  ;;  %v8159_v55 = vld [vmem:[%s15212_s6 + $0x750] sm:$0xff] }
 0x52d   :  { %9529 = vmatpush1.bf16.msra.mxu1 %v9528_v27  ;;  %v1614_v27 = vld [vmem:[%s15212_s6 + $0x308] sm:$0xff] }
 0x52e   :  { %9531 = vmatprep.subr.bf16.mxu1 %v9530_v3  ;;  %v1616_v3 = vld [vmem:[%s15212_s6 + $0x318] sm:$0xff] }
 0x52f   :  { %v9566_v31 = vpack.c.bf16 %v1616_v3, %v1614_v27  ;;  %v8166_v27 = vld [vmem:[%s15212_s6 + $0x788] sm:$0xff] }
 0x531   :  { %9533 = vmatpush1.bf16.msra.mxu1 %v9532_v32  ;;  %v1613_v32 = vld [vmem:[%s15212_s6 + $0x300] sm:$0xff] }
 0x532   :  { %9535 = vmatprep.subr.bf16.mxu1 %v9534_v9  ;;  %v1615_v9 = vld [vmem:[%s15212_s6 + $0x310] sm:$0xff] }
 0x534   :  { %2137 = vmatmul.mubr.f32.vlgmr.msra.gmra.mrb[16].mxu1 %v12181_v59  ;;  %v1596_v59 = vld [vmem:[%s15212_s6 + $0x278] sm:$0xff] }
 0x535   :  { %2142 = vmatprep.mubr.f32.mxu1 %v12191_v0  ;;  %9537 = vmatpush1.bf16.msra.mxu1 %v9536_v37  ;;  %v9544_v0 = vpack.c.bf16 %v1591_v46, %v1589_v45  ;;  %v9546_v57 = vpack.c.bf16 %v1596_v59, %v1594_v50  ;;  %v9568_v37 = vpack.c.bf16 %v1615_v9, %v1613_v32  ;;  %v1621_v50 = vld [vmem:[%s15212_s6 + $0x340] sm:$0xff]  ;;  %v1623_v59 = vld [vmem:[%s15212_s6 + $0x350] sm:$0xff]  ;;  %v8170_v32 = vld [vmem:[%s15212_s6 + $0x7a8] sm:$0xff] }
 0x536   :  { %9539 = vmatprep.subr.bf16.mxu1 %v9538_v38  ;;  %v9570_v38 = vpack.c.bf16 %v1620_v35, %v1618_v34  ;;  %v9572_v45 = vpack.c.bf16 %v1619_v10, %v1617_v39  ;;  %v9574_v46 = vpack.c.bf16 %v1624_v41, %v1622_v40  ;;  %v8172_v9 = vld [vmem:[%s15212_s6 + $0x7b8] sm:$0xff]  ;;  %v8174_v39 = vld [vmem:[%s15212_s6 + $0x7c8] sm:$0xff] }
 0x537   :  { %v9622_v35 = vpack.c.bf16 %v8172_v9, %v8170_v32  ;;  %v8176_v10 = vld [vmem:[%s15212_s6 + $0x7d8] sm:$0xff] }
 0x538   :  { %2143 = vmatmul.mubr.f32.gmra.mrb[18].mxu1 %v12189_v63  ;;  %v1600_v63 = vld [vmem:[%s15212_s6 + $0x298] sm:$0xff]  ;;  %v9626_v41 = vpack.c.bf16 %v8176_v10, %v8174_v39 }
 0x539   :  { %9541 = vmatpush1.bf16.msra.mxu1 %v9540_v42  ;;  %8139 = vmatprep.mubr.msk.f32.mxu1 %vm1905_vm5, %v12187_v62  ;;  %v9548_v62 = vpack.c.bf16 %v1595_v53, %v1593_v58  ;;  %v9550_v26 = vpack.c.bf16 %v1600_v63, %v1598_v25  ;;  %v12682_v42 = vpop.f32.mrb[34].mxu0  ;;  %v9576_v58 = vpack.c.bf16 %v1623_v59, %v1621_v50  ;;  %v1625_v25 = vld [vmem:[%s15212_s6 + $0x360] sm:$0xff]  ;;  %v1627_v63 = vld [vmem:[%s15212_s6 + $0x370] sm:$0xff]  ;;  %v8178_v50 = vld [vmem:[%s15212_s6 + $0x7e8] sm:$0xff] }
 0x53a   :  { %9543 = vmatprep.subr.bf16.mxu1 %v9542_v44  ;;  %v12684_v44 = vpop.f32.mrb[35].mxu0  ;;  %v9580_v1 = vpack.c.bf16 %v1627_v63, %v1625_v25  ;;  %v8180_v59 = vld [vmem:[%s15212_s6 + $0x7f8] sm:$0xff]  ;;  %v8182_v25 = vld [vmem:[%s15212_s6 + $0x808] sm:$0xff] }
 0x53b   :  { %v8184_v63 = vld [vmem:[%s15212_s6 + $0x818] sm:$0xff] }
 0x53d   :  { %9545 = vmatpush1.bf16.msra.mxu1 %v9544_v0  ;;  %v1626_v0 = vld [vmem:[%s15212_s6 + $0x368] sm:$0xff] }
 0x53e   :  { %9547 = vmatprep.subr.bf16.mxu1 %v9546_v57  ;;  %v1628_v57 = vld [vmem:[%s15212_s6 + $0x378] sm:$0xff] }
 0x53f   :  { %v9578_v53 = vpack.c.bf16 %v1628_v57, %v1626_v0  ;;  %v9630_v57 = vpack.c.bf16 %v8180_v59, %v8178_v50 }
 0x541   :  { %9549 = vmatpush1.bf16.msra.mxu1 %v9548_v62  ;;  %v8150_v62 = vld [vmem:[%s15212_s6 + $0x708] sm:$0xff] }
 0x542   :  { %9551 = vmatprep.subr.bf16.mxu1 %v9550_v26  ;;  %v8152_v26 = vld [vmem:[%s15212_s6 + $0x718] sm:$0xff] }
 0x543   :  { %v9602_v4 = vpack.c.bf16 %v8152_v26, %v8150_v62  ;;  %v9634_v26 = vpack.c.bf16 %v8184_v63, %v8182_v25 }
 0x545   :  { %9553 = vmatpush1.bf16.msra.mxu1 %v9552_v60  ;;  %v8154_v60 = vld [vmem:[%s15212_s6 + $0x728] sm:$0xff] }
 0x546   :  { %9555 = vmatprep.subr.bf16.mxu1 %v9554_v8  ;;  %v8156_v8 = vld [vmem:[%s15212_s6 + $0x738] sm:$0xff] }
 0x547   :  { %v9606_v13 = vpack.c.bf16 %v8156_v8, %v8154_v60  ;;  %v9638_v8 = vpack.c.bf16 %v8188_v23, %v8186_v6 }
 0x549   :  { %9557 = vmatpush1.bf16.msra.mxu1 %v9556_v17  ;;  %v8158_v17 = vld [vmem:[%s15212_s6 + $0x748] sm:$0xff] }
 0x54a   :  { %9559 = vmatprep.subr.bf16.mxu1 %v9558_v54  ;;  %v8160_v54 = vld [vmem:[%s15212_s6 + $0x758] sm:$0xff] }
 0x54b   :  { %v9610_v19 = vpack.c.bf16 %v8160_v54, %v8158_v17  ;;  %v9642_v54 = vpack.c.bf16 %v8192_v16, %v8190_v14 }
 0x54d   :  { %9561 = vmatpush1.bf16.msra.mxu1 %v9560_v21  ;;  %v8162_v21 = vld [vmem:[%s15212_s6 + $0x768] sm:$0xff] }
 0x54e   :  { %9563 = vmatprep.subr.bf16.mxu1 %v9562_v22 }
 0x551   :  { %9565 = vmatpush1.bf16.msra.mxu1 %v9564_v29  ;;  %v8165_v29 = vld [vmem:[%s15212_s6 + $0x780] sm:$0xff] }
 0x552   :  { %9567 = vmatprep.subr.bf16.mxu1 %v9566_v31  ;;  %v8167_v31 = vld [vmem:[%s15212_s6 + $0x790] sm:$0xff] }
 0x553   :  { %v9620_v34 = vpack.c.bf16 %v8167_v31, %v8165_v29  ;;  %v8202_v29 = vld [vmem:[%s15212_s6 + $0x8a8] sm:$0xff]  ;;  %v8204_v31 = vld [vmem:[%s15212_s6 + $0x8b8] sm:$0xff] }
 0x554   :  { %v9654_v9 = vpack.c.bf16 %v8204_v31, %v8202_v29  ;;  %v8238_v29 = vld [vmem:[%s15212_s6 + $0x9c8] sm:$0xff]  ;;  %v8240_v31 = vld [vmem:[%s15212_s6 + $0x9d8] sm:$0xff] }
 0x555   :  { %9569 = vmatpush1.bf16.msra.mxu1 %v9568_v37  ;;  %v8169_v37 = vld [vmem:[%s15212_s6 + $0x7a0] sm:$0xff] }
 0x556   :  { %9571 = vmatprep.subr.bf16.mxu1 %v9570_v38  ;;  %v8171_v38 = vld [vmem:[%s15212_s6 + $0x7b0] sm:$0xff] }
 0x557   :  { %v9624_v40 = vpack.c.bf16 %v8171_v38, %v8169_v37  ;;  %v8206_v37 = vld [vmem:[%s15212_s6 + $0x8c8] sm:$0xff]  ;;  %v8208_v38 = vld [vmem:[%s15212_s6 + $0x8d8] sm:$0xff] }
 0x558   :  { %v9658_v10 = vpack.c.bf16 %v8208_v38, %v8206_v37  ;;  %v8242_v37 = vld [vmem:[%s15212_s6 + $0x9e8] sm:$0xff]  ;;  %v8244_v38 = vld [vmem:[%s15212_s6 + $0x9f8] sm:$0xff] }
 0x559   :  { %9573 = vmatpush1.bf16.msra.mxu1 %v9572_v45  ;;  %v8173_v45 = vld [vmem:[%s15212_s6 + $0x7c0] sm:$0xff] }
 0x55a   :  { %9575 = vmatprep.subr.bf16.mxu1 %v9574_v46  ;;  %v8175_v46 = vld [vmem:[%s15212_s6 + $0x7d0] sm:$0xff] }
 0x55b   :  { %v9628_v0 = vpack.c.bf16 %v8175_v46, %v8173_v45  ;;  %v8210_v45 = vld [vmem:[%s15212_s6 + $0x8e8] sm:$0xff]  ;;  %v8212_v46 = vld [vmem:[%s15212_s6 + $0x8f8] sm:$0xff] }
 0x55c   :  { %v9662_v59 = vpack.c.bf16 %v8212_v46, %v8210_v45  ;;  %v8246_v45 = vld [vmem:[%s15212_s6 + $0xa08] sm:$0xff]  ;;  %v8248_v46 = vld [vmem:[%s15212_s6 + $0xa18] sm:$0xff] }
 0x55d   :  { %9577 = vmatpush1.bf16.msra.mxu1 %v9576_v58  ;;  %v8177_v58 = vld [vmem:[%s15212_s6 + $0x7e0] sm:$0xff] }
 0x55e   :  { %9579 = vmatprep.subr.bf16.mxu1 %v9578_v53  ;;  %v8179_v53 = vld [vmem:[%s15212_s6 + $0x7f0] sm:$0xff] }
 0x55f   :  { %v9632_v62 = vpack.c.bf16 %v8179_v53, %v8177_v58  ;;  %v8214_v58 = vld [vmem:[%s15212_s6 + $0x908] sm:$0xff]  ;;  %v8216_v53 = vld [vmem:[%s15212_s6 + $0x918] sm:$0xff] }
 0x560   :  { %v9666_v63 = vpack.c.bf16 %v8216_v53, %v8214_v58  ;;  %v8250_v58 = vld [vmem:[%s15212_s6 + $0xa28] sm:$0xff]  ;;  %v8252_v53 = vld [vmem:[%s15212_s6 + $0xa38] sm:$0xff] }
 0x561   :  { %9581 = vmatpush1.bf16.msra.mxu1 %v9580_v1  ;;  %v8181_v1 = vld [vmem:[%s15212_s6 + $0x800] sm:$0xff] }
 0x562   :  { %9603 = vmatprep.subr.bf16.mxu1 %v9602_v4  ;;  %v8183_v4 = vld [vmem:[%s15212_s6 + $0x810] sm:$0xff] }
 0x563   :  { %v9636_v60 = vpack.c.bf16 %v8183_v4, %v8181_v1  ;;  %v8218_v1 = vld [vmem:[%s15212_s6 + $0x928] sm:$0xff]  ;;  %v8220_v4 = vld [vmem:[%s15212_s6 + $0x938] sm:$0xff] }
 0x564   :  { %2214 = vmatmul.mubr.f32.vlgmr.msra.gmra.mrb[16].mxu1 %v12185_v61  ;;  %v8164_v61 = vld [vmem:[%s15212_s6 + $0x778] sm:$0xff]  ;;  %v9670_v23 = vpack.c.bf16 %v8220_v4, %v8218_v1  ;;  %v8254_v1 = vld [vmem:[%s15212_s6 + $0xa48] sm:$0xff] }
 0x565   :  { %8140 = vmatprep.mubr.msk.f32.mxu1 %vm1905_vm5, %v12207_v7  ;;  %9605 = vmatpush1.bf16.msra.mxu1 %v9604_v12  ;;  %v9612_v7 = vpack.c.bf16 %v8159_v55, %v8157_v20  ;;  %v9614_v22 = vpack.c.bf16 %v8164_v61, %v8162_v21  ;;  %v8185_v12 = vld [vmem:[%s15212_s6 + $0x820] sm:$0xff]  ;;  %v8194_v20 = vld [vmem:[%s15212_s6 + $0x868] sm:$0xff]  ;;  %v8196_v55 = vld [vmem:[%s15212_s6 + $0x878] sm:$0xff] }
 0x566   :  { %9607 = vmatprep.subr.bf16.mxu1 %v9606_v13  ;;  %v8187_v13 = vld [vmem:[%s15212_s6 + $0x830] sm:$0xff]  ;;  %v9646_v61 = vpack.c.bf16 %v8196_v55, %v8194_v20  ;;  %v8225_v20 = vld [vmem:[%s15212_s6 + $0x960] sm:$0xff]  ;;  %v8256_v4 = vld [vmem:[%s15212_s6 + $0xa58] sm:$0xff] }
 0x567   :  { %v9640_v17 = vpack.c.bf16 %v8187_v13, %v8185_v12  ;;  %v8222_v12 = vld [vmem:[%s15212_s6 + $0x948] sm:$0xff]  ;;  %v8224_v13 = vld [vmem:[%s15212_s6 + $0x958] sm:$0xff]  ;;  %v8227_v55 = vld [vmem:[%s15212_s6 + $0x970] sm:$0xff] }
 0x568   :  { %2220 = vmatmul.mubr.f32.gmra.mrb[18].mxu1 %v12199_v2  ;;  %v8168_v2 = vld [vmem:[%s15212_s6 + $0x798] sm:$0xff]  ;;  %v9674_v16 = vpack.c.bf16 %v8224_v13, %v8222_v12  ;;  %v8258_v12 = vld [vmem:[%s15212_s6 + $0xa68] sm:$0xff] }
 0x569   :  { %9609 = vmatpush1.bf16.msra.mxu1 %v9608_v18  ;;  %2572 = vmatprep.mubr.f32.mxu1 %v12511_v15  ;;  %v9616_v15 = vpack.c.bf16 %v8163_v56, %v8161_v24  ;;  %v9618_v3 = vpack.c.bf16 %v8168_v2, %v8166_v27  ;;  %v8189_v18 = vld [vmem:[%s15212_s6 + $0x840] sm:$0xff]  ;;  %v8198_v24 = vld [vmem:[%s15212_s6 + $0x888] sm:$0xff]  ;;  %v8200_v56 = vld [vmem:[%s15212_s6 + $0x898] sm:$0xff] }
 0x56a   :  { %9611 = vmatprep.subr.bf16.mxu1 %v9610_v19  ;;  %v8191_v19 = vld [vmem:[%s15212_s6 + $0x850] sm:$0xff]  ;;  %v9650_v2 = vpack.c.bf16 %v8200_v56, %v8198_v24  ;;  %v8234_v24 = vld [vmem:[%s15212_s6 + $0x9a8] sm:$0xff]  ;;  %v8236_v56 = vld [vmem:[%s15212_s6 + $0x9b8] sm:$0xff] }
 0x56b   :  { %v9644_v21 = vpack.c.bf16 %v8191_v19, %v8189_v18  ;;  %v8226_v18 = vld [vmem:[%s15212_s6 + $0x968] sm:$0xff]  ;;  %v8260_v13 = vld [vmem:[%s15212_s6 + $0xa78] sm:$0xff] }
 0x56d   :  { %9613 = vmatpush1.bf16.msra.mxu1 %v9612_v7  ;;  %v8193_v7 = vld [vmem:[%s15212_s6 + $0x860] sm:$0xff] }
 0x56e   :  { %9615 = vmatprep.subr.bf16.mxu1 %v9614_v22  ;;  %v8195_v22 = vld [vmem:[%s15212_s6 + $0x870] sm:$0xff] }
 0x56f   :  { %v9648_v27 = vpack.c.bf16 %v8195_v22, %v8193_v7  ;;  %v8229_v7 = vld [vmem:[%s15212_s6 + $0x980] sm:$0xff]  ;;  %v8231_v22 = vld [vmem:[%s15212_s6 + $0x990] sm:$0xff] }
 0x571   :  { %9617 = vmatpush1.bf16.msra.mxu1 %v9616_v15  ;;  %v8197_v15 = vld [vmem:[%s15212_s6 + $0x880] sm:$0xff] }
 0x572   :  { %9619 = vmatprep.subr.bf16.mxu1 %v9618_v3  ;;  %v8199_v3 = vld [vmem:[%s15212_s6 + $0x890] sm:$0xff] }
 0x573   :  { %v9652_v32 = vpack.c.bf16 %v8199_v3, %v8197_v15  ;;  %v8233_v15 = vld [vmem:[%s15212_s6 + $0x9a0] sm:$0xff]  ;;  %v8235_v3 = vld [vmem:[%s15212_s6 + $0x9b0] sm:$0xff] }
 0x575   :  { %9621 = vmatpush1.bf16.msra.mxu1 %v9620_v34  ;;  %v8201_v34 = vld [vmem:[%s15212_s6 + $0x8a0] sm:$0xff] }
 0x576   :  { %9623 = vmatprep.subr.bf16.mxu1 %v9622_v35  ;;  %v8203_v35 = vld [vmem:[%s15212_s6 + $0x8b0] sm:$0xff] }
 0x577   :  { %v9656_v39 = vpack.c.bf16 %v8203_v35, %v8201_v34  ;;  %v8237_v34 = vld [vmem:[%s15212_s6 + $0x9c0] sm:$0xff]  ;;  %v8239_v35 = vld [vmem:[%s15212_s6 + $0x9d0] sm:$0xff] }
 0x579   :  { %9625 = vmatpush1.bf16.msra.mxu1 %v9624_v40  ;;  %v8205_v40 = vld [vmem:[%s15212_s6 + $0x8c0] sm:$0xff] }
 0x57a   :  { %9627 = vmatprep.subr.bf16.mxu1 %v9626_v41  ;;  %v8207_v41 = vld [vmem:[%s15212_s6 + $0x8d0] sm:$0xff] }
 0x57b   :  { %v9660_v50 = vpack.c.bf16 %v8207_v41, %v8205_v40  ;;  %v8241_v40 = vld [vmem:[%s15212_s6 + $0x9e0] sm:$0xff]  ;;  %v8243_v41 = vld [vmem:[%s15212_s6 + $0x9f0] sm:$0xff] }
 0x57d   :  { %9629 = vmatpush1.bf16.msra.mxu1 %v9628_v0  ;;  %v8209_v0 = vld [vmem:[%s15212_s6 + $0x8e0] sm:$0xff] }
 0x57e   :  { %9631 = vmatprep.subr.bf16.mxu1 %v9630_v57  ;;  %v8211_v57 = vld [vmem:[%s15212_s6 + $0x8f0] sm:$0xff] }
 0x57f   :  { %v9664_v25 = vpack.c.bf16 %v8211_v57, %v8209_v0  ;;  %v8245_v0 = vld [vmem:[%s15212_s6 + $0xa00] sm:$0xff]  ;;  %v8247_v57 = vld [vmem:[%s15212_s6 + $0xa10] sm:$0xff] }
 0x581   :  { %9633 = vmatpush1.bf16.msra.mxu1 %v9632_v62  ;;  %v8213_v62 = vld [vmem:[%s15212_s6 + $0x900] sm:$0xff] }
 0x582   :  { %9635 = vmatprep.subr.bf16.mxu1 %v9634_v26  ;;  %v8215_v26 = vld [vmem:[%s15212_s6 + $0x910] sm:$0xff] }
 0x583   :  { %v9668_v6 = vpack.c.bf16 %v8215_v26, %v8213_v62  ;;  %v8249_v62 = vld [vmem:[%s15212_s6 + $0xa20] sm:$0xff]  ;;  %v8251_v26 = vld [vmem:[%s15212_s6 + $0xa30] sm:$0xff] }
 0x585   :  { %9637 = vmatpush1.bf16.msra.mxu1 %v9636_v60  ;;  %v8217_v60 = vld [vmem:[%s15212_s6 + $0x920] sm:$0xff] }
 0x586   :  { %9639 = vmatprep.subr.bf16.mxu1 %v9638_v8  ;;  %v8219_v8 = vld [vmem:[%s15212_s6 + $0x930] sm:$0xff] }
 0x587   :  { %v9672_v14 = vpack.c.bf16 %v8219_v8, %v8217_v60  ;;  %v8253_v60 = vld [vmem:[%s15212_s6 + $0xa40] sm:$0xff]  ;;  %v8255_v8 = vld [vmem:[%s15212_s6 + $0xa50] sm:$0xff] }
 0x589   :  { %9641 = vmatpush1.bf16.msra.mxu1 %v9640_v17  ;;  %v8221_v17 = vld [vmem:[%s15212_s6 + $0x940] sm:$0xff] }
 0x58a   :  { %9643 = vmatprep.subr.bf16.mxu1 %v9642_v54  ;;  %v8223_v54 = vld [vmem:[%s15212_s6 + $0x950] sm:$0xff] }
 0x58d   :  { %9645 = vmatpush1.bf16.msra.mxu1 %v9644_v21  ;;  %v8230_v21 = vld [vmem:[%s15212_s6 + $0x988] sm:$0xff] }
 0x58e   :  { %9647 = vmatprep.subr.bf16.mxu1 %v9646_v61 }
 0x591   :  { %9649 = vmatpush1.bf16.msra.mxu1 %v9648_v27  ;;  %v9684_v27 = vpack.c.bf16 %v8231_v22, %v8229_v7 }
 0x592   :  { %9651 = vmatprep.subr.bf16.mxu1 %v9650_v2  ;;  %v9686_v2 = vpack.c.bf16 %v8236_v56, %v8234_v24 }
 0x595   :  { %9653 = vmatpush1.bf16.msra.mxu1 %v9652_v32  ;;  %v9688_v32 = vpack.c.bf16 %v8235_v3, %v8233_v15 }
 0x596   :  { %9655 = vmatprep.subr.bf16.mxu1 %v9654_v9  ;;  %v9690_v9 = vpack.c.bf16 %v8240_v31, %v8238_v29 }
 0x599   :  { %9657 = vmatpush1.bf16.msra.mxu1 %v9656_v39  ;;  %v9692_v39 = vpack.c.bf16 %v8239_v35, %v8237_v34 }
 0x59a   :  { %9659 = vmatprep.subr.bf16.mxu1 %v9658_v10  ;;  %v9694_v10 = vpack.c.bf16 %v8244_v38, %v8242_v37 }
 0x59d   :  { %9661 = vmatpush1.bf16.msra.mxu1 %v9660_v50  ;;  %v9696_v50 = vpack.c.bf16 %v8243_v41, %v8241_v40 }
 0x59e   :  { %9663 = vmatprep.subr.bf16.mxu1 %v9662_v59  ;;  %v9698_v59 = vpack.c.bf16 %v8248_v46, %v8246_v45  ;;  %v4874_v45 = vld [vmem:[%s15168_s19 + $0x18] sm:$0xf] }
 0x5a1   :  { %9665 = vmatpush1.bf16.msra.mxu1 %v9664_v25  ;;  %v9700_v25 = vpack.c.bf16 %v8247_v57, %v8245_v0  ;;  %v8269_v0 = vld [vmem:[%s15216_s8 + $0xe0] sm:$0xff]  ;;  %v8270_v57 = vld [vmem:[%s15216_s8 + $0xe8] sm:$0xff] }
 0x5a2   :  { %9667 = vmatprep.subr.bf16.mxu1 %v9666_v63  ;;  %v9702_v63 = vpack.c.bf16 %v8252_v53, %v8250_v58  ;;  %v2818_v58 = vld [vmem:[#allocation8 + $0x8] sm:$0xff]  ;;  %v9727_v53 = vpack.c.bf16 %v8270_v57, %v8269_v0  ;;  %v2793_v0 = vld [vmem:[%s15216_s8 + $0x20] sm:$0xff]  ;;  %v2794_v57 = vld [vmem:[%s15216_s8 + $0x28] sm:$0xff] }
 0x5a4   :  { %2573 = vmatmul.mubr.f32.vlgmr.msra.gmra.mrb[16].mxu1 %v12503_v11  ;;  %v8228_v11 = vld [vmem:[%s15212_s6 + $0x978] sm:$0xff] }
 0x5a5   :  { %9669 = vmatpush1.bf16.msra.mxu1 %v9668_v6  ;;  %2578 = vmatprep.mubr.f32.mxu1 %v12652_v5  ;;  %v9676_v5 = vpack.c.bf16 %v8223_v54, %v8221_v17  ;;  %v9678_v19 = vpack.c.bf16 %v8228_v11, %v8226_v18  ;;  %v9704_v6 = vpack.c.bf16 %v8251_v26, %v8249_v62  ;;  %v8257_v17 = vld [vmem:[%s15212_s6 + $0xa60] sm:$0xff]  ;;  %v8259_v54 = vld [vmem:[%s15212_s6 + $0xa70] sm:$0xff]  ;;  %v11264_v11 = vmov 0.0|0.0  }
 0x5a6   :  { %9671 = vmatprep.subr.bf16.mxu1 %v9670_v23  ;;  %v9706_v23 = vpack.c.bf16 %v8256_v4, %v8254_v1  ;;  %v9712_v18 = vpack.c.bf16 %v8259_v54, %v8257_v17  ;;  %v8273_v26 = vld [vmem:[%s15216_s8 + $0x100] sm:$0xff]  ;;  %v8274_v1 = vld [vmem:[%s15216_s8 + $0x108] sm:$0xff] }
 0x5a7   :  { %v9733_v4 = vpack.c.bf16 %v8274_v1, %v8273_v26  ;;  %v8281_v54 = vld [vmem:[%s15216_s8 + $0x140] sm:$0xff]  ;;  %v2798_v26 = vld [vmem:[%s15216_s8 + $0x48] sm:$0xff] }
 0x5a8   :  { %2579 = vmatmul.mubr.f32.gmra.mrb[18].mxu1 %v12650_v28  ;;  %v8232_v28 = vld [vmem:[%s15212_s6 + $0x998] sm:$0xff] }
 0x5a9   :  { %9673 = vmatpush1.bf16.msra.mxu1 %v9672_v14  ;;  %8261 = vmatprep.mubr.msk.f32.mxu1 %vm1905_vm5, %v12668_v36  ;;  %v9680_v36 = vpack.c.bf16 %v8227_v55, %v8225_v20  ;;  %v9682_v61 = vpack.c.bf16 %v8232_v28, %v8230_v21  ;;  %v9708_v14 = vpack.c.bf16 %v8255_v8, %v8253_v60  ;;  %v8277_v8 = vld [vmem:[%s15216_s8 + $0x120] sm:$0xff] }
 0x5aa   :  { %9675 = vmatprep.subr.bf16.mxu1 %v9674_v16  ;;  %v9710_v16 = vpack.c.bf16 %v8260_v13, %v8258_v12  ;;  %v8278_v12 = vld [vmem:[%s15216_s8 + $0x128] sm:$0xff] }
 0x5ab   :  { %v9739_v13 = vpack.c.bf16 %v8278_v12, %v8277_v8  ;;  %v2802_v8 = vld [vmem:[%s15216_s8 + $0x68] sm:$0xff] }
 0x5ad   :  { %9677 = vmatpush1.bf16.msra.mxu1 %v9676_v5  ;;  %v2666_v5 = vld [vmem:[%s15213_s15] sm:$0x3] }
 0x5ae   :  { %9679 = vmatprep.subr.bf16.mxu1 %v9678_v19  ;;  %v2671_v19 = vrot.slane %v2666_v5, %v11865_v48  ;;  %v2675_v20 = vrot.slane %v2666_v5, %v11869_v51 }
 0x5b1   :  { %9681 = vmatpush1.bf16.msra.mxu1 %v9680_v36 }
 0x5b2   :  { %9683 = vmatprep.subr.bf16.mxu1 %v9682_v61 }
 0x5b5   :  { %9685 = vmatpush1.bf16.msra.mxu1 %v9684_v27 }
 0x5b6   :  { %9687 = vmatprep.subr.bf16.mxu1 %v9686_v2 }
 0x5b9   :  { %9689 = vmatpush1.bf16.msra.mxu1 %v9688_v32 }
 0x5ba   :  { %9691 = vmatprep.subr.bf16.mxu1 %v9690_v9 }
 0x5bd   :  { %9693 = vmatpush1.bf16.msra.mxu1 %v9692_v39 }
 0x5be   :  { %9695 = vmatprep.subr.bf16.mxu1 %v9694_v10 }
 0x5c1   :  { %9697 = vmatpush1.bf16.msra.mxu1 %v9696_v50 }
 0x5c2   :  { %9699 = vmatprep.subr.bf16.mxu1 %v9698_v59  ;;  %v2706_v59 = vld [vmem:[#allocation8] sm:$0xff] }
 0x5c5   :  { %9701 = vmatpush1.bf16.msra.mxu1 %v9700_v25  ;;  %v8271_v25 = vld [vmem:[%s15216_s8 + $0xf0] sm:$0xff] }
 0x5c6   :  { %9703 = vmatprep.subr.bf16.mxu1 %v9702_v63  ;;  %v8272_v63 = vld [vmem:[%s15216_s8 + $0xf8] sm:$0xff] }
 0x5c7   :  { %v9730_v62 = vpack.c.bf16 %v8272_v63, %v8271_v25  ;;  %v2796_v25 = vld [vmem:[%s15216_s8 + $0x38] sm:$0xff] }
 0x5c9   :  { %9705 = vmatpush1.bf16.msra.mxu1 %v9704_v6  ;;  %v8275_v6 = vld [vmem:[%s15216_s8 + $0x110] sm:$0xff] }
 0x5ca   :  { %9707 = vmatprep.subr.bf16.mxu1 %v9706_v23  ;;  %v8276_v23 = vld [vmem:[%s15216_s8 + $0x118] sm:$0xff] }
 0x5cb   :  { %v9736_v60 = vpack.c.bf16 %v8276_v23, %v8275_v6  ;;  %v2800_v6 = vld [vmem:[%s15216_s8 + $0x58] sm:$0xff] }
 0x5cd   :  { %9709 = vmatpush1.bf16.msra.mxu1 %v9708_v14  ;;  %v8279_v14 = vld [vmem:[%s15216_s8 + $0x130] sm:$0xff] }
 0x5ce   :  { %9711 = vmatprep.subr.bf16.mxu1 %v9710_v16  ;;  %v8280_v16 = vld [vmem:[%s15216_s8 + $0x138] sm:$0xff] }
 0x5cf   :  { %v9742_v17 = vpack.c.bf16 %v8280_v16, %v8279_v14  ;;  %v2804_v14 = vld [vmem:[%s15216_s8 + $0x78] sm:$0xff] }
 0x5d1   :  { %9713 = vmatpush1.bf16.msra.mxu1 %v9712_v18  ;;  %v8282_v18 = vld [vmem:[%s15216_s8 + $0x148] sm:$0xff] }
 0x5d2   :  { %9936 = vmatprep.subr.bf16.mxu1 %v11264_v11  ;;  %v9745_v5 = vpack.c.bf16 %v8282_v18, %v8281_v54  ;;  %v2806_v54 = vld [vmem:[%s15216_s8 + $0x88] sm:$0xff] }
 0x5d4   :  { %2650 = vmatmul.mubr.f32.vlgmr.msra.gmra.mrb[16].mxu1 %v12666_v30 }
 0x5d5   :  { %8262 = vmatprep.mubr.msk.f32.mxu1 %vm1905_vm5, %v12684_v44 }
 0x5d8   :  { %2656 = vmatmul.mubr.f32.gmra.mrb[18].mxu1 %v12682_v42 }
 0x5d9   :  { %9204 = vmatprep.mubr.msk.f32.mxu1 %vm11265_vm10, %v15188_v43 }
 0x6a7   :  { %v2651_v55 = vpop.f32.mrb[16].mxu1 }
 0x6a8   :  { %v2678_v21 = vadd.f32 %v2671_v19, %v2651_v55  ;;  %v2653_v28 = vpop.f32.mrb[17].mxu1 }
 0x6a9   :  { %v2679_v30 = vadd.f32 %v2675_v20, %v2653_v28  ;;  %v8286_v28 = vld [vmem:[%s15216_s8 + $0x168] sm:$0xff] }
 0x6aa   :  { %v2682_v36 = vsub.f32 0.0, %v2678_v21  ;;  %v8285_v21 = vld [vmem:[%s15216_s8 + $0x160] sm:$0xff] }
 0x6ab   :  { %v2683_v61 = vsub.f32 0.0, %v2679_v30  ;;  %v2657_v44 = vpop.f32.mrb[18].mxu1  ;;  %v9751_v30 = vpack.c.bf16 %v8286_v28, %v8285_v21  ;;  %v2810_v21 = vld [vmem:[%s15216_s8 + $0xa8] sm:$0xff] }
 0x6ac   :  { %v2686_v7 = vmul.f32 1.442695, %v2682_v36  ;;  %v2680_v42 = vadd.f32 %v2671_v19, %v2657_v44  ;;  %v2659_v22 = vpop.f32.mrb[19].mxu1  ;;  %v8283_v19 = vld [vmem:[%s15216_s8 + $0x150] sm:$0xff] }
 0x6ad   :  { %v2688_v24 = vmul.f32 1.442695, %v2683_v61  ;;  %v2681_v56 = vadd.f32 %v2675_v20, %v2659_v22  ;;  %v8284_v20 = vld [vmem:[%s15216_s8 + $0x158] sm:$0xff]  ;;  %v8287_v36 = vld [vmem:[%s15216_s8 + $0x170] sm:$0xff] }
 0x6ae   :  { %10831 = vpow2.f32 %v2686_v7  ;;  %v2684_v27 = vsub.f32 0.0, %v2680_v42  ;;  %v9748_v55 = vpack.c.bf16 %v8284_v20, %v8283_v19  ;;  %v8288_v61 = vld [vmem:[%s15216_s8 + $0x178] sm:$0xff]  ;;  %v8289_v7 = vld [vmem:[%s15216_s8 + $0x180] sm:$0xff]  ;;  %v8290_v42 = vld [vmem:[%s15216_s8 + $0x188] sm:$0xff] }
 0x6af   :  { %10833 = vpow2.f32 %v2688_v24  ;;  %v2685_v2 = vsub.f32 0.0, %v2681_v56  ;;  %v9754_v44 = vpack.c.bf16 %v8288_v61, %v8287_v36  ;;  %v9757_v22 = vpack.c.bf16 %v8290_v42, %v8289_v7  ;;  %v8291_v24 = vld [vmem:[%s15216_s8 + $0x190] sm:$0xff]  ;;  %v8292_v56 = vld [vmem:[%s15216_s8 + $0x198] sm:$0xff]  ;;  %v2814_v7 = vld [vmem:[%s15216_s8 + $0xc8] sm:$0xff] }
 0x6b0   :  { %v2690_v15 = vmul.f32 1.442695, %v2684_v27  ;;  %v9760_v27 = vpack.c.bf16 %v8292_v56, %v8291_v24  ;;  %v2808_v19 = vld [vmem:[%s15216_s8 + $0x98] sm:$0xff] }
 0x6b1   :  { %v2692_v3 = vmul.f32 1.442695, %v2685_v2  ;;  %v8293_v2 = vld [vmem:[%s15216_s8 + $0x1a0] sm:$0xff]  ;;  %v2812_v36 = vld [vmem:[%s15216_s8 + $0xb8] sm:$0xff] }
 0x6b2   :  { %10835 = vpow2.f32 %v2690_v15  ;;  %v8294_v15 = vld [vmem:[%s15216_s8 + $0x1a8] sm:$0xff]  ;;  %v2816_v24 = vld [vmem:[%s15216_s8 + $0xd8] sm:$0xff] }
 0x6b3   :  { %10837 = vpow2.f32 %v2692_v3  ;;  %v9763_v3 = vpack.c.bf16 %v8294_v15, %v8293_v2  ;;  %v8302_v2 = vld [vmem:[%s15216_s8 + $0x1c0] sm:$0xff]  ;;  %v8304_v15 = vld [vmem:[%s15216_s8 + $0x1d0] sm:$0xff] }
 0x6b8   :  { %v10832_v29 = vpop.eup %10831 }
 0x6b9   :  { %v10834_v31 = vpop.eup %10833  ;;  %v2694_v32 = vadd.f32 1.0, %v10832_v29  ;;  %v8295_v29 = vld [vmem:[%s15216_s8 + $0x1b0] sm:$0xff] }
 0x6ba   :  { %v2695_v9 = vadd.f32 1.0, %v10834_v31  ;;  %v8296_v31 = vld [vmem:[%s15216_s8 + $0x1b8] sm:$0xff] }
 0x6bb   :  { %10839 = vrcp.f32 %v2694_v32  ;;  %v9766_v32 = vpack.c.bf16 %v8296_v31, %v8295_v29  ;;  %v8306_v31 = vld [vmem:[%s15216_s8 + $0x1e0] sm:$0xff] }
 0x6bc   :  { %v10836_v34 = vpop.eup %10835  ;;  %10841 = vrcp.f32 %v2695_v9 }
 0x6bd   :  { %v10838_v35 = vpop.eup %10837  ;;  %v2696_v37 = vadd.f32 1.0, %v10836_v34 }
 0x6be   :  { %v2697_v38 = vadd.f32 1.0, %v10838_v35  ;;  %v2789_v35 = vld [vmem:[%s15216_s8] sm:$0xff] }
 0x6bf   :  { %10843 = vrcp.f32 %v2696_v37  ;;  %v2790_v37 = vld [vmem:[%s15216_s8 + $0x8] sm:$0xff] }
 0x6c0   :  { %10845 = vrcp.f32 %v2697_v38 }
 0x6c5   :  { %v10840_v39 = vpop.eup %10839 }
 0x6c6   :  { %v10842_v10 = vpop.eup %10841 }
 0x6c9   :  { %v10844_v40 = vpop.eup %10843 }
 0x6ca   :  { %v10846_v41 = vpop.eup %10845  ;;  %v13065_v46 = vpack.c.bf16 %v10844_v40, %v10840_v39  ;;  %v9769_v39 = vpack.c.bf16 %v2790_v37, %v2789_v35  ;;  %v2791_v40 = vld [vmem:[%s15216_s8 + $0x10] sm:$0xff]  ;;  %v8309_v35 = vld [vmem:[%s15216_s8 + $0x1f8] sm:$0xff] }
 0x6cb   :  { %v13067_v50 = vpack.c.bf16 %v10846_v41, %v10842_v10  ;;  %v2792_v41 = vld [vmem:[%s15216_s8 + $0x18] sm:$0xff] }
 0x6cd   :  { %9716 = vmatprep.subr.msk.bf16.mxu0 %vm13061_vm7, %v13067_v50 }
 0x6ce   :  { %9719 = vmatpush1.bf16.msk.msra.mxu0 %vm13061_vm7, %v13065_v46 }
 0x6cf   :  { %9722 = vmatprep.subr.msk.bf16.mxu0 %vm13061_vm7, %v13067_v50 }
 0x6d1   :  { %8265 = vmatmul.mubr.msk.f32.vlgmr.msra.gmra.mrb[36].mxu0 %vm2707_vm8, %v2706_v59  ;;  %v9772_v59 = vpack.c.bf16 %v2792_v41, %v2791_v40  ;;  %v8312_v40 = vld [vmem:[%s15216_s8 + $0x210] sm:$0xff]  ;;  %v8313_v41 = vld [vmem:[%s15216_s8 + $0x218] sm:$0xff] }
 0x6d2   :  { %9725 = vmatpush1.bf16.msk.msra.mxu0 %vm13061_vm7, %v13065_v46  ;;  %2886 = vmatprep.mubr.f32.mxu0 %v15188_v43 }
 0x6d3   :  { %9726 = vmatprep.subr.bf16.mxu0 %v11264_v11 }
 0x6d5   :  { %8268 = vmatmul.mubr.msk.f32.vlgmr.msra.gmra.mrb[38].mxu0 %vm2707_vm8, %v2818_v58  ;;  %v9775_v58 = vpack.c.bf16 %v2794_v57, %v2793_v0  ;;  %v8314_v0 = vld [vmem:[%s15216_s8 + $0x220] sm:$0xff]  ;;  %v8315_v57 = vld [vmem:[%s15216_s8 + $0x228] sm:$0xff] }
 0x6d6   :  { %9728 = vmatpush1.bf16.msra.mxu0 %v9727_v53  ;;  %v2795_v53 = vld [vmem:[%s15216_s8 + $0x30] sm:$0xff] }
 0x6d7   :  { %9729 = vmatprep.subr.bf16.mxu0 %v11264_v11  ;;  %v9778_v63 = vpack.c.bf16 %v2796_v25, %v2795_v53  ;;  %v8316_v53 = vld [vmem:[%s15216_s8 + $0x230] sm:$0xff]  ;;  %v8317_v25 = vld [vmem:[%s15216_s8 + $0x238] sm:$0xff] }
 0x6da   :  { %9731 = vmatpush1.bf16.msra.mxu0 %v9730_v62  ;;  %v2797_v62 = vld [vmem:[%s15216_s8 + $0x40] sm:$0xff] }
 0x6db   :  { %9732 = vmatprep.subr.bf16.mxu0 %v11264_v11  ;;  %v9781_v1 = vpack.c.bf16 %v2798_v26, %v2797_v62  ;;  %v8318_v62 = vld [vmem:[%s15216_s8 + $0x240] sm:$0xff]  ;;  %v8319_v26 = vld [vmem:[%s15216_s8 + $0x248] sm:$0xff] }
 0x6de   :  { %9734 = vmatpush1.bf16.msra.mxu0 %v9733_v4  ;;  %v2799_v4 = vld [vmem:[%s15216_s8 + $0x50] sm:$0xff] }
 0x6df   :  { %9735 = vmatprep.subr.bf16.mxu0 %v11264_v11  ;;  %v9784_v23 = vpack.c.bf16 %v2800_v6, %v2799_v4  ;;  %v8320_v4 = vld [vmem:[%s15216_s8 + $0x250] sm:$0xff]  ;;  %v8321_v6 = vld [vmem:[%s15216_s8 + $0x258] sm:$0xff] }
 0x6e2   :  { %9737 = vmatpush1.bf16.msra.mxu0 %v9736_v60  ;;  %v2801_v60 = vld [vmem:[%s15216_s8 + $0x60] sm:$0xff] }
 0x6e3   :  { %9738 = vmatprep.subr.bf16.mxu0 %v11264_v11  ;;  %v9787_v12 = vpack.c.bf16 %v2802_v8, %v2801_v60  ;;  %v8322_v60 = vld [vmem:[%s15216_s8 + $0x260] sm:$0xff]  ;;  %v8323_v8 = vld [vmem:[%s15216_s8 + $0x268] sm:$0xff] }
 0x6e6   :  { %9740 = vmatpush1.bf16.msra.mxu0 %v9739_v13  ;;  %v2803_v13 = vld [vmem:[%s15216_s8 + $0x70] sm:$0xff] }
 0x6e7   :  { %9741 = vmatprep.subr.bf16.mxu0 %v11264_v11  ;;  %v9790_v16 = vpack.c.bf16 %v2804_v14, %v2803_v13  ;;  %v8324_v13 = vld [vmem:[%s15216_s8 + $0x270] sm:$0xff]  ;;  %v8325_v14 = vld [vmem:[%s15216_s8 + $0x278] sm:$0xff] }
 0x6ea   :  { %9743 = vmatpush1.bf16.msra.mxu0 %v9742_v17  ;;  %v2805_v17 = vld [vmem:[%s15216_s8 + $0x80] sm:$0xff] }
 0x6eb   :  { %9744 = vmatprep.subr.bf16.mxu0 %v11264_v11  ;;  %v9793_v18 = vpack.c.bf16 %v2806_v54, %v2805_v17  ;;  %v8326_v17 = vld [vmem:[%s15216_s8 + $0x280] sm:$0xff]  ;;  %v8327_v54 = vld [vmem:[%s15216_s8 + $0x288] sm:$0xff] }
 0x6ee   :  { %9746 = vmatpush1.bf16.msra.mxu0 %v9745_v5  ;;  %v2807_v5 = vld [vmem:[%s15216_s8 + $0x90] sm:$0xff] }
 0x6ef   :  { %9747 = vmatprep.subr.bf16.mxu0 %v11264_v11  ;;  %v9796_v20 = vpack.c.bf16 %v2808_v19, %v2807_v5  ;;  %v8328_v5 = vld [vmem:[%s15216_s8 + $0x290] sm:$0xff]  ;;  %v8329_v19 = vld [vmem:[%s15216_s8 + $0x298] sm:$0xff] }
 0x6f2   :  { %9749 = vmatpush1.bf16.msra.mxu0 %v9748_v55  ;;  %v2809_v55 = vld [vmem:[%s15216_s8 + $0xa0] sm:$0xff] }
 0x6f3   :  { %9750 = vmatprep.subr.bf16.mxu0 %v11264_v11  ;;  %v9799_v28 = vpack.c.bf16 %v2810_v21, %v2809_v55 }
 0x6f6   :  { %9752 = vmatpush1.bf16.msra.mxu0 %v9751_v30  ;;  %v2811_v30 = vld [vmem:[%s15216_s8 + $0xb0] sm:$0xff] }
 0x6f7   :  { %9753 = vmatprep.subr.bf16.mxu0 %v11264_v11  ;;  %v9802_v61 = vpack.c.bf16 %v2812_v36, %v2811_v30 }
 0x6fa   :  { %9755 = vmatpush1.bf16.msra.mxu0 %v9754_v44  ;;  %v2813_v44 = vld [vmem:[%s15216_s8 + $0xc0] sm:$0xff] }
 0x6fb   :  { %9756 = vmatprep.subr.bf16.mxu0 %v11264_v11  ;;  %v9805_v42 = vpack.c.bf16 %v2814_v7, %v2813_v44 }
 0x6fe   :  { %9758 = vmatpush1.bf16.msra.mxu0 %v9757_v22  ;;  %v2815_v22 = vld [vmem:[%s15216_s8 + $0xd0] sm:$0xff] }
 0x6ff   :  { %9759 = vmatprep.subr.bf16.mxu0 %v11264_v11  ;;  %v9808_v56 = vpack.c.bf16 %v2816_v24, %v2815_v22 }
 0x702   :  { %9761 = vmatpush1.bf16.msra.mxu0 %v9760_v27  ;;  %v3070_v27 = vld [vmem:[#allocation8 + $0x10] sm:$0xff] }
 0x703   :  { %9762 = vmatprep.subr.bf16.mxu0 %v11264_v11 }
 0x706   :  { %9764 = vmatpush1.bf16.msra.mxu0 %v9763_v3  ;;  %v8305_v3 = vld [vmem:[%s15216_s8 + $0x1d8] sm:$0xff] }
 0x707   :  { %9765 = vmatprep.subr.bf16.mxu0 %v11264_v11  ;;  %v9820_v29 = vpack.c.bf16 %v8305_v3, %v8304_v15 }
 0x70a   :  { %9767 = vmatpush1.bf16.msra.mxu0 %v9766_v32  ;;  %v8307_v32 = vld [vmem:[%s15216_s8 + $0x1e8] sm:$0xff] }
 0x70b   :  { %9768 = vmatprep.subr.bf16.mxu0 %v11264_v11 }
 0x7a4   :  { %v13183_v9 = vpop.f32.mrb[36].mxu0 }
 0x7a5   :  { %v2786_v34 = vpop.f32.mrb[37].mxu0 }
 0x7a8   :  { %v2888_v38 = vpop.f32.mrb[38].mxu0 }
 0x7a9   :  { %v2890_v10 = vpop.f32.mrb[39].mxu0 }
 0x7aa   :  { %8297 = vmatprep.mubr.msk.f32.mxu0 %vm2922_vm9, %v2890_v10 }
 0x7ab   :  { %2991 = vmatmul.mubr.f32.vlgmr.msra.gmra.mrb[40].mxu0 %v2888_v38  ;;  %v8310_v38 = vld [vmem:[%s15216_s8 + $0x200] sm:$0xff] }
 0x7ac   :  { %9770 = vmatpush1.bf16.msra.mxu0 %v9769_v39  ;;  %8298 = vmatprep.mubr.msk.f32.mxu0 %vm2922_vm9, %v2786_v34  ;;  %v8308_v34 = vld [vmem:[%s15216_s8 + $0x1f0] sm:$0xff]  ;;  %v8311_v39 = vld [vmem:[%s15216_s8 + $0x208] sm:$0xff] }
 0x7ad   :  { %9771 = vmatprep.subr.bf16.mxu0 %v11264_v11  ;;  %v9826_v37 = vpack.c.bf16 %v8309_v35, %v8308_v34  ;;  %v9829_v10 = vpack.c.bf16 %v8311_v39, %v8310_v38  ;;  %v8336_v34 = vld [vmem:[%s15160_s11 + $0x90] sm:$0xff]  ;;  %v8337_v35 = vld [vmem:[%s15160_s11 + $0x98] sm:$0xff]  ;;  %v8338_v38 = vld [vmem:[%s15160_s11 + $0xa0] sm:$0xff] }
 0x7ae   :  { %v8339_v39 = vld [vmem:[%s15160_s11 + $0xa8] sm:$0xff] }
 0x7b0   :  { %9773 = vmatpush1.bf16.msra.mxu0 %v9772_v59  ;;  %v9832_v59 = vpack.c.bf16 %v8313_v41, %v8312_v40  ;;  %v8340_v40 = vld [vmem:[%s15160_s11 + $0xb0] sm:$0xff]  ;;  %v8341_v41 = vld [vmem:[%s15160_s11 + $0xb8] sm:$0xff] }
 0x7b1   :  { %9774 = vmatprep.subr.bf16.mxu0 %v11264_v11 }
 0x7b4   :  { %9776 = vmatpush1.bf16.msra.mxu0 %v9775_v58  ;;  %v9835_v58 = vpack.c.bf16 %v8315_v57, %v8314_v0  ;;  %v8342_v0 = vld [vmem:[%s15160_s11 + $0xc0] sm:$0xff]  ;;  %v8343_v57 = vld [vmem:[%s15160_s11 + $0xc8] sm:$0xff] }
 0x7b5   :  { %9777 = vmatprep.subr.bf16.mxu0 %v11264_v11 }
 0x7b8   :  { %9779 = vmatpush1.bf16.msra.mxu0 %v9778_v63  ;;  %v9838_v63 = vpack.c.bf16 %v8317_v25, %v8316_v53  ;;  %v8344_v53 = vld [vmem:[%s15160_s11 + $0xd0] sm:$0xff]  ;;  %v8345_v25 = vld [vmem:[%s15160_s11 + $0xd8] sm:$0xff] }
 0x7b9   :  { %9780 = vmatprep.subr.bf16.mxu0 %v11264_v11 }
 0x7bc   :  { %9782 = vmatpush1.bf16.msra.mxu0 %v9781_v1  ;;  %v9841_v1 = vpack.c.bf16 %v8319_v26, %v8318_v62  ;;  %v8346_v62 = vld [vmem:[%s15160_s11 + $0xe0] sm:$0xff]  ;;  %v8347_v26 = vld [vmem:[%s15160_s11 + $0xe8] sm:$0xff] }
 0x7bd   :  { %9783 = vmatprep.subr.bf16.mxu0 %v11264_v11 }
 0x7c0   :  { %9785 = vmatpush1.bf16.msra.mxu0 %v9784_v23  ;;  %v9844_v23 = vpack.c.bf16 %v8321_v6, %v8320_v4  ;;  %v8348_v4 = vld [vmem:[%s15160_s11 + $0xf0] sm:$0xff]  ;;  %v8349_v6 = vld [vmem:[%s15160_s11 + $0xf8] sm:$0xff] }
 0x7c1   :  { %9786 = vmatprep.subr.bf16.mxu0 %v11264_v11 }
 0x7c4   :  { %9788 = vmatpush1.bf16.msra.mxu0 %v9787_v12  ;;  %v9847_v12 = vpack.c.bf16 %v8323_v8, %v8322_v60  ;;  %v3337_v60 = vld [vmem:[%s15160_s11] sm:$0xff]  ;;  %v3338_v8 = vld [vmem:[%s15160_s11 + $0x8] sm:$0xff] }
 0x7c5   :  { %9789 = vmatprep.subr.bf16.mxu0 %v11264_v11 }
 0x7c8   :  { %9791 = vmatpush1.bf16.msra.mxu0 %v9790_v16  ;;  %v9850_v16 = vpack.c.bf16 %v8325_v14, %v8324_v13  ;;  %v9883_v14 = vpack.c.bf16 %v3338_v8, %v3337_v60 }
 0x7c9   :  { %9792 = vmatprep.subr.bf16.mxu0 %v11264_v11 }
 0x7cc   :  { %9794 = vmatpush1.bf16.msra.mxu0 %v9793_v18  ;;  %v9853_v18 = vpack.c.bf16 %v8327_v54, %v8326_v17  ;;  %v3340_v17 = vld [vmem:[%s15160_s11 + $0x18] sm:$0xff] }
 0x7cd   :  { %9795 = vmatprep.subr.bf16.mxu0 %v11264_v11 }
 0x7d0   :  { %9797 = vmatpush1.bf16.msra.mxu0 %v9796_v20  ;;  %v9856_v20 = vpack.c.bf16 %v8329_v19, %v8328_v5  ;;  %v3341_v19 = vld [vmem:[%s15160_s11 + $0x20] sm:$0xff] }
 0x7d1   :  { %9798 = vmatprep.subr.bf16.mxu0 %v11264_v11 }
 0x7d4   :  { %9800 = vmatpush1.bf16.msra.mxu0 %v9799_v28 }
 0x7d5   :  { %9801 = vmatprep.subr.bf16.mxu0 %v11264_v11 }
 0x7d8   :  { %9803 = vmatpush1.bf16.msra.mxu0 %v9802_v61 }
 0x7d9   :  { %9804 = vmatprep.subr.bf16.mxu0 %v11264_v11 }
 0x7dc   :  { %9806 = vmatpush1.bf16.msra.mxu0 %v9805_v42  ;;  %v8331_v42 = vld [vmem:[%s15217_s1] ss:$0 sm:$0xff] }
 0x7dd   :  { %9807 = vmatprep.subr.bf16.mxu0 %v11264_v11 }
 0x7e0   :  { %9809 = vmatpush1.bf16.msra.mxu0 %v9808_v56 }
 0x7e1   :  { %9812 = vmatprep.subr.msk.bf16.mxu0 %vm13061_vm7, %v13067_v50  ;;  %v8303_v50 = vld [vmem:[%s15216_s8 + $0x1c8] sm:$0xff] }
 0x7e3   :  { %3064 = vmatmul.mubr.f32.vlgmr.msra.gmra.mrb[42].mxu0 %v13183_v9  ;;  %v9823_v9 = vpack.c.bf16 %v8307_v32, %v8306_v31  ;;  %v8335_v31 = vld [vmem:[%s15160_s11 + $0x88] sm:$0xff] }
 0x7e4   :  { %9815 = vmatpush1.bf16.msk.msra.mxu0 %vm13061_vm7, %v13065_v46  ;;  %3138 = vmatprep.mubr.f32.mxu0 %v15188_v43  ;;  %v9817_v46 = vpack.c.bf16 %v8303_v50, %v8302_v2  ;;  %v3354_v32 = vld [vmem:[#allocation10 + $0x4] sm:$0xf] }
 0x7e5   :  { %9816 = vmatprep.subr.bf16.mxu0 %v11264_v11 }
 0x7e7   :  { %8301 = vmatmul.mubr.msk.f32.vlgmr.msra.gmra.mrb[44].mxu0 %vm2707_vm8, %v3070_v27 }
 0x7e8   :  { %9818 = vmatpush1.bf16.msra.mxu0 %v9817_v46  ;;  %v3262_v46 = vld [vmem:[#allocation10] sm:$0xf] }
 0x7e9   :  { %9819 = vmatprep.subr.bf16.mxu0 %v11264_v11 }
 0x7ec   :  { %9821 = vmatpush1.bf16.msra.mxu0 %v9820_v29  ;;  %v8334_v29 = vld [vmem:[%s15160_s11 + $0x80] sm:$0xff] }
 0x7ed   :  { %9822 = vmatprep.subr.bf16.mxu0 %v11264_v11 }
 0x7f0   :  { %9824 = vmatpush1.bf16.msra.mxu0 %v9823_v9  ;;  %v9859_v9 = vpack.c.bf16 %v8335_v31, %v8334_v29  ;;  %v8351_v29 = vld [vmem:[%s15160_s11 + $0x100] sm:$0xff]  ;;  %v8352_v31 = vld [vmem:[%s15160_s11 + $0x108] sm:$0xff] }
 0x7f1   :  { %9825 = vmatprep.subr.bf16.mxu0 %v11264_v11 }
 0x7f4   :  { %9827 = vmatpush1.bf16.msra.mxu0 %v9826_v37  ;;  %v9862_v37 = vpack.c.bf16 %v8337_v35, %v8336_v34  ;;  %v8355_v35 = vld [vmem:[%s15160_s11 + $0x120] sm:$0xff] }
 0x7f5   :  { %9828 = vmatprep.subr.bf16.mxu0 %v11264_v11 }
 0x7f8   :  { %9830 = vmatpush1.bf16.msra.mxu0 %v9829_v10  ;;  %v9865_v10 = vpack.c.bf16 %v8339_v39, %v8338_v38  ;;  %v8357_v39 = vld [vmem:[%s15160_s11 + $0x130] sm:$0xff] }
 0x7f9   :  { %9831 = vmatprep.subr.bf16.mxu0 %v11264_v11 }
 0x7fc   :  { %9833 = vmatpush1.bf16.msra.mxu0 %v9832_v59  ;;  %v9868_v59 = vpack.c.bf16 %v8341_v41, %v8340_v40  ;;  %v8359_v41 = vld [vmem:[%s15160_s11 + $0x140] sm:$0xff] }
 0x7fd   :  { %9834 = vmatprep.subr.bf16.mxu0 %v11264_v11 }
 0x800   :  { %9836 = vmatpush1.bf16.msra.mxu0 %v9835_v58  ;;  %v9871_v58 = vpack.c.bf16 %v8343_v57, %v8342_v0  ;;  %v8361_v57 = vld [vmem:[%s15160_s11 + $0x150] sm:$0xff] }
 0x801   :  { %9837 = vmatprep.subr.bf16.mxu0 %v11264_v11 }
 0x804   :  { %9839 = vmatpush1.bf16.msra.mxu0 %v9838_v63  ;;  %v9874_v63 = vpack.c.bf16 %v8345_v25, %v8344_v53  ;;  %v8363_v25 = vld [vmem:[%s15160_s11 + $0x160] sm:$0xff] }
 0x805   :  { %9840 = vmatprep.subr.bf16.mxu0 %v11264_v11 }
 0x808   :  { %9842 = vmatpush1.bf16.msra.mxu0 %v9841_v1  ;;  %v9877_v1 = vpack.c.bf16 %v8347_v26, %v8346_v62  ;;  %v8365_v26 = vld [vmem:[%s15160_s11 + $0x170] sm:$0xff] }
 0x809   :  { %9843 = vmatprep.subr.bf16.mxu0 %v11264_v11 }
 0x80c   :  { %9845 = vmatpush1.bf16.msra.mxu0 %v9844_v23  ;;  %v9880_v23 = vpack.c.bf16 %v8349_v6, %v8348_v4 }
 0x80d   :  { %9846 = vmatprep.subr.bf16.mxu0 %v11264_v11 }
 0x810   :  { %9848 = vmatpush1.bf16.msra.mxu0 %v9847_v12 }
 0x811   :  { %9849 = vmatprep.subr.bf16.mxu0 %v11264_v11 }
 0x814   :  { %9851 = vmatpush1.bf16.msra.mxu0 %v9850_v16  ;;  %v3339_v16 = vld [vmem:[%s15160_s11 + $0x10] sm:$0xff] }
 0x815   :  { %9852 = vmatprep.subr.bf16.mxu0 %v11264_v11  ;;  %v9886_v5 = vpack.c.bf16 %v3340_v17, %v3339_v16  ;;  %v8367_v17 = vld [vmem:[#allocation11] ss:$0 sm:$0xff] }
 0x818   :  { %9854 = vmatpush1.bf16.msra.mxu0 %v9853_v18 }
 0x819   :  { %9855 = vmatprep.subr.bf16.mxu0 %v11264_v11 }
 0x81c   :  { %9857 = vmatpush1.bf16.msra.mxu0 %v9856_v20  ;;  %v3342_v20 = vld [vmem:[%s15160_s11 + $0x28] sm:$0xff] }
 0x81d   :  { %9045 = vmatprep.subr.mxu0 %v15188_v43 }
 0x87e   :  { %v2992_v55 = vpop.f32.mrb[40].mxu0 }
 0x87f   :  { %v2994_v21 = vpop.f32.mrb[41].mxu0 }
 0x880   :  { %v3343_v21 = vld [vmem:[%s15160_s11 + $0x30] sm:$0xff] }
 0x8b6   :  { %v3065_v28 = vpop.f32.mrb[42].mxu0 }
 0x8b7   :  { %v3066_v30 = vadd.f32 %v3065_v28, %v2992_v55  ;;  %v3067_v36 = vpop.f32.mrb[43].mxu0  ;;  %v9889_v55 = vpack.c.bf16 %v3342_v20, %v3341_v19  ;;  %v3344_v28 = vld [vmem:[%s15160_s11 + $0x38] sm:$0xff] }
 0x8b8   :  { %v3345_v36 = vld [vmem:[%s15160_s11 + $0x40] sm:$0xff] }
 0x8ba   :  { %v3140_v61 = vpop.f32.mrb[44].mxu0 }
 0x8bb   :  { %v3142_v44 = vpop.f32.mrb[45].mxu0 }
 0x8bc   :  { %8330 = vmatprep.mubr.msk.f32.mxu0 %vm2922_vm9, %v3142_v44 }
 0x8bd   :  { %3242 = vmatmul.mubr.f32.vlgmr.msra.gmra.mrb[46].mxu0 %v3140_v61  ;;  %v3346_v61 = vld [vmem:[%s15160_s11 + $0x48] sm:$0xff] }
 0x8be   :  { %9047 = vmatprep.mubr.msk.f32.mxu0 %vm11265_vm10, %v15188_v43  ;;  %v9895_v44 = vpack.c.bf16 %v3346_v61, %v3345_v36  ;;  %v3921_v36 = vld [vmem:[#allocation13 + $0x18] sm:$0xff]  ;;  %v3922_v61 = vld [vmem:[#allocation13 + $0x20] sm:$0xff] }
 0x990   :  { %v3243_v7 = vpop.f32.mrb[46].mxu0 }
 0x991   :  { %v3247_v22 = vadd.f32 %v3243_v7, %v3066_v30  ;;  %v3245_v24 = vpop.f32.mrb[47].mxu0  ;;  %v9892_v30 = vpack.c.bf16 %v3344_v28, %v3343_v21  ;;  %v3347_v7 = vld [vmem:[%s15160_s11 + $0x50] sm:$0xff]  ;;  %v3764_v28 = vld [vmem:[%s15162_s13] sm:$0xff] }
 0x992   :  { %v3349_v24 = vld [vmem:[%s15160_s11 + $0x60] sm:$0xff] }
 0x993   :  { %v3255_v56 = vadd.f32 %v8331_v42, %v3247_v22  ;;  %v3348_v42 = vld [vmem:[%s15160_s11 + $0x58] sm:$0xff] }
 0x994   :  { %v9898_v22 = vpack.c.bf16 %v3348_v42, %v3347_v7  ;;  %v9931_v7 = vpack.c.bf16 %v3922_v61, %v3921_v36  ;;  %v3923_v42 = vld [vmem:[#allocation13 + $0x28] sm:$0xf]  ;;  %v8410_v36 = vld [vmem:[%s15166_s17 + $0x1a8] sm:$0xff] }
 0x995   :  { %v3256_v27 = vsub.f32 0.0, %v3255_v56  ;;  %v3350_v56 = vld [vmem:[%s15160_s11 + $0x68] sm:$0xff]  ;;  %v8412_v61 = vld [vmem:[%s15166_s17 + $0x1b8] sm:$0xff] }
 0x997   :  { %v3257_v2 = vmul.f32 1.442695, %v3256_v27  ;;  %v9901_v27 = vpack.c.bf16 %v3350_v56, %v3349_v24  ;;  %v3843_v24 = vld [vmem:[#allocation13 + $0x8] sm:$0xff] }
 0x999   :  { %10847 = vpow2.f32 %v3257_v2  ;;  %v3351_v2 = vld [vmem:[%s15160_s11 + $0x70] sm:$0xff] }
 0x9a3   :  { %v10848_v50 = vpop.eup %10847 }
 0x9a4   :  { %v3259_v15 = vadd.f32 1.0, %v10848_v50  ;;  %v3352_v50 = vld [vmem:[%s15160_s11 + $0x78] sm:$0xff] }
 0x9a6   :  { %10849 = vrcp.f32 %v3259_v15  ;;  %v9904_v15 = vpack.c.bf16 %v3352_v50, %v3351_v2 }
 0x9b0   :  { %v13400_v3 = vpop.eup %10849 }
 0x9b1   :  { %9046 = vmatpush3.msra.mxu0 %v13400_v3 }
 0x9b2   :  { %9048 = vmatmul.mubr.msk.f32.vlgmr.msra.gmra.mrb[48].mxu0 %vm3263_vm11, %v3262_v46  ;;  %9050 = vmatprep.subr.mxu0 %v15188_v43  ;;  %v3586_v46 = vld [vmem:[#allocation10 + $0x8] sm:$0xf] }
 0x9b3   :  { %9051 = vmatpush3.msra.mxu0 %v13400_v3  ;;  %9052 = vmatprep.mubr.msk.f32.mxu0 %vm11265_vm10, %v15188_v43 }
 0x9b4   :  { %9858 = vmatprep.subr.bf16.mxu0 %v11264_v11 }
 0x9b6   :  { %9053 = vmatmul.mubr.msk.f32.vlgmr.msra.gmra.mrb[50].mxu0 %vm3263_vm11, %v3354_v32  ;;  %v9907_v32 = vpack.c.bf16 %v8352_v31, %v8351_v29  ;;  %v8377_v29 = vld [vmem:[%s15162_s13 + $0x10] sm:$0xff]  ;;  %v4153_v31 = vld [vmem:[#allocation13 + $0x30] sm:$0xff] }
 0x9b7   :  { %9860 = vmatpush3.bf16.msra.mxu0 %v9859_v9  ;;  %9087 = vmatprep.mubr.msk.f32.mxu0 %vm11265_vm10, %v15188_v43  ;;  %v8354_v9 = vld [vmem:[%s15160_s11 + $0x118] sm:$0xff] }
 0x9b8   :  { %9861 = vmatprep.subr.bf16.mxu0 %v11264_v11 }
 0x9bb   :  { %9863 = vmatpush3.bf16.msra.mxu0 %v9862_v37  ;;  %v8356_v37 = vld [vmem:[%s15160_s11 + $0x128] sm:$0xff] }
 0x9bc   :  { %9864 = vmatprep.subr.bf16.mxu0 %v11264_v11  ;;  %v9913_v38 = vpack.c.bf16 %v8356_v37, %v8355_v35 }
 0x9bf   :  { %9866 = vmatpush3.bf16.msra.mxu0 %v9865_v10  ;;  %v8358_v10 = vld [vmem:[%s15160_s11 + $0x138] sm:$0xff] }
 0x9c0   :  { %9867 = vmatprep.subr.bf16.mxu0 %v11264_v11  ;;  %v9916_v40 = vpack.c.bf16 %v8358_v10, %v8357_v39 }
 0x9c3   :  { %9869 = vmatpush3.bf16.msra.mxu0 %v9868_v59  ;;  %v8360_v59 = vld [vmem:[%s15160_s11 + $0x148] sm:$0xff] }
 0x9c4   :  { %9870 = vmatprep.subr.bf16.mxu0 %v11264_v11  ;;  %v9919_v0 = vpack.c.bf16 %v8360_v59, %v8359_v41  ;;  %v4247_v41 = vld [vmem:[%s15165_s16] sm:$0xff]  ;;  %v8390_v59 = vld [vmem:[%s15166_s17 + $0x108] sm:$0xff] }
 0x9c7   :  { %9872 = vmatpush3.bf16.msra.mxu0 %v9871_v58  ;;  %v8362_v58 = vld [vmem:[%s15160_s11 + $0x158] sm:$0xff] }
 0x9c8   :  { %9873 = vmatprep.subr.bf16.mxu0 %v11264_v11  ;;  %v9922_v53 = vpack.c.bf16 %v8362_v58, %v8361_v57  ;;  %v8389_v57 = vld [vmem:[%s15166_s17 + $0x100] sm:$0xff] }
 0x9cb   :  { %9875 = vmatpush3.bf16.msra.mxu0 %v9874_v63  ;;  %v8364_v63 = vld [vmem:[%s15160_s11 + $0x168] sm:$0xff] }
 0x9cc   :  { %9876 = vmatprep.subr.bf16.mxu0 %v11264_v11  ;;  %v9925_v62 = vpack.c.bf16 %v8364_v63, %v8363_v25  ;;  %v8394_v25 = vld [vmem:[%s15166_s17 + $0x128] sm:$0xff]  ;;  %v8396_v63 = vld [vmem:[%s15166_s17 + $0x138] sm:$0xff] }
 0x9cf   :  { %9878 = vmatpush3.bf16.msra.mxu0 %v9877_v1  ;;  %v8366_v1 = vld [vmem:[%s15160_s11 + $0x178] sm:$0xff] }
 0x9d0   :  { %9879 = vmatprep.subr.bf16.mxu0 %v11264_v11  ;;  %v9928_v4 = vpack.c.bf16 %v8366_v1, %v8365_v26  ;;  %v9943_v26 = vpack.c.bf16 %v8396_v63, %v8394_v25  ;;  %v8393_v1 = vld [vmem:[%s15166_s17 + $0x120] sm:$0xff]  ;;  %v8419_v63 = vld [vmem:[%s15166_s17 + $0x1f0] sm:$0xff] }
 0x9d1   :  { %v8417_v25 = vld [vmem:[%s15166_s17 + $0x1e0] sm:$0xff] }
 0x9d3   :  { %9881 = vmatpush3.bf16.msra.mxu0 %v9880_v23 }
 0x9d4   :  { %9882 = vmatprep.subr.bf16.mxu0 %v11264_v11 }
 0xa85   :  { %v3333_v12 = vpop.f32.mrb[48].mxu0 }
 0xa86   :  { %v9049_v13 = vpop.f32.mrb[49].mxu0 }
 0xa89   :  { %v3424_v54 = vpop.f32.mrb[50].mxu0 }
 0xa8a   :  { %v9054_v18 = vpop.f32.mrb[51].mxu0  ;;  %9088 = vmatmul.mubr.f32.vlgmr.msra.gmra.mrb[52].mxu0 %v3424_v54 }
 0xa8b   :  { %9884 = vmatpush3.bf16.msra.mxu0 %v9883_v14  ;;  %9122 = vmatprep.mubr.msk.f32.mxu0 %vm11265_vm10, %v15188_v43 }
 0xa8c   :  { %9885 = vmatprep.subr.bf16.mxu0 %v11264_v11 }
 0xa8f   :  { %9887 = vmatpush3.bf16.msra.mxu0 %v9886_v5 }
 0xa90   :  { %9888 = vmatprep.subr.bf16.mxu0 %v11264_v11 }
 0xa93   :  { %9890 = vmatpush3.bf16.msra.mxu0 %v9889_v55 }
 0xa94   :  { %9891 = vmatprep.subr.bf16.mxu0 %v11264_v11 }
 0xa97   :  { %9893 = vmatpush3.bf16.msra.mxu0 %v9892_v30 }
 0xa98   :  { %9894 = vmatprep.subr.bf16.mxu0 %v11264_v11 }
 0xa9b   :  { %9896 = vmatpush3.bf16.msra.mxu0 %v9895_v44  ;;  %v8370_v44 = vld [vmem:[%s15162_s13 + $0x8] sm:$0xff] }
 0xa9c   :  { %9897 = vmatprep.subr.bf16.mxu0 %v11264_v11 }
 0xa9f   :  { %9899 = vmatpush3.bf16.msra.mxu0 %v9898_v22  ;;  %v3842_v22 = vld [vmem:[#allocation13] sm:$0xff] }
 0xaa0   :  { %9900 = vmatprep.subr.bf16.mxu0 %v11264_v11  ;;  %v9934_v2 = vpack.c.bf16 %v3843_v24, %v3842_v22  ;;  %v8411_v22 = vld [vmem:[%s15166_s17 + $0x1b0] sm:$0xff]  ;;  %v8414_v24 = vld [vmem:[%s15166_s17 + $0x1c8] sm:$0xff] }
 0xaa3   :  { %9902 = vmatpush3.bf16.msra.mxu0 %v9901_v27 }
 0xaa4   :  { %9903 = vmatprep.subr.bf16.mxu0 %v11264_v11 }
 0xaa7   :  { %9905 = vmatpush3.bf16.msra.mxu0 %v9904_v15 }
 0xaa8   :  { %9125 = vmatprep.subr.mxu0 %v15188_v43 }
 0xaaa   :  { %9123 = vmatmul.mubr.f32.vlgmr.msra.gmra.mrb[54].mxu0 %v3333_v12 }
 0xaab   :  { %9126 = vmatpush3.msra.mxu0 %v13400_v3  ;;  %9127 = vmatprep.mubr.msk.f32.mxu0 %vm11265_vm10, %v15188_v43  ;;  %v8353_v3 = vld [vmem:[%s15160_s11 + $0x110] sm:$0xff] }
 0xaac   :  { %9906 = vmatprep.subr.bf16.mxu0 %v11264_v11  ;;  %v9910_v34 = vpack.c.bf16 %v8354_v9, %v8353_v3  ;;  %v4154_v3 = vld [vmem:[#allocation13 + $0x38] sm:$0xff]  ;;  %v4155_v9 = vld [vmem:[#allocation13 + $0x40] sm:$0xf] }
 0xaae   :  { %9128 = vmatmul.mubr.msk.f32.vlgmr.msra.gmra.mrb[56].mxu0 %vm3263_vm11, %v3586_v46  ;;  %v3844_v46 = vld [vmem:[#allocation13 + $0x10] sm:$0xf] }
 0xaaf   :  { %9162 = vmatprep.mubr.msk.f32.mxu0 %vm11265_vm10, %v15188_v43  ;;  %9908 = vmatpush3.bf16.msra.mxu0 %v9907_v32  ;;  %v9937_v32 = vpack.c.bf16 %v4154_v3, %v4153_v31  ;;  %v8382_v31 = vld [vmem:[#allocation14] ss:$0 sm:$0xff] }
 0xab0   :  { %9909 = vmatprep.subr.bf16.mxu0 %v11264_v11 }
 0xab1   :  { %9938 = vmatpush3.bf16.msra.mxu1 %v9937_v32 }
 0xab2   :  { %9202 = vmatprep.subr.mxu1 %v15188_v43 }
 0xab3   :  { %9911 = vmatpush3.bf16.msra.mxu0 %v9910_v34 }
 0xab4   :  { %9912 = vmatprep.subr.bf16.mxu0 %v11264_v11 }
 0xab5   :  { %9203 = vmatpush3.msk.msra.mxu1 %vm479_vm1, %v4155_v9 }
 0xab7   :  { %9914 = vmatpush3.bf16.msra.mxu0 %v9913_v38 }
 0xab8   :  { %9915 = vmatprep.subr.bf16.mxu0 %v11264_v11 }
 0xabb   :  { %9917 = vmatpush3.bf16.msra.mxu0 %v9916_v40 }
 0xabc   :  { %9918 = vmatprep.subr.bf16.mxu0 %v11264_v11 }
 0xabf   :  { %9920 = vmatpush3.bf16.msra.mxu0 %v9919_v0  ;;  %v8392_v0 = vld [vmem:[%s15166_s17 + $0x118] sm:$0xff] }
 0xac0   :  { %9921 = vmatprep.subr.bf16.mxu0 %v11264_v11  ;;  %v9939_v58 = vpack.c.bf16 %v8392_v0, %v8390_v59  ;;  %v8421_v59 = vld [vmem:[%s15165_s16 + $0x20] sm:$0xff]  ;;  %v8422_v0 = vld [vmem:[%s15165_s16 + $0x28] sm:$0x3f] }
 0xac2   :  { %9940 = vmatprep.subr.bf16.mxu1 %v9939_v58  ;;  %v8420_v58 = vld [vmem:[%s15166_s17 + $0x1f8] sm:$0xff] }
 0xac3   :  { %9923 = vmatpush3.bf16.msra.mxu0 %v9922_v53  ;;  %v8391_v53 = vld [vmem:[%s15166_s17 + $0x110] sm:$0xff] }
 0xac4   :  { %9924 = vmatprep.subr.bf16.mxu0 %v11264_v11 }
 0xac7   :  { %9926 = vmatpush3.bf16.msra.mxu0 %v9925_v62  ;;  %v9941_v62 = vpack.c.bf16 %v8391_v53, %v8389_v57  ;;  %v8418_v57 = vld [vmem:[%s15166_s17 + $0x1e8] sm:$0xff] }
 0xac8   :  { %9927 = vmatprep.subr.bf16.mxu0 %v11264_v11  ;;  %v9967_v53 = vpack.c.bf16 %v8420_v58, %v8418_v57 }
 0xacb   :  { %9929 = vmatpush3.bf16.msra.mxu0 %v9928_v4  ;;  %v8395_v4 = vld [vmem:[%s15166_s17 + $0x130] sm:$0xff] }
 0xacc   :  { %9165 = vmatprep.subr.mxu0 %v15188_v43 }
 0xb5d   :  { %v3511_v6 = vpop.f32.mrb[52].mxu0 }
 0xb5e   :  { %v9089_v23 = vpop.f32.mrb[53].mxu0 }
 0xb5f   :  { %v8400_v23 = vld [vmem:[%s15166_s17 + $0x158] sm:$0xff] }
 0xb7d   :  { %v3581_v60 = vpop.f32.mrb[54].mxu0 }
 0xb7e   :  { %v3582_v8 = vadd.f32 %v3581_v60, %v3511_v6  ;;  %v9124_v12 = vpop.f32.mrb[55].mxu0  ;;  %v8398_v6 = vld [vmem:[%s15166_s17 + $0x148] sm:$0xff]  ;;  %v9945_v60 = vpack.c.bf16 %v8395_v4, %v8393_v1  ;;  %v4333_v1 = vld [vmem:[%s15166_s17 + $0x18] sm:$0xff] }
 0xb7f   :  { %v8397_v12 = vld [vmem:[%s15166_s17 + $0x140] sm:$0xff] }
 0xb81   :  { %v3656_v13 = vpop.f32.mrb[56].mxu0 }
 0xb82   :  { %v9129_v14 = vpop.f32.mrb[57].mxu0  ;;  %9163 = vmatmul.mubr.f32.vlgmr.msra.gmra.mrb[58].mxu0 %v3656_v13  ;;  %v8399_v13 = vld [vmem:[%s15166_s17 + $0x150] sm:$0xff] }
 0xb83   :  { %9167 = vmatprep.mubr.msk.f32.mxu0 %vm11265_vm10, %v15188_v43  ;;  %v8402_v14 = vld [vmem:[%s15166_s17 + $0x168] sm:$0xff] }
 0xc55   :  { %v3743_v16 = vpop.f32.mrb[58].mxu0 }
 0xc56   :  { %v3747_v54 = vadd.f32 %v3743_v16, %v3582_v8  ;;  %v9164_v18 = vpop.f32.mrb[59].mxu0  ;;  %v9947_v8 = vpack.c.bf16 %v8400_v23, %v8398_v6  ;;  %v8404_v16 = vld [vmem:[%s15166_s17 + $0x178] sm:$0xff]  ;;  %v4330_v23 = vld [vmem:[%s15166_s17] sm:$0xff] }
 0xc57   :  { %v8401_v18 = vld [vmem:[%s15166_s17 + $0x160] sm:$0xff] }
 0xc58   :  { %v3755_v5 = vadd.f32 %v8367_v17, %v3747_v54  ;;  %v9949_v17 = vpack.c.bf16 %v8399_v13, %v8397_v12  ;;  %v9951_v54 = vpack.c.bf16 %v8404_v16, %v8402_v14  ;;  %v4335_v12 = vld [vmem:[%s15166_s17 + $0x28] sm:$0xff]  ;;  %v4337_v13 = vld [vmem:[%s15166_s17 + $0x38] sm:$0xff] }
 0xc5a   :  { %v3756_v19 = vsub.f32 0.0, %v3755_v5  ;;  %v8403_v5 = vld [vmem:[%s15166_s17 + $0x170] sm:$0xff] }
 0xc5c   :  { %v3757_v20 = vmul.f32 1.442695, %v3756_v19  ;;  %v8406_v19 = vld [vmem:[%s15166_s17 + $0x188] sm:$0xff] }
 0xc5e   :  { %10851 = vpow2.f32 %v3757_v20  ;;  %v8408_v20 = vld [vmem:[%s15166_s17 + $0x198] sm:$0xff] }
 0xc68   :  { %v10852_v55 = vpop.eup %10851 }
 0xc69   :  { %v3759_v21 = vadd.f32 1.0, %v10852_v55  ;;  %v9953_v55 = vpack.c.bf16 %v8403_v5, %v8401_v18  ;;  %v4336_v18 = vld [vmem:[%s15166_s17 + $0x30] sm:$0xff] }
 0xc6b   :  { %10853 = vrcp.f32 %v3759_v21  ;;  %v9955_v21 = vpack.c.bf16 %v8408_v20, %v8406_v19  ;;  %v4339_v19 = vld [vmem:[%s15166_s17 + $0x48] sm:$0xff]  ;;  %v4341_v20 = vld [vmem:[%s15166_s17 + $0x58] sm:$0xff] }
 0xc75   :  { %v10854_v30 = vpop.eup %10853 }
 0xc76   :  { %3763 = vst.msk [vmem:[%s15174_s25] sm:$0xf] %vm3762_vm12, %v10854_v30  ;;  %9166 = vmatpush3.msk.msra.mxu0 %vm479_vm1, %v10854_v30 }
 0xc77   :  { %9168 = vmatmul.mubr.msk.f32.vlgmr.msra.gmra.mrb[60].mxu0 %vm3765_vm13, %v3764_v28  ;;  %9170 = vmatprep.subr.mxu0 %v15188_v43  ;;  %v8405_v28 = vld [vmem:[%s15166_s17 + $0x180] sm:$0xff] }
 0xc78   :  { %9171 = vmatpush3.msk.msra.mxu0 %vm479_vm1, %v10854_v30  ;;  %9172 = vmatprep.mubr.msk.f32.mxu0 %vm11265_vm10, %v15188_v43 }
 0xc79   :  { %9930 = vmatprep.subr.bf16.mxu0 %v11264_v11 }
 0xc7b   :  { %9173 = vmatmul.mubr.msk.f32.vlgmr.msra.gmra.mrb[62].mxu0 %vm3765_vm13, %v8370_v44 }
 0xc7c   :  { %9932 = vmatpush3.bf16.msra.mxu0 %v9931_v7  ;;  %9181 = vmatprep.mubr.msk.f32.mxu0 %vm11265_vm10, %v15188_v43  ;;  %v9959_v7 = vpack.c.bf16 %v8412_v61, %v8410_v36  ;;  %v4343_v61 = vld [vmem:[%s15166_s17 + $0x68] sm:$0xff] }
 0xc7d   :  { %9179 = vmatprep.subr.mxu0 %v15188_v43 }
 0xc80   :  { %9180 = vmatpush3.msk.msra.mxu0 %vm479_vm1, %v3923_v42  ;;  %v8409_v42 = vld [vmem:[%s15166_s17 + $0x1a0] sm:$0xff] }
 0xc81   :  { %9933 = vmatprep.subr.bf16.mxu0 %v11264_v11 }
 0xd4a   :  { %v3838_v56 = vpop.f32.mrb[60].mxu0 }
 0xd4b   :  { %v9169_v27 = vpop.f32.mrb[61].mxu0 }
 0xd4c   :  { %v9961_v27 = vpack.c.bf16 %v8411_v22, %v8409_v42 }
 0xd4e   :  { %v3916_v50 = vpop.f32.mrb[62].mxu0 }
 0xd4f   :  { %v9174_v15 = vpop.f32.mrb[63].mxu0  ;;  %9182 = vmatmul.mubr.msk.f32.vlgmr.msra.gmra.mrb[64].mxu0 %vm3924_vm14, %v3916_v50  ;;  %v8413_v50 = vld [vmem:[%s15166_s17 + $0x1c0] sm:$0xff] }
 0xd50   :  { %9935 = vmatpush3.bf16.msra.mxu0 %v9934_v2  ;;  %9190 = vmatprep.mubr.msk.f32.mxu0 %vm11265_vm10, %v15188_v43  ;;  %v8415_v15 = vld [vmem:[%s15166_s17 + $0x1d0] sm:$0xff] }
 0xd51   :  { %9188 = vmatprep.subr.mxu0 %v15188_v43 }
 0xd54   :  { %9189 = vmatpush3.msk.msra.mxu0 %vm479_vm1, %v3844_v46  ;;  %v9965_v46 = vpack.c.bf16 %v8415_v15, %v8413_v50 }
 0xd55   :  { %9191 = vmatmul.mubr.msk.f32.vlgmr.msra.gmra.mrb[66].mxu0 %vm3924_vm14, %v3838_v56  ;;  %9193 = vmatprep.subr.mxu0 %v15188_v43  ;;  %v8416_v56 = vld [vmem:[%s15166_s17 + $0x1d8] sm:$0xff] }
 0xd56   :  { %9194 = vmatpush3.msk.msra.mxu0 %vm479_vm1, %v10854_v30  ;;  %9195 = vmatprep.mubr.msk.f32.mxu0 %vm11265_vm10, %v15188_v43  ;;  %v8407_v30 = vld [vmem:[%s15166_s17 + $0x190] sm:$0xff]  ;;  %v9963_v2 = vpack.c.bf16 %v8416_v56, %v8414_v24  ;;  %v4342_v24 = vld [vmem:[%s15166_s17 + $0x60] sm:$0xff] }
 0xd57   :  { %v9957_v44 = vpack.c.bf16 %v8407_v30, %v8405_v28  ;;  %v4338_v28 = vld [vmem:[%s15166_s17 + $0x40] sm:$0xff]  ;;  %v4340_v30 = vld [vmem:[%s15166_s17 + $0x50] sm:$0xff] }
 0xd58   :  { %v9981_v42 = vpack.c.bf16 %v4340_v30, %v4338_v28  ;;  %v4344_v56 = vld [vmem:[%s15166_s17 + $0x70] sm:$0xff] }
 0xd59   :  { %9196 = vmatmul.mubr.msk.f32.vlgmr.msra.gmra.mrb[68].mxu0 %vm3765_vm13, %v8377_v29  ;;  %v9985_v50 = vpack.c.bf16 %v4344_v56, %v4342_v24  ;;  %v8441_v56 = vld [vmem:[%s15166_s17 + $0x280] sm:$0xff] }
 0xd5a   :  { %9209 = vmatprep.mubr.msk.f32.mxu0 %vm3263_vm11, %v4247_v41  ;;  %v8385_v41 = vld [vmem:[%s15165_s16 + $0x10] sm:$0xff] }
 0xe22   :  { %v3997_v34 = vpop.f32.mrb[64].mxu0 }
 0xe23   :  { %v9183_v35 = vpop.f32.mrb[65].mxu0 }
 0xe28   :  { %v4073_v37 = vpop.f32.mrb[66].mxu0 }
 0xe29   :  { %v13629_v38 = vadd.f32 %v4073_v37, %v3997_v34  ;;  %v9192_v39 = vpop.f32.mrb[67].mxu0 }
 0xe2c   :  { %v4148_v10 = vpop.f32.mrb[68].mxu0 }
 0xe2d   :  { %v9197_v40 = vpop.f32.mrb[69].mxu0  ;;  %9205 = vmatmul.mubr.msk.f32.vlgmr.msra.gmra.mrb[20].mxu1 %vm3924_vm14, %v4148_v10 }
 0xe2e   :  { %4543 = vmatprep.mubr.f32.mxu1 %v15188_v43  ;;  %9942 = vmatpush1.bf16.msra.mxu1 %v9941_v62  ;;  %v4248_v40 = vld [vmem:[%s15165_s16 + $0x8] sm:$0x3f]  ;;  %v9969_v62 = vpack.c.bf16 %v8419_v63, %v8417_v25  ;;  %v4360_v25 = vld [vmem:[%s15166_s17 + $0xf0] sm:$0xff] }
 0xe2f   :  { %9944 = vmatprep.subr.bf16.mxu1 %v9943_v26  ;;  %v4331_v26 = vld [vmem:[%s15166_s17 + $0x8] sm:$0xff] }
 0xe30   :  { %v9971_v4 = vpack.c.bf16 %v4333_v1, %v4331_v26  ;;  %v8426_v63 = vld [vmem:[%s15166_s17 + $0x208] sm:$0xff] }
 0xe32   :  { %9946 = vmatpush1.bf16.msra.mxu1 %v9945_v60  ;;  %v4332_v60 = vld [vmem:[%s15166_s17 + $0x10] sm:$0xff] }
 0xe33   :  { %9948 = vmatprep.subr.bf16.mxu1 %v9947_v8  ;;  %v9973_v14 = vpack.c.bf16 %v4332_v60, %v4330_v23  ;;  %v8427_v23 = vld [vmem:[%s15166_s17 + $0x210] sm:$0xff]  ;;  %v8430_v60 = vld [vmem:[%s15166_s17 + $0x228] sm:$0xff] }
 0xe36   :  { %9950 = vmatpush1.bf16.msra.mxu1 %v9949_v17  ;;  %v9975_v17 = vpack.c.bf16 %v4337_v13, %v4335_v12  ;;  %v8432_v12 = vld [vmem:[%s15166_s17 + $0x238] sm:$0xff] }
 0xe37   :  { %9952 = vmatprep.subr.bf16.mxu1 %v9951_v54  ;;  %v4334_v54 = vld [vmem:[%s15166_s17 + $0x20] sm:$0xff] }
 0xe3a   :  { %9954 = vmatpush1.bf16.msra.mxu1 %v9953_v55  ;;  %v9977_v55 = vpack.c.bf16 %v4336_v18, %v4334_v54  ;;  %v8434_v54 = vld [vmem:[%s15166_s17 + $0x248] sm:$0xff]  ;;  %v8436_v18 = vld [vmem:[%s15166_s17 + $0x258] sm:$0xff] }
 0xe3b   :  { %9956 = vmatprep.subr.bf16.mxu1 %v9955_v21  ;;  %v9979_v21 = vpack.c.bf16 %v4341_v20, %v4339_v19  ;;  %v10011_v19 = vpack.c.bf16 %v8436_v18, %v8434_v54  ;;  %v8433_v20 = vld [vmem:[%s15166_s17 + $0x240] sm:$0xff] }
 0xe3e   :  { %9958 = vmatpush1.bf16.msra.mxu1 %v9957_v44  ;;  %v4345_v44 = vld [vmem:[%s15166_s17 + $0x78] sm:$0xff] }
 0xe3f   :  { %9960 = vmatprep.subr.bf16.mxu1 %v9959_v7  ;;  %v9983_v22 = vpack.c.bf16 %v4345_v44, %v4343_v61  ;;  %v8437_v61 = vld [vmem:[%s15166_s17 + $0x260] sm:$0xff]  ;;  %v8439_v44 = vld [vmem:[%s15166_s17 + $0x270] sm:$0xff] }
 0xe42   :  { %9962 = vmatpush1.bf16.msra.mxu1 %v9961_v27  ;;  %v4347_v27 = vld [vmem:[%s15166_s17 + $0x88] sm:$0xff] }
 0xe43   :  { %9964 = vmatprep.subr.bf16.mxu1 %v9963_v2  ;;  %v4349_v2 = vld [vmem:[%s15166_s17 + $0x98] sm:$0xff] }
 0xe44   :  { %v9987_v15 = vpack.c.bf16 %v4349_v2, %v4347_v27  ;;  %v8443_v27 = vld [vmem:[%s15166_s17 + $0x290] sm:$0xff]  ;;  %v8446_v2 = vld [vmem:[%s15166_s17 + $0x2a8] sm:$0xff] }
 0xe46   :  { %9966 = vmatpush1.bf16.msra.mxu1 %v9965_v46  ;;  %v4346_v46 = vld [vmem:[%s15166_s17 + $0x80] sm:$0xff] }
 0xe47   :  { %9968 = vmatprep.subr.bf16.mxu1 %v9967_v53  ;;  %v4358_v53 = vld [vmem:[%s15166_s17 + $0xe0] sm:$0xff] }
 0xe48   :  { %v10001_v26 = vpack.c.bf16 %v4360_v25, %v4358_v53 }
 0xe4a   :  { %9970 = vmatpush1.bf16.msra.mxu1 %v9969_v62  ;;  %v8428_v62 = vld [vmem:[%s15166_s17 + $0x218] sm:$0xff] }
 0xe4b   :  { %9972 = vmatprep.subr.bf16.mxu1 %v9971_v4  ;;  %v10003_v1 = vpack.c.bf16 %v8428_v62, %v8426_v63  ;;  %v8425_v4 = vld [vmem:[%s15166_s17 + $0x200] sm:$0xff] }
 0xe4c   :  { %v10005_v13 = vpack.c.bf16 %v8427_v23, %v8425_v4 }
 0xf00   :  { %v4228_v29 = vpop.f32.mrb[20].mxu1 }
 0xf01   :  { %v4232_v3 = vadd.f32 %v4228_v29, %v13629_v38  ;;  %v9206_v32 = vpop.f32.mrb[21].mxu1  ;;  %v8386_v38 = vld [vmem:[%s15165_s16 + $0x18] sm:$0x3f]  ;;  %v4348_v29 = vld [vmem:[%s15166_s17 + $0x90] sm:$0xff] }
 0xf02   :  { %v9989_v32 = vpack.c.bf16 %v4348_v29, %v4346_v46  ;;  %v8445_v29 = vld [vmem:[%s15166_s17 + $0x2a0] sm:$0xff] }
 0xf03   :  { %v4240_v9 = vadd.f32 %v8382_v31, %v4232_v3  ;;  %v4351_v31 = vld [vmem:[%s15166_s17 + $0xa8] sm:$0xff]  ;;  %v4353_v3 = vld [vmem:[%s15166_s17 + $0xb8] sm:$0xff] }
 0xf05   :  { %v4241_v34 = vsub.f32 0.0, %v4240_v9  ;;  %v9991_v9 = vpack.c.bf16 %v4353_v3, %v4351_v31  ;;  %v8447_v31 = vld [vmem:[%s15166_s17 + $0x2b0] sm:$0xff]  ;;  %v8450_v3 = vld [vmem:[%s15166_s17 + $0x2c8] sm:$0xff] }
 0xf07   :  { %v4242_v35 = vmul.f32 1.442695, %v4241_v34  ;;  %v4350_v34 = vld [vmem:[%s15166_s17 + $0xa0] sm:$0xff] }
 0xf09   :  { %10855 = vpow2.f32 %v4242_v35  ;;  %v4352_v35 = vld [vmem:[%s15166_s17 + $0xb0] sm:$0xff] }
 0xf13   :  { %v10856_v37 = vpop.eup %10855 }
 0xf14   :  { %v4244_v39 = vadd.f32 1.0, %v10856_v37  ;;  %v4355_v37 = vld [vmem:[%s15166_s17 + $0xc8] sm:$0xff] }
 0xf16   :  { %10857 = vrcp.f32 %v4244_v39  ;;  %v4357_v39 = vld [vmem:[%s15166_s17 + $0xd8] sm:$0xff] }
 0xf20   :  { %v10858_v10 = vpop.eup %10857 }
 0xf21   :  { %9207 = vmatprep.subr.mxu0 %v10858_v10 }
 0xf22   :  { %9208 = vmatpush3.msra.mxu0 %v10858_v10 }
 0xf23   :  { %9210 = vmatmul.mubr.msk.f32.vlgmr.msra.gmra.mrb[70].mxu0 %vm3263_vm11, %v4248_v40  ;;  %9212 = vmatprep.subr.mxu0 %v10858_v10  ;;  %v9995_v40 = vpack.c.bf16 %v4357_v39, %v4355_v37  ;;  %v8451_v37 = vld [vmem:[%s15166_s17 + $0x2d0] sm:$0xff]  ;;  %v8454_v39 = vld [vmem:[%s15166_s17 + $0x2e8] sm:$0xff] }
 0xf24   :  { %9213 = vmatpush3.msra.mxu0 %v10858_v10  ;;  %9214 = vmatprep.mubr.msk.f32.mxu0 %vm3263_vm11, %v8385_v41  ;;  %v4354_v41 = vld [vmem:[%s15166_s17 + $0xc0] sm:$0xff] }
 0xf25   :  { %9217 = vmatprep.subr.mxu0 %v10858_v10 }
 0xf27   :  { %9215 = vmatmul.mubr.msk.f32.vlgmr.msra.gmra.mrb[72].mxu0 %vm3263_vm11, %v8386_v38  ;;  %v4356_v38 = vld [vmem:[%s15166_s17 + $0xd0] sm:$0xff] }
 0xf28   :  { %9218 = vmatpush3.msra.mxu0 %v10858_v10  ;;  %9219 = vmatprep.mubr.msk.f32.mxu0 %vm3263_vm11, %v8421_v59  ;;  %v9993_v10 = vpack.c.bf16 %v4352_v35, %v4350_v34  ;;  %v4359_v59 = vld [vmem:[%s15166_s17 + $0xe8] sm:$0xff]  ;;  %v9997_v57 = vpack.c.bf16 %v4356_v38, %v4354_v41  ;;  %v8449_v35 = vld [vmem:[%s15166_s17 + $0x2c0] sm:$0xff] }
 0xf29   :  { %v8453_v38 = vld [vmem:[%s15166_s17 + $0x2e0] sm:$0xff] }
 0xf2b   :  { %9220 = vmatmul.mubr.msk.f32.vlgmr.msra.gmra.mrb[74].mxu0 %vm3263_vm11, %v8422_v0  ;;  %v4361_v0 = vld [vmem:[%s15166_s17 + $0xf8] sm:$0xff] }
 0xf2c   :  { %4957 = vmatprep.mubr.f32.mxu0 %v15188_v43  ;;  %v9999_v58 = vpack.c.bf16 %v4361_v0, %v4359_v59  ;;  %v8455_v59 = vld [vmem:[%s15166_s17 + $0x2f0] sm:$0xff] }
 0xf2d   :  { %v10033_v0 = vpack.c.bf16 %v8455_v59, %v8453_v38  ;;  %v5217_v59 = vld [vmem:[#allocation17 + $0x400] sm:$0xff] }
 0xff6   :  { %v13761_v6 = vpop.f32.mrb[70].mxu0 }
 0xff7   :  { %v13769_v8 = vpop.f32.mrb[71].mxu0 }
 0xffa   :  { %v9216_v16 = vpop.f32.mrb[72].mxu0 }
 0xffb   :  { %v4437_v5 = vpop.f32.mrb[73].mxu0 }
 0xffc   :  { %4544 = vmatmul.mubr.f32.vlgmr.msra.gmra.mrb[22].mxu1 %v4437_v5 }
 0xffd   :  { %9974 = vmatpush1.bf16.msra.mxu1 %v9973_v14  ;;  %4549 = vmatprep.mubr.f32.mxu1 %v15188_v43  ;;  %v10007_v14 = vpack.c.bf16 %v8432_v12, %v8430_v60 }
 0xffe   :  { %9976 = vmatprep.subr.bf16.mxu1 %v9975_v17  ;;  %v13796_v36 = vpop.f32.mrb[74].mxu0  ;;  %v8431_v17 = vld [vmem:[%s15166_s17 + $0x230] sm:$0xff] }
 0xfff   :  { %v13804_v7 = vpop.f32.mrb[75].mxu0 }
0x1000   :  { %4550 = vmatmul.mubr.f32.gmra.mrb[24].mxu1 %v9216_v16  ;;  %v8429_v16 = vld [vmem:[%s15166_s17 + $0x220] sm:$0xff] }
0x1001   :  { %9978 = vmatpush1.bf16.msra.mxu1 %v9977_v55  ;;  %4620 = vmatprep.mubr.f32.mxu1 %v15188_v43  ;;  %v10009_v5 = vpack.c.bf16 %v8431_v17, %v8429_v16  ;;  %v8435_v55 = vld [vmem:[%s15166_s17 + $0x250] sm:$0xff] }
0x1002   :  { %9980 = vmatprep.subr.bf16.mxu1 %v9979_v21  ;;  %v8438_v21 = vld [vmem:[%s15166_s17 + $0x268] sm:$0xff]  ;;  %v10013_v28 = vpack.c.bf16 %v8435_v55, %v8433_v20 }
0x1005   :  { %9982 = vmatpush1.bf16.msra.mxu1 %v9981_v42  ;;  %v8442_v42 = vld [vmem:[%s15166_s17 + $0x288] sm:$0xff] }
0x1006   :  { %9984 = vmatprep.subr.bf16.mxu1 %v9983_v22  ;;  %v10017_v22 = vpack.c.bf16 %v8439_v44, %v8437_v61 }
0x1009   :  { %9986 = vmatpush1.bf16.msra.mxu1 %v9985_v50  ;;  %v8448_v50 = vld [vmem:[%s15166_s17 + $0x2b8] sm:$0xff] }
0x100a   :  { %9988 = vmatprep.subr.bf16.mxu1 %v9987_v15  ;;  %v10021_v15 = vpack.c.bf16 %v8443_v27, %v8441_v56  ;;  %v10023_v46 = vpack.c.bf16 %v8448_v50, %v8446_v2  ;;  %v5206_v56 = vld [vmem:[#allocation17 + $0x3a8] sm:$0xff] }
0x100b   :  { %v4871_v27 = vld [vmem:[%s15168_s19] sm:$0xff]  ;;  %v4872_v50 = vld [vmem:[%s15168_s19 + $0x8] sm:$0xff] }
0x100d   :  { %9990 = vmatpush1.bf16.msra.mxu1 %v9989_v32  ;;  %v8452_v32 = vld [vmem:[%s15166_s17 + $0x2d8] sm:$0xff] }
0x100e   :  { %9992 = vmatprep.subr.bf16.mxu1 %v9991_v9  ;;  %v10025_v9 = vpack.c.bf16 %v8447_v31, %v8445_v29  ;;  %v10027_v34 = vpack.c.bf16 %v8452_v32, %v8450_v3  ;;  %v5205_v29 = vld [vmem:[#allocation17 + $0x3a0] sm:$0xff]  ;;  %v5210_v31 = vld [vmem:[#allocation17 + $0x3c8] sm:$0xff] }
0x100f   :  { %v5214_v3 = vld [vmem:[#allocation17 + $0x3e8] sm:$0xff] }
0x1010   :  { %v8463_v32 = vld [vmem:[%s15168_s19 + $0x20] sm:$0xff] }
0x1011   :  { %9994 = vmatpush1.bf16.msra.mxu1 %v9993_v10  ;;  %v8456_v10 = vld [vmem:[%s15166_s17 + $0x2f8] sm:$0xff] }
0x1012   :  { %9996 = vmatprep.subr.bf16.mxu1 %v9995_v40  ;;  %v10029_v40 = vpack.c.bf16 %v8451_v37, %v8449_v35  ;;  %v10031_v41 = vpack.c.bf16 %v8456_v10, %v8454_v39  ;;  %v5209_v35 = vld [vmem:[#allocation17 + $0x3c0] sm:$0xff]  ;;  %v5218_v39 = vld [vmem:[#allocation17 + $0x408] sm:$0xff] }
0x1013   :  { %v5213_v37 = vld [vmem:[#allocation17 + $0x3e0] sm:$0xff]  ;;  %v5222_v10 = vld [vmem:[#allocation17 + $0x428] sm:$0xff] }
0x1014   :  { %v10055_v38 = vpack.c.bf16 %v5222_v10, %v5218_v39  ;;  %v5285_v39 = vld [vmem:[#allocation17 + $0x620] sm:$0xff] }
0x1015   :  { %9998 = vmatpush1.bf16.msra.mxu1 %v9997_v57  ;;  %v4831_v57 = vld [vmem:[#allocation16] sm:$0x3] }
0x1016   :  { %10000 = vmatprep.subr.bf16.mxu1 %v9999_v58  ;;  %v4836_v58 = vrot.slane %v4831_v57, %v11865_v48  ;;  %v4840_v53 = vrot.slane %v4831_v57, %v11869_v51  ;;  %v5226_v57 = vld [vmem:[#allocation17 + $0x448] sm:$0xff] }
0x1019   :  { %10002 = vmatpush1.bf16.msra.mxu1 %v10001_v26 }
0x101a   :  { %10004 = vmatprep.subr.bf16.mxu1 %v10003_v1 }
0x101c   :  { %4621 = vmatmul.mubr.f32.vlgmr.msra.gmra.mrb[22].mxu1 %v13769_v8  ;;  %v8440_v8 = vld [vmem:[%s15166_s17 + $0x278] sm:$0xff] }
0x101d   :  { %10006 = vmatpush1.bf16.msra.mxu1 %v10005_v13  ;;  %4626 = vmatprep.mubr.f32.mxu1 %v15188_v43  ;;  %v10015_v30 = vpack.c.bf16 %v8440_v8, %v8438_v21 }
0x101e   :  { %10008 = vmatprep.subr.bf16.mxu1 %v10007_v14 }
0x1020   :  { %4627 = vmatmul.mubr.f32.gmra.mrb[24].mxu1 %v13761_v6  ;;  %v8444_v6 = vld [vmem:[%s15166_s17 + $0x298] sm:$0xff] }
0x1021   :  { %10010 = vmatpush1.bf16.msra.mxu1 %v10009_v5  ;;  %4814 = vmatprep.mubr.f32.mxu1 %v15188_v43  ;;  %v10019_v24 = vpack.c.bf16 %v8444_v6, %v8442_v42 }
0x1022   :  { %10012 = vmatprep.subr.bf16.mxu1 %v10011_v19 }
0x1025   :  { %10014 = vmatpush1.bf16.msra.mxu1 %v10013_v28 }
0x1026   :  { %10016 = vmatprep.subr.bf16.mxu1 %v10015_v30 }
0x1029   :  { %10018 = vmatpush1.bf16.msra.mxu1 %v10017_v22 }
0x102a   :  { %10020 = vmatprep.subr.bf16.mxu1 %v10019_v24  ;;  %v5202_v24 = vld [vmem:[#allocation17 + $0x388] sm:$0xff] }
0x102b   :  { %v10047_v2 = vpack.c.bf16 %v5206_v56, %v5202_v24  ;;  %v5270_v24 = vld [vmem:[#allocation17 + $0x5a8] sm:$0xff] }
0x102d   :  { %10022 = vmatpush1.bf16.msra.mxu1 %v10021_v15  ;;  %v4873_v15 = vld [vmem:[%s15168_s19 + $0x10] sm:$0xff] }
0x102e   :  { %10024 = vmatprep.subr.bf16.mxu1 %v10023_v46  ;;  %v5201_v46 = vld [vmem:[#allocation17 + $0x380] sm:$0xff] }
0x1031   :  { %10026 = vmatpush1.bf16.msra.mxu1 %v10025_v9  ;;  %v10049_v9 = vpack.c.bf16 %v5205_v29, %v5201_v46 }
0x1032   :  { %10028 = vmatprep.subr.bf16.mxu1 %v10027_v34  ;;  %v10051_v34 = vpack.c.bf16 %v5214_v3, %v5210_v31  ;;  %v5273_v31 = vld [vmem:[#allocation17 + $0x5c0] sm:$0xff] }
0x1033   :  { %v5277_v3 = vld [vmem:[#allocation17 + $0x5e0] sm:$0xff] }
0x1035   :  { %10030 = vmatpush1.bf16.msra.mxu1 %v10029_v40  ;;  %v8464_v40 = vld [vmem:[%s15168_s19 + $0x28] sm:$0xff] }
0x1036   :  { %10032 = vmatprep.subr.bf16.mxu1 %v10031_v41  ;;  %v10053_v41 = vpack.c.bf16 %v5213_v37, %v5209_v35  ;;  %v5281_v37 = vld [vmem:[#allocation17 + $0x600] sm:$0xff] }
0x1037   :  { %v10089_v10 = vpack.c.bf16 %v5285_v39, %v5281_v37 }
0x1039   :  { %10034 = vmatpush1.bf16.msra.mxu1 %v10033_v0  ;;  %v5221_v0 = vld [vmem:[#allocation17 + $0x420] sm:$0xff] }
0x103c   :  { %4815 = vmatmul.mubr.f32.vlgmr.msra.gmra.mrb[22].mxu1 %v13804_v7 }
0x103d   :  { %4820 = vmatprep.mubr.f32.mxu1 %v15188_v43 }
0x1040   :  { %4821 = vmatmul.mubr.f32.gmra.mrb[24].mxu1 %v13796_v36 }
0x1041   :  { %5774 = vmatprep.mubr.f32.mxu1 %v15188_v43 }
0x110f   :  { %v4816_v25 = vpop.f32.mrb[22].mxu1 }
0x1110   :  { %v4843_v63 = vadd.f32 %v4836_v58, %v4816_v25  ;;  %v4818_v62 = vpop.f32.mrb[23].mxu1  ;;  %v10057_v25 = vpack.c.bf16 %v5221_v0, %v5217_v59  ;;  %v5289_v59 = vld [vmem:[#allocation17 + $0x640] sm:$0xff] }
0x1111   :  { %v4844_v26 = vadd.f32 %v4840_v53, %v4818_v62  ;;  %v5225_v62 = vld [vmem:[#allocation17 + $0x440] sm:$0xff] }
0x1112   :  { %v4847_v1 = vsub.f32 0.0, %v4843_v63  ;;  %v5293_v0 = vld [vmem:[#allocation17 + $0x660] sm:$0xff] }
0x1113   :  { %v4848_v4 = vsub.f32 0.0, %v4844_v26  ;;  %v4822_v23 = vpop.f32.mrb[24].mxu1  ;;  %v5229_v26 = vld [vmem:[#allocation17 + $0x460] sm:$0xff] }
0x1114   :  { %v4851_v60 = vmul.f32 1.442695, %v4847_v1  ;;  %v4845_v7 = vadd.f32 %v4836_v58, %v4822_v23  ;;  %v4824_v12 = vpop.f32.mrb[25].mxu1  ;;  %v5230_v58 = vld [vmem:[#allocation17 + $0x468] sm:$0xff]  ;;  %v8466_v23 = vld [vmem:[%s15168_s19 + $0x38] sm:$0xf] }
0x1115   :  { %v4853_v13 = vmul.f32 1.442695, %v4848_v4  ;;  %v4846_v14 = vadd.f32 %v4840_v53, %v4824_v12  ;;  %v8465_v53 = vld [vmem:[%s15168_s19 + $0x30] sm:$0xff]  ;;  %v10059_v63 = vpack.c.bf16 %v5230_v58, %v5226_v57  ;;  %v5234_v1 = vld [vmem:[#allocation17 + $0x488] sm:$0xff]  ;;  %v5233_v12 = vld [vmem:[#allocation17 + $0x480] sm:$0xff]  ;;  %v10093_v57 = vpack.c.bf16 %v5293_v0, %v5289_v59 }
0x1116   :  { %10859 = vpow2.f32 %v4851_v60  ;;  %v4849_v36 = vsub.f32 0.0, %v4845_v7  ;;  %v5238_v4 = vld [vmem:[#allocation17 + $0x4a8] sm:$0xff]  ;;  %v10061_v60 = vpack.c.bf16 %v5229_v26, %v5225_v62  ;;  %v5301_v62 = vld [vmem:[#allocation17 + $0x6a0] sm:$0xff]  ;;  %v5236_v59 = vld [vmem:[#allocation17 + $0x498] sm:$0xff] }
0x1117   :  { %10861 = vpow2.f32 %v4853_v13  ;;  %v4850_v16 = vsub.f32 0.0, %v4846_v14  ;;  %v10063_v7 = vpack.c.bf16 %v5238_v4, %v5234_v1  ;;  %v5237_v13 = vld [vmem:[#allocation17 + $0x4a0] sm:$0xff]  ;;  %v5242_v14 = vld [vmem:[#allocation17 + $0x4c8] sm:$0xff]  ;;  %v5240_v0 = vld [vmem:[#allocation17 + $0x4b8] sm:$0xff] }
0x1118   :  { %v4855_v17 = vmul.f32 1.442695, %v4849_v36  ;;  %v5246_v36 = vld [vmem:[#allocation17 + $0x4e8] sm:$0xff] }
0x1119   :  { %v4857_v54 = vmul.f32 1.442695, %v4850_v16  ;;  %v10065_v16 = vpack.c.bf16 %v5237_v13, %v5233_v12  ;;  %v5298_v58 = vld [vmem:[#allocation17 + $0x688] sm:$0xff]  ;;  %v5204_v13 = vld [vmem:[#allocation17 + $0x398] sm:$0xff] }
0x111a   :  { %10863 = vpow2.f32 %v4855_v17  ;;  %v10067_v17 = vpack.c.bf16 %v5246_v36, %v5242_v14  ;;  %v5306_v1 = vld [vmem:[#allocation17 + $0x6c8] sm:$0xff]  ;;  %v5208_v14 = vld [vmem:[#allocation17 + $0x3b8] sm:$0xff] }
0x111b   :  { %10865 = vpow2.f32 %v4857_v54  ;;  %v5241_v54 = vld [vmem:[#allocation17 + $0x4c0] sm:$0xff]  ;;  %v5310_v4 = vld [vmem:[#allocation17 + $0x6e8] sm:$0xff]  ;;  %v10103_v36 = vpack.c.bf16 %v5208_v14, %v5204_v13  ;;  %v5256_v13 = vld [vmem:[#allocation17 + $0x538] sm:$0xff] }
0x1120   :  { %v10860_v18 = vpop.eup %10859 }
0x1121   :  { %v10862_v5 = vpop.eup %10861  ;;  %v4859_v19 = vadd.f32 1.0, %v10860_v18  ;;  %v5245_v18 = vld [vmem:[#allocation17 + $0x4e0] sm:$0xff] }
0x1122   :  { %v4860_v20 = vadd.f32 1.0, %v10862_v5  ;;  %v5250_v5 = vld [vmem:[#allocation17 + $0x508] sm:$0xff] }
0x1123   :  { %10867 = vrcp.f32 %v4859_v19  ;;  %v5254_v19 = vld [vmem:[#allocation17 + $0x528] sm:$0xff] }
0x1124   :  { %v10864_v55 = vpop.eup %10863  ;;  %10869 = vrcp.f32 %v4860_v20  ;;  %v10069_v20 = vpack.c.bf16 %v5245_v18, %v5241_v54  ;;  %v8491_v54 = vld [vmem:[%s15168_s19 + $0x50] sm:$0xff]  ;;  %v8492_v18 = vld [vmem:[%s15168_s19 + $0x58] sm:$0xf] }
0x1125   :  { %v10866_v21 = vpop.eup %10865  ;;  %v4861_v8 = vadd.f32 1.0, %v10864_v55  ;;  %v10071_v55 = vpack.c.bf16 %v5254_v19, %v5250_v5 }
0x1126   :  { %v4862_v28 = vadd.f32 1.0, %v10866_v21  ;;  %v5249_v21 = vld [vmem:[#allocation17 + $0x500] sm:$0xff] }
0x1127   :  { %10871 = vrcp.f32 %v4861_v8  ;;  %v5253_v8 = vld [vmem:[#allocation17 + $0x520] sm:$0xff] }
0x1128   :  { %10873 = vrcp.f32 %v4862_v28  ;;  %v5258_v28 = vld [vmem:[#allocation17 + $0x548] sm:$0xff] }
0x112d   :  { %v10868_v30 = vpop.eup %10867 }
0x112e   :  { %v10870_v61 = vpop.eup %10869 }
0x1131   :  { %v10872_v44 = vpop.eup %10871 }
0x1132   :  { %v10874_v42 = vpop.eup %10873  ;;  %v10038_v6 = vpack.c.bf16 %v10872_v44, %v10868_v30  ;;  %v5262_v30 = vld [vmem:[#allocation17 + $0x568] sm:$0xff] }
0x1133   :  { %v10035_v22 = vpack.c.bf16 %v10874_v42, %v10870_v61  ;;  %v10073_v61 = vpack.c.bf16 %v5253_v8, %v5249_v21  ;;  %v10075_v44 = vpack.c.bf16 %v5262_v30, %v5258_v28  ;;  %v5257_v42 = vld [vmem:[#allocation17 + $0x540] sm:$0xff] }
0x1135   :  { %10037 = vmatprep.subr.msk.bf16.mxu0 %vm13061_vm7, %v10035_v22  ;;  %10273 = vmatprep.subr.msk.bf16.mxu1 %vm13061_vm7, %v10035_v22 }
0x1136   :  { %10040 = vmatpush1.bf16.msk.msra.mxu0 %vm13061_vm7, %v10038_v6  ;;  %10276 = vmatpush1.bf16.msk.msra.mxu1 %vm13061_vm7, %v10038_v6 }
0x1137   :  { %10043 = vmatprep.subr.msk.bf16.mxu0 %vm13061_vm7, %v10035_v22  ;;  %v5266_v22 = vld [vmem:[#allocation17 + $0x588] sm:$0xff] }
0x1139   :  { %8459 = vmatmul.mubr.msk.f32.vlgmr.msra.gmra.mrb[76].mxu0 %vm2707_vm8, %v4871_v27  ;;  %v10079_v27 = vpack.c.bf16 %v5270_v24, %v5266_v22 }
0x113a   :  { %10046 = vmatpush1.bf16.msk.msra.mxu0 %vm13061_vm7, %v10038_v6  ;;  %4963 = vmatprep.mubr.f32.mxu0 %v15188_v43  ;;  %v5261_v6 = vld [vmem:[#allocation17 + $0x560] sm:$0xff] }
0x113b   :  { %10048 = vmatprep.subr.bf16.mxu0 %v10047_v2  ;;  %v10077_v56 = vpack.c.bf16 %v5261_v6, %v5257_v42  ;;  %v5265_v2 = vld [vmem:[#allocation17 + $0x580] sm:$0xff]  ;;  %v5212_v42 = vld [vmem:[#allocation17 + $0x3d8] sm:$0xff] }
0x113c   :  { %v5216_v6 = vld [vmem:[#allocation17 + $0x3f8] sm:$0xff] }
0x113d   :  { %8460 = vmatmul.mubr.msk.f32.gmra.mrb[78].mxu0 %vm2707_vm8, %v4872_v50  ;;  %v5269_v50 = vld [vmem:[#allocation17 + $0x5a0] sm:$0xff] }
0x113e   :  { %4969 = vmatprep.mubr.f32.mxu0 %v15188_v43  ;;  %v10081_v46 = vpack.c.bf16 %v5269_v50, %v5265_v2  ;;  %v5211_v2 = vld [vmem:[#allocation17 + $0x3d0] sm:$0xff] }
0x113f   :  { %v5215_v50 = vld [vmem:[#allocation17 + $0x3f0] sm:$0xff] }
0x1141   :  { %8461 = vmatmul.mubr.msk.f32.gmra.mrb[80].mxu0 %vm2707_vm8, %v4873_v15  ;;  %v5274_v15 = vld [vmem:[#allocation17 + $0x5c8] sm:$0xff] }
0x1142   :  { %4975 = vmatprep.mubr.f32.mxu0 %v15188_v43 }
0x1145   :  { %8462 = vmatmul.mubr.msk.f32.gmra.mrb[82].mxu0 %vm2707_vm8, %v4874_v45  ;;  %v5278_v45 = vld [vmem:[#allocation17 + $0x5e8] sm:$0xff] }
0x1146   :  { %5175 = vmatprep.mubr.f32.mxu0 %v15188_v43  ;;  %v10083_v29 = vpack.c.bf16 %v5278_v45, %v5274_v15  ;;  %v5220_v15 = vld [vmem:[#allocation17 + $0x418] sm:$0xff] }
0x1147   :  { %v5224_v45 = vld [vmem:[#allocation17 + $0x438] sm:$0xff] }
0x1149   :  { %8469 = vmatmul.mubr.msk.f32.vlgmr.msra.gmra.mrb[84].mxu0 %vm2707_vm8, %v8463_v32  ;;  %v10085_v32 = vpack.c.bf16 %v5277_v3, %v5273_v31  ;;  %v10111_v3 = vpack.c.bf16 %v5224_v45, %v5220_v15  ;;  %v5271_v15 = vld [vmem:[#allocation17 + $0x5b0] sm:$0xff]  ;;  %v5276_v45 = vld [vmem:[#allocation17 + $0x5d8] sm:$0xff] }
0x114a   :  { %5181 = vmatprep.mubr.f32.mxu0 %v15188_v43  ;;  %10050 = vmatpush1.bf16.msra.mxu0 %v10049_v9  ;;  %v5282_v9 = vld [vmem:[#allocation17 + $0x608] sm:$0xff] }
0x114b   :  { %10052 = vmatprep.subr.bf16.mxu0 %v10051_v34  ;;  %v5286_v34 = vld [vmem:[#allocation17 + $0x628] sm:$0xff] }
0x114c   :  { %v10087_v35 = vpack.c.bf16 %v5286_v34, %v5282_v9  ;;  %v5223_v9 = vld [vmem:[#allocation17 + $0x430] sm:$0xff]  ;;  %v5228_v34 = vld [vmem:[#allocation17 + $0x458] sm:$0xff] }
0x114d   :  { %8470 = vmatmul.mubr.msk.f32.gmra.mrb[86].mxu0 %vm2707_vm8, %v8464_v40  ;;  %v5290_v40 = vld [vmem:[#allocation17 + $0x648] sm:$0xff] }
0x114e   :  { %5187 = vmatprep.mubr.f32.mxu0 %v15188_v43  ;;  %10054 = vmatpush1.bf16.msra.mxu0 %v10053_v41  ;;  %v5294_v41 = vld [vmem:[#allocation17 + $0x668] sm:$0xff] }
0x114f   :  { %10056 = vmatprep.subr.bf16.mxu0 %v10055_v38  ;;  %v10091_v38 = vpack.c.bf16 %v5294_v41, %v5290_v40  ;;  %v5227_v41 = vld [vmem:[#allocation17 + $0x450] sm:$0xff] }
0x1151   :  { %8471 = vmatmul.mubr.msk.f32.gmra.mrb[88].mxu0 %vm2707_vm8, %v8465_v53  ;;  %v5302_v53 = vld [vmem:[#allocation17 + $0x6a8] sm:$0xff] }
0x1152   :  { %5193 = vmatprep.mubr.f32.mxu0 %v15188_v43  ;;  %10058 = vmatpush1.bf16.msra.mxu0 %v10057_v25  ;;  %v10095_v25 = vpack.c.bf16 %v5302_v53, %v5298_v58 }
0x1153   :  { %10060 = vmatprep.subr.bf16.mxu0 %v10059_v63  ;;  %v5297_v63 = vld [vmem:[#allocation17 + $0x680] sm:$0xff] }
0x1154   :  { %v10097_v26 = vpack.c.bf16 %v5301_v62, %v5297_v63  ;;  %v5235_v63 = vld [vmem:[#allocation17 + $0x490] sm:$0xff] }
0x1155   :  { %8472 = vmatmul.mubr.msk.f32.gmra.mrb[90].mxu0 %vm2707_vm8, %v8466_v23  ;;  %v10099_v23 = vpack.c.bf16 %v5310_v4, %v5306_v1  ;;  %v5239_v62 = vld [vmem:[#allocation17 + $0x4b0] sm:$0xff]  ;;  %v5248_v1 = vld [vmem:[#allocation17 + $0x4f8] sm:$0xff] }
0x1156   :  { %10062 = vmatpush1.bf16.msra.mxu0 %v10061_v60  ;;  %v5305_v60 = vld [vmem:[#allocation17 + $0x6c0] sm:$0xff]  ;;  %v10121_v4 = vpack.c.bf16 %v5239_v62, %v5235_v63  ;;  %v5291_v62 = vld [vmem:[#allocation17 + $0x650] sm:$0xff] }
0x1157   :  { %10064 = vmatprep.subr.bf16.mxu0 %v10063_v7  ;;  %v5309_v7 = vld [vmem:[#allocation17 + $0x6e0] sm:$0xff] }
0x1158   :  { %v10101_v12 = vpack.c.bf16 %v5309_v7, %v5305_v60  ;;  %v5243_v60 = vld [vmem:[#allocation17 + $0x4d0] sm:$0xff] }
0x1159   :  { %v5247_v7 = vld [vmem:[#allocation17 + $0x4f0] sm:$0xff] }
0x115a   :  { %10066 = vmatpush1.bf16.msra.mxu0 %v10065_v16  ;;  %v8489_v16 = vld [vmem:[%s15168_s19 + $0x40] sm:$0xff]  ;;  %v10125_v14 = vpack.c.bf16 %v5247_v7, %v5243_v60  ;;  %v5299_v7 = vld [vmem:[#allocation17 + $0x690] sm:$0xff] }
0x115b   :  { %10068 = vmatprep.subr.bf16.mxu0 %v10067_v17  ;;  %8495 = vmatmul.mubr.msk.f32.vlgmr.msra.gmra.mrb[26].mxu1 %vm2707_vm8, %v8489_v16  ;;  %v8490_v17 = vld [vmem:[%s15168_s19 + $0x48] sm:$0xff] }
0x115c   :  { %5780 = vmatprep.mubr.f32.mxu1 %v15188_v43  ;;  %v5251_v16 = vld [vmem:[#allocation17 + $0x510] sm:$0xff] }
0x115e   :  { %10070 = vmatpush1.bf16.msra.mxu0 %v10069_v20 }
0x115f   :  { %10072 = vmatprep.subr.bf16.mxu0 %v10071_v55  ;;  %8496 = vmatmul.mubr.msk.f32.gmra.mrb[28].mxu1 %vm2707_vm8, %v8490_v17  ;;  %v5255_v17 = vld [vmem:[#allocation17 + $0x530] sm:$0xff] }
0x1160   :  { %5786 = vmatprep.mubr.f32.mxu1 %v15188_v43 }
0x1162   :  { %10074 = vmatpush1.bf16.msra.mxu0 %v10073_v61  ;;  %v5203_v61 = vld [vmem:[#allocation17 + $0x390] sm:$0xff] }
0x1163   :  { %10076 = vmatprep.subr.bf16.mxu0 %v10075_v44  ;;  %8497 = vmatmul.mubr.msk.f32.gmra.mrb[30].mxu1 %vm2707_vm8, %v8491_v54  ;;  %v5207_v44 = vld [vmem:[#allocation17 + $0x3b0] sm:$0xff]  ;;  %v5260_v54 = vld [vmem:[#allocation17 + $0x558] sm:$0xff] }
0x1164   :  { %5792 = vmatprep.mubr.f32.mxu1 %v15188_v43  ;;  %v10105_v24 = vpack.c.bf16 %v5207_v44, %v5203_v61  ;;  %v10129_v61 = vpack.c.bf16 %v5255_v17, %v5251_v16  ;;  %v5307_v17 = vld [vmem:[#allocation17 + $0x6d0] sm:$0xff] }
0x1166   :  { %10078 = vmatpush1.bf16.msra.mxu0 %v10077_v56 }
0x1167   :  { %10080 = vmatprep.subr.bf16.mxu0 %v10079_v27  ;;  %8498 = vmatmul.mubr.msk.f32.gmra.mrb[32].mxu1 %vm2707_vm8, %v8492_v18  ;;  %v10107_v27 = vpack.c.bf16 %v5216_v6, %v5212_v42  ;;  %v5264_v18 = vld [vmem:[#allocation17 + $0x578] sm:$0xff]  ;;  %v5259_v42 = vld [vmem:[#allocation17 + $0x550] sm:$0xff] }
0x1168   :  { %6356 = vmatprep.mubr.f32.mxu1 %v15188_v43  ;;  %v10131_v44 = vpack.c.bf16 %v5264_v18, %v5260_v54  ;;  %v5263_v6 = vld [vmem:[#allocation17 + $0x570] sm:$0xff]  ;;  %v4983_v18 = vld [vmem:[#allocation17 + $0x8] sm:$0xff] }
0x1169   :  { %v5311_v54 = vld [vmem:[#allocation17 + $0x6f0] sm:$0xff] }
0x116a   :  { %10082 = vmatpush1.bf16.msra.mxu0 %v10081_v46 }
0x116b   :  { %10084 = vmatprep.subr.bf16.mxu0 %v10083_v29  ;;  %v10109_v29 = vpack.c.bf16 %v5215_v50, %v5211_v2  ;;  %v5267_v50 = vld [vmem:[#allocation17 + $0x590] sm:$0xff] }
0x116e   :  { %10086 = vmatpush1.bf16.msra.mxu0 %v10085_v32  ;;  %v5219_v32 = vld [vmem:[#allocation17 + $0x410] sm:$0xff] }
0x116f   :  { %10088 = vmatprep.subr.bf16.mxu0 %v10087_v35  ;;  %v5232_v35 = vld [vmem:[#allocation17 + $0x478] sm:$0xff]  ;;  %v10113_v39 = vpack.c.bf16 %v5223_v9, %v5219_v32  ;;  %v5275_v9 = vld [vmem:[#allocation17 + $0x5d0] sm:$0xff] }
0x1170   :  { %v10115_v40 = vpack.c.bf16 %v5232_v35, %v5228_v34  ;;  %v5279_v34 = vld [vmem:[#allocation17 + $0x5f0] sm:$0xff]  ;;  %v5284_v35 = vld [vmem:[#allocation17 + $0x618] sm:$0xff] }
0x1172   :  { %10090 = vmatpush1.bf16.msra.mxu0 %v10089_v10 }
0x1173   :  { %10092 = vmatprep.subr.bf16.mxu0 %v10091_v38  ;;  %v5231_v38 = vld [vmem:[#allocation17 + $0x470] sm:$0xff] }
0x1174   :  { %v10117_v58 = vpack.c.bf16 %v5231_v38, %v5227_v41  ;;  %v5283_v38 = vld [vmem:[#allocation17 + $0x610] sm:$0xff] }
0x1176   :  { %10094 = vmatpush1.bf16.msra.mxu0 %v10093_v57 }
0x1177   :  { %10096 = vmatprep.subr.bf16.mxu0 %v10095_v25  ;;  %v10119_v25 = vpack.c.bf16 %v5240_v0, %v5236_v59  ;;  %v5287_v59 = vld [vmem:[#allocation17 + $0x630] sm:$0xff]  ;;  %v5292_v0 = vld [vmem:[#allocation17 + $0x658] sm:$0xff] }
0x117a   :  { %10098 = vmatpush1.bf16.msra.mxu0 %v10097_v26  ;;  %v5244_v26 = vld [vmem:[#allocation17 + $0x4d8] sm:$0xff] }
0x117b   :  { %10100 = vmatprep.subr.bf16.mxu0 %v10099_v23  ;;  %v10123_v23 = vpack.c.bf16 %v5248_v1, %v5244_v26  ;;  %v5295_v26 = vld [vmem:[#allocation17 + $0x670] sm:$0xff]  ;;  %v5300_v1 = vld [vmem:[#allocation17 + $0x698] sm:$0xff] }
0x117e   :  { %10102 = vmatpush1.bf16.msra.mxu0 %v10101_v12  ;;  %v5252_v12 = vld [vmem:[#allocation17 + $0x518] sm:$0xff] }
0x117f   :  { %10104 = vmatprep.subr.bf16.mxu0 %v10103_v36  ;;  %v10127_v36 = vpack.c.bf16 %v5256_v13, %v5252_v12  ;;  %v5303_v12 = vld [vmem:[#allocation17 + $0x6b0] sm:$0xff]  ;;  %v5308_v13 = vld [vmem:[#allocation17 + $0x6d8] sm:$0xff] }
0x120c   :  { %v14038_v5 = vpop.f32.mrb[76].mxu0 }
0x120d   :  { %v14040_v19 = vpop.f32.mrb[77].mxu0 }
0x1210   :  { %v14042_v20 = vpop.f32.mrb[78].mxu0 }
0x1211   :  { %v14044_v55 = vpop.f32.mrb[79].mxu0 }
0x1214   :  { %v14046_v21 = vpop.f32.mrb[80].mxu0 }
0x1215   :  { %v14048_v8 = vpop.f32.mrb[81].mxu0 }
0x1218   :  { %v14050_v28 = vpop.f32.mrb[82].mxu0 }
0x1219   :  { %v14052_v30 = vpop.f32.mrb[83].mxu0 }
0x121c   :  { %v14054_v22 = vpop.f32.mrb[84].mxu0 }
0x121d   :  { %v5179_v56 = vpop.f32.mrb[85].mxu0 }
0x121e   :  { %8473 = vmatprep.mubr.msk.f32.mxu0 %vm2922_vm9, %v5179_v56 }
0x121f   :  { %5390 = vmatmul.mubr.f32.vlgmr.msra.gmra.mrb[92].mxu0 %v14054_v22 }
0x1220   :  { %10106 = vmatpush1.bf16.msra.mxu0 %v10105_v24  ;;  %v14058_v46 = vpop.f32.mrb[86].mxu0  ;;  %v5268_v24 = vld [vmem:[#allocation17 + $0x598] sm:$0xff] }
0x1221   :  { %v14060_v31 = vpop.f32.mrb[87].mxu0  ;;  %10108 = vmatprep.subr.bf16.mxu0 %v10107_v27  ;;  %v10133_v27 = vpack.c.bf16 %v5263_v6, %v5259_v42  ;;  %v4982_v6 = vld [vmem:[#allocation17] sm:$0xff] }
0x1222   :  { %8474 = vmatprep.mubr.msk.f32.mxu0 %vm2922_vm9, %v14060_v31 }
0x1223   :  { %5396 = vmatmul.mubr.f32.gmra.mrb[94].mxu0 %v14058_v46 }
0x1224   :  { %10110 = vmatpush1.bf16.msra.mxu0 %v10109_v29  ;;  %v14065_v37 = vpop.f32.mrb[88].mxu0  ;;  %v5280_v29 = vld [vmem:[#allocation17 + $0x5f8] sm:$0xff] }
0x1225   :  { %v14067_v10 = vpop.f32.mrb[89].mxu0  ;;  %10112 = vmatprep.subr.bf16.mxu0 %v10111_v3  ;;  %v10137_v3 = vpack.c.bf16 %v5271_v15, %v5267_v50  ;;  %v10139_v32 = vpack.c.bf16 %v5280_v29, %v5276_v45  ;;  %v4990_v15 = vld [vmem:[#allocation17 + $0x40] sm:$0xff]  ;;  %v4999_v29 = vld [vmem:[#allocation17 + $0x88] sm:$0xff] }
0x1226   :  { %8475 = vmatprep.mubr.msk.f32.mxu0 %vm2922_vm9, %v14067_v10  ;;  %v4994_v45 = vld [vmem:[#allocation17 + $0x60] sm:$0xff] }
0x1227   :  { %5402 = vmatmul.mubr.f32.gmra.mrb[96].mxu0 %v14065_v37 }
0x1228   :  { %10114 = vmatpush1.bf16.msra.mxu0 %v10113_v39  ;;  %v14072_v57 = vpop.f32.mrb[90].mxu0  ;;  %v5288_v39 = vld [vmem:[#allocation17 + $0x638] sm:$0xff] }
0x1229   :  { %v14074_v53 = vpop.f32.mrb[91].mxu0  ;;  %10116 = vmatprep.subr.bf16.mxu0 %v10115_v40  ;;  %v10141_v40 = vpack.c.bf16 %v5279_v34, %v5275_v9  ;;  %v10143_v41 = vpack.c.bf16 %v5288_v39, %v5284_v35  ;;  %v4998_v34 = vld [vmem:[#allocation17 + $0x80] sm:$0xff]  ;;  %v5007_v39 = vld [vmem:[#allocation17 + $0xc8] sm:$0xff] }
0x122a   :  { %8476 = vmatprep.mubr.msk.f32.mxu0 %vm2922_vm9, %v14074_v53  ;;  %v5002_v35 = vld [vmem:[#allocation17 + $0xa0] sm:$0xff] }
0x122b   :  { %5408 = vmatmul.mubr.f32.gmra.mrb[98].mxu0 %v14072_v57 }
0x122c   :  { %10118 = vmatpush1.bf16.msra.mxu0 %v10117_v58  ;;  %8477 = vmatprep.mubr.msk.f32.mxu0 %vm2922_vm9, %v5179_v56  ;;  %v5272_v56 = vld [vmem:[#allocation17 + $0x5b8] sm:$0xff] }
0x122d   :  { %10120 = vmatprep.subr.bf16.mxu0 %v10119_v25  ;;  %v10135_v2 = vpack.c.bf16 %v5272_v56, %v5268_v24  ;;  %v5296_v58 = vld [vmem:[#allocation17 + $0x678] sm:$0xff]  ;;  %v10145_v25 = vpack.c.bf16 %v5287_v59, %v5283_v38  ;;  %v4986_v24 = vld [vmem:[#allocation17 + $0x20] sm:$0xff]  ;;  %v4991_v56 = vld [vmem:[#allocation17 + $0x48] sm:$0xff] }
0x122e   :  { %v10147_v63 = vpack.c.bf16 %v5296_v58, %v5292_v0  ;;  %v5006_v38 = vld [vmem:[#allocation17 + $0xc0] sm:$0xff]  ;;  %v5019_v0 = vld [vmem:[#allocation17 + $0x128] sm:$0xff] }
0x122f   :  { %v5010_v59 = vld [vmem:[#allocation17 + $0xe0] sm:$0xff] }
0x1230   :  { %10122 = vmatpush1.bf16.msra.mxu0 %v10121_v4  ;;  %v5304_v4 = vld [vmem:[#allocation17 + $0x6b8] sm:$0xff]  ;;  %v10173_v58 = vpack.c.bf16 %v5010_v59, %v5006_v38  ;;  %v5070_v59 = vld [vmem:[#allocation17 + $0x2c0] sm:$0xff] }
0x1231   :  { %10124 = vmatprep.subr.bf16.mxu0 %v10123_v23  ;;  %v10149_v23 = vpack.c.bf16 %v5295_v26, %v5291_v62  ;;  %v10151_v60 = vpack.c.bf16 %v5304_v4, %v5300_v1  ;;  %v5027_v62 = vld [vmem:[#allocation17 + $0x168] sm:$0xff]  ;;  %v5022_v1 = vld [vmem:[#allocation17 + $0x140] sm:$0xff] }
0x1232   :  { %v5026_v4 = vld [vmem:[#allocation17 + $0x160] sm:$0xff] }
0x1234   :  { %10126 = vmatpush1.bf16.msra.mxu0 %v10125_v14  ;;  %v5312_v14 = vld [vmem:[#allocation17 + $0x6f8] sm:$0xff] }
0x1235   :  { %10128 = vmatprep.subr.bf16.mxu0 %v10127_v36  ;;  %v10153_v36 = vpack.c.bf16 %v5303_v12, %v5299_v7  ;;  %v10155_v16 = vpack.c.bf16 %v5312_v14, %v5308_v13  ;;  %v5030_v12 = vld [vmem:[#allocation17 + $0x180] sm:$0xff]  ;;  %v5039_v14 = vld [vmem:[#allocation17 + $0x1c8] sm:$0xff] }
0x1236   :  { %v5034_v13 = vld [vmem:[#allocation17 + $0x1a0] sm:$0xff] }
0x1238   :  { %10130 = vmatpush1.bf16.msra.mxu0 %v10129_v61  ;;  %v4987_v61 = vld [vmem:[#allocation17 + $0x28] sm:$0xff] }
0x1239   :  { %10132 = vmatprep.subr.bf16.mxu0 %v10131_v44  ;;  %v10157_v44 = vpack.c.bf16 %v5311_v54, %v5307_v17  ;;  %v10159_v42 = vpack.c.bf16 %v4987_v61, %v4983_v18  ;;  %v5038_v17 = vld [vmem:[#allocation17 + $0x1c0] sm:$0xff]  ;;  %v5047_v18 = vld [vmem:[#allocation17 + $0x208] sm:$0xff] }
0x123a   :  { %v5042_v54 = vld [vmem:[#allocation17 + $0x1e0] sm:$0xff]  ;;  %v5051_v61 = vld [vmem:[#allocation17 + $0x228] sm:$0xff] }
0x123c   :  { %10134 = vmatpush1.bf16.msra.mxu0 %v10133_v27  ;;  %v4995_v27 = vld [vmem:[#allocation17 + $0x68] sm:$0xff] }
0x123d   :  { %10136 = vmatprep.subr.bf16.mxu0 %v10135_v2  ;;  %v10161_v2 = vpack.c.bf16 %v4986_v24, %v4982_v6  ;;  %v10163_v50 = vpack.c.bf16 %v4995_v27, %v4991_v56  ;;  %v5046_v6 = vld [vmem:[#allocation17 + $0x200] sm:$0xff]  ;;  %v5055_v56 = vld [vmem:[#allocation17 + $0x248] sm:$0xff] }
0x123e   :  { %v5050_v24 = vld [vmem:[#allocation17 + $0x220] sm:$0xff]  ;;  %v5059_v27 = vld [vmem:[#allocation17 + $0x268] sm:$0xff] }
0x1240   :  { %10138 = vmatpush1.bf16.msra.mxu0 %v10137_v3  ;;  %v5003_v3 = vld [vmem:[#allocation17 + $0xa8] sm:$0xff] }
0x1241   :  { %10140 = vmatprep.subr.bf16.mxu0 %v10139_v32  ;;  %v10165_v32 = vpack.c.bf16 %v4994_v45, %v4990_v15  ;;  %v10167_v9 = vpack.c.bf16 %v5003_v3, %v4999_v29  ;;  %v5054_v15 = vld [vmem:[#allocation17 + $0x240] sm:$0xff]  ;;  %v5063_v29 = vld [vmem:[#allocation17 + $0x288] sm:$0xff] }
0x1242   :  { %v5058_v45 = vld [vmem:[#allocation17 + $0x260] sm:$0xff]  ;;  %v5067_v3 = vld [vmem:[#allocation17 + $0x2a8] sm:$0xff] }
0x1244   :  { %10142 = vmatpush1.bf16.msra.mxu0 %v10141_v40  ;;  %v5011_v40 = vld [vmem:[#allocation17 + $0xe8] sm:$0xff] }
0x1245   :  { %10144 = vmatprep.subr.bf16.mxu0 %v10143_v41  ;;  %v10169_v41 = vpack.c.bf16 %v5002_v35, %v4998_v34  ;;  %v5062_v34 = vld [vmem:[#allocation17 + $0x280] sm:$0xff] }
0x1246   :  { %v5066_v35 = vld [vmem:[#allocation17 + $0x2a0] sm:$0xff] }
0x1248   :  { %10146 = vmatpush1.bf16.msra.mxu0 %v10145_v25  ;;  %v5014_v25 = vld [vmem:[#allocation17 + $0x100] sm:$0xff] }
0x1249   :  { %10148 = vmatprep.subr.bf16.mxu0 %v10147_v63  ;;  %v5018_v63 = vld [vmem:[#allocation17 + $0x120] sm:$0xff] }
0x124a   :  { %v10177_v26 = vpack.c.bf16 %v5018_v63, %v5014_v25 }
0x124c   :  { %10150 = vmatpush1.bf16.msra.mxu0 %v10149_v23  ;;  %v5035_v23 = vld [vmem:[#allocation17 + $0x1a8] sm:$0xff] }
0x124d   :  { %10152 = vmatprep.subr.bf16.mxu0 %v10151_v60  ;;  %v10181_v60 = vpack.c.bf16 %v5026_v4, %v5022_v1  ;;  %v5087_v1 = vld [vmem:[#allocation17 + $0x348] sm:$0xff] }
0x124e   :  { %v5091_v4 = vld [vmem:[#allocation17 + $0x368] sm:$0xff] }
0x1250   :  { %10154 = vmatpush1.bf16.msra.mxu0 %v10153_v36  ;;  %v5043_v36 = vld [vmem:[#allocation17 + $0x1e8] sm:$0xff] }
0x1251   :  { %10156 = vmatprep.subr.bf16.mxu0 %v10155_v16  ;;  %v10187_v16 = vpack.c.bf16 %v5043_v36, %v5039_v14  ;;  %v4985_v14 = vld [vmem:[#allocation17 + $0x18] sm:$0xff] }
0x1252   :  { %v4989_v36 = vld [vmem:[#allocation17 + $0x38] sm:$0xff] }
0x1254   :  { %10158 = vmatpush1.bf16.msra.mxu0 %v10157_v44  ;;  %v10189_v44 = vpack.c.bf16 %v5042_v54, %v5038_v17  ;;  %v10215_v17 = vpack.c.bf16 %v4989_v36, %v4985_v14  ;;  %v4984_v54 = vld [vmem:[#allocation17 + $0x10] sm:$0xff] }
0x1255   :  { %10160 = vmatprep.subr.bf16.mxu0 %v10159_v42  ;;  %v10191_v42 = vpack.c.bf16 %v5051_v61, %v5047_v18  ;;  %v4988_v18 = vld [vmem:[#allocation17 + $0x30] sm:$0xff] }
0x1256   :  { %v5032_v14 = vld [vmem:[#allocation17 + $0x190] sm:$0xff] }
0x1257   :  { %5479 = vmatmul.mubr.f32.vlgmr.msra.gmra.mrb[100].mxu0 %v14054_v22  ;;  %v10171_v22 = vpack.c.bf16 %v5011_v40, %v5007_v39  ;;  %v5071_v39 = vld [vmem:[#allocation17 + $0x2c8] sm:$0xff]  ;;  %v5036_v36 = vld [vmem:[#allocation17 + $0x1b0] sm:$0xff] }
0x1258   :  { %8478 = vmatprep.mubr.msk.f32.mxu0 %vm2922_vm9, %v14060_v31  ;;  %10162 = vmatpush1.bf16.msra.mxu0 %v10161_v2  ;;  %v5015_v31 = vld [vmem:[#allocation17 + $0x108] sm:$0xff]  ;;  %v10193_v2 = vpack.c.bf16 %v5050_v24, %v5046_v6  ;;  %v10217_v6 = vpack.c.bf16 %v4988_v18, %v4984_v54  ;;  %v10241_v54 = vpack.c.bf16 %v5036_v36, %v5032_v14  ;;  %v5088_v36 = vld [vmem:[#allocation17 + $0x350] sm:$0xff] }
0x1259   :  { %10164 = vmatprep.subr.bf16.mxu0 %v10163_v50  ;;  %v10195_v50 = vpack.c.bf16 %v5059_v27, %v5055_v56  ;;  %v5075_v40 = vld [vmem:[#allocation17 + $0x2e8] sm:$0xff]  ;;  %v4992_v56 = vld [vmem:[#allocation17 + $0x50] sm:$0xff] }
0x125a   :  { %v10203_v38 = vpack.c.bf16 %v5075_v40, %v5071_v39  ;;  %v4996_v27 = vld [vmem:[#allocation17 + $0x70] sm:$0xff] }
0x125b   :  { %5485 = vmatmul.mubr.f32.gmra.mrb[102].mxu0 %v14058_v46  ;;  %v10175_v46 = vpack.c.bf16 %v5019_v0, %v5015_v31  ;;  %v5074_v31 = vld [vmem:[#allocation17 + $0x2e0] sm:$0xff]  ;;  %v5008_v39 = vld [vmem:[#allocation17 + $0xd0] sm:$0xff] }
0x125c   :  { %8479 = vmatprep.mubr.msk.f32.mxu0 %vm2922_vm9, %v14067_v10  ;;  %10166 = vmatpush1.bf16.msra.mxu0 %v10165_v32  ;;  %v5023_v10 = vld [vmem:[#allocation17 + $0x148] sm:$0xff]  ;;  %v10197_v32 = vpack.c.bf16 %v5058_v45, %v5054_v15  ;;  %v10205_v25 = vpack.c.bf16 %v5074_v31, %v5070_v59  ;;  %v10221_v15 = vpack.c.bf16 %v4996_v27, %v4992_v56  ;;  %v5012_v40 = vld [vmem:[#allocation17 + $0xf0] sm:$0xff] }
0x125d   :  { %10168 = vmatprep.subr.bf16.mxu0 %v10167_v9  ;;  %v10199_v9 = vpack.c.bf16 %v5067_v3, %v5063_v29  ;;  %v5000_v29 = vld [vmem:[#allocation17 + $0x90] sm:$0xff]  ;;  %v10229_v59 = vpack.c.bf16 %v5012_v40, %v5008_v39 }
0x125e   :  { %v5004_v3 = vld [vmem:[#allocation17 + $0xb0] sm:$0xff] }
0x125f   :  { %5491 = vmatmul.mubr.f32.gmra.mrb[104].mxu0 %v14065_v37  ;;  %v10179_v37 = vpack.c.bf16 %v5027_v62, %v5023_v10  ;;  %v5078_v62 = vld [vmem:[#allocation17 + $0x300] sm:$0xff]  ;;  %v5048_v27 = vld [vmem:[#allocation17 + $0x210] sm:$0xff] }
0x1260   :  { %8480 = vmatprep.mubr.msk.f32.mxu0 %vm2922_vm9, %v14074_v53  ;;  %10170 = vmatpush1.bf16.msra.mxu0 %v10169_v41  ;;  %v5031_v53 = vld [vmem:[#allocation17 + $0x188] sm:$0xff]  ;;  %v10201_v41 = vpack.c.bf16 %v5066_v35, %v5062_v34  ;;  %v10225_v34 = vpack.c.bf16 %v5004_v3, %v5000_v29  ;;  %v5056_v3 = vld [vmem:[#allocation17 + $0x250] sm:$0xff] }
0x1261   :  { %10172 = vmatprep.subr.bf16.mxu0 %v10171_v22  ;;  %v10183_v7 = vpack.c.bf16 %v5035_v23, %v5031_v53  ;;  %v14092_v22 = vpop.f32.mrb[26].mxu1  ;;  %v5064_v40 = vld [vmem:[#allocation17 + $0x290] sm:$0xff] }
0x1262   :  { %v14094_v0 = vpop.f32.mrb[27].mxu1 }
0x1263   :  { %5497 = vmatmul.mubr.f32.gmra.mrb[106].mxu0 %v14072_v57  ;;  %v10185_v57 = vpack.c.bf16 %v5034_v13, %v5030_v12  ;;  %v14096_v63 = vpop.f32.mrb[28].mxu1  ;;  %v5090_v12 = vld [vmem:[#allocation17 + $0x360] sm:$0xff] }
0x1264   :  { %10174 = vmatpush1.bf16.msra.mxu0 %v10173_v58  ;;  %8481 = vmatprep.mubr.msk.f32.mxu0 %vm2922_vm9, %v14040_v19  ;;  %v5079_v58 = vld [vmem:[#allocation17 + $0x308] sm:$0xff] }
0x1265   :  { %10176 = vmatprep.subr.bf16.mxu0 %v10175_v46  ;;  %v5083_v46 = vld [vmem:[#allocation17 + $0x328] sm:$0xff] }
0x1266   :  { %v10207_v10 = vpack.c.bf16 %v5083_v46, %v5079_v58  ;;  %v5016_v58 = vld [vmem:[#allocation17 + $0x110] sm:$0xff] }
0x1267   :  { %v5020_v46 = vld [vmem:[#allocation17 + $0x130] sm:$0xff] }
0x1268   :  { %10178 = vmatpush1.bf16.msra.mxu0 %v10177_v26  ;;  %v5082_v26 = vld [vmem:[#allocation17 + $0x320] sm:$0xff] }
0x1269   :  { %10180 = vmatprep.subr.bf16.mxu0 %v10179_v37  ;;  %v14098_v37 = vpop.f32.mrb[29].mxu1  ;;  %v10209_v53 = vpack.c.bf16 %v5082_v26, %v5078_v62  ;;  %v10233_v62 = vpack.c.bf16 %v5020_v46, %v5016_v58  ;;  %v5072_v46 = vld [vmem:[#allocation17 + $0x2d0] sm:$0xff] }
0x126a   :  { %v14100_v23 = vpop.f32.mrb[30].mxu1 }
0x126b   :  { %v14102_v13 = vpop.f32.mrb[31].mxu1 }
0x126c   :  { %10182 = vmatpush1.bf16.msra.mxu0 %v10181_v60  ;;  %v10211_v60 = vpack.c.bf16 %v5091_v4, %v5087_v1  ;;  %v5024_v1 = vld [vmem:[#allocation17 + $0x150] sm:$0xff] }
0x126d   :  { %10184 = vmatprep.subr.bf16.mxu0 %v10183_v7  ;;  %v5086_v7 = vld [vmem:[#allocation17 + $0x340] sm:$0xff]  ;;  %v5028_v4 = vld [vmem:[#allocation17 + $0x170] sm:$0xff] }
0x1270   :  { %10186 = vmatpush1.bf16.msra.mxu0 %v10185_v57  ;;  %v10213_v57 = vpack.c.bf16 %v5090_v12, %v5086_v7  ;;  %v10237_v7 = vpack.c.bf16 %v5028_v4, %v5024_v1  ;;  %v5080_v4 = vld [vmem:[#allocation17 + $0x310] sm:$0xff] }
0x1271   :  { %10188 = vmatprep.subr.bf16.mxu0 %v10187_v16  ;;  %v14104_v16 = vpop.f32.mrb[32].mxu1 }
0x1272   :  { %v14106_v61 = vpop.f32.mrb[33].mxu1 }
0x1274   :  { %10190 = vmatpush1.bf16.msra.mxu0 %v10189_v44  ;;  %v4993_v44 = vld [vmem:[#allocation17 + $0x58] sm:$0xff] }
0x1275   :  { %10192 = vmatprep.subr.bf16.mxu0 %v10191_v42  ;;  %v4997_v42 = vld [vmem:[#allocation17 + $0x78] sm:$0xff] }
0x1276   :  { %v10219_v24 = vpack.c.bf16 %v4997_v42, %v4993_v44  ;;  %v5044_v44 = vld [vmem:[#allocation17 + $0x1f0] sm:$0xff]  ;;  %v5049_v42 = vld [vmem:[#allocation17 + $0x218] sm:$0xff] }
0x1278   :  { %10194 = vmatpush1.bf16.msra.mxu0 %v10193_v2  ;;  %v5001_v2 = vld [vmem:[#allocation17 + $0x98] sm:$0xff] }
0x1279   :  { %10196 = vmatprep.subr.bf16.mxu0 %v10195_v50  ;;  %v5005_v50 = vld [vmem:[#allocation17 + $0xb8] sm:$0xff] }
0x127a   :  { %v10223_v45 = vpack.c.bf16 %v5005_v50, %v5001_v2  ;;  %v5052_v2 = vld [vmem:[#allocation17 + $0x230] sm:$0xff]  ;;  %v5057_v50 = vld [vmem:[#allocation17 + $0x258] sm:$0xff] }
0x127c   :  { %10198 = vmatpush1.bf16.msra.mxu0 %v10197_v32  ;;  %v5009_v32 = vld [vmem:[#allocation17 + $0xd8] sm:$0xff] }
0x127d   :  { %10200 = vmatprep.subr.bf16.mxu0 %v10199_v9  ;;  %v5013_v9 = vld [vmem:[#allocation17 + $0xf8] sm:$0xff] }
0x127e   :  { %v10227_v35 = vpack.c.bf16 %v5013_v9, %v5009_v32  ;;  %v5060_v32 = vld [vmem:[#allocation17 + $0x270] sm:$0xff]  ;;  %v5065_v9 = vld [vmem:[#allocation17 + $0x298] sm:$0xff] }
0x1280   :  { %10202 = vmatpush1.bf16.msra.mxu0 %v10201_v41  ;;  %v5017_v41 = vld [vmem:[#allocation17 + $0x118] sm:$0xff] }
0x1281   :  { %10204 = vmatprep.subr.bf16.mxu0 %v10203_v38  ;;  %v5021_v38 = vld [vmem:[#allocation17 + $0x138] sm:$0xff] }
0x1282   :  { %v10231_v31 = vpack.c.bf16 %v5021_v38, %v5017_v41  ;;  %v5068_v41 = vld [vmem:[#allocation17 + $0x2b0] sm:$0xff]  ;;  %v5073_v38 = vld [vmem:[#allocation17 + $0x2d8] sm:$0xff] }
0x1284   :  { %10206 = vmatpush1.bf16.msra.mxu0 %v10205_v25  ;;  %v5025_v25 = vld [vmem:[#allocation17 + $0x158] sm:$0xff] }
0x1285   :  { %10208 = vmatprep.subr.bf16.mxu0 %v10207_v10  ;;  %v5029_v10 = vld [vmem:[#allocation17 + $0x178] sm:$0xff] }
0x1286   :  { %v10235_v26 = vpack.c.bf16 %v5029_v10, %v5025_v25  ;;  %v5076_v25 = vld [vmem:[#allocation17 + $0x2f0] sm:$0xff]  ;;  %v5081_v10 = vld [vmem:[#allocation17 + $0x318] sm:$0xff] }
0x1288   :  { %10210 = vmatpush1.bf16.msra.mxu0 %v10209_v53  ;;  %v5033_v53 = vld [vmem:[#allocation17 + $0x198] sm:$0xff] }
0x1289   :  { %10212 = vmatprep.subr.bf16.mxu0 %v10211_v60  ;;  %v5037_v60 = vld [vmem:[#allocation17 + $0x1b8] sm:$0xff] }
0x128a   :  { %v10239_v12 = vpack.c.bf16 %v5037_v60, %v5033_v53  ;;  %v5084_v53 = vld [vmem:[#allocation17 + $0x330] sm:$0xff]  ;;  %v5089_v60 = vld [vmem:[#allocation17 + $0x358] sm:$0xff] }
0x128c   :  { %10214 = vmatpush1.bf16.msra.mxu0 %v10213_v57  ;;  %v5041_v57 = vld [vmem:[#allocation17 + $0x1d8] sm:$0xff] }
0x128d   :  { %10216 = vmatprep.subr.bf16.mxu0 %v10215_v17  ;;  %v5045_v17 = vld [vmem:[#allocation17 + $0x1f8] sm:$0xff] }
0x128e   :  { %v10243_v18 = vpack.c.bf16 %v5045_v17, %v5041_v57  ;;  %v5092_v57 = vld [vmem:[#allocation17 + $0x370] sm:$0xff]  ;;  %v5801_v17 = vld [vmem:[#allocation17 + $0x708] sm:$0xff] }
0x128f   :  { %5580 = vmatmul.mubr.f32.vlgmr.msra.gmra.mrb[92].mxu0 %v14038_v5 }
0x1290   :  { %8482 = vmatprep.mubr.msk.f32.mxu0 %vm2922_vm9, %v14044_v55  ;;  %10218 = vmatpush1.bf16.msra.mxu0 %v10217_v6  ;;  %v5053_v6 = vld [vmem:[#allocation17 + $0x238] sm:$0xff] }
0x1291   :  { %10220 = vmatprep.subr.bf16.mxu0 %v10219_v24  ;;  %v10247_v56 = vpack.c.bf16 %v5053_v6, %v5049_v42  ;;  %v5804_v42 = vld [vmem:[#allocation17 + $0x720] sm:$0xff]  ;;  %v5809_v6 = vld [vmem:[#allocation17 + $0x748] sm:$0xff] }
0x1293   :  { %5586 = vmatmul.mubr.f32.gmra.mrb[94].mxu0 %v14042_v20 }
0x1294   :  { %8483 = vmatprep.mubr.msk.f32.mxu0 %vm2922_vm9, %v14048_v8  ;;  %10222 = vmatpush1.bf16.msra.mxu0 %v10221_v15  ;;  %v5061_v15 = vld [vmem:[#allocation17 + $0x278] sm:$0xff] }
0x1295   :  { %10224 = vmatprep.subr.bf16.mxu0 %v10223_v45  ;;  %v10249_v45 = vpack.c.bf16 %v5052_v2, %v5048_v27  ;;  %v10251_v29 = vpack.c.bf16 %v5061_v15, %v5057_v50  ;;  %v5808_v2 = vld [vmem:[#allocation17 + $0x740] sm:$0xff]  ;;  %v5817_v15 = vld [vmem:[#allocation17 + $0x788] sm:$0xff] }
0x1296   :  { %v5812_v50 = vld [vmem:[#allocation17 + $0x760] sm:$0xff] }
0x1297   :  { %5592 = vmatmul.mubr.f32.gmra.mrb[96].mxu0 %v14046_v21 }
0x1298   :  { %8484 = vmatprep.mubr.msk.f32.mxu0 %vm2922_vm9, %v14052_v30  ;;  %10226 = vmatpush1.bf16.msra.mxu0 %v10225_v34  ;;  %v5069_v34 = vld [vmem:[#allocation17 + $0x2b8] sm:$0xff] }
0x1299   :  { %10228 = vmatprep.subr.bf16.mxu0 %v10227_v35  ;;  %v10253_v35 = vpack.c.bf16 %v5060_v32, %v5056_v3  ;;  %v10255_v39 = vpack.c.bf16 %v5069_v34, %v5065_v9  ;;  %v5816_v32 = vld [vmem:[#allocation17 + $0x780] sm:$0xff]  ;;  %v5825_v34 = vld [vmem:[#allocation17 + $0x7c8] sm:$0xff] }
0x129a   :  { %v5820_v9 = vld [vmem:[#allocation17 + $0x7a0] sm:$0xff] }
0x129b   :  { %5598 = vmatmul.mubr.f32.gmra.mrb[98].mxu0 %v14050_v28 }
0x129c   :  { %10230 = vmatpush1.bf16.msra.mxu0 %v10229_v59  ;;  %8485 = vmatprep.mubr.msk.f32.mxu0 %vm2922_vm9, %v14040_v19  ;;  %v5040_v19 = vld [vmem:[#allocation17 + $0x1d0] sm:$0xff]  ;;  %v5077_v59 = vld [vmem:[#allocation17 + $0x2f8] sm:$0xff] }
0x129d   :  { %10232 = vmatprep.subr.bf16.mxu0 %v10231_v31  ;;  %v10245_v24 = vpack.c.bf16 %v5044_v44, %v5040_v19  ;;  %v10257_v31 = vpack.c.bf16 %v5068_v41, %v5064_v40  ;;  %v10259_v58 = vpack.c.bf16 %v5077_v59, %v5073_v38  ;;  %v5800_v44 = vld [vmem:[#allocation17 + $0x700] sm:$0xff]  ;;  %v5837_v38 = vld [vmem:[#allocation17 + $0x828] sm:$0xff] }
0x129e   :  { %v5824_v40 = vld [vmem:[#allocation17 + $0x7c0] sm:$0xff] }
0x129f   :  { %v5828_v41 = vld [vmem:[#allocation17 + $0x7e0] sm:$0xff] }
0x12a0   :  { %10234 = vmatpush1.bf16.msra.mxu0 %v10233_v62  ;;  %v5085_v62 = vld [vmem:[#allocation17 + $0x338] sm:$0xff]  ;;  %v10291_v59 = vpack.c.bf16 %v5828_v41, %v5824_v40  ;;  %v5888_v40 = vld [vmem:[#allocation17 + $0x9c0] sm:$0xff] }
0x12a1   :  { %10236 = vmatprep.subr.bf16.mxu0 %v10235_v26  ;;  %v10261_v26 = vpack.c.bf16 %v5076_v25, %v5072_v46  ;;  %v10263_v1 = vpack.c.bf16 %v5085_v62, %v5081_v10  ;;  %v5845_v46 = vld [vmem:[#allocation17 + $0x868] sm:$0xff]  ;;  %v5840_v10 = vld [vmem:[#allocation17 + $0x840] sm:$0xff] }
0x12a2   :  { %v5844_v62 = vld [vmem:[#allocation17 + $0x860] sm:$0xff] }
0x12a3   :  { %v5892_v41 = vld [vmem:[#allocation17 + $0x9e0] sm:$0xff] }
0x12a4   :  { %10238 = vmatpush1.bf16.msra.mxu0 %v10237_v7  ;;  %v5093_v7 = vld [vmem:[#allocation17 + $0x378] sm:$0xff] }
0x12a5   :  { %10240 = vmatprep.subr.bf16.mxu0 %v10239_v12  ;;  %v10265_v12 = vpack.c.bf16 %v5084_v53, %v5080_v4  ;;  %v10267_v14 = vpack.c.bf16 %v5093_v7, %v5089_v60  ;;  %v5848_v53 = vld [vmem:[#allocation17 + $0x880] sm:$0xff]  ;;  %v5857_v7 = vld [vmem:[#allocation17 + $0x8c8] sm:$0xff] }
0x12a6   :  { %v5852_v60 = vld [vmem:[#allocation17 + $0x8a0] sm:$0xff] }
0x12a8   :  { %10242 = vmatpush1.bf16.msra.mxu0 %v10241_v54  ;;  %v5805_v54 = vld [vmem:[#allocation17 + $0x728] sm:$0xff] }
0x12a9   :  { %10244 = vmatprep.subr.bf16.mxu0 %v10243_v18  ;;  %v10269_v18 = vpack.c.bf16 %v5092_v57, %v5088_v36  ;;  %v10277_v19 = vpack.c.bf16 %v5805_v54, %v5801_v17  ;;  %v5856_v36 = vld [vmem:[#allocation17 + $0x8c0] sm:$0xff]  ;;  %v5865_v17 = vld [vmem:[#allocation17 + $0x908] sm:$0xff] }
0x12aa   :  { %v5860_v57 = vld [vmem:[#allocation17 + $0x8e0] sm:$0xff]  ;;  %v5869_v54 = vld [vmem:[#allocation17 + $0x928] sm:$0xff] }
0x12ac   :  { %10246 = vmatpush1.bf16.msra.mxu0 %v10245_v24  ;;  %v5813_v24 = vld [vmem:[#allocation17 + $0x768] sm:$0xff] }
0x12ad   :  { %10248 = vmatprep.subr.bf16.mxu0 %v10247_v56  ;;  %v10279_v56 = vpack.c.bf16 %v5804_v42, %v5800_v44  ;;  %v10281_v27 = vpack.c.bf16 %v5813_v24, %v5809_v6  ;;  %v5864_v44 = vld [vmem:[#allocation17 + $0x900] sm:$0xff]  ;;  %v5873_v6 = vld [vmem:[#allocation17 + $0x948] sm:$0xff] }
0x12ae   :  { %v5868_v42 = vld [vmem:[#allocation17 + $0x920] sm:$0xff]  ;;  %v5877_v24 = vld [vmem:[#allocation17 + $0x968] sm:$0xff] }
0x12b0   :  { %10250 = vmatpush1.bf16.msra.mxu0 %v10249_v45  ;;  %v5821_v45 = vld [vmem:[#allocation17 + $0x7a8] sm:$0xff] }
0x12b1   :  { %10252 = vmatprep.subr.bf16.mxu0 %v10251_v29  ;;  %v10283_v29 = vpack.c.bf16 %v5812_v50, %v5808_v2  ;;  %v10285_v3 = vpack.c.bf16 %v5821_v45, %v5817_v15  ;;  %v5872_v2 = vld [vmem:[#allocation17 + $0x940] sm:$0xff]  ;;  %v5881_v15 = vld [vmem:[#allocation17 + $0x988] sm:$0xff] }
0x12b2   :  { %v5876_v50 = vld [vmem:[#allocation17 + $0x960] sm:$0xff]  ;;  %v5885_v45 = vld [vmem:[#allocation17 + $0x9a8] sm:$0xff] }
0x12b4   :  { %10254 = vmatpush1.bf16.msra.mxu0 %v10253_v35  ;;  %v5829_v35 = vld [vmem:[#allocation17 + $0x7e8] sm:$0xff] }
0x12b5   :  { %10256 = vmatprep.subr.bf16.mxu0 %v10255_v39  ;;  %v10287_v39 = vpack.c.bf16 %v5820_v9, %v5816_v32  ;;  %v5880_v32 = vld [vmem:[#allocation17 + $0x980] sm:$0xff] }
0x12b6   :  { %v5884_v9 = vld [vmem:[#allocation17 + $0x9a0] sm:$0xff] }
0x12b8   :  { %10258 = vmatpush1.bf16.msra.mxu0 %v10257_v31  ;;  %v5832_v31 = vld [vmem:[#allocation17 + $0x800] sm:$0xff] }
0x12b9   :  { %10260 = vmatprep.subr.bf16.mxu0 %v10259_v58  ;;  %v5836_v58 = vld [vmem:[#allocation17 + $0x820] sm:$0xff] }
0x12ba   :  { %v10295_v25 = vpack.c.bf16 %v5836_v58, %v5832_v31  ;;  %v5896_v31 = vld [vmem:[#allocation17 + $0xa00] sm:$0xff] }
0x12bb   :  { %v5900_v58 = vld [vmem:[#allocation17 + $0xa20] sm:$0xff] }
0x12bc   :  { %10262 = vmatpush1.bf16.msra.mxu0 %v10261_v26  ;;  %v5853_v26 = vld [vmem:[#allocation17 + $0x8a8] sm:$0xff] }
0x12bd   :  { %10264 = vmatprep.subr.bf16.mxu0 %v10263_v1  ;;  %v10299_v1 = vpack.c.bf16 %v5844_v62, %v5840_v10  ;;  %v5904_v10 = vld [vmem:[#allocation17 + $0xa40] sm:$0xff] }
0x12be   :  { %v5908_v62 = vld [vmem:[#allocation17 + $0xa60] sm:$0xff] }
0x12c0   :  { %10266 = vmatpush1.bf16.msra.mxu0 %v10265_v12  ;;  %v5861_v12 = vld [vmem:[#allocation17 + $0x8e8] sm:$0xff] }
0x12c1   :  { %10268 = vmatprep.subr.bf16.mxu0 %v10267_v14  ;;  %v10305_v14 = vpack.c.bf16 %v5861_v12, %v5857_v7  ;;  %v5811_v7 = vld [vmem:[#allocation17 + $0x758] sm:$0xff] }
0x12c2   :  { %v5815_v12 = vld [vmem:[#allocation17 + $0x778] sm:$0xff] }
0x12c4   :  { %10270 = vmatpush1.bf16.msra.mxu0 %v10269_v18  ;;  %v10307_v18 = vpack.c.bf16 %v5860_v57, %v5856_v36  ;;  %v5810_v36 = vld [vmem:[#allocation17 + $0x750] sm:$0xff] }
0x12c5   :  { %10278 = vmatprep.subr.bf16.mxu0 %v10277_v19  ;;  %v10309_v19 = vpack.c.bf16 %v5869_v54, %v5865_v17  ;;  %v5814_v57 = vld [vmem:[#allocation17 + $0x770] sm:$0xff]  ;;  %v5819_v17 = vld [vmem:[#allocation17 + $0x798] sm:$0xff] }
0x12c6   :  { %v5823_v54 = vld [vmem:[#allocation17 + $0x7b8] sm:$0xff] }
0x12c7   :  { %5669 = vmatmul.mubr.f32.vlgmr.msra.gmra.mrb[100].mxu0 %v14038_v5  ;;  %v10289_v5 = vpack.c.bf16 %v5829_v35, %v5825_v34  ;;  %v5889_v34 = vld [vmem:[#allocation17 + $0x9c8] sm:$0xff] }
0x12c8   :  { %8486 = vmatprep.mubr.msk.f32.mxu0 %vm2922_vm9, %v14044_v55  ;;  %10280 = vmatpush1.bf16.msra.mxu0 %v10279_v56  ;;  %v5833_v55 = vld [vmem:[#allocation17 + $0x808] sm:$0xff]  ;;  %v10311_v56 = vpack.c.bf16 %v5868_v42, %v5864_v44  ;;  %v5818_v44 = vld [vmem:[#allocation17 + $0x790] sm:$0xff] }
0x12c9   :  { %10282 = vmatprep.subr.bf16.mxu0 %v10281_v27  ;;  %v10313_v27 = vpack.c.bf16 %v5877_v24, %v5873_v6  ;;  %v5893_v35 = vld [vmem:[#allocation17 + $0x9e8] sm:$0xff]  ;;  %v5822_v42 = vld [vmem:[#allocation17 + $0x7b0] sm:$0xff]  ;;  %v5827_v6 = vld [vmem:[#allocation17 + $0x7d8] sm:$0xff] }
0x12ca   :  { %v5831_v24 = vld [vmem:[#allocation17 + $0x7f8] sm:$0xff] }
0x12cb   :  { %5675 = vmatmul.mubr.f32.gmra.mrb[102].mxu0 %v14042_v20  ;;  %v10293_v20 = vpack.c.bf16 %v5837_v38, %v5833_v55  ;;  %v5897_v55 = vld [vmem:[#allocation17 + $0xa08] sm:$0xff] }
0x12cc   :  { %8487 = vmatprep.mubr.msk.f32.mxu0 %vm2922_vm9, %v14048_v8  ;;  %10284 = vmatpush1.bf16.msra.mxu0 %v10283_v29  ;;  %v5841_v8 = vld [vmem:[#allocation17 + $0x848] sm:$0xff]  ;;  %v10315_v29 = vpack.c.bf16 %v5876_v50, %v5872_v2  ;;  %v5826_v2 = vld [vmem:[#allocation17 + $0x7d0] sm:$0xff] }
0x12cd   :  { %10286 = vmatprep.subr.bf16.mxu0 %v10285_v3  ;;  %v10317_v3 = vpack.c.bf16 %v5885_v45, %v5881_v15  ;;  %v5901_v38 = vld [vmem:[#allocation17 + $0xa28] sm:$0xff]  ;;  %v5830_v50 = vld [vmem:[#allocation17 + $0x7f0] sm:$0xff]  ;;  %v5835_v15 = vld [vmem:[#allocation17 + $0x818] sm:$0xff] }
0x12ce   :  { %v5839_v45 = vld [vmem:[#allocation17 + $0x838] sm:$0xff] }
0x12cf   :  { %5681 = vmatmul.mubr.f32.gmra.mrb[104].mxu0 %v14046_v21  ;;  %v10297_v21 = vpack.c.bf16 %v5845_v46, %v5841_v8  ;;  %v5905_v8 = vld [vmem:[#allocation17 + $0xa48] sm:$0xff] }
0x12d0   :  { %8488 = vmatprep.mubr.msk.f32.mxu0 %vm2922_vm9, %v14052_v30  ;;  %10288 = vmatpush1.bf16.msra.mxu0 %v10287_v39  ;;  %v5849_v30 = vld [vmem:[#allocation17 + $0x888] sm:$0xff]  ;;  %v10319_v39 = vpack.c.bf16 %v5884_v9, %v5880_v32  ;;  %v5834_v32 = vld [vmem:[#allocation17 + $0x810] sm:$0xff] }
0x12d1   :  { %10290 = vmatprep.subr.bf16.mxu0 %v10289_v5  ;;  %v10301_v4 = vpack.c.bf16 %v5853_v26, %v5849_v30  ;;  %v10321_v5 = vpack.c.bf16 %v5893_v35, %v5889_v34  ;;  %v5909_v46 = vld [vmem:[#allocation17 + $0xa68] sm:$0xff]  ;;  %v5803_v30 = vld [vmem:[#allocation17 + $0x718] sm:$0xff]  ;;  %v5838_v9 = vld [vmem:[#allocation17 + $0x830] sm:$0xff] }
0x12d2   :  { %v5807_v26 = vld [vmem:[#allocation17 + $0x738] sm:$0xff] }
0x12d3   :  { %5687 = vmatmul.mubr.f32.gmra.mrb[106].mxu0 %v14050_v28  ;;  %v10303_v28 = vpack.c.bf16 %v5852_v60, %v5848_v53  ;;  %v5802_v53 = vld [vmem:[#allocation17 + $0x710] sm:$0xff]  ;;  %v5843_v34 = vld [vmem:[#allocation17 + $0x858] sm:$0xff] }
0x12d4   :  { %10292 = vmatpush1.bf16.msra.mxu0 %v10291_v59  ;;  %8499 = vmatprep.mubr.msk.f32.mxu0 %vm2922_vm9, %v14094_v0  ;;  %v10323_v59 = vpack.c.bf16 %v5892_v41, %v5888_v40  ;;  %v5806_v60 = vld [vmem:[#allocation17 + $0x730] sm:$0xff]  ;;  %v5847_v35 = vld [vmem:[#allocation17 + $0x878] sm:$0xff] }
0x12d5   :  { %10294 = vmatprep.subr.bf16.mxu0 %v10293_v20  ;;  %v10325_v20 = vpack.c.bf16 %v5901_v38, %v5897_v55  ;;  %v5842_v40 = vld [vmem:[#allocation17 + $0x850] sm:$0xff]  ;;  %v5851_v55 = vld [vmem:[#allocation17 + $0x898] sm:$0xff] }
0x12d6   :  { %v5846_v41 = vld [vmem:[#allocation17 + $0x870] sm:$0xff]  ;;  %v5855_v38 = vld [vmem:[#allocation17 + $0x8b8] sm:$0xff] }
0x12d8   :  { %10296 = vmatpush1.bf16.msra.mxu0 %v10295_v25  ;;  %v10327_v25 = vpack.c.bf16 %v5900_v58, %v5896_v31  ;;  %v5850_v31 = vld [vmem:[#allocation17 + $0x890] sm:$0xff] }
0x12d9   :  { %10298 = vmatprep.subr.bf16.mxu0 %v10297_v21  ;;  %v10329_v21 = vpack.c.bf16 %v5909_v46, %v5905_v8  ;;  %v5854_v58 = vld [vmem:[#allocation17 + $0x8b0] sm:$0xff]  ;;  %v5859_v8 = vld [vmem:[#allocation17 + $0x8d8] sm:$0xff] }
0x12da   :  { %v5863_v46 = vld [vmem:[#allocation17 + $0x8f8] sm:$0xff] }
0x12dc   :  { %10300 = vmatpush1.bf16.msra.mxu0 %v10299_v1  ;;  %v10331_v1 = vpack.c.bf16 %v5908_v62, %v5904_v10  ;;  %v5862_v10 = vld [vmem:[#allocation17 + $0x8f0] sm:$0xff]  ;;  %v5867_v62 = vld [vmem:[#allocation17 + $0x918] sm:$0xff] }
0x12dd   :  { %10302 = vmatprep.subr.bf16.mxu0 %v10301_v4  ;;  %v10333_v4 = vpack.c.bf16 %v5807_v26, %v5803_v30  ;;  %v5871_v30 = vld [vmem:[#allocation17 + $0x938] sm:$0xff] }
0x12e0   :  { %10304 = vmatpush1.bf16.msra.mxu0 %v10303_v28  ;;  %v10335_v28 = vpack.c.bf16 %v5806_v60, %v5802_v53  ;;  %v5870_v53 = vld [vmem:[#allocation17 + $0x930] sm:$0xff]  ;;  %v5875_v60 = vld [vmem:[#allocation17 + $0x958] sm:$0xff] }
0x12e1   :  { %10306 = vmatprep.subr.bf16.mxu0 %v10305_v14  ;;  %v10337_v14 = vpack.c.bf16 %v5815_v12, %v5811_v7  ;;  %v5879_v7 = vld [vmem:[#allocation17 + $0x978] sm:$0xff] }
0x12e4   :  { %10308 = vmatpush1.bf16.msra.mxu0 %v10307_v18  ;;  %v10339_v18 = vpack.c.bf16 %v5814_v57, %v5810_v36  ;;  %v5878_v36 = vld [vmem:[#allocation17 + $0x970] sm:$0xff]  ;;  %v5883_v57 = vld [vmem:[#allocation17 + $0x998] sm:$0xff] }
0x12e5   :  { %10310 = vmatprep.subr.bf16.mxu0 %v10309_v19  ;;  %v10341_v19 = vpack.c.bf16 %v5823_v54, %v5819_v17  ;;  %v5887_v17 = vld [vmem:[#allocation17 + $0x9b8] sm:$0xff] }
0x12e8   :  { %10312 = vmatpush1.bf16.msra.mxu0 %v10311_v56  ;;  %v10343_v56 = vpack.c.bf16 %v5822_v42, %v5818_v44  ;;  %v5886_v44 = vld [vmem:[#allocation17 + $0x9b0] sm:$0xff]  ;;  %v5891_v42 = vld [vmem:[#allocation17 + $0x9d8] sm:$0xff] }
0x12e9   :  { %10314 = vmatprep.subr.bf16.mxu0 %v10313_v27  ;;  %v10345_v27 = vpack.c.bf16 %v5831_v24, %v5827_v6  ;;  %v5895_v6 = vld [vmem:[#allocation17 + $0x9f8] sm:$0xff] }
0x12ec   :  { %10316 = vmatpush1.bf16.msra.mxu0 %v10315_v29  ;;  %v10347_v29 = vpack.c.bf16 %v5830_v50, %v5826_v2  ;;  %v5894_v2 = vld [vmem:[#allocation17 + $0x9f0] sm:$0xff]  ;;  %v5899_v50 = vld [vmem:[#allocation17 + $0xa18] sm:$0xff] }
0x12ed   :  { %10318 = vmatprep.subr.bf16.mxu0 %v10317_v3  ;;  %v10349_v3 = vpack.c.bf16 %v5839_v45, %v5835_v15  ;;  %v5903_v15 = vld [vmem:[#allocation17 + $0xa38] sm:$0xff] }
0x12f0   :  { %10320 = vmatpush1.bf16.msra.mxu0 %v10319_v39  ;;  %v10351_v39 = vpack.c.bf16 %v5838_v9, %v5834_v32  ;;  %v5902_v32 = vld [vmem:[#allocation17 + $0xa30] sm:$0xff]  ;;  %v5907_v9 = vld [vmem:[#allocation17 + $0xa58] sm:$0xff] }
0x12f1   :  { %10322 = vmatprep.subr.bf16.mxu0 %v10321_v5  ;;  %v10353_v5 = vpack.c.bf16 %v5847_v35, %v5843_v34  ;;  %v5911_v34 = vld [vmem:[#allocation17 + $0xa78] sm:$0xff] }
0x12f4   :  { %10324 = vmatpush1.bf16.msra.mxu0 %v10323_v59  ;;  %v10355_v59 = vpack.c.bf16 %v5846_v41, %v5842_v40  ;;  %v5910_v40 = vld [vmem:[#allocation17 + $0xa70] sm:$0xff] }
0x12f5   :  { %10326 = vmatprep.subr.bf16.mxu0 %v10325_v20  ;;  %v10357_v20 = vpack.c.bf16 %v5855_v38, %v5851_v55  ;;  %v14155_v55 = vld [vmem:[#allocation19] sm:$0xf] }
0x12f8   :  { %10328 = vmatpush1.bf16.msra.mxu0 %v10327_v25  ;;  %v10359_v25 = vpack.c.bf16 %v5854_v58, %v5850_v31 }
0x12f9   :  { %10330 = vmatprep.subr.bf16.mxu0 %v10329_v21  ;;  %v10361_v21 = vpack.c.bf16 %v5863_v46, %v5859_v8 }
0x12fc   :  { %10332 = vmatpush1.bf16.msra.mxu0 %v10331_v1  ;;  %v10365_v1 = vpack.c.bf16 %v5871_v30, %v5867_v62 }
0x12fd   :  { %10334 = vmatprep.subr.bf16.mxu0 %v10333_v4  ;;  %v5866_v4 = vld [vmem:[#allocation17 + $0x910] sm:$0xff] }
0x12fe   :  { %v10367_v12 = vpack.c.bf16 %v5870_v53, %v5866_v4 }
0x12ff   :  { %5989 = vmatmul.mubr.f32.vlgmr.msra.gmra.mrb[92].mxu0 %v14092_v22 }
0x1300   :  { %10336 = vmatpush1.bf16.msra.mxu0 %v10335_v28  ;;  %8500 = vmatprep.mubr.msk.f32.mxu0 %vm2922_vm9, %v14098_v37  ;;  %v10369_v28 = vpack.c.bf16 %v5879_v7, %v5875_v60 }
0x1301   :  { %10338 = vmatprep.subr.bf16.mxu0 %v10337_v14  ;;  %v5874_v14 = vld [vmem:[#allocation17 + $0x950] sm:$0xff] }
0x1302   :  { %v10371_v54 = vpack.c.bf16 %v5878_v36, %v5874_v14 }
0x1303   :  { %5995 = vmatmul.mubr.f32.gmra.mrb[94].mxu0 %v14096_v63 }
0x1304   :  { %10340 = vmatpush1.bf16.msra.mxu0 %v10339_v18  ;;  %8501 = vmatprep.mubr.msk.f32.mxu0 %vm2922_vm9, %v14102_v13  ;;  %v10373_v18 = vpack.c.bf16 %v5887_v17, %v5883_v57 }
0x1305   :  { %10342 = vmatprep.subr.bf16.mxu0 %v10341_v19  ;;  %v5882_v19 = vld [vmem:[#allocation17 + $0x990] sm:$0xff] }
0x1306   :  { %v10375_v24 = vpack.c.bf16 %v5886_v44, %v5882_v19 }
0x1307   :  { %6001 = vmatmul.mubr.f32.gmra.mrb[96].mxu0 %v14100_v23 }
0x1308   :  { %10344 = vmatpush1.bf16.msra.mxu0 %v10343_v56  ;;  %8502 = vmatprep.mubr.msk.f32.mxu0 %vm2922_vm9, %v14106_v61  ;;  %v10377_v56 = vpack.c.bf16 %v5895_v6, %v5891_v42 }
0x1309   :  { %10346 = vmatprep.subr.bf16.mxu0 %v10345_v27  ;;  %v5890_v27 = vld [vmem:[#allocation17 + $0x9d0] sm:$0xff] }
0x130a   :  { %v10379_v45 = vpack.c.bf16 %v5894_v2, %v5890_v27 }
0x130b   :  { %6007 = vmatmul.mubr.f32.gmra.mrb[98].mxu0 %v14104_v16 }
0x130c   :  { %10348 = vmatpush1.bf16.msra.mxu0 %v10347_v29  ;;  %8503 = vmatprep.mubr.msk.f32.mxu0 %vm2922_vm9, %v14094_v0  ;;  %v5858_v0 = vld [vmem:[#allocation17 + $0x8d0] sm:$0xff]  ;;  %v10381_v29 = vpack.c.bf16 %v5903_v15, %v5899_v50 }
0x130d   :  { %10350 = vmatprep.subr.bf16.mxu0 %v10349_v3  ;;  %v10363_v26 = vpack.c.bf16 %v5862_v10, %v5858_v0  ;;  %v5898_v3 = vld [vmem:[#allocation17 + $0xa10] sm:$0xff] }
0x130e   :  { %v10383_v35 = vpack.c.bf16 %v5902_v32, %v5898_v3 }
0x1310   :  { %10352 = vmatpush1.bf16.msra.mxu0 %v10351_v39  ;;  %v10385_v39 = vpack.c.bf16 %v5911_v34, %v5907_v9 }
0x1311   :  { %10354 = vmatprep.subr.bf16.mxu0 %v10353_v5  ;;  %v5906_v5 = vld [vmem:[#allocation17 + $0xa50] sm:$0xff] }
0x1312   :  { %v10387_v41 = vpack.c.bf16 %v5910_v40, %v5906_v5 }
0x1314   :  { %10356 = vmatpush1.bf16.msra.mxu0 %v10355_v59 }
0x1315   :  { %10358 = vmatprep.subr.bf16.mxu0 %v10357_v20 }
0x1318   :  { %10360 = vmatpush1.bf16.msra.mxu0 %v10359_v25 }
0x1319   :  { %10362 = vmatprep.subr.bf16.mxu0 %v10361_v21 }
0x131c   :  { %10364 = vmatpush1.bf16.msra.mxu0 %v10363_v26 }
0x131d   :  { %10366 = vmatprep.subr.bf16.mxu0 %v10365_v1 }
0x1320   :  { %10368 = vmatpush1.bf16.msra.mxu0 %v10367_v12 }
0x1321   :  { %10370 = vmatprep.subr.bf16.mxu0 %v10369_v28 }
0x1324   :  { %10372 = vmatpush1.bf16.msra.mxu0 %v10371_v54 }
0x1325   :  { %10374 = vmatprep.subr.bf16.mxu0 %v10373_v18 }
0x1328   :  { %10376 = vmatpush1.bf16.msra.mxu0 %v10375_v24 }
0x1329   :  { %10378 = vmatprep.subr.bf16.mxu0 %v10377_v56 }
0x132c   :  { %10380 = vmatpush1.bf16.msra.mxu0 %v10379_v45 }
0x132d   :  { %10382 = vmatprep.subr.bf16.mxu0 %v10381_v29 }
0x1330   :  { %10384 = vmatpush1.bf16.msra.mxu0 %v10383_v35 }
0x1331   :  { %10386 = vmatprep.subr.bf16.mxu0 %v10385_v39 }
0x1334   :  { %10388 = vmatpush1.bf16.msra.mxu0 %v10387_v41 }
0x1337   :  { %6078 = vmatmul.mubr.f32.vlgmr.msra.gmra.mrb[100].mxu0 %v14092_v22  ;;  %v6123_v22 = vrot.slane %v14155_v55, %v11865_v48 }
0x1338   :  { %8504 = vmatprep.mubr.msk.f32.mxu0 %vm2922_vm9, %v14098_v37 }
0x133b   :  { %6084 = vmatmul.mubr.f32.gmra.mrb[102].mxu0 %v14096_v63  ;;  %v6127_v63 = vrot.slane %v14155_v55, %v11869_v51 }
0x133c   :  { %8505 = vmatprep.mubr.msk.f32.mxu0 %vm2922_vm9, %v14102_v13 }
0x133f   :  { %6090 = vmatmul.mubr.f32.gmra.mrb[104].mxu0 %v14100_v23 }
0x1340   :  { %8506 = vmatprep.mubr.msk.f32.mxu0 %vm2922_vm9, %v14106_v61 }
0x1343   :  { %6096 = vmatmul.mubr.f32.gmra.mrb[106].mxu0 %v14104_v16 }
0x1344   :  { %7397 = vmatprep.mubr.f32.mxu0 %v15188_v43 }
0x13d2   :  { %v5990_v37 = vpop.f32.mrb[92].mxu0 }
0x13d3   :  { %v6140_v38 = vadd.f32 %v6123_v22, %v5990_v37  ;;  %v5992_v13 = vpop.f32.mrb[93].mxu0 }
0x13d4   :  { %v6141_v59 = vadd.f32 %v6127_v63, %v5992_v13 }
0x13d5   :  { %v6156_v23 = vsub.f32 0.0, %v6140_v38 }
0x13d6   :  { %v6157_v20 = vsub.f32 0.0, %v6141_v59  ;;  %v5996_v31 = vpop.f32.mrb[94].mxu0  ;;  %v14188_v59 = vld [vmem:[%s15171_s22] sm:$0xff] }
0x13d7   :  { %v6172_v61 = vmul.f32 1.442695, %v6156_v23  ;;  %v6144_v58 = vadd.f32 %v6123_v22, %v5996_v31  ;;  %v5998_v16 = vpop.f32.mrb[95].mxu0  ;;  %v6131_v23 = vrot.slane %v14155_v55, %v1221_v49  ;;  %v6135_v31 = vrot.slane %v14155_v55, %v1225_v52  ;;  %v14210_v49 = vld [vmem:[%s15171_s22 + $0x10] sm:$0xff] }
0x13d8   :  { %v6174_v8 = vmul.f32 1.442695, %v6157_v20  ;;  %v6145_v46 = vadd.f32 %v6127_v63, %v5998_v16  ;;  %v14199_v20 = vld [vmem:[%s15171_s22 + $0x8] sm:$0xff] }
0x13d9   :  { %10875 = vpow2.f32 %v6172_v61  ;;  %v6160_v25 = vsub.f32 0.0, %v6144_v58 }
0x13da   :  { %10877 = vpow2.f32 %v6174_v8  ;;  %v6161_v21 = vsub.f32 0.0, %v6145_v46  ;;  %v6002_v48 = vpop.f32.mrb[96].mxu0 }
0x13db   :  { %v6180_v0 = vmul.f32 1.442695, %v6160_v25  ;;  %v6148_v10 = vadd.f32 %v6123_v22, %v6002_v48  ;;  %v6004_v51 = vpop.f32.mrb[97].mxu0  ;;  %v14218_v48 = vld [vmem:[%s15171_s22 + $0x18] sm:$0xff] }
0x13dc   :  { %v6182_v62 = vmul.f32 1.442695, %v6161_v21  ;;  %v6149_v30 = vadd.f32 %v6127_v63, %v6004_v51 }
0x13dd   :  { %10879 = vpow2.f32 %v6180_v0  ;;  %v6164_v26 = vsub.f32 0.0, %v6148_v10 }
0x13de   :  { %10881 = vpow2.f32 %v6182_v62  ;;  %v6165_v1 = vsub.f32 0.0, %v6149_v30  ;;  %v6008_v4 = vpop.f32.mrb[98].mxu0 }
0x13df   :  { %v6188_v53 = vmul.f32 1.442695, %v6164_v26  ;;  %v6152_v60 = vadd.f32 %v6123_v22, %v6008_v4  ;;  %v6010_v7 = vpop.f32.mrb[99].mxu0 }
0x13e0   :  { %v6190_v12 = vmul.f32 1.442695, %v6165_v1  ;;  %v6153_v28 = vadd.f32 %v6127_v63, %v6010_v7 }
0x13e1   :  { %10883 = vpow2.f32 %v6188_v53  ;;  %v6168_v14 = vsub.f32 0.0, %v6152_v60  ;;  %v14226_v53 = vld [vmem:[%s15171_s22 + $0x20] sm:$0xff] }
0x13e2   :  { %v6169_v36 = vsub.f32 0.0, %v6153_v28  ;;  %10885 = vpow2.f32 %v6190_v12 }
0x13e3   :  { %v10876_v57 = vpop.eup %10875  ;;  %v6196_v17 = vmul.f32 1.442695, %v6168_v14 }
0x13e4   :  { %v10878_v54 = vpop.eup %10877  ;;  %v6204_v18 = vadd.f32 1.0, %v10876_v57  ;;  %v6198_v19 = vmul.f32 1.442695, %v6169_v36 }
0x13e5   :  { %v6205_v44 = vadd.f32 1.0, %v10878_v54  ;;  %10887 = vpow2.f32 %v6196_v17  ;;  %v14234_v54 = vld [vmem:[%s15171_s22 + $0x28] sm:$0xff] }
0x13e6   :  { %10889 = vrcp.f32 %v6204_v18 }
0x13e7   :  { %v10880_v42 = vpop.eup %10879  ;;  %10891 = vpow2.f32 %v6198_v19 }
0x13e8   :  { %v10882_v6 = vpop.eup %10881  ;;  %v6208_v24 = vadd.f32 1.0, %v10880_v42  ;;  %10893 = vrcp.f32 %v6205_v44 }
0x13e9   :  { %v6209_v56 = vadd.f32 1.0, %v10882_v6 }
0x13ea   :  { %10895 = vrcp.f32 %v6208_v24 }
0x13eb   :  { %v10884_v27 = vpop.eup %10883  ;;  %10897 = vrcp.f32 %v6209_v56  ;;  %v6258_v56 = vld [vmem:[%s15171_s22 + $0x30] sm:$0xff] }
0x13ec   :  { %v10886_v2 = vpop.eup %10885  ;;  %v6212_v50 = vadd.f32 1.0, %v10884_v27 }
0x13ed   :  { %v6213_v45 = vadd.f32 1.0, %v10886_v2 }
0x13ee   :  { %10899 = vrcp.f32 %v6212_v50 }
0x13ef   :  { %v10888_v15 = vpop.eup %10887 }
0x13f0   :  { %v6216_v29 = vadd.f32 1.0, %v10888_v15  ;;  %v10890_v3 = vpop.eup %10889 }
0x13f1   :  { %v10892_v32 = vpop.eup %10891 }
0x13f2   :  { %10901 = vrcp.f32 %v6216_v29  ;;  %v10894_v9 = vpop.eup %10893  ;;  %v6217_v34 = vadd.f32 1.0, %v10892_v32 }
0x13f3   :  { %10903 = vrcp.f32 %v6213_v45 }
0x13f4   :  { %v10896_v35 = vpop.eup %10895  ;;  %10905 = vrcp.f32 %v6217_v34 }
0x13f5   :  { %v10898_v39 = vpop.eup %10897  ;;  %v14161_v5 = vpack.c.bf16 %v10896_v35, %v10890_v3 }
0x13f6   :  { %v14163_v40 = vpack.c.bf16 %v10898_v39, %v10894_v9 }
0x13f8   :  { %10390 = vmatprep.subr.bf16.mxu1 %v14163_v40  ;;  %10566 = vmatprep.subr.bf16.mxu0 %v14163_v40  ;;  %v10900_v41 = vpop.eup %10899 }
0x13f9   :  { %10392 = vmatpush1.bf16.msra.mxu1 %v14161_v5  ;;  %10568 = vmatpush1.bf16.msra.mxu0 %v14161_v5 }
0x13fc   :  { %v10902_v22 = vpop.eup %10901 }
0x13fd   :  { %v14169_v63 = vpack.c.bf16 %v10902_v22, %v10900_v41  ;;  %v10904_v37 = vpop.eup %10903 }
0x13fe   :  { %v10906_v38 = vpop.eup %10905 }
0x13ff   :  { %v14171_v13 = vpack.c.bf16 %v10906_v38, %v10904_v37 }
0x1401   :  { %10395 = vmatprep.subr.msk.bf16.mxu1 %vm11634_vm3, %v14171_v13  ;;  %10571 = vmatprep.subr.msk.bf16.mxu0 %vm11634_vm3, %v14171_v13 }
0x1402   :  { %10398 = vmatpush1.bf16.msk.msra.mxu1 %vm11634_vm3, %v14169_v63  ;;  %10574 = vmatpush1.bf16.msk.msra.mxu0 %vm11634_vm3, %v14169_v63 }
0x1405   :  { %8509 = vmatmul.mubr.msk.f32.vlgmr.msra.gmra.mrb[34].mxu1 %vm466_vm4, %v14188_v59 }
0x1406   :  { %6362 = vmatprep.mubr.f32.mxu1 %v15188_v43 }
0x1409   :  { %8510 = vmatmul.mubr.msk.f32.gmra.mrb[36].mxu1 %vm466_vm4, %v14199_v20 }
0x140a   :  { %v6079_v61 = vpop.f32.mrb[100].mxu0  ;;  %6368 = vmatprep.mubr.f32.mxu1 %v15188_v43 }
0x140b   :  { %v6142_v58 = vadd.f32 %v6131_v23, %v6079_v61  ;;  %v6081_v16 = vpop.f32.mrb[101].mxu0 }
0x140c   :  { %v6143_v8 = vadd.f32 %v6135_v31, %v6081_v16 }
0x140d   :  { %v6158_v46 = vsub.f32 0.0, %v6142_v58  ;;  %8511 = vmatmul.mubr.msk.f32.gmra.mrb[38].mxu1 %vm466_vm4, %v14210_v49 }
0x140e   :  { %v6159_v25 = vsub.f32 0.0, %v6143_v8  ;;  %v6085_v21 = vpop.f32.mrb[102].mxu0  ;;  %6374 = vmatprep.mubr.f32.mxu1 %v15188_v43 }
0x140f   :  { %v6176_v47 = vmul.f32 1.442695, %v6158_v46  ;;  %v6146_v52 = vadd.f32 %v6131_v23, %v6085_v21  ;;  %v6087_v55 = vpop.f32.mrb[103].mxu0 }
0x1410   :  { %v6178_v0 = vmul.f32 1.442695, %v6159_v25  ;;  %v6147_v10 = vadd.f32 %v6135_v31, %v6087_v55 }
0x1411   :  { %10907 = vpow2.f32 %v6176_v47  ;;  %v6162_v51 = vsub.f32 0.0, %v6146_v52  ;;  %8512 = vmatmul.mubr.msk.f32.gmra.mrb[40].mxu1 %vm466_vm4, %v14218_v48 }
0x1412   :  { %10909 = vpow2.f32 %v6178_v0  ;;  %v6163_v62 = vsub.f32 0.0, %v6147_v10  ;;  %v6091_v30 = vpop.f32.mrb[104].mxu0  ;;  %6380 = vmatprep.mubr.f32.mxu1 %v15188_v43  ;;  %v8530_v0 = vld [vmem:[%s15171_s22 + $0x60] sm:$0xff]  ;;  %v8531_v10 = vld [vmem:[%s15171_s22 + $0x68] sm:$0xff] }
0x1413   :  { %v6184_v26 = vmul.f32 1.442695, %v6162_v51  ;;  %v6150_v1 = vadd.f32 %v6131_v23, %v6091_v30  ;;  %v6093_v4 = vpop.f32.mrb[105].mxu0  ;;  %v8550_v51 = vld [vmem:[%s15172_s23 + $0x1c0] sm:$0xff]  ;;  %v8568_v30 = vld [vmem:[%s15172_s23 + $0x250] sm:$0xff] }
0x1414   :  { %v6186_v60 = vmul.f32 1.442695, %v6163_v62  ;;  %v6151_v7 = vadd.f32 %v6135_v31, %v6093_v4  ;;  %v8551_v62 = vld [vmem:[%s15172_s23 + $0x1c8] sm:$0xff] }
0x1415   :  { %10911 = vpow2.f32 %v6184_v26  ;;  %v6166_v12 = vsub.f32 0.0, %v6150_v1  ;;  %8513 = vmatmul.mubr.msk.f32.gmra.mrb[42].mxu1 %vm466_vm4, %v14226_v53  ;;  %v8569_v26 = vld [vmem:[%s15172_s23 + $0x258] sm:$0xff]  ;;  %v10431_v1 = vpack.c.bf16 %v8551_v62, %v8550_v51 }
0x1416   :  { %10913 = vpow2.f32 %v6186_v60  ;;  %v6167_v28 = vsub.f32 0.0, %v6151_v7  ;;  %v6097_v14 = vpop.f32.mrb[106].mxu0  ;;  %6386 = vmatprep.mubr.f32.mxu1 %v15188_v43  ;;  %v10433_v4 = vpack.c.bf16 %v8569_v26, %v8568_v30  ;;  %v8553_v60 = vld [vmem:[%s15172_s23 + $0x1d8] sm:$0xff]  ;;  %v8570_v7 = vld [vmem:[%s15172_s23 + $0x260] sm:$0xff] }
0x1417   :  { %v6192_v36 = vmul.f32 1.442695, %v6166_v12  ;;  %v6154_v57 = vadd.f32 %v6131_v23, %v6097_v14  ;;  %v6099_v17 = vpop.f32.mrb[107].mxu0  ;;  %v8571_v12 = vld [vmem:[%s15172_s23 + $0x268] sm:$0xff] }
0x1418   :  { %v6194_v18 = vmul.f32 1.442695, %v6167_v28  ;;  %v6155_v19 = vadd.f32 %v6135_v31, %v6099_v17  ;;  %v10437_v14 = vpack.c.bf16 %v8571_v12, %v8570_v7  ;;  %v8572_v17 = vld [vmem:[%s15172_s23 + $0x270] sm:$0xff] }
0x1419   :  { %10915 = vpow2.f32 %v6192_v36  ;;  %v6170_v44 = vsub.f32 0.0, %v6154_v57  ;;  %8514 = vmatmul.mubr.msk.f32.gmra.mrb[44].mxu1 %vm466_vm4, %v14234_v54  ;;  %v8554_v36 = vld [vmem:[%s15172_s23 + $0x1e0] sm:$0xff]  ;;  %v8555_v57 = vld [vmem:[%s15172_s23 + $0x1e8] sm:$0xff] }
0x141a   :  { %v6171_v42 = vsub.f32 0.0, %v6155_v19  ;;  %10917 = vpow2.f32 %v6194_v18  ;;  %6392 = vmatprep.mubr.f32.mxu1 %v15188_v43  ;;  %v10439_v18 = vpack.c.bf16 %v8555_v57, %v8554_v36 }
0x141b   :  { %v10908_v6 = vpop.eup %10907  ;;  %v6200_v24 = vmul.f32 1.442695, %v6170_v44  ;;  %v8556_v44 = vld [vmem:[%s15172_s23 + $0x1f0] sm:$0xff] }
0x141c   :  { %v10910_v27 = vpop.eup %10909  ;;  %v6206_v2 = vadd.f32 1.0, %v10908_v6  ;;  %v6202_v50 = vmul.f32 1.442695, %v6171_v42  ;;  %v8557_v42 = vld [vmem:[%s15172_s23 + $0x1f8] sm:$0xff] }
0x141d   :  { %v6207_v15 = vadd.f32 1.0, %v10910_v27  ;;  %10919 = vpow2.f32 %v6200_v24  ;;  %8515 = vmatmul.mubr.msk.f32.gmra.mrb[46].mxu1 %vm466_vm4, %v6258_v56  ;;  %v10443_v6 = vpack.c.bf16 %v8557_v42, %v8556_v44  ;;  %v8574_v24 = vld [vmem:[%s15172_s23 + $0x280] sm:$0xff] }
0x141e   :  { %10921 = vrcp.f32 %v6206_v2  ;;  %6463 = vmatprep.mubr.f32.mxu1 %v15188_v43  ;;  %v8558_v2 = vld [vmem:[%s15172_s23 + $0x200] sm:$0xff] }
0x141f   :  { %v10912_v45 = vpop.eup %10911  ;;  %10923 = vpow2.f32 %v6202_v50  ;;  %v8559_v50 = vld [vmem:[%s15172_s23 + $0x208] sm:$0xff] }
0x1420   :  { %v10914_v29 = vpop.eup %10913  ;;  %v6210_v3 = vadd.f32 1.0, %v10912_v45  ;;  %10925 = vrcp.f32 %v6207_v15  ;;  %v10447_v15 = vpack.c.bf16 %v8559_v50, %v8558_v2  ;;  %v8576_v45 = vld [vmem:[%s15172_s23 + $0x290] sm:$0xff]  ;;  %v8586_v50 = vld [vmem:[%s15172_s23 + $0x2e0] sm:$0xff] }
0x1421   :  { %v6211_v32 = vadd.f32 1.0, %v10914_v29  ;;  %v8577_v29 = vld [vmem:[%s15172_s23 + $0x298] sm:$0xff] }
0x1422   :  { %10927 = vrcp.f32 %v6210_v3  ;;  %v10449_v3 = vpack.c.bf16 %v8577_v29, %v8576_v45 }
0x1423   :  { %v10916_v9 = vpop.eup %10915  ;;  %10929 = vrcp.f32 %v6211_v32  ;;  %v8560_v32 = vld [vmem:[%s15172_s23 + $0x210] sm:$0xff] }
0x1424   :  { %v10918_v34 = vpop.eup %10917  ;;  %v6214_v35 = vadd.f32 1.0, %v10916_v9  ;;  %v8561_v9 = vld [vmem:[%s15172_s23 + $0x218] sm:$0xff] }
0x1425   :  { %v6215_v41 = vadd.f32 1.0, %v10918_v34  ;;  %v10451_v34 = vpack.c.bf16 %v8561_v9, %v8560_v32  ;;  %v8588_v32 = vld [vmem:[%s15172_s23 + $0x2f0] sm:$0xff]  ;;  %v8589_v9 = vld [vmem:[%s15172_s23 + $0x2f8] sm:$0xff] }
0x1426   :  { %10931 = vrcp.f32 %v6214_v35  ;;  %v8578_v35 = vld [vmem:[%s15172_s23 + $0x2a0] sm:$0xff] }
0x1427   :  { %v10920_v39 = vpop.eup %10919 }
0x1428   :  { %v6218_v22 = vadd.f32 1.0, %v10920_v39  ;;  %v10922_v37 = vpop.eup %10921  ;;  %v8579_v39 = vld [vmem:[%s15172_s23 + $0x2a8] sm:$0xff] }
0x1429   :  { %v10924_v38 = vpop.eup %10923 }
0x142a   :  { %10933 = vrcp.f32 %v6218_v22  ;;  %v10926_v23 = vpop.eup %10925  ;;  %v6219_v31 = vadd.f32 1.0, %v10924_v38  ;;  %v8562_v22 = vld [vmem:[%s15172_s23 + $0x220] sm:$0xff] }
0x142b   :  { %10935 = vrcp.f32 %v6215_v41  ;;  %v10453_v41 = vpack.c.bf16 %v8579_v39, %v8578_v35  ;;  %v10471_v35 = vpack.c.bf16 %v8589_v9, %v8588_v32 }
0x142c   :  { %v10928_v61 = vpop.eup %10927  ;;  %10937 = vrcp.f32 %v6219_v31  ;;  %v8581_v31 = vld [vmem:[%s15172_s23 + $0x2b8] sm:$0xff] }
0x142d   :  { %v10930_v58 = vpop.eup %10929  ;;  %v14244_v16 = vpack.c.bf16 %v10928_v61, %v10922_v37  ;;  %v8563_v37 = vld [vmem:[%s15172_s23 + $0x228] sm:$0xff] }
0x142e   :  { %v14246_v8 = vpack.c.bf16 %v10930_v58, %v10926_v23  ;;  %v10455_v38 = vpack.c.bf16 %v8563_v37, %v8562_v22  ;;  %v8580_v23 = vld [vmem:[%s15172_s23 + $0x2b0] sm:$0xff]  ;;  %v8591_v22 = vld [vmem:[%s15172_s23 + $0x308] sm:$0xff] }
0x142f   :  { %v10457_v61 = vpack.c.bf16 %v8581_v31, %v8580_v23  ;;  %v8564_v58 = vld [vmem:[%s15172_s23 + $0x230] sm:$0xff] }
0x1430   :  { %10400 = vmatprep.subr.bf16.mxu1 %v14246_v8  ;;  %v10932_v46 = vpop.eup %10931  ;;  %v8592_v31 = vld [vmem:[%s15172_s23 + $0x310] sm:$0xff] }
0x1431   :  { %10402 = vmatpush1.bf16.msra.mxu1 %v14244_v16 }
0x1434   :  { %v10934_v25 = vpop.eup %10933 }
0x1435   :  { %v14250_v21 = vpack.c.bf16 %v10934_v25, %v10932_v46  ;;  %v10936_v47 = vpop.eup %10935  ;;  %v8565_v46 = vld [vmem:[%s15172_s23 + $0x238] sm:$0xff] }
0x1436   :  { %v10938_v52 = vpop.eup %10937  ;;  %v10459_v25 = vpack.c.bf16 %v8565_v46, %v8564_v58 }
0x1437   :  { %v14252_v55 = vpack.c.bf16 %v10938_v52, %v10936_v47 }
0x1439   :  { %10405 = vmatprep.subr.msk.bf16.mxu1 %vm11634_vm3, %v14252_v55 }
0x143a   :  { %10408 = vmatpush1.bf16.msk.msra.mxu1 %vm11634_vm3, %v14250_v21 }
0x143b   :  { %10410 = vmatprep.subr.bf16.mxu1 %v14163_v40  ;;  %v8526_v40 = vld [vmem:[%s15171_s22 + $0x40] sm:$0xff] }
0x143d   :  { %8518 = vmatmul.mubr.msk.f32.vlgmr.msra.gmra.mrb[48].mxu1 %vm466_vm4, %v14188_v59  ;;  %v8567_v59 = vld [vmem:[%s15172_s23 + $0x248] sm:$0xff] }
0x143e   :  { %10412 = vmatpush1.bf16.msra.mxu1 %v14161_v5  ;;  %6469 = vmatprep.mubr.f32.mxu1 %v15188_v43  ;;  %v8525_v5 = vld [vmem:[%s15171_s22 + $0x38] sm:$0xff] }
0x143f   :  { %10415 = vmatprep.subr.msk.bf16.mxu1 %vm11634_vm3, %v14171_v13  ;;  %v8566_v13 = vld [vmem:[%s15172_s23 + $0x240] sm:$0xff] }
0x1441   :  { %8519 = vmatmul.mubr.msk.f32.gmra.mrb[50].mxu1 %vm466_vm4, %v14199_v20  ;;  %v8528_v20 = vld [vmem:[%s15171_s22 + $0x50] sm:$0xff] }
0x1442   :  { %10418 = vmatpush1.bf16.msk.msra.mxu1 %vm11634_vm3, %v14169_v63  ;;  %6475 = vmatprep.mubr.f32.mxu1 %v15188_v43  ;;  %v8527_v63 = vld [vmem:[%s15171_s22 + $0x48] sm:$0xff] }
0x1443   :  { %10420 = vmatprep.subr.bf16.mxu1 %v14246_v8 }
0x1445   :  { %8520 = vmatmul.mubr.msk.f32.gmra.mrb[52].mxu1 %vm466_vm4, %v14210_v49  ;;  %v10429_v49 = vpack.c.bf16 %v8567_v59, %v8566_v13 }
0x1446   :  { %6481 = vmatprep.mubr.f32.mxu1 %v15188_v43 }
0x1449   :  { %8521 = vmatmul.mubr.msk.f32.gmra.mrb[54].mxu1 %vm466_vm4, %v14218_v48  ;;  %v8529_v48 = vld [vmem:[%s15171_s22 + $0x58] sm:$0xff] }
0x144a   :  { %6487 = vmatprep.mubr.f32.mxu1 %v15188_v43 }
0x144d   :  { %8522 = vmatmul.mubr.msk.f32.gmra.mrb[56].mxu1 %vm466_vm4, %v14226_v53  ;;  %v8552_v53 = vld [vmem:[%s15172_s23 + $0x1d0] sm:$0xff] }
0x144e   :  { %6493 = vmatprep.mubr.f32.mxu1 %v15188_v43  ;;  %v10435_v28 = vpack.c.bf16 %v8553_v60, %v8552_v53 }
0x1451   :  { %8523 = vmatmul.mubr.msk.f32.gmra.mrb[58].mxu1 %vm466_vm4, %v14234_v54  ;;  %v8573_v54 = vld [vmem:[%s15172_s23 + $0x278] sm:$0xff] }
0x1452   :  { %6499 = vmatprep.mubr.f32.mxu1 %v15188_v43  ;;  %v10441_v19 = vpack.c.bf16 %v8573_v54, %v8572_v17 }
0x1455   :  { %8524 = vmatmul.mubr.msk.f32.gmra.mrb[60].mxu1 %vm466_vm4, %v6258_v56  ;;  %v8575_v56 = vld [vmem:[%s15172_s23 + $0x288] sm:$0xff] }
0x1456   :  { %6655 = vmatprep.mubr.f32.mxu1 %v15188_v43  ;;  %v10445_v27 = vpack.c.bf16 %v8575_v56, %v8574_v24  ;;  %v8584_v24 = vld [vmem:[%s15172_s23 + $0x2d0] sm:$0xff]  ;;  %v8585_v56 = vld [vmem:[%s15172_s23 + $0x2d8] sm:$0xff] }
0x1459   :  { %8534 = vmatmul.mubr.msk.f32.vlgmr.msra.gmra.mrb[62].mxu1 %vm466_vm4, %v8525_v5 }
0x145a   :  { %10422 = vmatpush1.bf16.msra.mxu1 %v14244_v16  ;;  %6661 = vmatprep.mubr.f32.mxu1 %v15188_v43 }
0x145b   :  { %10425 = vmatprep.subr.msk.bf16.mxu1 %vm11634_vm3, %v14252_v55 }
0x145d   :  { %8535 = vmatmul.mubr.msk.f32.gmra.mrb[64].mxu1 %vm466_vm4, %v8526_v40 }
0x145e   :  { %10428 = vmatpush1.bf16.msk.msra.mxu1 %vm11634_vm3, %v14250_v21  ;;  %6667 = vmatprep.mubr.f32.mxu1 %v15188_v43 }
0x145f   :  { %10430 = vmatprep.subr.bf16.mxu1 %v10429_v49 }
0x1461   :  { %8536 = vmatmul.mubr.msk.f32.gmra.mrb[66].mxu1 %vm466_vm4, %v8527_v63 }
0x1462   :  { %6673 = vmatprep.mubr.f32.mxu1 %v15188_v43 }
0x1465   :  { %8537 = vmatmul.mubr.msk.f32.gmra.mrb[68].mxu1 %vm466_vm4, %v8528_v20 }
0x1466   :  { %6679 = vmatprep.mubr.f32.mxu1 %v15188_v43 }
0x1469   :  { %8538 = vmatmul.mubr.msk.f32.gmra.mrb[70].mxu1 %vm466_vm4, %v8529_v48 }
0x146a   :  { %6685 = vmatprep.mubr.f32.mxu1 %v15188_v43 }
0x146d   :  { %8539 = vmatmul.mubr.msk.f32.gmra.mrb[72].mxu1 %vm466_vm4, %v8530_v0 }
0x146e   :  { %6691 = vmatprep.mubr.f32.mxu1 %v15188_v43 }
0x1471   :  { %8540 = vmatmul.mubr.msk.f32.gmra.mrb[74].mxu1 %vm466_vm4, %v8531_v10 }
0x1472   :  { %6762 = vmatprep.mubr.f32.mxu1 %v15188_v43 }
0x1475   :  { %8543 = vmatmul.mubr.msk.f32.vlgmr.msra.gmra.mrb[76].mxu1 %vm466_vm4, %v8525_v5 }
0x1476   :  { %6768 = vmatprep.mubr.f32.mxu1 %v15188_v43  ;;  %10432 = vmatpush3.bf16.msra.mxu1 %v10431_v1 }
0x1477   :  { %10434 = vmatprep.subr.bf16.mxu1 %v10433_v4 }
0x1479   :  { %8544 = vmatmul.mubr.msk.f32.gmra.mrb[78].mxu1 %vm466_vm4, %v8526_v40 }
0x147a   :  { %6774 = vmatprep.mubr.f32.mxu1 %v15188_v43  ;;  %10436 = vmatpush3.bf16.msra.mxu1 %v10435_v28 }
0x147b   :  { %10438 = vmatprep.subr.bf16.mxu1 %v10437_v14 }
0x147d   :  { %8545 = vmatmul.mubr.msk.f32.gmra.mrb[80].mxu1 %vm466_vm4, %v8527_v63 }
0x147e   :  { %6780 = vmatprep.mubr.f32.mxu1 %v15188_v43  ;;  %10440 = vmatpush3.bf16.msra.mxu1 %v10439_v18  ;;  %v8582_v18 = vld [vmem:[%s15172_s23 + $0x2c0] sm:$0xff] }
0x147f   :  { %10442 = vmatprep.subr.bf16.mxu1 %v10441_v19  ;;  %v8583_v19 = vld [vmem:[%s15172_s23 + $0x2c8] sm:$0xff] }
0x1480   :  { %v10462_v42 = vpack.c.bf16 %v8583_v19, %v8582_v18  ;;  %v8594_v18 = vld [vmem:[%s15172_s23 + $0x320] sm:$0xff]  ;;  %v8595_v19 = vld [vmem:[%s15172_s23 + $0x328] sm:$0xff] }
0x1481   :  { %8546 = vmatmul.mubr.msk.f32.gmra.mrb[82].mxu1 %vm466_vm4, %v8528_v20 }
0x1482   :  { %6786 = vmatprep.mubr.f32.mxu1 %v15188_v43  ;;  %10444 = vmatpush3.bf16.msra.mxu1 %v10443_v6 }
0x1483   :  { %10446 = vmatprep.subr.bf16.mxu1 %v10445_v27  ;;  %v10465_v27 = vpack.c.bf16 %v8585_v56, %v8584_v24  ;;  %v14547_v24 = vld [vmem:[%s15171_s22 + $0x70] sm:$0xff] }
0x1484   :  { %v8596_v56 = vld [vmem:[%s15172_s23 + $0x330] sm:$0xff]  ;;  %8629 = vmatmul.mubr.msk.f32.vlgmr.msra.gmra.mrb[108].mxu0 %vm466_vm4, %v14547_v24 }
0x1485   :  { %8547 = vmatmul.mubr.msk.f32.gmra.mrb[84].mxu1 %vm466_vm4, %v8529_v48  ;;  %7403 = vmatprep.mubr.f32.mxu0 %v15188_v43 }
0x1486   :  { %6792 = vmatprep.mubr.f32.mxu1 %v15188_v43  ;;  %10448 = vmatpush3.bf16.msra.mxu1 %v10447_v15  ;;  %v8587_v15 = vld [vmem:[%s15172_s23 + $0x2e8] sm:$0xff] }
0x1487   :  { %10450 = vmatprep.subr.bf16.mxu1 %v10449_v3  ;;  %v10468_v29 = vpack.c.bf16 %v8587_v15, %v8586_v50 }
0x1489   :  { %8548 = vmatmul.mubr.msk.f32.gmra.mrb[86].mxu1 %vm466_vm4, %v8530_v0 }
0x148a   :  { %6798 = vmatprep.mubr.f32.mxu1 %v15188_v43  ;;  %10452 = vmatpush3.bf16.msra.mxu1 %v10451_v34 }
0x148b   :  { %10454 = vmatprep.subr.bf16.mxu1 %v10453_v41  ;;  %v8590_v41 = vld [vmem:[%s15172_s23 + $0x300] sm:$0xff] }
0x148d   :  { %8549 = vmatmul.mubr.msk.f32.gmra.mrb[88].mxu1 %vm466_vm4, %v8531_v10 }
0x148e   :  { %10456 = vmatpush3.bf16.msra.mxu1 %v10455_v38  ;;  %v10474_v38 = vpack.c.bf16 %v8591_v22, %v8590_v41  ;;  %v8601_v41 = vld [vmem:[%s15172_s23 + $0x358] sm:$0xff] }
0x148f   :  { %10458 = vmatprep.subr.bf16.mxu1 %v10457_v61  ;;  %v8593_v61 = vld [vmem:[%s15172_s23 + $0x318] sm:$0xff] }
0x1490   :  { %v10477_v46 = vpack.c.bf16 %v8593_v61, %v8592_v31  ;;  %v8602_v31 = vld [vmem:[%s15172_s23 + $0x360] sm:$0xff]  ;;  %v8603_v61 = vld [vmem:[%s15172_s23 + $0x368] sm:$0xff] }
0x1492   :  { %10460 = vmatpush3.bf16.msra.mxu1 %v10459_v25 }
0x1493   :  { %10461 = vmatprep.subr.bf16.mxu1 %v11264_v11 }
0x14d8   :  { %v14441_v47 = vpop.f32.mrb[34].mxu1 }
0x14d9   :  { %v14443_v52 = vpop.f32.mrb[35].mxu1 }
0x14dc   :  { %v14445_v5 = vpop.f32.mrb[36].mxu1 }
0x14dd   :  { %v14447_v40 = vpop.f32.mrb[37].mxu1 }
0x14e0   :  { %v14449_v63 = vpop.f32.mrb[38].mxu1 }
0x14e1   :  { %v14451_v13 = vpop.f32.mrb[39].mxu1 }
0x14e4   :  { %v14453_v59 = vpop.f32.mrb[40].mxu1 }
0x14e5   :  { %v14455_v20 = vpop.f32.mrb[41].mxu1 }
0x14e8   :  { %v14457_v49 = vpop.f32.mrb[42].mxu1 }
0x14e9   :  { %v14459_v48 = vpop.f32.mrb[43].mxu1 }
0x14ec   :  { %v14461_v0 = vpop.f32.mrb[44].mxu1 }
0x14ed   :  { %v14463_v10 = vpop.f32.mrb[45].mxu1 }
0x14f0   :  { %v14465_v51 = vpop.f32.mrb[46].mxu1 }
0x14f1   :  { %v14467_v62 = vpop.f32.mrb[47].mxu1 }
0x1510   :  { %v14469_v30 = vpop.f32.mrb[48].mxu1 }
0x1511   :  { %v14471_v26 = vpop.f32.mrb[49].mxu1 }
0x1514   :  { %v14473_v1 = vpop.f32.mrb[50].mxu1 }
0x1515   :  { %v14475_v4 = vpop.f32.mrb[51].mxu1 }
0x1518   :  { %v14477_v53 = vpop.f32.mrb[52].mxu1 }
0x1519   :  { %v14479_v60 = vpop.f32.mrb[53].mxu1 }
0x151c   :  { %v14481_v7 = vpop.f32.mrb[54].mxu1 }
0x151d   :  { %v14483_v12 = vpop.f32.mrb[55].mxu1 }
0x1520   :  { %v14485_v28 = vpop.f32.mrb[56].mxu1 }
0x1521   :  { %v14487_v14 = vpop.f32.mrb[57].mxu1 }
0x1524   :  { %v14489_v36 = vpop.f32.mrb[58].mxu1 }
0x1525   :  { %v14491_v57 = vpop.f32.mrb[59].mxu1 }
0x1528   :  { %v14493_v17 = vpop.f32.mrb[60].mxu1 }
0x1529   :  { %v14495_v54 = vpop.f32.mrb[61].mxu1 }
0x152c   :  { %v6657_v44 = vpop.f32.mrb[62].mxu1 }
0x152d   :  { %v6659_v6 = vpop.f32.mrb[63].mxu1 }
0x152e   :  { %6947 = vmatprep.mubr.f32.mxu1 %v6659_v6 }
0x152f   :  { %6948 = vmatmul.mubr.f32.vlgmr.msra.gmra.mrb[90].mxu1 %v6657_v44 }
0x1530   :  { %10463 = vmatpush1.bf16.msra.mxu1 %v10462_v42  ;;  %v6663_v2 = vpop.f32.mrb[64].mxu1  ;;  %v10480_v42 = vpack.c.bf16 %v8595_v19, %v8594_v18  ;;  %v14616_v18 = vld [vmem:[%s15171_s22 + $0x90] sm:$0xff] }
0x1531   :  { %10464 = vmatprep.subr.bf16.mxu1 %v11264_v11  ;;  %v6665_v45 = vpop.f32.mrb[65].mxu1  ;;  %v8604_v19 = vld [vmem:[%s15172_s23 + $0x370] sm:$0xff] }
0x1532   :  { %6952 = vmatprep.mubr.f32.mxu1 %v6665_v45  ;;  %v14564_v45 = vld [vmem:[%s15171_s22 + $0x78] sm:$0xff] }
0x1533   :  { %6953 = vmatmul.mubr.f32.gmra.mrb[92].mxu1 %v6663_v2  ;;  %8630 = vmatmul.mubr.msk.f32.gmra.mrb[110].mxu0 %vm466_vm4, %v14564_v45 }
0x1534   :  { %10466 = vmatpush1.bf16.msra.mxu1 %v10465_v27  ;;  %v6669_v3 = vpop.f32.mrb[66].mxu1  ;;  %v8597_v27 = vld [vmem:[%s15172_s23 + $0x338] sm:$0xff]  ;;  %7409 = vmatprep.mubr.f32.mxu0 %v15188_v43 }
0x1535   :  { %10467 = vmatprep.subr.bf16.mxu1 %v11264_v11  ;;  %v6671_v34 = vpop.f32.mrb[67].mxu1  ;;  %v10483_v50 = vpack.c.bf16 %v8597_v27, %v8596_v56  ;;  %v6523_v56 = vld [vmem:[%s15172_s23 + $0x88] sm:$0xff] }
0x1536   :  { %6957 = vmatprep.mubr.f32.mxu1 %v6671_v34 }
0x1537   :  { %6958 = vmatmul.mubr.f32.gmra.mrb[94].mxu1 %v6669_v3  ;;  %v8599_v3 = vld [vmem:[%s15172_s23 + $0x348] sm:$0xff] }
0x1538   :  { %10469 = vmatpush1.bf16.msra.mxu1 %v10468_v29  ;;  %v6675_v39 = vpop.f32.mrb[68].mxu1  ;;  %v8598_v29 = vld [vmem:[%s15172_s23 + $0x340] sm:$0xff] }
0x1539   :  { %10470 = vmatprep.subr.bf16.mxu1 %v11264_v11  ;;  %v6677_v37 = vpop.f32.mrb[69].mxu1  ;;  %v10486_v9 = vpack.c.bf16 %v8599_v3, %v8598_v29  ;;  %v6506_v3 = vld [vmem:[%s15172_s23] sm:$0xff] }
0x153a   :  { %6962 = vmatprep.mubr.f32.mxu1 %v6677_v37 }
0x153b   :  { %6963 = vmatmul.mubr.f32.gmra.mrb[96].mxu1 %v6675_v39  ;;  %v8600_v39 = vld [vmem:[%s15172_s23 + $0x350] sm:$0xff] }
0x153c   :  { %10472 = vmatpush1.bf16.msra.mxu1 %v10471_v35  ;;  %v6681_v23 = vpop.f32.mrb[70].mxu1  ;;  %v14582_v35 = vld [vmem:[%s15171_s22 + $0x80] sm:$0xff]  ;;  %v10489_v37 = vpack.c.bf16 %v8601_v41, %v8600_v39  ;;  %v6524_v39 = vld [vmem:[%s15172_s23 + $0x90] sm:$0xff]  ;;  %v6525_v41 = vld [vmem:[%s15172_s23 + $0x98] sm:$0xff] }
0x153d   :  { %10473 = vmatprep.subr.bf16.mxu1 %v11264_v11  ;;  %v6683_v58 = vpop.f32.mrb[71].mxu1  ;;  %8631 = vmatmul.mubr.msk.f32.gmra.mrb[112].mxu0 %vm466_vm4, %v14582_v35 }
0x153e   :  { %6967 = vmatprep.mubr.f32.mxu1 %v6683_v58  ;;  %7415 = vmatprep.mubr.f32.mxu0 %v15188_v43 }
0x153f   :  { %6968 = vmatmul.mubr.f32.gmra.mrb[98].mxu1 %v6681_v23  ;;  %v14599_v23 = vld [vmem:[%s15171_s22 + $0x88] sm:$0xff] }
0x1540   :  { %10475 = vmatpush1.bf16.msra.mxu1 %v10474_v38  ;;  %v6687_v25 = vpop.f32.mrb[72].mxu1 }
0x1541   :  { %10476 = vmatprep.subr.bf16.mxu1 %v11264_v11  ;;  %v6689_v44 = vpop.f32.mrb[73].mxu1  ;;  %8632 = vmatmul.mubr.msk.f32.gmra.mrb[114].mxu0 %vm466_vm4, %v14599_v23 }
0x1542   :  { %6972 = vmatprep.mubr.f32.mxu1 %v6689_v44  ;;  %7421 = vmatprep.mubr.f32.mxu0 %v15188_v43  ;;  %v8605_v44 = vld [vmem:[%s15172_s23 + $0x378] sm:$0xff] }
0x1543   :  { %6973 = vmatmul.mubr.f32.gmra.mrb[100].mxu1 %v6687_v25  ;;  %v10495_v27 = vpack.c.bf16 %v8605_v44, %v8604_v19  ;;  %v6508_v19 = vld [vmem:[%s15172_s23 + $0x10] sm:$0xff]  ;;  %v6509_v44 = vld [vmem:[%s15172_s23 + $0x18] sm:$0xff] }
0x1544   :  { %10478 = vmatpush1.bf16.msra.mxu1 %v10477_v46  ;;  %v6693_v6 = vpop.f32.mrb[74].mxu1  ;;  %v10492_v46 = vpack.c.bf16 %v8603_v61, %v8602_v31  ;;  %v14660_v61 = vld [vmem:[%s15171_s22 + $0xa0] sm:$0xff] }
0x1545   :  { %10479 = vmatprep.subr.bf16.mxu1 %v11264_v11  ;;  %v6695_v2 = vpop.f32.mrb[75].mxu1  ;;  %8633 = vmatmul.mubr.msk.f32.gmra.mrb[116].mxu0 %vm466_vm4, %v14616_v18 }
0x1546   :  { %6977 = vmatprep.mubr.f32.mxu1 %v6695_v2  ;;  %7427 = vmatprep.mubr.f32.mxu0 %v15188_v43 }
0x1547   :  { %6978 = vmatmul.mubr.f32.gmra.mrb[102].mxu1 %v6693_v6  ;;  %v6522_v6 = vld [vmem:[%s15172_s23 + $0x80] sm:$0xff] }
0x1548   :  { %10481 = vmatpush1.bf16.msra.mxu1 %v10480_v42  ;;  %v14559_v15 = vpop.f32.mrb[76].mxu1  ;;  %v10497_v29 = vpack.c.bf16 %v6523_v56, %v6522_v6  ;;  %v6526_v56 = vld [vmem:[%s15172_s23 + $0xa0] sm:$0xff] }
0x1549   :  { %10482 = vmatprep.subr.bf16.mxu1 %v11264_v11  ;;  %v6766_v32 = vpop.f32.mrb[77].mxu1 }
0x154a   :  { %8606 = vmatprep.mubr.msk.f32.mxu1 %vm1905_vm5, %v6766_v32  ;;  %v6507_v32 = vld [vmem:[%s15172_s23 + $0x8] sm:$0xff] }
0x154c   :  { %10484 = vmatpush1.bf16.msra.mxu1 %v10483_v50  ;;  %v14577_v34 = vpop.f32.mrb[78].mxu1  ;;  %v14639_v50 = vld [vmem:[%s15171_s22 + $0x98] sm:$0xff] }
0x154d   :  { %10485 = vmatprep.subr.bf16.mxu1 %v11264_v11  ;;  %v6772_v22 = vpop.f32.mrb[79].mxu1  ;;  %8634 = vmatmul.mubr.msk.f32.gmra.mrb[118].mxu0 %vm466_vm4, %v14639_v50 }
0x154e   :  { %7433 = vmatprep.mubr.f32.mxu0 %v15188_v43 }
0x1550   :  { %10487 = vmatpush1.bf16.msra.mxu1 %v10486_v9  ;;  %v14594_v38 = vpop.f32.mrb[80].mxu1 }
0x1551   :  { %10488 = vmatprep.subr.bf16.mxu1 %v11264_v11  ;;  %v6778_v58 = vpop.f32.mrb[81].mxu1  ;;  %8635 = vmatmul.mubr.msk.f32.gmra.mrb[120].mxu0 %vm466_vm4, %v14660_v61 }
0x1554   :  { %10490 = vmatpush1.bf16.msra.mxu1 %v10489_v37  ;;  %v14611_v25 = vpop.f32.mrb[82].mxu1  ;;  %v10499_v37 = vpack.c.bf16 %v6507_v32, %v6506_v3 }
0x1555   :  { %10491 = vmatprep.subr.bf16.mxu1 %v11264_v11  ;;  %v6784_v42 = vpop.f32.mrb[83].mxu1 }
0x1558   :  { %10493 = vmatpush1.bf16.msra.mxu1 %v10492_v46  ;;  %v14634_v2 = vpop.f32.mrb[84].mxu1  ;;  %v10501_v46 = vpack.c.bf16 %v6525_v41, %v6524_v39  ;;  %v6510_v39 = vld [vmem:[%s15172_s23 + $0x20] sm:$0xff]  ;;  %v6511_v41 = vld [vmem:[%s15172_s23 + $0x28] sm:$0xff] }
0x1559   :  { %10494 = vmatprep.subr.bf16.mxu1 %v11264_v11  ;;  %v6790_v9 = vpop.f32.mrb[85].mxu1 }
0x155c   :  { %10496 = vmatpush1.bf16.msra.mxu1 %v10495_v27  ;;  %v6794_v31 = vpop.f32.mrb[86].mxu1  ;;  %v6527_v27 = vld [vmem:[%s15172_s23 + $0xa8] sm:$0xff] }
0x155d   :  { %10498 = vmatprep.subr.bf16.mxu1 %v10497_v29  ;;  %v6796_v6 = vpop.f32.mrb[87].mxu1  ;;  %v10503_v29 = vpack.c.bf16 %v6509_v44, %v6508_v19  ;;  %v10505_v32 = vpack.c.bf16 %v6527_v27, %v6526_v56  ;;  %v6512_v19 = vld [vmem:[%s15172_s23 + $0x30] sm:$0xff]  ;;  %v6513_v44 = vld [vmem:[%s15172_s23 + $0x38] sm:$0xff]  ;;  %v6530_v56 = vld [vmem:[%s15172_s23 + $0xc0] sm:$0xff] }
0x155f   :  { %7048 = vmatmul.mubr.f32.vlgmr.msra.gmra.mrb[104].mxu1 %v14559_v15  ;;  %v6528_v15 = vld [vmem:[%s15172_s23 + $0xb0] sm:$0xff] }
0x1560   :  { %10500 = vmatpush3.bf16.msra.mxu1 %v10499_v37  ;;  %8607 = vmatprep.mubr.msk.f32.mxu1 %vm1905_vm5, %v6772_v22  ;;  %v6800_v3 = vpop.f32.mrb[88].mxu1  ;;  %v6529_v22 = vld [vmem:[%s15172_s23 + $0xb8] sm:$0xff]  ;;  %v10507_v37 = vpack.c.bf16 %v6511_v41, %v6510_v39  ;;  %v6532_v39 = vld [vmem:[%s15172_s23 + $0xd0] sm:$0xff] }
0x1561   :  { %10502 = vmatprep.subr.bf16.mxu1 %v10501_v46  ;;  %v6802_v43 = vpop.f32.mrb[89].mxu1  ;;  %v10509_v46 = vpack.c.bf16 %v6529_v22, %v6528_v15  ;;  %v6516_v15 = vld [vmem:[%s15172_s23 + $0x50] sm:$0xff]  ;;  %v6517_v22 = vld [vmem:[%s15172_s23 + $0x58] sm:$0xff] }
0x1563   :  { %7053 = vmatmul.mubr.f32.gmra.mrb[106].mxu1 %v14577_v34  ;;  %v6531_v34 = vld [vmem:[%s15172_s23 + $0xc8] sm:$0xff] }
0x1564   :  { %10504 = vmatpush3.bf16.msra.mxu1 %v10503_v29  ;;  %8608 = vmatprep.mubr.msk.f32.mxu1 %vm1905_vm5, %v6778_v58  ;;  %v10511_v58 = vpack.c.bf16 %v6513_v44, %v6512_v19  ;;  %v10513_v27 = vpack.c.bf16 %v6531_v34, %v6530_v56  ;;  %v6514_v29 = vld [vmem:[%s15172_s23 + $0x40] sm:$0xff]  ;;  %v6519_v44 = vld [vmem:[%s15172_s23 + $0x68] sm:$0xff]  ;;  %v6536_v56 = vld [vmem:[%s15172_s23 + $0xf0] sm:$0xff] }
0x1565   :  { %10506 = vmatprep.subr.bf16.mxu1 %v10505_v32  ;;  %v6515_v32 = vld [vmem:[%s15172_s23 + $0x48] sm:$0xff]  ;;  %v6518_v19 = vld [vmem:[%s15172_s23 + $0x60] sm:$0xff] }
0x1567   :  { %7058 = vmatmul.mubr.f32.gmra.mrb[108].mxu1 %v14594_v38  ;;  %v6533_v38 = vld [vmem:[%s15172_s23 + $0xd8] sm:$0xff] }
0x1568   :  { %10508 = vmatpush3.bf16.msra.mxu1 %v10507_v37  ;;  %8609 = vmatprep.mubr.msk.f32.mxu1 %vm1905_vm5, %v6784_v42  ;;  %v10515_v42 = vpack.c.bf16 %v6515_v32, %v6514_v29  ;;  %v10517_v41 = vpack.c.bf16 %v6533_v38, %v6532_v39  ;;  %v6534_v37 = vld [vmem:[%s15172_s23 + $0xe0] sm:$0xff] }
0x1569   :  { %10510 = vmatprep.subr.bf16.mxu1 %v10509_v46  ;;  %v6542_v38 = vld [vmem:[%s15172_s23 + $0x120] sm:$0xff] }
0x156b   :  { %7063 = vmatmul.mubr.f32.gmra.mrb[110].mxu1 %v14611_v25  ;;  %v6535_v25 = vld [vmem:[%s15172_s23 + $0xe8] sm:$0xff] }
0x156c   :  { %10512 = vmatpush3.bf16.msra.mxu1 %v10511_v58  ;;  %8610 = vmatprep.mubr.msk.f32.mxu1 %vm1905_vm5, %v6790_v9  ;;  %v10519_v9 = vpack.c.bf16 %v6517_v22, %v6516_v15  ;;  %v10521_v46 = vpack.c.bf16 %v6535_v25, %v6534_v37  ;;  %v6520_v58 = vld [vmem:[%s15172_s23 + $0x70] sm:$0xff]  ;;  %v6547_v15 = vld [vmem:[%s15172_s23 + $0x148] sm:$0xff]  ;;  %v6549_v22 = vld [vmem:[%s15172_s23 + $0x158] sm:$0xff] }
0x156d   :  { %10514 = vmatprep.subr.bf16.mxu1 %v10513_v27  ;;  %v6521_v27 = vld [vmem:[%s15172_s23 + $0x78] sm:$0xff]  ;;  %v6551_v37 = vld [vmem:[%s15172_s23 + $0x168] sm:$0xff] }
0x156e   :  { %v10527_v29 = vpack.c.bf16 %v6521_v27, %v6520_v58  ;;  %v6553_v25 = vld [vmem:[%s15172_s23 + $0x178] sm:$0xff]  ;;  %v8685_v27 = vld [vmem:[%s15172_s23 + $0x4c0] sm:$0xff] }
0x156f   :  { %7068 = vmatmul.mubr.f32.gmra.mrb[112].mxu1 %v14634_v2  ;;  %v6537_v2 = vld [vmem:[%s15172_s23 + $0xf8] sm:$0xff] }
0x1570   :  { %10516 = vmatpush3.bf16.msra.mxu1 %v10515_v42  ;;  %8611 = vmatprep.mubr.msk.f32.mxu1 %vm1905_vm5, %v6796_v6  ;;  %v10523_v6 = vpack.c.bf16 %v6519_v44, %v6518_v19  ;;  %v10525_v34 = vpack.c.bf16 %v6537_v2, %v6536_v56  ;;  %v6543_v42 = vld [vmem:[%s15172_s23 + $0x128] sm:$0xff]  ;;  %v6558_v44 = vld [vmem:[%s15172_s23 + $0x1a0] sm:$0xff] }
0x1571   :  { %10518 = vmatprep.subr.bf16.mxu1 %v10517_v41  ;;  %v6545_v41 = vld [vmem:[%s15172_s23 + $0x138] sm:$0xff]  ;;  %v6559_v56 = vld [vmem:[%s15172_s23 + $0x1a8] sm:$0xff] }
0x1572   :  { %v10560_v2 = vpack.c.bf16 %v6559_v56, %v6558_v44 }
0x1573   :  { %7073 = vmatmul.mubr.f32.gmra.mrb[114].mxu1 %v6794_v31  ;;  %v6539_v31 = vld [vmem:[%s15172_s23 + $0x108] sm:$0xff] }
0x1574   :  { %10520 = vmatpush3.bf16.msra.mxu1 %v10519_v9  ;;  %8612 = vmatprep.mubr.msk.f32.mxu1 %vm1905_vm5, %v6802_v43  ;;  %v6538_v43 = vld [vmem:[%s15172_s23 + $0x100] sm:$0xff]  ;;  %v6555_v9 = vld [vmem:[%s15172_s23 + $0x188] sm:$0xff] }
0x1575   :  { %10522 = vmatprep.subr.bf16.mxu1 %v10521_v46  ;;  %v10530_v32 = vpack.c.bf16 %v6539_v31, %v6538_v43  ;;  %v8665_v31 = vld [vmem:[%s15172_s23 + $0x420] sm:$0xff] }
0x1577   :  { %7078 = vmatmul.mubr.f32.gmra.mrb[116].mxu1 %v6800_v3  ;;  %v6540_v3 = vld [vmem:[%s15172_s23 + $0x110] sm:$0xff] }
0x1578   :  { %10524 = vmatpush3.bf16.msra.mxu1 %v10523_v6  ;;  %7168 = vmatprep.mubr.f32.mxu1 %v14443_v52  ;;  %v6541_v52 = vld [vmem:[%s15172_s23 + $0x118] sm:$0xff]  ;;  %v6560_v6 = vld [vmem:[%s15172_s23 + $0x1b0] sm:$0xff] }
0x1579   :  { %10526 = vmatprep.subr.bf16.mxu1 %v10525_v34  ;;  %v10533_v39 = vpack.c.bf16 %v6541_v52, %v6540_v3  ;;  %v6561_v34 = vld [vmem:[%s15172_s23 + $0x1b8] sm:$0xff]  ;;  %v8649_v52 = vld [vmem:[%s15172_s23 + $0x3a0] sm:$0xff] }
0x157a   :  { %v10563_v58 = vpack.c.bf16 %v6561_v34, %v6560_v6  ;;  %v8691_v6 = vld [vmem:[%s15172_s23 + $0x4f0] sm:$0xff]  ;;  %v8692_v34 = vld [vmem:[%s15172_s23 + $0x4f8] sm:$0xff] }
0x157c   :  { %10528 = vmatpush3.bf16.msra.mxu1 %v10527_v29  ;;  %v8686_v29 = vld [vmem:[%s15172_s23 + $0x4c8] sm:$0xff] }
0x157d   :  { %10529 = vmatprep.subr.bf16.mxu1 %v11264_v11  ;;  %v10630_v43 = vpack.c.bf16 %v8686_v29, %v8685_v27  ;;  %v8675_v27 = vld [vmem:[%s15172_s23 + $0x470] sm:$0xff]  ;;  %v8676_v29 = vld [vmem:[%s15172_s23 + $0x478] sm:$0xff] }
0x157f   :  { %7169 = vmatmul.mubr.f32.vlgmr.msra.gmra.mrb[118].mxu1 %v14441_v47  ;;  %v10536_v47 = vpack.c.bf16 %v6543_v42, %v6542_v38 }
0x1580   :  { %7173 = vmatprep.mubr.f32.mxu1 %v14447_v40  ;;  %10531 = vmatpush1.bf16.msra.mxu1 %v10530_v32  ;;  %v6544_v40 = vld [vmem:[%s15172_s23 + $0x130] sm:$0xff]  ;;  %v8666_v32 = vld [vmem:[%s15172_s23 + $0x428] sm:$0xff] }
0x1581   :  { %10532 = vmatprep.subr.bf16.mxu1 %v11264_v11  ;;  %v10593_v3 = vpack.c.bf16 %v8666_v32, %v8665_v31  ;;  %v8659_v31 = vld [vmem:[%s15172_s23 + $0x3f0] sm:$0xff]  ;;  %v8660_v32 = vld [vmem:[%s15172_s23 + $0x3f8] sm:$0xff] }
0x1583   :  { %7174 = vmatmul.mubr.f32.gmra.mrb[120].mxu1 %v14445_v5  ;;  %v10539_v5 = vpack.c.bf16 %v6545_v41, %v6544_v40  ;;  %v8687_v40 = vld [vmem:[%s15172_s23 + $0x4d0] sm:$0xff]  ;;  %v8688_v41 = vld [vmem:[%s15172_s23 + $0x4d8] sm:$0xff] }
0x1584   :  { %7178 = vmatprep.mubr.f32.mxu1 %v14451_v13  ;;  %10534 = vmatpush1.bf16.msra.mxu1 %v10533_v39  ;;  %v6546_v13 = vld [vmem:[%s15172_s23 + $0x140] sm:$0xff]  ;;  %v8650_v39 = vld [vmem:[%s15172_s23 + $0x3a8] sm:$0xff] }
0x1585   :  { %10535 = vmatprep.subr.bf16.mxu1 %v11264_v11  ;;  %v10595_v42 = vpack.c.bf16 %v8650_v39, %v8649_v52  ;;  %v10615_v52 = vpack.c.bf16 %v8660_v32, %v8659_v31 }
0x1587   :  { %7179 = vmatmul.mubr.f32.gmra.mrb[122].mxu1 %v14449_v63  ;;  %v10542_v63 = vpack.c.bf16 %v6547_v15, %v6546_v13  ;;  %v10633_v13 = vpack.c.bf16 %v8688_v41, %v8687_v40  ;;  %v8667_v15 = vld [vmem:[%s15172_s23 + $0x430] sm:$0xff]  ;;  %v7399_v41 = vpop.f32.mrb[108].mxu0 }
0x1588   :  { %7183 = vmatprep.mubr.f32.mxu1 %v14455_v20  ;;  %10537 = vmatpush1.bf16.msra.mxu1 %v10536_v47  ;;  %v6548_v20 = vld [vmem:[%s15172_s23 + $0x150] sm:$0xff] }
0x1589   :  { %10538 = vmatprep.subr.bf16.mxu1 %v11264_v11 }
0x158b   :  { %7184 = vmatmul.mubr.f32.gmra.mrb[124].mxu1 %v14453_v59  ;;  %v10545_v59 = vpack.c.bf16 %v6549_v22, %v6548_v20  ;;  %v8651_v22 = vld [vmem:[%s15172_s23 + $0x3b0] sm:$0xff] }
0x158c   :  { %7188 = vmatprep.mubr.f32.mxu1 %v14459_v48  ;;  %10540 = vmatpush1.bf16.msra.mxu1 %v10539_v5  ;;  %v6550_v48 = vld [vmem:[%s15172_s23 + $0x160] sm:$0xff] }
0x158d   :  { %10541 = vmatprep.subr.bf16.mxu1 %v11264_v11 }
0x158f   :  { %7189 = vmatmul.mubr.f32.gmra.mrb[126].mxu1 %v14457_v49  ;;  %v10548_v49 = vpack.c.bf16 %v6551_v37, %v6550_v48 }
0x1590   :  { %7193 = vmatprep.mubr.f32.mxu1 %v14463_v10  ;;  %10543 = vmatpush1.bf16.msra.mxu1 %v10542_v63  ;;  %v6552_v10 = vld [vmem:[%s15172_s23 + $0x170] sm:$0xff]  ;;  %v8668_v63 = vld [vmem:[%s15172_s23 + $0x438] sm:$0xff] }
0x1591   :  { %10544 = vmatprep.subr.bf16.mxu1 %v11264_v11  ;;  %v10597_v20 = vpack.c.bf16 %v8668_v63, %v8667_v15 }
0x1593   :  { %7194 = vmatmul.mubr.f32.gmra.mrb[128].mxu1 %v14461_v0  ;;  %v10551_v0 = vpack.c.bf16 %v6553_v25, %v6552_v10  ;;  %v8689_v10 = vld [vmem:[%s15172_s23 + $0x4e0] sm:$0xff]  ;;  %v8690_v25 = vld [vmem:[%s15172_s23 + $0x4e8] sm:$0xff] }
0x1594   :  { %7198 = vmatprep.mubr.f32.mxu1 %v14467_v62  ;;  %10546 = vmatpush1.bf16.msra.mxu1 %v10545_v59  ;;  %v6554_v62 = vld [vmem:[%s15172_s23 + $0x180] sm:$0xff]  ;;  %v8652_v59 = vld [vmem:[%s15172_s23 + $0x3b8] sm:$0xff] }
0x1595   :  { %10547 = vmatprep.subr.bf16.mxu1 %v11264_v11  ;;  %v10554_v46 = vpack.c.bf16 %v6555_v9, %v6554_v62  ;;  %v10599_v37 = vpack.c.bf16 %v8652_v59, %v8651_v22  ;;  %v10636_v62 = vpack.c.bf16 %v8690_v25, %v8689_v10  ;;  %v8669_v9 = vld [vmem:[%s15172_s23 + $0x440] sm:$0xff]  ;;  %v8700_v22 = vld [vmem:[%s15172_s23 + $0x538] sm:$0xff] }
0x1597   :  { %7199 = vmatmul.mubr.f32.gmra.mrb[130].mxu1 %v14465_v51  ;;  %v6556_v51 = vld [vmem:[%s15172_s23 + $0x190] sm:$0xff] }
0x1598   :  { %10549 = vmatpush1.bf16.msra.mxu1 %v10548_v49  ;;  %8613 = vmatprep.mubr.msk.f32.mxu1 %vm1905_vm5, %v14471_v26  ;;  %v6557_v26 = vld [vmem:[%s15172_s23 + $0x198] sm:$0xff] }
0x1599   :  { %10550 = vmatprep.subr.bf16.mxu1 %v11264_v11  ;;  %v10557_v19 = vpack.c.bf16 %v6557_v26, %v6556_v51  ;;  %v8653_v26 = vld [vmem:[%s15172_s23 + $0x3c0] sm:$0xff] }
0x159c   :  { %10552 = vmatpush1.bf16.msra.mxu1 %v10551_v0 }
0x159d   :  { %10553 = vmatprep.subr.bf16.mxu1 %v11264_v11 }
0x15a0   :  { %10555 = vmatpush1.bf16.msra.mxu1 %v10554_v46  ;;  %v8670_v46 = vld [vmem:[%s15172_s23 + $0x448] sm:$0xff] }
0x15a1   :  { %10556 = vmatprep.subr.bf16.mxu1 %v11264_v11  ;;  %v10601_v51 = vpack.c.bf16 %v8670_v46, %v8669_v9 }
0x15a4   :  { %10558 = vmatpush1.bf16.msra.mxu1 %v10557_v19  ;;  %v8654_v19 = vld [vmem:[%s15172_s23 + $0x3c8] sm:$0xff] }
0x15a5   :  { %10559 = vmatprep.subr.bf16.mxu1 %v11264_v11  ;;  %v10603_v56 = vpack.c.bf16 %v8654_v19, %v8653_v26 }
0x15a8   :  { %10561 = vmatpush1.bf16.msra.mxu1 %v10560_v2 }
0x15a9   :  { %10562 = vmatprep.subr.bf16.mxu1 %v11264_v11 }
0x15ac   :  { %10564 = vmatpush1.bf16.msra.mxu1 %v10563_v58 }
0x15ad   :  { %10576 = vmatprep.subr.bf16.mxu1 %v14246_v8  ;;  %v8678_v8 = vld [vmem:[%s15172_s23 + $0x488] sm:$0xff] }
0x15af   :  { %7269 = vmatmul.mubr.f32.vlgmr.msra.gmra.mrb[132].mxu1 %v14469_v30  ;;  %v8680_v30 = vld [vmem:[%s15172_s23 + $0x498] sm:$0xff] }
0x15b0   :  { %8614 = vmatprep.mubr.msk.f32.mxu1 %vm1905_vm5, %v14475_v4  ;;  %10578 = vmatpush1.bf16.msra.mxu1 %v14244_v16  ;;  %v8677_v16 = vld [vmem:[%s15172_s23 + $0x480] sm:$0xff]  ;;  %v8662_v4 = vld [vmem:[%s15172_s23 + $0x408] sm:$0xff] }
0x15b1   :  { %10581 = vmatprep.subr.msk.bf16.mxu1 %vm11634_vm3, %v14252_v55  ;;  %v10618_v55 = vpack.c.bf16 %v8678_v8, %v8677_v16  ;;  %v8671_v16 = vld [vmem:[%s15172_s23 + $0x450] sm:$0xff]  ;;  %v8672_v8 = vld [vmem:[%s15172_s23 + $0x458] sm:$0xff] }
0x15b3   :  { %7274 = vmatmul.mubr.f32.gmra.mrb[134].mxu1 %v14473_v1  ;;  %v8661_v1 = vld [vmem:[%s15172_s23 + $0x400] sm:$0xff] }
0x15b4   :  { %8615 = vmatprep.mubr.msk.f32.mxu1 %vm1905_vm5, %v14479_v60  ;;  %10584 = vmatpush1.bf16.msk.msra.mxu1 %vm11634_vm3, %v14250_v21  ;;  %v8679_v21 = vld [vmem:[%s15172_s23 + $0x490] sm:$0xff]  ;;  %v10585_v60 = vpack.c.bf16 %v8662_v4, %v8661_v1 }
0x15b5   :  { %10617 = vmatprep.subr.bf16.mxu1 %v11264_v11 }
0x15b6   :  { %10586 = vmatprep.subr.bf16.mxu0 %v10585_v60  ;;  %v8693_v60 = vld [vmem:[%s15172_s23 + $0x500] sm:$0xff] }
0x15b7   :  { %7279 = vmatmul.mubr.f32.gmra.mrb[136].mxu1 %v14477_v53  ;;  %v10621_v53 = vpack.c.bf16 %v8680_v30, %v8679_v21  ;;  %v10605_v21 = vpack.c.bf16 %v8672_v8, %v8671_v16  ;;  %v8656_v30 = vld [vmem:[%s15172_s23 + $0x3d8] sm:$0xff] }
0x15b8   :  { %8616 = vmatprep.mubr.msk.f32.mxu1 %vm1905_vm5, %v14483_v12  ;;  %v8646_v12 = vld [vmem:[%s15172_s23 + $0x388] sm:$0xff] }
0x15bb   :  { %7284 = vmatmul.mubr.f32.gmra.mrb[138].mxu1 %v14481_v7  ;;  %v8645_v7 = vld [vmem:[%s15172_s23 + $0x380] sm:$0xff] }
0x15bc   :  { %8617 = vmatprep.mubr.msk.f32.mxu1 %vm1905_vm5, %v14487_v14  ;;  %v8682_v14 = vld [vmem:[%s15172_s23 + $0x4a8] sm:$0xff] }
0x15bf   :  { %7289 = vmatmul.mubr.f32.gmra.mrb[140].mxu1 %v14485_v28  ;;  %v8681_v28 = vld [vmem:[%s15172_s23 + $0x4a0] sm:$0xff] }
0x15c0   :  { %8618 = vmatprep.mubr.msk.f32.mxu1 %vm1905_vm5, %v14491_v57  ;;  %v10624_v57 = vpack.c.bf16 %v8682_v14, %v8681_v28  ;;  %v8673_v14 = vld [vmem:[%s15172_s23 + $0x460] sm:$0xff] }
0x15c3   :  { %7294 = vmatmul.mubr.f32.gmra.mrb[142].mxu1 %v14489_v36  ;;  %v10587_v36 = vpack.c.bf16 %v8646_v12, %v8645_v7  ;;  %v8694_v7 = vld [vmem:[%s15172_s23 + $0x508] sm:$0xff] }
0x15c4   :  { %8619 = vmatprep.mubr.msk.f32.mxu1 %vm1905_vm5, %v14495_v54  ;;  %v8684_v54 = vld [vmem:[%s15172_s23 + $0x4b8] sm:$0xff]  ;;  %v10642_v28 = vpack.c.bf16 %v8694_v7, %v8693_v60 }
0x15c5   :  { %10588 = vmatpush3.bf16.msra.mxu0 %v10587_v36  ;;  %v8674_v36 = vld [vmem:[%s15172_s23 + $0x468] sm:$0xff] }
0x15c7   :  { %7299 = vmatmul.mubr.f32.gmra.mrb[144].mxu1 %v14493_v17  ;;  %v8683_v17 = vld [vmem:[%s15172_s23 + $0x4b0] sm:$0xff] }
0x15c8   :  { %7504 = vmatprep.mubr.f32.mxu1 %v15218_v33 }
0x15cb   :  { %8638 = vmatmul.mubr.msk.f32.vlgmr.msra.gmra.mrb[146].mxu1 %vm466_vm4, %v14547_v24  ;;  %v10627_v24 = vpack.c.bf16 %v8684_v54, %v8683_v17  ;;  %v8657_v17 = vld [vmem:[%s15172_s23 + $0x3e0] sm:$0xff]  ;;  %v8658_v54 = vld [vmem:[%s15172_s23 + $0x3e8] sm:$0xff] }
0x15cc   :  { %7510 = vmatprep.mubr.f32.mxu1 %v15218_v33  ;;  %10619 = vmatpush1.bf16.msra.mxu1 %v10618_v55  ;;  %v8655_v55 = vld [vmem:[%s15172_s23 + $0x3d0] sm:$0xff] }
0x15cd   :  { %10620 = vmatprep.subr.bf16.mxu1 %v11264_v11  ;;  %v10607_v4 = vpack.c.bf16 %v8656_v30, %v8655_v55 }
0x15cf   :  { %8639 = vmatmul.mubr.msk.f32.gmra.mrb[148].mxu1 %vm466_vm4, %v14564_v45  ;;  %v8663_v45 = vld [vmem:[%s15172_s23 + $0x410] sm:$0xff] }
0x15d0   :  { %7516 = vmatprep.mubr.f32.mxu1 %v15218_v33  ;;  %10622 = vmatpush1.bf16.msra.mxu1 %v10621_v53 }
0x15d1   :  { %10623 = vmatprep.subr.bf16.mxu1 %v11264_v11 }
0x15d3   :  { %8640 = vmatmul.mubr.msk.f32.gmra.mrb[150].mxu1 %vm466_vm4, %v14582_v35  ;;  %v8664_v35 = vld [vmem:[%s15172_s23 + $0x418] sm:$0xff] }
0x15d4   :  { %7522 = vmatprep.mubr.f32.mxu1 %v15218_v33  ;;  %10625 = vmatpush1.bf16.msra.mxu1 %v10624_v57  ;;  %v10609_v57 = vpack.c.bf16 %v8674_v36, %v8673_v14 }
0x15d5   :  { %10626 = vmatprep.subr.bf16.mxu1 %v11264_v11 }
0x15d7   :  { %8641 = vmatmul.mubr.msk.f32.gmra.mrb[152].mxu1 %vm466_vm4, %v14599_v23  ;;  %v10589_v23 = vpack.c.bf16 %v8664_v35, %v8663_v45  ;;  %v10611_v45 = vpack.c.bf16 %v8658_v54, %v8657_v17 }
0x15d8   :  { %7528 = vmatprep.mubr.f32.mxu1 %v15218_v33  ;;  %10628 = vmatpush1.bf16.msra.mxu1 %v10627_v24 }
0x15d9   :  { %10629 = vmatprep.subr.bf16.mxu1 %v11264_v11  ;;  %10590 = vmatprep.subr.bf16.mxu0 %v10589_v23  ;;  %v8695_v23 = vld [vmem:[%s15172_s23 + $0x510] sm:$0xff] }
0x15db   :  { %8642 = vmatmul.mubr.msk.f32.gmra.mrb[154].mxu1 %vm466_vm4, %v14616_v18  ;;  %v8647_v18 = vld [vmem:[%s15172_s23 + $0x390] sm:$0xff] }
0x15dc   :  { %7534 = vmatprep.mubr.f32.mxu1 %v15218_v33  ;;  %10631 = vmatpush1.bf16.msra.mxu1 %v10630_v43  ;;  %v10613_v43 = vpack.c.bf16 %v8676_v29, %v8675_v27 }
0x15dd   :  { %10632 = vmatprep.subr.bf16.mxu1 %v11264_v11 }
0x15df   :  { %8643 = vmatmul.mubr.msk.f32.gmra.mrb[156].mxu1 %vm466_vm4, %v14639_v50  ;;  %v8648_v50 = vld [vmem:[%s15172_s23 + $0x398] sm:$0xff] }
0x15e0   :  { %7540 = vmatprep.mubr.f32.mxu1 %v15218_v33  ;;  %10634 = vmatpush1.bf16.msra.mxu1 %v10633_v13  ;;  %v10639_v33 = vpack.c.bf16 %v8692_v34, %v8691_v6  ;;  %v7401_v13 = vpop.f32.mrb[109].mxu0 }
0x15e1   :  { %10635 = vmatprep.subr.bf16.mxu1 %v11264_v11  ;;  %7689 = vmatprep.mubr.f32.mxu0 %v7401_v13 }
0x15e3   :  { %8644 = vmatmul.mubr.msk.f32.gmra.mrb[158].mxu1 %vm466_vm4, %v14660_v61  ;;  %v10591_v61 = vpack.c.bf16 %v8648_v50, %v8647_v18  ;;  %v8696_v18 = vld [vmem:[%s15172_s23 + $0x518] sm:$0xff] }
0x15e4   :  { %10637 = vmatpush1.bf16.msra.mxu1 %v10636_v62 }
0x15e5   :  { %10592 = vmatpush3.bf16.msra.mxu0 %v10591_v61  ;;  %10638 = vmatprep.subr.bf16.mxu1 %v11264_v11  ;;  %v10645_v61 = vpack.c.bf16 %v8696_v18, %v8695_v23 }
0x15e6   :  { %10594 = vmatprep.subr.bf16.mxu0 %v10593_v3 }
0x15e8   :  { %10640 = vmatpush1.bf16.msra.mxu1 %v10639_v33 }
0x15e9   :  { %10596 = vmatpush3.bf16.msra.mxu0 %v10595_v42  ;;  %10641 = vmatprep.subr.bf16.mxu1 %v11264_v11  ;;  %v8698_v42 = vld [vmem:[%s15172_s23 + $0x528] sm:$0xff] }
0x15ea   :  { %10598 = vmatprep.subr.bf16.mxu0 %v10597_v20  ;;  %v8699_v20 = vld [vmem:[%s15172_s23 + $0x530] sm:$0xff] }
0x15ec   :  { %10643 = vmatpush1.bf16.msra.mxu1 %v10642_v28 }
0x15ed   :  { %10600 = vmatpush3.bf16.msra.mxu0 %v10599_v37  ;;  %10644 = vmatprep.subr.bf16.mxu1 %v11264_v11 }
0x15ee   :  { %10602 = vmatprep.subr.bf16.mxu0 %v10601_v51 }
0x15f0   :  { %10646 = vmatpush1.bf16.msra.mxu1 %v10645_v61 }
0x15f1   :  { %10604 = vmatpush3.bf16.msra.mxu0 %v10603_v56  ;;  %10647 = vmatprep.subr.bf16.mxu1 %v11264_v11 }
0x15f2   :  { %10606 = vmatprep.subr.bf16.mxu0 %v10605_v21 }
0x15f5   :  { %10608 = vmatpush3.bf16.msra.mxu0 %v10607_v4 }
0x15f6   :  { %10610 = vmatprep.subr.bf16.mxu0 %v10609_v57 }
0x15f9   :  { %10612 = vmatpush3.bf16.msra.mxu0 %v10611_v45 }
0x15fa   :  { %10614 = vmatprep.subr.bf16.mxu0 %v10613_v43 }
0x15fd   :  { %10616 = vmatpush3.bf16.msra.mxu0 %v10615_v52 }
0x1600   :  { %7690 = vmatmul.mubr.f32.vlgmr.msra.gmra.mrb[122].mxu0 %v7399_v41 }
0x1602   :  { %v8858_v38 = vpop.f32.mrb[90].mxu1 }
0x1603   :  { %v8859_v47 = vpop.f32.mrb[91].mxu1 }
0x1604   :  { %v14979_v5 = vadd.f32 %v8859_v47, %v8858_v38  ;;  %v8697_v38 = vld [vmem:[%s15172_s23 + $0x520] sm:$0xff] }
0x1605   :  { %v10648_v40 = vpack.c.bf16 %v8698_v42, %v8697_v38 }
0x1606   :  { %v8861_v48 = vpop.f32.mrb[92].mxu1  ;;  %v7405_v37 = vpop.f32.mrb[110].mxu0 }
0x1607   :  { %v8862_v49 = vpop.f32.mrb[93].mxu1  ;;  %10649 = vmatpush1.bf16.msra.mxu1 %v10648_v40 }
0x1608   :  { %v15000_v0 = vadd.f32 %v8862_v49, %v8861_v48  ;;  %10650 = vmatprep.subr.bf16.mxu1 %v11264_v11  ;;  %v10651_v48 = vpack.c.bf16 %v8700_v22, %v8699_v20  ;;  %v7407_v49 = vpop.f32.mrb[111].mxu0 }
0x1609   :  { %7694 = vmatprep.mubr.f32.mxu0 %v7407_v49 }
0x160a   :  { %v8864_v44 = vpop.f32.mrb[94].mxu1  ;;  %7695 = vmatmul.mubr.f32.gmra.mrb[124].mxu0 %v7405_v37 }
0x160b   :  { %v8865_v2 = vpop.f32.mrb[95].mxu1  ;;  %10652 = vmatpush1.bf16.msra.mxu1 %v10651_v48 }
0x160c   :  { %v15021_v58 = vadd.f32 %v8865_v2, %v8864_v44 }
0x160e   :  { %v8867_v1 = vpop.f32.mrb[96].mxu1 }
0x160f   :  { %v8868_v53 = vpop.f32.mrb[97].mxu1 }
0x1610   :  { %v15042_v12 = vadd.f32 %v8868_v53, %v8867_v1  ;;  %v7411_v10 = vpop.f32.mrb[112].mxu0 }
0x1611   :  { %v7413_v25 = vpop.f32.mrb[113].mxu0 }
0x1612   :  { %v8870_v24 = vpop.f32.mrb[98].mxu1  ;;  %7699 = vmatprep.mubr.f32.mxu0 %v7413_v25 }
0x1613   :  { %v8871_v35 = vpop.f32.mrb[99].mxu1  ;;  %7700 = vmatmul.mubr.f32.gmra.mrb[126].mxu0 %v7411_v10 }
0x1614   :  { %v15063_v50 = vadd.f32 %v8871_v35, %v8870_v24  ;;  %v7417_v11 = vpop.f32.mrb[114].mxu0 }
0x1615   :  { %v7419_v62 = vpop.f32.mrb[115].mxu0 }
0x1616   :  { %v8873_v3 = vpop.f32.mrb[100].mxu1  ;;  %7704 = vmatprep.mubr.f32.mxu0 %v7419_v62 }
0x1617   :  { %v8874_v39 = vpop.f32.mrb[101].mxu1  ;;  %7705 = vmatmul.mubr.f32.gmra.mrb[128].mxu0 %v7417_v11 }
0x1618   :  { %v8875_v47 = vadd.f32 %v8874_v39, %v8873_v3  ;;  %v7423_v9 = vpop.f32.mrb[116].mxu0 }
0x1619   :  { %v7425_v46 = vpop.f32.mrb[117].mxu0 }
0x161a   :  { %v8876_v15 = vpop.f32.mrb[102].mxu1  ;;  %7709 = vmatprep.mubr.f32.mxu0 %v7425_v46 }
0x161b   :  { %v8877_v63 = vpop.f32.mrb[103].mxu1  ;;  %7710 = vmatmul.mubr.f32.gmra.mrb[130].mxu0 %v7423_v9 }
0x161c   :  { %v8878_v59 = vadd.f32 %v8877_v63, %v8876_v15 }
0x1620   :  { %v7429_v51 = vpop.f32.mrb[118].mxu0 }
0x1621   :  { %v7431_v26 = vpop.f32.mrb[119].mxu0 }
0x1622   :  { %7714 = vmatprep.mubr.f32.mxu0 %v7431_v26 }
0x1623   :  { %7715 = vmatmul.mubr.f32.gmra.mrb[132].mxu0 %v7429_v51 }
0x1624   :  { %v7435_v19 = vpop.f32.mrb[120].mxu0 }
0x1625   :  { %v7437_v44 = vpop.f32.mrb[121].mxu0 }
0x1626   :  { %7719 = vmatprep.mubr.f32.mxu0 %v7437_v44 }
0x1627   :  { %7720 = vmatmul.mubr.f32.gmra.mrb[134].mxu0 %v7435_v19 }
0x1632   :  { %v7049_v56 = vpop.f32.mrb[104].mxu1 }
0x1633   :  { %v7050_v2 = vadd.f32 %v14979_v5, %v7049_v56  ;;  %v7051_v6 = vpop.f32.mrb[105].mxu1 }
0x1636   :  { %v7054_v34 = vpop.f32.mrb[106].mxu1 }
0x1637   :  { %v7055_v33 = vadd.f32 %v15000_v0, %v7054_v34  ;;  %v7056_v16 = vpop.f32.mrb[107].mxu1 }
0x163a   :  { %v7059_v8 = vpop.f32.mrb[108].mxu1 }
0x163b   :  { %v7060_v21 = vadd.f32 %v15021_v58, %v7059_v8  ;;  %v7061_v55 = vpop.f32.mrb[109].mxu1 }
0x163e   :  { %v7064_v30 = vpop.f32.mrb[110].mxu1 }
0x163f   :  { %v7065_v1 = vadd.f32 %v15042_v12, %v7064_v30  ;;  %v7066_v4 = vpop.f32.mrb[111].mxu1 }
0x1642   :  { %v7069_v53 = vpop.f32.mrb[112].mxu1 }
0x1643   :  { %v7070_v60 = vadd.f32 %v15063_v50, %v7069_v53  ;;  %v7071_v7 = vpop.f32.mrb[113].mxu1 }
0x1646   :  { %v7074_v28 = vpop.f32.mrb[114].mxu1 }
0x1647   :  { %v7075_v5 = vadd.f32 %v8875_v47, %v7074_v28  ;;  %v7076_v14 = vpop.f32.mrb[115].mxu1 }
0x164a   :  { %v7079_v36 = vpop.f32.mrb[116].mxu1 }
0x164b   :  { %v7080_v57 = vadd.f32 %v8878_v59, %v7079_v36  ;;  %v7081_v17 = vpop.f32.mrb[117].mxu1 }
0x1652   :  { %v8911_v0 = vpop.f32.mrb[118].mxu1 }
0x1653   :  { %v8912_v54 = vpop.f32.mrb[119].mxu1 }
0x1654   :  { %v8913_v24 = vadd.f32 %v8912_v54, %v8911_v0 }
0x1656   :  { %v8914_v45 = vpop.f32.mrb[120].mxu1  ;;  %v7171_v58 = vadd.f32 %v8913_v24, %v7050_v2 }
0x1657   :  { %v8915_v35 = vpop.f32.mrb[121].mxu1 }
0x1658   :  { %v8916_v23 = vadd.f32 %v8915_v35, %v8914_v45 }
0x165a   :  { %v8917_v18 = vpop.f32.mrb[122].mxu1  ;;  %v7176_v12 = vadd.f32 %v8916_v23, %v7055_v33 }
0x165b   :  { %v8918_v61 = vpop.f32.mrb[123].mxu1 }
0x165c   :  { %v8919_v27 = vadd.f32 %v8918_v61, %v8917_v18 }
0x165e   :  { %v8920_v29 = vpop.f32.mrb[124].mxu1  ;;  %v7181_v50 = vadd.f32 %v8919_v27, %v7060_v21 }
0x165f   :  { %v8921_v43 = vpop.f32.mrb[125].mxu1 }
0x1660   :  { %v8922_v31 = vadd.f32 %v8921_v43, %v8920_v29 }
0x1662   :  { %v8923_v32 = vpop.f32.mrb[126].mxu1  ;;  %v7186_v3 = vadd.f32 %v8922_v31, %v7065_v1 }
0x1663   :  { %v8924_v52 = vpop.f32.mrb[127].mxu1 }
0x1664   :  { %v8925_v39 = vadd.f32 %v8924_v52, %v8923_v32 }
0x1666   :  { %v8926_v38 = vpop.f32.mrb[128].mxu1  ;;  %v7191_v42 = vadd.f32 %v8925_v39, %v7070_v60 }
0x1667   :  { %v8927_v47 = vpop.f32.mrb[129].mxu1 }
0x1668   :  { %v8928_v40 = vadd.f32 %v8927_v47, %v8926_v38 }
0x166a   :  { %v8929_v41 = vpop.f32.mrb[130].mxu1  ;;  %v7196_v13 = vadd.f32 %v8928_v40, %v7075_v5 }
0x166b   :  { %v8930_v15 = vpop.f32.mrb[131].mxu1 }
0x166c   :  { %v8931_v63 = vadd.f32 %v8930_v15, %v8929_v41  ;;  %v8708_v41 = vld [vmem:[%s15173_s24] ss:$0 sm:$0xff]  ;;  %s11266_s24 = smov [#allocation20]  }
0x166d   :  { %s7902_s21 = sshll.u32 %s11266_s24, 4  ;;  %s7903_s21 = int_to_ptr.vmem [resolvable:$true] %s7902_s21 }
0x166e   :  { %v7201_v20 = vadd.f32 %v8931_v63, %v7080_v57  ;;  %s11209_s1 = scalar_lea.vmem %s7903_s21, 896  ;;  %p11214_p5 = scmp.lt.s32.totalorder %s7903_s21, %s7903_s21 }
0x166f   :  { %p11210_p4 = scmp.ne.s32.totalorder %s7903_s21, %s11209_s1  ;;  %p11215_p6 = scmp.lt.s32.totalorder %s11209_s1, %s11209_s1 }
0x1671   :  { %p11216_p7 = por %p11215_p6, %p11214_p5 }
0x1673   :  { %p11217_p8 = pnand %p11216_p7, %p11210_p4 }
0x1682   :  { %v7270_v22 = vpop.f32.mrb[132].mxu1 }
0x1683   :  { %v15096_v59 = vadd.f32 %v7270_v22, %v7171_v58  ;;  %v7272_v48 = vpop.f32.mrb[133].mxu1 }
0x1686   :  { %v7275_v37 = vpop.f32.mrb[134].mxu1 }
0x1687   :  { %v15098_v49 = vadd.f32 %v7275_v37, %v7176_v12  ;;  %v7277_v10 = vpop.f32.mrb[135].mxu1 }
0x168a   :  { %v7280_v25 = vpop.f32.mrb[136].mxu1 }
0x168b   :  { %v15100_v11 = vadd.f32 %v7280_v25, %v7181_v50  ;;  %v7282_v62 = vpop.f32.mrb[137].mxu1 }
0x168e   :  { %v7285_v9 = vpop.f32.mrb[138].mxu1 }
0x168f   :  { %v15102_v46 = vadd.f32 %v7285_v9, %v7186_v3  ;;  %v7287_v51 = vpop.f32.mrb[139].mxu1 }
0x1692   :  { %v7290_v26 = vpop.f32.mrb[140].mxu1 }
0x1693   :  { %v15104_v19 = vadd.f32 %v7290_v26, %v7191_v42  ;;  %v7292_v44 = vpop.f32.mrb[141].mxu1 }
0x1696   :  { %v7295_v56 = vpop.f32.mrb[142].mxu1 }
0x1697   :  { %v15106_v2 = vadd.f32 %v7295_v56, %v7196_v13  ;;  %v7297_v6 = vpop.f32.mrb[143].mxu1 }
0x169a   :  { %v7300_v34 = vpop.f32.mrb[144].mxu1 }
0x169b   :  { %v15108_v33 = vadd.f32 %v7300_v34, %v7201_v20  ;;  %v7302_v16 = vpop.f32.mrb[145].mxu1 }
0x169e   :  { %v7506_v8 = vpop.f32.mrb[146].mxu1 }
0x169f   :  { %v7508_v21 = vpop.f32.mrb[147].mxu1 }
0x16a0   :  { %8701 = vmatprep.mubr.msk.f32.mxu1 %vm1905_vm5, %v7508_v21 }
0x16a1   :  { %7790 = vmatmul.mubr.f32.vlgmr.msra.gmra.mrb[160].mxu1 %v7506_v8 }
0x16a2   :  { %v7512_v55 = vpop.f32.mrb[148].mxu1 }
0x16a3   :  { %v7514_v30 = vpop.f32.mrb[149].mxu1 }
0x16a4   :  { %8702 = vmatprep.mubr.msk.f32.mxu1 %vm1905_vm5, %v7514_v30 }
0x16a5   :  { %7795 = vmatmul.mubr.f32.gmra.mrb[162].mxu1 %v7512_v55 }
0x16a6   :  { %v7518_v1 = vpop.f32.mrb[150].mxu1 }
0x16a7   :  { %v7520_v4 = vpop.f32.mrb[151].mxu1 }
0x16a8   :  { %8703 = vmatprep.mubr.msk.f32.mxu1 %vm1905_vm5, %v7520_v4 }
0x16a9   :  { %7800 = vmatmul.mubr.f32.gmra.mrb[164].mxu1 %v7518_v1 }
0x16aa   :  { %v7524_v53 = vpop.f32.mrb[152].mxu1 }
0x16ab   :  { %v7526_v60 = vpop.f32.mrb[153].mxu1 }
0x16ac   :  { %8704 = vmatprep.mubr.msk.f32.mxu1 %vm1905_vm5, %v7526_v60 }
0x16ad   :  { %7805 = vmatmul.mubr.f32.gmra.mrb[166].mxu1 %v7524_v53 }
0x16ae   :  { %v7530_v7 = vpop.f32.mrb[154].mxu1 }
0x16af   :  { %v7532_v28 = vpop.f32.mrb[155].mxu1 }
0x16b0   :  { %8705 = vmatprep.mubr.msk.f32.mxu1 %vm1905_vm5, %v7532_v28 }
0x16b1   :  { %7810 = vmatmul.mubr.f32.gmra.mrb[168].mxu1 %v7530_v7 }
0x16b2   :  { %v7536_v5 = vpop.f32.mrb[156].mxu1 }
0x16b3   :  { %v7538_v14 = vpop.f32.mrb[157].mxu1 }
0x16b4   :  { %8706 = vmatprep.mubr.msk.f32.mxu1 %vm1905_vm5, %v7538_v14 }
0x16b5   :  { %7815 = vmatmul.mubr.f32.gmra.mrb[170].mxu1 %v7536_v5 }
0x16b6   :  { %v7542_v36 = vpop.f32.mrb[158].mxu1 }
0x16b7   :  { %v7544_v57 = vpop.f32.mrb[159].mxu1 }
0x16b8   :  { %8707 = vmatprep.mubr.msk.f32.mxu1 %vm1905_vm5, %v7544_v57 }
0x16b9   :  { %7820 = vmatmul.mubr.f32.gmra.mrb[172].mxu1 %v7542_v36 }
0x16d3   :  { %v8964_v17 = vpop.f32.mrb[122].mxu0 }
0x16d4   :  { %v8965_v0 = vpop.f32.mrb[123].mxu0 }
0x16d5   :  { %v8966_v54 = vadd.f32 %v8965_v0, %v8964_v17 }
0x16dd   :  { %v8967_v24 = vpop.f32.mrb[124].mxu0 }
0x16de   :  { %v8968_v45 = vpop.f32.mrb[125].mxu0 }
0x16df   :  { %v8969_v58 = vadd.f32 %v8968_v45, %v8967_v24 }
0x16e6   :  { %v8970_v35 = vpop.f32.mrb[126].mxu0 }
0x16e7   :  { %v8971_v23 = vpop.f32.mrb[127].mxu0 }
0x16e8   :  { %v8972_v18 = vadd.f32 %v8971_v23, %v8970_v35 }
0x16ea   :  { %v8973_v12 = vpop.f32.mrb[128].mxu0 }
0x16eb   :  { %v8974_v61 = vpop.f32.mrb[129].mxu0 }
0x16ec   :  { %v8975_v27 = vadd.f32 %v8974_v61, %v8973_v12 }
0x16ee   :  { %v8976_v29 = vpop.f32.mrb[130].mxu0 }
0x16ef   :  { %v8977_v50 = vpop.f32.mrb[131].mxu0 }
0x16f0   :  { %v8978_v43 = vadd.f32 %v8977_v50, %v8976_v29 }
0x16f6   :  { %v8979_v31 = vpop.f32.mrb[132].mxu0 }
0x16f7   :  { %v8980_v32 = vpop.f32.mrb[133].mxu0 }
0x16f8   :  { %v8981_v3 = vadd.f32 %v8980_v32, %v8979_v31 }
0x16fa   :  { %v8982_v52 = vpop.f32.mrb[134].mxu0 }
0x16fb   :  { %v8983_v39 = vpop.f32.mrb[135].mxu0 }
0x16fc   :  { %v8984_v38 = vadd.f32 %v8983_v39, %v8982_v52 }
0x1774   :  { %v7791_v42 = vpop.f32.mrb[160].mxu1 }
0x1775   :  { %v7792_v47 = vadd.f32 %v8966_v54, %v7791_v42  ;;  %v7793_v40 = vpop.f32.mrb[161].mxu1 }
0x1777   :  { %v7825_v13 = vadd.f32 %v7792_v47, %v15096_v59 }
0x1778   :  { %v7796_v15 = vpop.f32.mrb[162].mxu1 }
0x1779   :  { %v7839_v63 = vadd.f32 %v8708_v41, %v7825_v13  ;;  %v7797_v20 = vadd.f32 %v8969_v58, %v7796_v15  ;;  %v7798_v22 = vpop.f32.mrb[163].mxu1 }
0x177b   :  { %v7846_v48 = vsub.f32 0.0, %v7839_v63  ;;  %v7826_v37 = vadd.f32 %v7797_v20, %v15098_v49 }
0x177c   :  { %v7801_v10 = vpop.f32.mrb[164].mxu1 }
0x177d   :  { %v7853_v25 = vmul.f32 1.442695, %v7846_v48  ;;  %v7840_v62 = vadd.f32 %v8708_v41, %v7826_v37  ;;  %v7802_v9 = vadd.f32 %v8972_v18, %v7801_v10  ;;  %v7803_v51 = vpop.f32.mrb[165].mxu1 }
0x177f   :  { %10939 = vpow2.f32 %v7853_v25  ;;  %v7847_v26 = vsub.f32 0.0, %v7840_v62  ;;  %v7827_v44 = vadd.f32 %v7802_v9, %v15100_v11 }
0x1780   :  { %v7806_v56 = vpop.f32.mrb[166].mxu1 }
0x1781   :  { %v7855_v6 = vmul.f32 1.442695, %v7847_v26  ;;  %v7841_v34 = vadd.f32 %v8708_v41, %v7827_v44  ;;  %v7807_v59 = vadd.f32 %v8975_v27, %v7806_v56  ;;  %v7808_v16 = vpop.f32.mrb[167].mxu1 }
0x1783   :  { %10941 = vpow2.f32 %v7855_v6  ;;  %v7848_v8 = vsub.f32 0.0, %v7841_v34  ;;  %v7828_v21 = vadd.f32 %v7807_v59, %v15102_v46 }
0x1784   :  { %v7811_v55 = vpop.f32.mrb[168].mxu1 }
0x1785   :  { %v7857_v49 = vmul.f32 1.442695, %v7848_v8  ;;  %v7842_v30 = vadd.f32 %v8708_v41, %v7828_v21  ;;  %v7812_v1 = vadd.f32 %v8978_v43, %v7811_v55  ;;  %v7813_v4 = vpop.f32.mrb[169].mxu1 }
0x1787   :  { %10943 = vpow2.f32 %v7857_v49  ;;  %v7849_v53 = vsub.f32 0.0, %v7842_v30  ;;  %v7829_v60 = vadd.f32 %v7812_v1, %v15104_v19 }
0x1788   :  { %v7816_v7 = vpop.f32.mrb[170].mxu1 }
0x1789   :  { %v10940_v11 = vpop.eup %10939  ;;  %v7859_v28 = vmul.f32 1.442695, %v7849_v53  ;;  %v7843_v5 = vadd.f32 %v8708_v41, %v7829_v60  ;;  %v7817_v14 = vadd.f32 %v8981_v3, %v7816_v7  ;;  %v7818_v36 = vpop.f32.mrb[171].mxu1 }
0x178a   :  { %v7867_v57 = vadd.f32 1.0, %v10940_v11 }
0x178b   :  { %10945 = vpow2.f32 %v7859_v28  ;;  %v7850_v17 = vsub.f32 0.0, %v7843_v5  ;;  %v7830_v46 = vadd.f32 %v7817_v14, %v15106_v2 }
0x178c   :  { %10947 = vrcp.f32 %v7867_v57  ;;  %v7821_v0 = vpop.f32.mrb[172].mxu1 }
0x178d   :  { %v10942_v54 = vpop.eup %10941  ;;  %v7861_v24 = vmul.f32 1.442695, %v7850_v17  ;;  %v7844_v45 = vadd.f32 %v8708_v41, %v7830_v46  ;;  %v7822_v58 = vadd.f32 %v8984_v38, %v7821_v0  ;;  %v7823_v35 = vpop.f32.mrb[173].mxu1 }
0x178e   :  { %v7868_v23 = vadd.f32 1.0, %v10942_v54 }
0x178f   :  { %10949 = vpow2.f32 %v7861_v24  ;;  %v7851_v19 = vsub.f32 0.0, %v7844_v45  ;;  %v7831_v18 = vadd.f32 %v7822_v58, %v15108_v33 }
0x1790   :  { %10951 = vrcp.f32 %v7868_v23 }
0x1791   :  { %v10944_v12 = vpop.eup %10943  ;;  %v7863_v61 = vmul.f32 1.442695, %v7851_v19  ;;  %v7845_v27 = vadd.f32 %v8708_v41, %v7831_v18 }
0x1792   :  { %v7869_v29 = vadd.f32 1.0, %v10944_v12 }
0x1793   :  { %10953 = vpow2.f32 %v7863_v61  ;;  %v7852_v50 = vsub.f32 0.0, %v7845_v27 }
0x1794   :  { %10955 = vrcp.f32 %v7869_v29 }
0x1795   :  { %v10946_v2 = vpop.eup %10945  ;;  %v7865_v43 = vmul.f32 1.442695, %v7852_v50 }
0x1796   :  { %v10948_v31 = vpop.eup %10947  ;;  %v7870_v32 = vadd.f32 1.0, %v10946_v2 }
0x1797   :  { %7888 = vst.msk [vmem:[#allocation20] sm:$0xff] %vm466_vm4, %v10948_v31  ;;  %10957 = vpow2.f32 %v7865_v43 }
0x1798   :  { %10959 = vrcp.f32 %v7870_v32 }
0x1799   :  { %v10950_v3 = vpop.eup %10949 }
0x179a   :  { %v10952_v52 = vpop.eup %10951  ;;  %v7871_v39 = vadd.f32 1.0, %v10950_v3 }
0x179b   :  { %7889 = vst.msk [vmem:[#allocation20 + $0x8] sm:$0xff] %vm466_vm4, %v10952_v52 }
0x179c   :  { %10961 = vrcp.f32 %v7871_v39 }
0x179d   :  { %v10954_v33 = vpop.eup %10953 }
0x179e   :  { %v10956_v38 = vpop.eup %10955  ;;  %v7872_v42 = vadd.f32 1.0, %v10954_v33 }
0x179f   :  { %7890 = vst.msk [vmem:[#allocation20 + $0x10] sm:$0xff] %vm466_vm4, %v10956_v38 }
0x17a0   :  { %10963 = vrcp.f32 %v7872_v42 }
0x17a1   :  { %v10958_v47 = vpop.eup %10957 }
0x17a2   :  { %v10960_v40 = vpop.eup %10959  ;;  %v7873_v41 = vadd.f32 1.0, %v10958_v47 }
0x17a3   :  { %7891 = vst.msk [vmem:[#allocation20 + $0x18] sm:$0xff] %vm466_vm4, %v10960_v40 }
0x17a4   :  { %10965 = vrcp.f32 %v7873_v41 }
0x17a6   :  { %v10962_v13 = vpop.eup %10961 }
0x17a7   :  { %7892 = vst.msk [vmem:[#allocation20 + $0x20] sm:$0xff] %vm466_vm4, %v10962_v13 }
0x17aa   :  { %v10964_v15 = vpop.eup %10963 }
0x17ab   :  { %7893 = vst.msk [vmem:[#allocation20 + $0x28] sm:$0xff] %vm466_vm4, %v10964_v15 }
0x17ae   :  { %v10966_v63 = vpop.eup %10965 }
0x17af   :  { %7894 = vst.msk [vmem:[#allocation20 + $0x30] sm:$0xff] %vm466_vm4, %v10966_v63 }
0x17b0   :  { %11220 = shalt.err (!%p11217_p8)
}
0x17b1   :  { %s15219_s6 = sld [smem:[#allocation39_spill]] }
0x17b7   :  { %s11221_s13 = scalar_lea.hbm %s15219_s6, 896 }
0x17b8   :  { %p11222_p9 = scmp.ne.s32.totalorder %s15219_s6, %s11221_s13  ;;  %p11225_p10 = scmp.lt.u32.totalorder %s11221_s13, %s15219_s6 }
0x17ba   :  { %p11227_p11 = pnand %p11225_p10, %p11222_p9 }
0x17bc   :  { %11230 = shalt.err (!%p11227_p11)
}
0x17bd   :  { %7908 = dma.vmem_to_hbm [thread:$0]  %s7903_s21, 896, %s15219_s6, [#allocation4], %s15205_s27, %s15205_s27, %s11249_s5  }
0x17be   :  { %11243 = dma.done.wait [#allocation4], 896  }
0x17bf   :  { %11244 = vsyncadd [#allocation4], 4294966400 }
0x17c0   :  { %7914 = vsyncpa [#allocation3], 1 }
0x17c1   :  { %7915 = vsyncpa [#allocation6], 1 }
0x17c2   :  { %7916 = vsyncpa [#allocation9], 1 }
0x17c3   :  { %7917 = vsyncpa [#allocation12], 1 }
0x17c4   :  { %7918 = vsyncpa [#allocation15], 1 }
0x17c5   :  { %7919 = vsyncpa [#allocation18], 1 }
0x17c6   :  { %7920 = vsyncpa [#allocation4], 1 }

</bundles_post_ra>
